<compile_context>
chip_gen: v6e
topology: v6e:2x2x1
jax: 0.10.0
libtpu: 0.0.40
codegen_flags: <defaults>
</compile_context>

<pallas_src>
import functools

import jax
import jax.numpy as jnp
from jax import lax
from jax.experimental import pallas as pl
from jax.experimental.pallas import tpu as pltpu

LANE = 128   # channel dims are padded to multiples of the 128-wide lane dim
TH = 8       # output rows per grid step (spatial row tile)


def _round_up(x, m):
    return (x + m - 1) // m * m


# ---------------------------------------------------------------------------
# Pallas kernel: one (batch, row-tile) step of an equivalent *stride-1* conv.
#   - kh*kw taps accumulated from one resident VMEM slab (main rows + halo rows)
#   - dy handled by sublane-aligned flat-slab views, dx by pltpu.roll of the
#     f32 per-dx partial sum (XLU)
#   - BN scale/bias on the f32 accumulator, optional residual add, optional ReLU
# ---------------------------------------------------------------------------
def _conv_tile(x_ref, xh_ref, w_ref, s_ref, b_ref, r_ref, o_ref,
               *, kh, kw, th, wp, wo, relu):
    k = x_ref.shape[-1]
    n = w_ref.shape[-1]
    m = th * wp

    if kh > 1:
        # main rows + (kh-1) halo rows -> contiguous (th+kh-1, wp, k) slab
        x_all = jnp.concatenate([x_ref[0], xh_ref[0]], axis=0)
    else:
        x_all = x_ref[0]
    rows = x_all.shape[0]
    x_flat = x_all.reshape(rows * wp, k)   # free view: wp % 8 == 0, k % 128 == 0

    acc = None
    for dx in range(kw):
        part = None
        for dy in range(kh):
            # sublane-aligned view (offset dy*wp is a multiple of 8)
            lhs = x_flat[dy * wp:dy * wp + m, :]
            d = jnp.dot(lhs, w_ref[dy * kw + dx],
                        preferred_element_type=jnp.float32)
            part = d if part is None else part + d
        if dx:
            # column shift by dx: one XLU sublane rotate of the f32 partial sum.
            # Wrapped / cross-row garbage only lands in columns >= wo (discarded).
            part = pltpu.roll(part, m - dx, axis=0)
        acc = part if acc is None else acc + part

    acc = acc.reshape(th, wp, n)[:, :wo, :]
    acc = acc * s_ref[...] + b_ref[...]            # folded BN on the f32 acc
    if r_ref is not None:
        acc = acc + r_ref[0].astype(jnp.float32)   # fused residual add
    if relu:
        acc = jnp.maximum(acc, 0.0)
    o_ref[0] = acc.astype(o_ref.dtype)


def _k_halo_res(x, xh, w, s, b, r, o, **cfg):
    _conv_tile(x, xh, w, s, b, r, o, **cfg)


def _k_halo(x, xh, w, s, b, o, **cfg):
    _conv_tile(x, xh, w, s, b, None, o, **cfg)


def _k_plain(x, w, s, b, o, **cfg):
    _conv_tile(x, None, w, s, b, None, o, **cfg)


def _k_res(x, w, s, b, r, o, **cfg):
    _conv_tile(x, None, w, s, b, r, o, **cfg)


# ---------------------------------------------------------------------------
# pallas_call wrapper: row-tiled, halo'd, lane-dense conv + BN (+ residual/ReLU)
# ---------------------------------------------------------------------------
def _conv_call(x_in, cv, *, ho, wo, relu, residual=None):
    """x_in: (B, Hi, Wi, K) bf16, spatially pre-padded input of an equivalent
    stride-1 conv.  cv: prepped conv params.  Returns (B, ho, wo, N) bf16."""
    B, Hi, Wi, K = x_in.shape
    taps, scale, bias = cv["taps"], cv["scale"], cv["bias"]
    kh, kw = cv["kh"], cv["kw"]
    T, K2, N = taps.shape
    assert K2 == K and T == kh * kw

    n_t = -(-ho // TH)
    ho_pad = n_t * TH
    hi_req = ho_pad + kh - 1
    wp = _round_up(max(Wi, wo + kw - 1), 8)        # sublane-aligned slab width
    pad_h = max(0, hi_req - Hi)
    pad_w = wp - Wi
    if pad_h or pad_w:
        x_in = jnp.pad(x_in, ((0, 0), (0, pad_h), (0, pad_w), (0, 0)))

    in_specs = [pl.BlockSpec((1, TH, wp, K), lambda b, i: (b, i, 0, 0))]
    args = [x_in]
    if kh > 1:
        halo = kh - 1
        step = TH // halo                          # TH=8, halo in {1,2}
        in_specs.append(
            pl.BlockSpec((1, halo, wp, K), lambda b, i: (b, (i + 1) * step, 0, 0)))
        args.append(x_in)
    # constant-index blocks: the pipeline keeps weights / BN vectors resident
    in_specs += [
        pl.BlockSpec((T, K, N), lambda b, i: (0, 0, 0)),
        pl.BlockSpec((1, N), lambda b, i: (0, 0)),
        pl.BlockSpec((1, N), lambda b, i: (0, 0)),
    ]
    args += [taps, scale, bias]

    if residual is not None:
        res = residual
        if res.shape[1] != ho_pad:
            res = jnp.pad(res, ((0, 0), (0, ho_pad - res.shape[1]), (0, 0), (0, 0)))
        in_specs.append(pl.BlockSpec((1, TH, wo, N), lambda b, i: (b, i, 0, 0)))
        args.append(res)
        kern = _k_halo_res if kh > 1 else _k_res
    else:
        kern = _k_halo if kh > 1 else _k_plain

    kern = functools.partial(kern, kh=kh, kw=kw, th=TH, wp=wp, wo=wo, relu=relu)

    out = pl.pallas_call(
        kern,
        out_shape=jax.ShapeDtypeStruct((B, ho_pad, wo, N), jnp.bfloat16),
        grid=(B, n_t),
        in_specs=in_specs,
        out_specs=pl.BlockSpec((1, TH, wo, N), lambda b, i: (b, i, 0, 0)),
        compiler_params=pltpu.CompilerParams(
            dimension_semantics=("parallel", "parallel")),
    )(*args)
    if ho_pad != ho:
        out = out[:, :ho]
    return out


# ---------------------------------------------------------------------------
# One-time parameter preprocessing (hoisted out of the jitted forward)
# ---------------------------------------------------------------------------
def _pad_oihw(w, cp_in, cp_out):
    cout, cin = w.shape[0], w.shape[1]
    return jnp.pad(w, ((0, cp_out - cout), (0, cp_in - cin), (0, 0), (0, 0)))


def _bn_vecs(scale, bias, cp_out):
    cout = scale.shape[0]
    s = jnp.pad(scale, (0, cp_out - cout)).reshape(1, cp_out).astype(jnp.float32)
    b = jnp.pad(bias, (0, cp_out - cout)).reshape(1, cp_out).astype(jnp.float32)
    return s, b


def prep_conv_s1(w, scale, bias, cp_in):
    """stride-1 conv (any kh, kw) on a spatially pre-padded input."""
    cout, _, kh, kw = w.shape
    cp_out = _round_up(cout, LANE)
    wt = jnp.transpose(_pad_oihw(w, cp_in, cp_out), (2, 3, 1, 0))
    taps = wt.reshape(kh * kw, cp_in, cp_out).astype(jnp.bfloat16)
    s, b = _bn_vecs(scale, bias, cp_out)
    return dict(taps=taps, scale=s, bias=b, kh=kh, kw=kw)


def prep_conv_s2(w, scale, bias, cp_in):
    """stride-2 padding-1 conv consumed on the space-to-depth input:
    stride-1 ceil(k/2) x ceil(k/2) conv over 4*cp_in channels."""
    cout, _, kh, kw = w.shape
    cp_out = _round_up(cout, LANE)
    wt = jnp.transpose(_pad_oihw(w, cp_in, cp_out), (2, 3, 1, 0))   # (kh,kw,ci,co)
    KH, KW = (kh + 1) // 2, (kw + 1) // 2
    taps = jnp.zeros((KH * KW, 4 * cp_in, cp_out), jnp.float32)
    for DY in range(KH):
        for py in range(2):
            dy = 2 * DY + py
            if dy >= kh:
                continue
            for DX in range(KW):
                for px in range(2):
                    dx = 2 * DX + px
                    if dx >= kw:
                        continue
                    c0 = (py * 2 + px) * cp_in
                    taps = taps.at[DY * KW + DX, c0:c0 + cp_in, :].set(wt[dy, dx])
    s, b = _bn_vecs(scale, bias, cp_out)
    return dict(taps=taps.astype(jnp.bfloat16), scale=s, bias=b, kh=KH, kw=KW)


def prep_downsample_s2(w, scale, bias, cp_in):
    """1x1 stride-2 (padding-0) downsample evaluated on the padding-1
    space-to-depth input shared with conv1: x[2y,2x] == s2d[y, x, parity(1,1)]."""
    cout = w.shape[0]
    cp_out = _round_up(cout, LANE)
    wt = jnp.transpose(_pad_oihw(w, cp_in, cp_out), (2, 3, 1, 0))[0, 0]  # (ci, co)
    taps = jnp.zeros((1, 4 * cp_in, cp_out), jnp.float32)
    taps = taps.at[0, 3 * cp_in:4 * cp_in, :].set(wt)
    s, b = _bn_vecs(scale, bias, cp_out)
    return dict(taps=taps.astype(jnp.bfloat16), scale=s, bias=b, kh=1, kw=1)


def prepare_block_params(raw, cp_in):
    stride = raw["stride"]
    planes = raw["conv1_w"].shape[0]
    cp_mid = _round_up(planes, LANE)
    p = {"stride": stride, "planes": planes, "cp_out": cp_mid}
    if stride == 1:
        p["conv1"] = prep_conv_s1(raw["conv1_w"], *raw["bn1"], cp_in)
        if "ds_w" in raw:
            p["ds"] = prep_conv_s1(raw["ds_w"], *raw["ds_bn"], cp_in)
    else:
        p["conv1"] = prep_conv_s2(raw["conv1_w"], *raw["bn1"], cp_in)
        p["ds"] = prep_downsample_s2(raw["ds_w"], *raw["ds_bn"], cp_in)
    p["conv2"] = prep_conv_s1(raw["conv2_w"], *raw["bn2"], cp_mid)
    return p


# ---------------------------------------------------------------------------
# BasicBlock forward (se=False, cbam=False module defaults)
# ---------------------------------------------------------------------------
def basic_block_forward(x, p):
    """x: (B, H, W, Cp_in) bf16 channel-padded NHWC -> (B, Ho, Wo, Cp_out) bf16."""
    B, H, W, C = x.shape
    if p["stride"] == 1:
        ho, wo = H, W
        x1 = jnp.pad(x, ((0, 0), (1, 1), (1, 1), (0, 0)))      # conv padding
        out = _conv_call(x1, p["conv1"], ho=ho, wo=wo, relu=True)
        identity = (_conv_call(x, p["ds"], ho=ho, wo=wo, relu=False)
                    if "ds" in p else x)
    else:
        ho, wo = (H - 1) // 2 + 1, (W - 1) // 2 + 1
        xp = jnp.pad(x, ((0, 0), (1, 1), (1, 1), (0, 0)))
        Hp, Wq = xp.shape[1], xp.shape[2]
        Hp2, Wq2 = Hp + (Hp & 1), Wq + (Wq & 1)
        if Hp2 != Hp or Wq2 != Wq:
            xp = jnp.pad(xp, ((0, 0), (0, Hp2 - Hp), (0, Wq2 - Wq), (0, 0)))
        xs2d = xp.reshape(B, Hp2 // 2, 2, Wq2 // 2, 2, C)
        xs2d = jnp.transpose(xs2d, (0, 1, 3, 2, 4, 5)).reshape(
            B, Hp2 // 2, Wq2 // 2, 4 * C)
        out = _conv_call(xs2d, p["conv1"], ho=ho, wo=wo, relu=True)
        identity = _conv_call(xs2d, p["ds"], ho=ho, wo=wo, relu=False)
    # conv2 + BN2 + residual add + final ReLU fused into one Pallas kernel
    out = _conv_call(jnp.pad(out, ((0, 0), (1, 1), (1, 1), (0, 0))),
                     p["conv2"], ho=ho, wo=wo, relu=True, residual=identity)
    return out


def basic_blocks_apply(x_nchw, prepped):
    """NCHW f32 in / NCHW f32 out (PyTorch convention); NHWC bf16 inside."""
    x = jnp.transpose(x_nchw, (0, 2, 3, 1)).astype(jnp.float32)
    c_in = x.shape[-1]
    cp = _round_up(c_in, LANE)
    x = jnp.pad(x, ((0, 0), (0, 0), (0, 0), (0, cp - c_in))).astype(jnp.bfloat16)
    for p in prepped:
        x = basic_block_forward(x, p)
    x = x[..., :prepped[-1]["planes"]].astype(jnp.float32)
    return jnp.transpose(x, (0, 3, 1, 2))


# ---------------------------------------------------------------------------
# Deterministic parameters (BatchNorm in inference mode with synthetic stats)
# ---------------------------------------------------------------------------
class ParamGen:
    def __init__(self, seed=0):
        self.key = jax.random.PRNGKey(seed)

    def next(self):
        self.key, k = jax.random.split(self.key)
        return k

    def conv_w(self, cout, cin, kh, kw):
        fan_in = cin * kh * kw
        return jax.random.normal(self.next(), (cout, cin, kh, kw),
                                 jnp.float32) * jnp.sqrt(2.0 / fan_in)

    def bn(self, c):
        gamma = 1.0 + 0.1 * jax.random.normal(self.next(), (c,), jnp.float32)
        beta = 0.1 * jax.random.normal(self.next(), (c,), jnp.float32)
        mean = 0.1 * jax.random.normal(self.next(), (c,), jnp.float32)
        var = 1.0 + 0.1 * jax.random.uniform(self.next(), (c,), jnp.float32)
        scale = gamma / jnp.sqrt(var + 1e-5)
        bias = beta - mean * scale
        return scale, bias


def make_block_params(pg, inplanes, planes, stride=1, downsample=False):
    p = {
        "conv1_w": pg.conv_w(planes, inplanes, 3, 3),
        "bn1": pg.bn(planes),
        "conv2_w": pg.conv_w(planes, planes, 3, 3),
        "bn2": pg.bn(planes),
        "stride": stride,
    }
    if downsample:
        p["ds_w"] = pg.conv_w(planes, inplanes, 1, 1)
        p["ds_bn"] = pg.bn(planes)
    return p


# Pure-JAX f32 reference (mirrors the PyTorch BasicBlock.forward)
def _conv_ref(x, w, scale, bias, stride, padding, relu=False, residual=None):
    out = lax.conv_general_dilated(
        x, jnp.transpose(w, (2, 3, 1, 0)),
        window_strides=(stride, stride),
        padding=((padding, padding), (padding, padding)),
        dimension_numbers=("NHWC", "HWIO", "NHWC"))
    out = out * scale + bias
    if residual is not None:
        out = out + residual
    if relu:
        out = jnp.maximum(out, 0.0)
    return out


def _block_ref(x, p):
    identity = x
    out = _conv_ref(x, p["conv1_w"], *p["bn1"], p["stride"], 1, relu=True)
    if "ds_w" in p:
        identity = _conv_ref(x, p["ds_w"], *p["ds_bn"], p["stride"], 0)
    out = _conv_ref(out, p["conv2_w"], *p["bn2"], 1, 1, relu=True, residual=identity)
    return out


if __name__ == "__main__":
    pg = ParamGen(0)
    # block 1: default BasicBlock config (stride=1, downsample=None)
    raw1 = make_block_params(pg, 64, 64, stride=1, downsample=False)
    # block 2: stride=2 with 1x1-conv+BN downsample (exercises the downsample branch)
    raw2 = make_block_params(pg, 64, 128, stride=2, downsample=True)
    raws = [raw1, raw2]

    # one-time weight/BN preprocessing (hoisted out of the jitted forward)
    prepped, cp = [], _round_up(64, LANE)
    for r in raws:
        pp = prepare_block_params(r, cp)
        prepped.append(pp)
        cp = pp["cp_out"]

    x = jax.random.normal(jax.random.PRNGKey(0), (2, 64, 32, 32), jnp.float32)

    fwd = jax.jit(lambda inp: basic_blocks_apply(inp, prepped))
    out = jax.block_until_ready(fwd(x))
    assert out.shape == (2, 128, 16, 16), out.shape
    assert bool(jnp.all(jnp.isfinite(out)))

    # correctness vs. pure-JAX f32 reference (bf16 MXU tolerance)
    xr = jnp.transpose(x, (0, 2, 3, 1))
    ref = _block_ref(xr, raw1)
    ref = _block_ref(ref, raw2)
    ref = jnp.transpose(ref, (0, 3, 1, 2))
    err = float(jnp.max(jnp.abs(out - ref)))
    assert err < 0.05 * (1.0 + float(jnp.max(jnp.abs(ref)))), err

    print("KERNEL_OK")
</pallas_src>

<mosaic_0001>
module attributes {stable_mosaic.version = 11 : i64} {
  func.func @_k_halo(%arg0: i32, %arg1: i32, %arg2: memref<1x8x40x128xbf16, #tpu.memory_space<vmem>>, %arg3: memref<1x2x40x128xbf16, #tpu.memory_space<vmem>>, %arg4: memref<9x128x128xbf16, #tpu.memory_space<vmem>>, %arg5: memref<1x128xf32, #tpu.memory_space<vmem>>, %arg6: memref<1x128xf32, #tpu.memory_space<vmem>>, %arg7: memref<1x8x32x128xbf16, #tpu.memory_space<vmem>>) attributes {dimension_semantics = [#tpu.dimension_semantics<parallel>, #tpu.dimension_semantics<parallel>], iteration_bounds = array<i64: 2, 4>, scalar_prefetch = 0 : i64, scratch_operands = 0 : i64, tpu.core_type = #tpu.core_type<tc>, window_params = [{transform_indices = @transform_0, window_bounds = array<i64: 1, 8, 40, 128>}, {transform_indices = @transform_1, window_bounds = array<i64: 1, 2, 40, 128>}, {pipeline_mode = #tpu.pipeline_mode<synchronous>, transform_indices = @transform_2, window_bounds = array<i64: 9, 128, 128>}, {pipeline_mode = #tpu.pipeline_mode<synchronous>, transform_indices = @transform_3, window_bounds = array<i64: 1, 128>}, {pipeline_mode = #tpu.pipeline_mode<synchronous>, transform_indices = @transform_4, window_bounds = array<i64: 1, 128>}, {transform_indices = @transform_5, window_bounds = array<i64: 1, 8, 32, 128>}]} {
    %c0 = arith.constant 0 : index
    %c0_0 = arith.constant 0 : index
    %c0_1 = arith.constant 0 : index
    %c0_2 = arith.constant 0 : index
    %0 = vector.load %arg2[%c0, %c0_0, %c0_1, %c0_2] : memref<1x8x40x128xbf16, #tpu.memory_space<vmem>>, vector<1x8x40x128xbf16>
    %1 = vector.shape_cast %0 : vector<1x8x40x128xbf16> to vector<8x40x128xbf16>
    %c0_3 = arith.constant 0 : index
    %c0_4 = arith.constant 0 : index
    %c0_5 = arith.constant 0 : index
    %c0_6 = arith.constant 0 : index
    %2 = vector.load %arg3[%c0_3, %c0_4, %c0_5, %c0_6] : memref<1x2x40x128xbf16, #tpu.memory_space<vmem>>, vector<1x2x40x128xbf16>
    %3 = vector.shape_cast %2 : vector<1x2x40x128xbf16> to vector<2x40x128xbf16>
    %4 = tpu.concatenate %1, %3 in 0 : vector<8x40x128xbf16>, vector<2x40x128xbf16> -> vector<10x40x128xbf16>
    %5 = vector.shape_cast %4 : vector<10x40x128xbf16> to vector<400x128xbf16>
    %6 = vector.extract_strided_slice %5 {offsets = [0, 0], sizes = [320, 128], strides = [1, 1]} : vector<400x128xbf16> to vector<320x128xbf16>
    %c0_7 = arith.constant 0 : index
    %c0_8 = arith.constant 0 : index
    %c0_9 = arith.constant 0 : index
    %7 = vector.load %arg4[%c0_7, %c0_8, %c0_9] : memref<9x128x128xbf16, #tpu.memory_space<vmem>>, vector<1x128x128xbf16>
    %8 = vector.shape_cast %7 : vector<1x128x128xbf16> to vector<128x128xbf16>
    %cst = arith.constant dense<0.000000e+00> : vector<320x128xf32>
    %9 = tpu.matmul %6, %8, %cst {dimension_numbers = #tpu.dot_dimension_numbers<[1], [0], [0], [1], [0, 0, 1, 1], [], []>} : vector<320x128xbf16>, vector<128x128xbf16>, vector<320x128xf32> -> vector<320x128xf32>
    %10 = vector.extract_strided_slice %5 {offsets = [40, 0], sizes = [320, 128], strides = [1, 1]} : vector<400x128xbf16> to vector<320x128xbf16>
    %c3 = arith.constant 3 : index
    %c0_10 = arith.constant 0 : index
    %c0_11 = arith.constant 0 : index
    %11 = vector.load %arg4[%c3, %c0_10, %c0_11] : memref<9x128x128xbf16, #tpu.memory_space<vmem>>, vector<1x128x128xbf16>
    %12 = vector.shape_cast %11 : vector<1x128x128xbf16> to vector<128x128xbf16>
    %cst_12 = arith.constant dense<0.000000e+00> : vector<320x128xf32>
    %13 = tpu.matmul %10, %12, %cst_12 {dimension_numbers = #tpu.dot_dimension_numbers<[1], [0], [0], [1], [0, 0, 1, 1], [], []>} : vector<320x128xbf16>, vector<128x128xbf16>, vector<320x128xf32> -> vector<320x128xf32>
    %14 = arith.addf %9, %13 : vector<320x128xf32>
    %15 = vector.extract_strided_slice %5 {offsets = [80, 0], sizes = [320, 128], strides = [1, 1]} : vector<400x128xbf16> to vector<320x128xbf16>
    %c6 = arith.constant 6 : index
    %c0_13 = arith.constant 0 : index
    %c0_14 = arith.constant 0 : index
    %16 = vector.load %arg4[%c6, %c0_13, %c0_14] : memref<9x128x128xbf16, #tpu.memory_space<vmem>>, vector<1x128x128xbf16>
    %17 = vector.shape_cast %16 : vector<1x128x128xbf16> to vector<128x128xbf16>
    %cst_15 = arith.constant dense<0.000000e+00> : vector<320x128xf32>
    %18 = tpu.matmul %15, %17, %cst_15 {dimension_numbers = #tpu.dot_dimension_numbers<[1], [0], [0], [1], [0, 0, 1, 1], [], []>} : vector<320x128xbf16>, vector<128x128xbf16>, vector<320x128xf32> -> vector<320x128xf32>
    %19 = arith.addf %14, %18 : vector<320x128xf32>
    %20 = vector.extract_strided_slice %5 {offsets = [0, 0], sizes = [320, 128], strides = [1, 1]} : vector<400x128xbf16> to vector<320x128xbf16>
    %c1 = arith.constant 1 : index
    %c0_16 = arith.constant 0 : index
    %c0_17 = arith.constant 0 : index
    %21 = vector.load %arg4[%c1, %c0_16, %c0_17] : memref<9x128x128xbf16, #tpu.memory_space<vmem>>, vector<1x128x128xbf16>
    %22 = vector.shape_cast %21 : vector<1x128x128xbf16> to vector<128x128xbf16>
    %cst_18 = arith.constant dense<0.000000e+00> : vector<320x128xf32>
    %23 = tpu.matmul %20, %22, %cst_18 {dimension_numbers = #tpu.dot_dimension_numbers<[1], [0], [0], [1], [0, 0, 1, 1], [], []>} : vector<320x128xbf16>, vector<128x128xbf16>, vector<320x128xf32> -> vector<320x128xf32>
    %24 = vector.extract_strided_slice %5 {offsets = [40, 0], sizes = [320, 128], strides = [1, 1]} : vector<400x128xbf16> to vector<320x128xbf16>
    %c4 = arith.constant 4 : index
    %c0_19 = arith.constant 0 : index
    %c0_20 = arith.constant 0 : index
    %25 = vector.load %arg4[%c4, %c0_19, %c0_20] : memref<9x128x128xbf16, #tpu.memory_space<vmem>>, vector<1x128x128xbf16>
    %26 = vector.shape_cast %25 : vector<1x128x128xbf16> to vector<128x128xbf16>
    %cst_21 = arith.constant dense<0.000000e+00> : vector<320x128xf32>
    %27 = tpu.matmul %24, %26, %cst_21 {dimension_numbers = #tpu.dot_dimension_numbers<[1], [0], [0], [1], [0, 0, 1, 1], [], []>} : vector<320x128xbf16>, vector<128x128xbf16>, vector<320x128xf32> -> vector<320x128xf32>
    %28 = arith.addf %23, %27 : vector<320x128xf32>
    %29 = vector.extract_strided_slice %5 {offsets = [80, 0], sizes = [320, 128], strides = [1, 1]} : vector<400x128xbf16> to vector<320x128xbf16>
    %c7 = arith.constant 7 : index
    %c0_22 = arith.constant 0 : index
    %c0_23 = arith.constant 0 : index
    %30 = vector.load %arg4[%c7, %c0_22, %c0_23] : memref<9x128x128xbf16, #tpu.memory_space<vmem>>, vector<1x128x128xbf16>
    %31 = vector.shape_cast %30 : vector<1x128x128xbf16> to vector<128x128xbf16>
    %cst_24 = arith.constant dense<0.000000e+00> : vector<320x128xf32>
    %32 = tpu.matmul %29, %31, %cst_24 {dimension_numbers = #tpu.dot_dimension_numbers<[1], [0], [0], [1], [0, 0, 1, 1], [], []>} : vector<320x128xbf16>, vector<128x128xbf16>, vector<320x128xf32> -> vector<320x128xf32>
    %33 = arith.addf %28, %32 : vector<320x128xf32>
    %c319_i32 = arith.constant 319 : i32
    %34 = tpu.dynamic_rotate %33 by %c319_i32 dim 0 : vector<320x128xf32>, i32 -> vector<320x128xf32>
    %35 = arith.addf %19, %34 : vector<320x128xf32>
    %36 = vector.extract_strided_slice %5 {offsets = [0, 0], sizes = [320, 128], strides = [1, 1]} : vector<400x128xbf16> to vector<320x128xbf16>
    %c2 = arith.constant 2 : index
    %c0_25 = arith.constant 0 : index
    %c0_26 = arith.constant 0 : index
    %37 = vector.load %arg4[%c2, %c0_25, %c0_26] : memref<9x128x128xbf16, #tpu.memory_space<vmem>>, vector<1x128x128xbf16>
    %38 = vector.shape_cast %37 : vector<1x128x128xbf16> to vector<128x128xbf16>
    %cst_27 = arith.constant dense<0.000000e+00> : vector<320x128xf32>
    %39 = tpu.matmul %36, %38, %cst_27 {dimension_numbers = #tpu.dot_dimension_numbers<[1], [0], [0], [1], [0, 0, 1, 1], [], []>} : vector<320x128xbf16>, vector<128x128xbf16>, vector<320x128xf32> -> vector<320x128xf32>
    %40 = vector.extract_strided_slice %5 {offsets = [40, 0], sizes = [320, 128], strides = [1, 1]} : vector<400x128xbf16> to vector<320x128xbf16>
    %c5 = arith.constant 5 : index
    %c0_28 = arith.constant 0 : index
    %c0_29 = arith.constant 0 : index
    %41 = vector.load %arg4[%c5, %c0_28, %c0_29] : memref<9x128x128xbf16, #tpu.memory_space<vmem>>, vector<1x128x128xbf16>
    %42 = vector.shape_cast %41 : vector<1x128x128xbf16> to vector<128x128xbf16>
    %cst_30 = arith.constant dense<0.000000e+00> : vector<320x128xf32>
    %43 = tpu.matmul %40, %42, %cst_30 {dimension_numbers = #tpu.dot_dimension_numbers<[1], [0], [0], [1], [0, 0, 1, 1], [], []>} : vector<320x128xbf16>, vector<128x128xbf16>, vector<320x128xf32> -> vector<320x128xf32>
    %44 = arith.addf %39, %43 : vector<320x128xf32>
    %45 = vector.extract_strided_slice %5 {offsets = [80, 0], sizes = [320, 128], strides = [1, 1]} : vector<400x128xbf16> to vector<320x128xbf16>
    %c8 = arith.constant 8 : index
    %c0_31 = arith.constant 0 : index
    %c0_32 = arith.constant 0 : index
    %46 = vector.load %arg4[%c8, %c0_31, %c0_32] : memref<9x128x128xbf16, #tpu.memory_space<vmem>>, vector<1x128x128xbf16>
    %47 = vector.shape_cast %46 : vector<1x128x128xbf16> to vector<128x128xbf16>
    %cst_33 = arith.constant dense<0.000000e+00> : vector<320x128xf32>
    %48 = tpu.matmul %45, %47, %cst_33 {dimension_numbers = #tpu.dot_dimension_numbers<[1], [0], [0], [1], [0, 0, 1, 1], [], []>} : vector<320x128xbf16>, vector<128x128xbf16>, vector<320x128xf32> -> vector<320x128xf32>
    %49 = arith.addf %44, %48 : vector<320x128xf32>
    %c318_i32 = arith.constant 318 : i32
    %50 = tpu.dynamic_rotate %49 by %c318_i32 dim 0 : vector<320x128xf32>, i32 -> vector<320x128xf32>
    %51 = arith.addf %35, %50 : vector<320x128xf32>
    %52 = vector.shape_cast %51 : vector<320x128xf32> to vector<8x40x128xf32>
    %53 = vector.extract_strided_slice %52 {offsets = [0, 0, 0], sizes = [8, 32, 128], strides = [1, 1, 1]} : vector<8x40x128xf32> to vector<8x32x128xf32>
    %c0_34 = arith.constant 0 : index
    %c0_35 = arith.constant 0 : index
    %54 = vector.load %arg5[%c0_34, %c0_35] : memref<1x128xf32, #tpu.memory_space<vmem>>, vector<1x128xf32>
    %55 = vector.shape_cast %54 : vector<1x128xf32> to vector<1x1x128xf32>
    %56 = vector.broadcast %55 : vector<1x1x128xf32> to vector<8x32x128xf32>
    %57 = arith.mulf %53, %56 : vector<8x32x128xf32>
    %c0_36 = arith.constant 0 : index
    %c0_37 = arith.constant 0 : index
    %58 = vector.load %arg6[%c0_36, %c0_37] : memref<1x128xf32, #tpu.memory_space<vmem>>, vector<1x128xf32>
    %59 = vector.shape_cast %58 : vector<1x128xf32> to vector<1x1x128xf32>
    %60 = vector.broadcast %59 : vector<1x1x128xf32> to vector<8x32x128xf32>
    %61 = arith.addf %57, %60 : vector<8x32x128xf32>
    %cst_38 = arith.constant 0.000000e+00 : f32
    %62 = vector.broadcast %cst_38 : f32 to vector<8x32x128xf32>
    %63 = arith.maximumf %61, %62 : vector<8x32x128xf32>
    %64 = arith.truncf %63 : vector<8x32x128xf32> to vector<8x32x128xbf16>
    %c0_39 = arith.constant 0 : index
    %c0_40 = arith.constant 0 : index
    %c0_41 = arith.constant 0 : index
    %c0_42 = arith.constant 0 : index
    %65 = vector.load %arg7[%c0_39, %c0_40, %c0_41, %c0_42] : memref<1x8x32x128xbf16, #tpu.memory_space<vmem>>, vector<1x8x32x128xbf16>
    %66 = vector.shape_cast %65 : vector<1x8x32x128xbf16> to vector<8x32x128xbf16>
    %67 = vector.shape_cast %64 : vector<8x32x128xbf16> to vector<1x8x32x128xbf16>
    tpu.vector_store %arg7[%c0_39, %c0_40, %c0_41, %c0_42], %67 {strides = array<i32>} : memref<1x8x32x128xbf16, #tpu.memory_space<vmem>>, vector<1x8x32x128xbf16>,
    return
  }
  func.func @transform_0(%arg0: i32, %arg1: i32) -> (i32, i32, i32, i32) {
    %c0_i32 = arith.constant 0 : i32
    %c0_i32_0 = arith.constant 0 : i32
    %c0_i32_1 = arith.constant 0 : i32
    return %arg0, %arg1, %c0_i32, %c0_i32_0 : i32, i32, i32, i32
  }
  func.func @transform_1(%arg0: i32, %arg1: i32) -> (i32, i32, i32, i32) {
    %c1_i32 = arith.constant 1 : i32
    %0 = arith.addi %arg1, %c1_i32 : i32
    %c4_i32 = arith.constant 4 : i32
    %1 = arith.muli %0, %c4_i32 : i32
    %c0_i32 = arith.constant 0 : i32
    %c0_i32_0 = arith.constant 0 : i32
    %c0_i32_1 = arith.constant 0 : i32
    return %arg0, %1, %c0_i32, %c0_i32_0 : i32, i32, i32, i32
  }
  func.func @transform_2(%arg0: i32, %arg1: i32) -> (i32, i32, i32) {
    %c0_i32 = arith.constant 0 : i32
    %c0_i32_0 = arith.constant 0 : i32
    %c0_i32_1 = arith.constant 0 : i32
    %c0_i32_2 = arith.constant 0 : i32
    return %c0_i32, %c0_i32_0, %c0_i32_1 : i32, i32, i32
  }
  func.func @transform_3(%arg0: i32, %arg1: i32) -> (i32, i32) {
    %c0_i32 = arith.constant 0 : i32
    %c0_i32_0 = arith.constant 0 : i32
    %c0_i32_1 = arith.constant 0 : i32
    return %c0_i32, %c0_i32_0 : i32, i32
  }
  func.func @transform_4(%arg0: i32, %arg1: i32) -> (i32, i32) {
    %c0_i32 = arith.constant 0 : i32
    %c0_i32_0 = arith.constant 0 : i32
    %c0_i32_1 = arith.constant 0 : i32
    return %c0_i32, %c0_i32_0 : i32, i32
  }
  func.func @transform_5(%arg0: i32, %arg1: i32) -> (i32, i32, i32, i32) {
    %c0_i32 = arith.constant 0 : i32
    %c0_i32_0 = arith.constant 0 : i32
    %c0_i32_1 = arith.constant 0 : i32
    return %arg0, %arg1, %c0_i32, %c0_i32_0 : i32, i32, i32, i32
  }
}

module attributes {stable_mosaic.version = 11 : i64} {
  func.func @_k_halo_res(%arg0: i32, %arg1: i32, %arg2: memref<1x8x40x128xbf16, #tpu.memory_space<vmem>>, %arg3: memref<1x2x40x128xbf16, #tpu.memory_space<vmem>>, %arg4: memref<9x128x128xbf16, #tpu.memory_space<vmem>>, %arg5: memref<1x128xf32, #tpu.memory_space<vmem>>, %arg6: memref<1x128xf32, #tpu.memory_space<vmem>>, %arg7: memref<1x8x32x128xbf16, #tpu.memory_space<vmem>>, %arg8: memref<1x8x32x128xbf16, #tpu.memory_space<vmem>>) attributes {dimension_semantics = [#tpu.dimension_semantics<parallel>, #tpu.dimension_semantics<parallel>], iteration_bounds = array<i64: 2, 4>, scalar_prefetch = 0 : i64, scratch_operands = 0 : i64, tpu.core_type = #tpu.core_type<tc>, window_params = [{transform_indices = @transform_0, window_bounds = array<i64: 1, 8, 40, 128>}, {transform_indices = @transform_1, window_bounds = array<i64: 1, 2, 40, 128>}, {pipeline_mode = #tpu.pipeline_mode<synchronous>, transform_indices = @transform_2, window_bounds = array<i64: 9, 128, 128>}, {pipeline_mode = #tpu.pipeline_mode<synchronous>, transform_indices = @transform_3, window_bounds = array<i64: 1, 128>}, {pipeline_mode = #tpu.pipeline_mode<synchronous>, transform_indices = @transform_4, window_bounds = array<i64: 1, 128>}, {transform_indices = @transform_5, window_bounds = array<i64: 1, 8, 32, 128>}, {transform_indices = @transform_6, window_bounds = array<i64: 1, 8, 32, 128>}]} {
    %c0 = arith.constant 0 : index
    %c0_0 = arith.constant 0 : index
    %c0_1 = arith.constant 0 : index
    %c0_2 = arith.constant 0 : index
    %0 = vector.load %arg2[%c0, %c0_0, %c0_1, %c0_2] : memref<1x8x40x128xbf16, #tpu.memory_space<vmem>>, vector<1x8x40x128xbf16>
    %1 = vector.shape_cast %0 : vector<1x8x40x128xbf16> to vector<8x40x128xbf16>
    %c0_3 = arith.constant 0 : index
    %c0_4 = arith.constant 0 : index
    %c0_5 = arith.constant 0 : index
    %c0_6 = arith.constant 0 : index
    %2 = vector.load %arg3[%c0_3, %c0_4, %c0_5, %c0_6] : memref<1x2x40x128xbf16, #tpu.memory_space<vmem>>, vector<1x2x40x128xbf16>
    %3 = vector.shape_cast %2 : vector<1x2x40x128xbf16> to vector<2x40x128xbf16>
    %4 = tpu.concatenate %1, %3 in 0 : vector<8x40x128xbf16>, vector<2x40x128xbf16> -> vector<10x40x128xbf16>
    %5 = vector.shape_cast %4 : vector<10x40x128xbf16> to vector<400x128xbf16>
    %6 = vector.extract_strided_slice %5 {offsets = [0, 0], sizes = [320, 128], strides = [1, 1]} : vector<400x128xbf16> to vector<320x128xbf16>
    %c0_7 = arith.constant 0 : index
    %c0_8 = arith.constant 0 : index
    %c0_9 = arith.constant 0 : index
    %7 = vector.load %arg4[%c0_7, %c0_8, %c0_9] : memref<9x128x128xbf16, #tpu.memory_space<vmem>>, vector<1x128x128xbf16>
    %8 = vector.shape_cast %7 : vector<1x128x128xbf16> to vector<128x128xbf16>
    %cst = arith.constant dense<0.000000e+00> : vector<320x128xf32>
    %9 = tpu.matmul %6, %8, %cst {dimension_numbers = #tpu.dot_dimension_numbers<[1], [0], [0], [1], [0, 0, 1, 1], [], []>} : vector<320x128xbf16>, vector<128x128xbf16>, vector<320x128xf32> -> vector<320x128xf32>
    %10 = vector.extract_strided_slice %5 {offsets = [40, 0], sizes = [320, 128], strides = [1, 1]} : vector<400x128xbf16> to vector<320x128xbf16>
    %c3 = arith.constant 3 : index
    %c0_10 = arith.constant 0 : index
    %c0_11 = arith.constant 0 : index
    %11 = vector.load %arg4[%c3, %c0_10, %c0_11] : memref<9x128x128xbf16, #tpu.memory_space<vmem>>, vector<1x128x128xbf16>
    %12 = vector.shape_cast %11 : vector<1x128x128xbf16> to vector<128x128xbf16>
    %cst_12 = arith.constant dense<0.000000e+00> : vector<320x128xf32>
    %13 = tpu.matmul %10, %12, %cst_12 {dimension_numbers = #tpu.dot_dimension_numbers<[1], [0], [0], [1], [0, 0, 1, 1], [], []>} : vector<320x128xbf16>, vector<128x128xbf16>, vector<320x128xf32> -> vector<320x128xf32>
    %14 = arith.addf %9, %13 : vector<320x128xf32>
    %15 = vector.extract_strided_slice %5 {offsets = [80, 0], sizes = [320, 128], strides = [1, 1]} : vector<400x128xbf16> to vector<320x128xbf16>
    %c6 = arith.constant 6 : index
    %c0_13 = arith.constant 0 : index
    %c0_14 = arith.constant 0 : index
    %16 = vector.load %arg4[%c6, %c0_13, %c0_14] : memref<9x128x128xbf16, #tpu.memory_space<vmem>>, vector<1x128x128xbf16>
    %17 = vector.shape_cast %16 : vector<1x128x128xbf16> to vector<128x128xbf16>
    %cst_15 = arith.constant dense<0.000000e+00> : vector<320x128xf32>
    %18 = tpu.matmul %15, %17, %cst_15 {dimension_numbers = #tpu.dot_dimension_numbers<[1], [0], [0], [1], [0, 0, 1, 1], [], []>} : vector<320x128xbf16>, vector<128x128xbf16>, vector<320x128xf32> -> vector<320x128xf32>
    %19 = arith.addf %14, %18 : vector<320x128xf32>
    %20 = vector.extract_strided_slice %5 {offsets = [0, 0], sizes = [320, 128], strides = [1, 1]} : vector<400x128xbf16> to vector<320x128xbf16>
    %c1 = arith.constant 1 : index
    %c0_16 = arith.constant 0 : index
    %c0_17 = arith.constant 0 : index
    %21 = vector.load %arg4[%c1, %c0_16, %c0_17] : memref<9x128x128xbf16, #tpu.memory_space<vmem>>, vector<1x128x128xbf16>
    %22 = vector.shape_cast %21 : vector<1x128x128xbf16> to vector<128x128xbf16>
    %cst_18 = arith.constant dense<0.000000e+00> : vector<320x128xf32>
    %23 = tpu.matmul %20, %22, %cst_18 {dimension_numbers = #tpu.dot_dimension_numbers<[1], [0], [0], [1], [0, 0, 1, 1], [], []>} : vector<320x128xbf16>, vector<128x128xbf16>, vector<320x128xf32> -> vector<320x128xf32>
    %24 = vector.extract_strided_slice %5 {offsets = [40, 0], sizes = [320, 128], strides = [1, 1]} : vector<400x128xbf16> to vector<320x128xbf16>
    %c4 = arith.constant 4 : index
    %c0_19 = arith.constant 0 : index
    %c0_20 = arith.constant 0 : index
    %25 = vector.load %arg4[%c4, %c0_19, %c0_20] : memref<9x128x128xbf16, #tpu.memory_space<vmem>>, vector<1x128x128xbf16>
    %26 = vector.shape_cast %25 : vector<1x128x128xbf16> to vector<128x128xbf16>
    %cst_21 = arith.constant dense<0.000000e+00> : vector<320x128xf32>
    %27 = tpu.matmul %24, %26, %cst_21 {dimension_numbers = #tpu.dot_dimension_numbers<[1], [0], [0], [1], [0, 0, 1, 1], [], []>} : vector<320x128xbf16>, vector<128x128xbf16>, vector<320x128xf32> -> vector<320x128xf32>
    %28 = arith.addf %23, %27 : vector<320x128xf32>
    %29 = vector.extract_strided_slice %5 {offsets = [80, 0], sizes = [320, 128], strides = [1, 1]} : vector<400x128xbf16> to vector<320x128xbf16>
    %c7 = arith.constant 7 : index
    %c0_22 = arith.constant 0 : index
    %c0_23 = arith.constant 0 : index
    %30 = vector.load %arg4[%c7, %c0_22, %c0_23] : memref<9x128x128xbf16, #tpu.memory_space<vmem>>, vector<1x128x128xbf16>
    %31 = vector.shape_cast %30 : vector<1x128x128xbf16> to vector<128x128xbf16>
    %cst_24 = arith.constant dense<0.000000e+00> : vector<320x128xf32>
    %32 = tpu.matmul %29, %31, %cst_24 {dimension_numbers = #tpu.dot_dimension_numbers<[1], [0], [0], [1], [0, 0, 1, 1], [], []>} : vector<320x128xbf16>, vector<128x128xbf16>, vector<320x128xf32> -> vector<320x128xf32>
    %33 = arith.addf %28, %32 : vector<320x128xf32>
    %c319_i32 = arith.constant 319 : i32
    %34 = tpu.dynamic_rotate %33 by %c319_i32 dim 0 : vector<320x128xf32>, i32 -> vector<320x128xf32>
    %35 = arith.addf %19, %34 : vector<320x128xf32>
    %36 = vector.extract_strided_slice %5 {offsets = [0, 0], sizes = [320, 128], strides = [1, 1]} : vector<400x128xbf16> to vector<320x128xbf16>
    %c2 = arith.constant 2 : index
    %c0_25 = arith.constant 0 : index
    %c0_26 = arith.constant 0 : index
    %37 = vector.load %arg4[%c2, %c0_25, %c0_26] : memref<9x128x128xbf16, #tpu.memory_space<vmem>>, vector<1x128x128xbf16>
    %38 = vector.shape_cast %37 : vector<1x128x128xbf16> to vector<128x128xbf16>
    %cst_27 = arith.constant dense<0.000000e+00> : vector<320x128xf32>
    %39 = tpu.matmul %36, %38, %cst_27 {dimension_numbers = #tpu.dot_dimension_numbers<[1], [0], [0], [1], [0, 0, 1, 1], [], []>} : vector<320x128xbf16>, vector<128x128xbf16>, vector<320x128xf32> -> vector<320x128xf32>
    %40 = vector.extract_strided_slice %5 {offsets = [40, 0], sizes = [320, 128], strides = [1, 1]} : vector<400x128xbf16> to vector<320x128xbf16>
    %c5 = arith.constant 5 : index
    %c0_28 = arith.constant 0 : index
    %c0_29 = arith.constant 0 : index
    %41 = vector.load %arg4[%c5, %c0_28, %c0_29] : memref<9x128x128xbf16, #tpu.memory_space<vmem>>, vector<1x128x128xbf16>
    %42 = vector.shape_cast %41 : vector<1x128x128xbf16> to vector<128x128xbf16>
    %cst_30 = arith.constant dense<0.000000e+00> : vector<320x128xf32>
    %43 = tpu.matmul %40, %42, %cst_30 {dimension_numbers = #tpu.dot_dimension_numbers<[1], [0], [0], [1], [0, 0, 1, 1], [], []>} : vector<320x128xbf16>, vector<128x128xbf16>, vector<320x128xf32> -> vector<320x128xf32>
    %44 = arith.addf %39, %43 : vector<320x128xf32>
    %45 = vector.extract_strided_slice %5 {offsets = [80, 0], sizes = [320, 128], strides = [1, 1]} : vector<400x128xbf16> to vector<320x128xbf16>
    %c8 = arith.constant 8 : index
    %c0_31 = arith.constant 0 : index
    %c0_32 = arith.constant 0 : index
    %46 = vector.load %arg4[%c8, %c0_31, %c0_32] : memref<9x128x128xbf16, #tpu.memory_space<vmem>>, vector<1x128x128xbf16>
    %47 = vector.shape_cast %46 : vector<1x128x128xbf16> to vector<128x128xbf16>
    %cst_33 = arith.constant dense<0.000000e+00> : vector<320x128xf32>
    %48 = tpu.matmul %45, %47, %cst_33 {dimension_numbers = #tpu.dot_dimension_numbers<[1], [0], [0], [1], [0, 0, 1, 1], [], []>} : vector<320x128xbf16>, vector<128x128xbf16>, vector<320x128xf32> -> vector<320x128xf32>
    %49 = arith.addf %44, %48 : vector<320x128xf32>
    %c318_i32 = arith.constant 318 : i32
    %50 = tpu.dynamic_rotate %49 by %c318_i32 dim 0 : vector<320x128xf32>, i32 -> vector<320x128xf32>
    %51 = arith.addf %35, %50 : vector<320x128xf32>
    %52 = vector.shape_cast %51 : vector<320x128xf32> to vector<8x40x128xf32>
    %53 = vector.extract_strided_slice %52 {offsets = [0, 0, 0], sizes = [8, 32, 128], strides = [1, 1, 1]} : vector<8x40x128xf32> to vector<8x32x128xf32>
    %c0_34 = arith.constant 0 : index
    %c0_35 = arith.constant 0 : index
    %54 = vector.load %arg5[%c0_34, %c0_35] : memref<1x128xf32, #tpu.memory_space<vmem>>, vector<1x128xf32>
    %55 = vector.shape_cast %54 : vector<1x128xf32> to vector<1x1x128xf32>
    %56 = vector.broadcast %55 : vector<1x1x128xf32> to vector<8x32x128xf32>
    %57 = arith.mulf %53, %56 : vector<8x32x128xf32>
    %c0_36 = arith.constant 0 : index
    %c0_37 = arith.constant 0 : index
    %58 = vector.load %arg6[%c0_36, %c0_37] : memref<1x128xf32, #tpu.memory_space<vmem>>, vector<1x128xf32>
    %59 = vector.shape_cast %58 : vector<1x128xf32> to vector<1x1x128xf32>
    %60 = vector.broadcast %59 : vector<1x1x128xf32> to vector<8x32x128xf32>
    %61 = arith.addf %57, %60 : vector<8x32x128xf32>
    %c0_38 = arith.constant 0 : index
    %c0_39 = arith.constant 0 : index
    %c0_40 = arith.constant 0 : index
    %c0_41 = arith.constant 0 : index
    %62 = vector.load %arg7[%c0_38, %c0_39, %c0_40, %c0_41] : memref<1x8x32x128xbf16, #tpu.memory_space<vmem>>, vector<1x8x32x128xbf16>
    %63 = vector.shape_cast %62 : vector<1x8x32x128xbf16> to vector<8x32x128xbf16>
    %64 = arith.extf %63 : vector<8x32x128xbf16> to vector<8x32x128xf32>
    %65 = arith.addf %61, %64 : vector<8x32x128xf32>
    %cst_42 = arith.constant 0.000000e+00 : f32
    %66 = vector.broadcast %cst_42 : f32 to vector<8x32x128xf32>
    %67 = arith.maximumf %65, %66 : vector<8x32x128xf32>
    %68 = arith.truncf %67 : vector<8x32x128xf32> to vector<8x32x128xbf16>
    %c0_43 = arith.constant 0 : index
    %c0_44 = arith.constant 0 : index
    %c0_45 = arith.constant 0 : index
    %c0_46 = arith.constant 0 : index
    %69 = vector.load %arg8[%c0_43, %c0_44, %c0_45, %c0_46] : memref<1x8x32x128xbf16, #tpu.memory_space<vmem>>, vector<1x8x32x128xbf16>
    %70 = vector.shape_cast %69 : vector<1x8x32x128xbf16> to vector<8x32x128xbf16>
    %71 = vector.shape_cast %68 : vector<8x32x128xbf16> to vector<1x8x32x128xbf16>
    tpu.vector_store %arg8[%c0_43, %c0_44, %c0_45, %c0_46], %71 {strides = array<i32>} : memref<1x8x32x128xbf16, #tpu.memory_space<vmem>>, vector<1x8x32x128xbf16>,
    return
  }
  func.func @transform_0(%arg0: i32, %arg1: i32) -> (i32, i32, i32, i32) {
    %c0_i32 = arith.constant 0 : i32
    %c0_i32_0 = arith.constant 0 : i32
    %c0_i32_1 = arith.constant 0 : i32
    return %arg0, %arg1, %c0_i32, %c0_i32_0 : i32, i32, i32, i32
  }
  func.func @transform_1(%arg0: i32, %arg1: i32) -> (i32, i32, i32, i32) {
    %c1_i32 = arith.constant 1 : i32
    %0 = arith.addi %arg1, %c1_i32 : i32
    %c4_i32 = arith.constant 4 : i32
    %1 = arith.muli %0, %c4_i32 : i32
    %c0_i32 = arith.constant 0 : i32
    %c0_i32_0 = arith.constant 0 : i32
    %c0_i32_1 = arith.constant 0 : i32
    return %arg0, %1, %c0_i32, %c0_i32_0 : i32, i32, i32, i32
  }
  func.func @transform_2(%arg0: i32, %arg1: i32) -> (i32, i32, i32) {
    %c0_i32 = arith.constant 0 : i32
    %c0_i32_0 = arith.constant 0 : i32
    %c0_i32_1 = arith.constant 0 : i32
    %c0_i32_2 = arith.constant 0 : i32
    return %c0_i32, %c0_i32_0, %c0_i32_1 : i32, i32, i32
  }
  func.func @transform_3(%arg0: i32, %arg1: i32) -> (i32, i32) {
    %c0_i32 = arith.constant 0 : i32
    %c0_i32_0 = arith.constant 0 : i32
    %c0_i32_1 = arith.constant 0 : i32
    return %c0_i32, %c0_i32_0 : i32, i32
  }
  func.func @transform_4(%arg0: i32, %arg1: i32) -> (i32, i32) {
    %c0_i32 = arith.constant 0 : i32
    %c0_i32_0 = arith.constant 0 : i32
    %c0_i32_1 = arith.constant 0 : i32
    return %c0_i32, %c0_i32_0 : i32, i32
  }
  func.func @transform_5(%arg0: i32, %arg1: i32) -> (i32, i32, i32, i32) {
    %c0_i32 = arith.constant 0 : i32
    %c0_i32_0 = arith.constant 0 : i32
    %c0_i32_1 = arith.constant 0 : i32
    return %arg0, %arg1, %c0_i32, %c0_i32_0 : i32, i32, i32, i32
  }
  func.func @transform_6(%arg0: i32, %arg1: i32) -> (i32, i32, i32, i32) {
    %c0_i32 = arith.constant 0 : i32
    %c0_i32_0 = arith.constant 0 : i32
    %c0_i32_1 = arith.constant 0 : i32
    return %arg0, %arg1, %c0_i32, %c0_i32_0 : i32, i32, i32, i32
  }
}

module attributes {stable_mosaic.version = 11 : i64} {
  func.func @_k_plain(%arg0: i32, %arg1: i32, %arg2: memref<1x8x24x512xbf16, #tpu.memory_space<vmem>>, %arg3: memref<1x512x128xbf16, #tpu.memory_space<vmem>>, %arg4: memref<1x128xf32, #tpu.memory_space<vmem>>, %arg5: memref<1x128xf32, #tpu.memory_space<vmem>>, %arg6: memref<1x8x16x128xbf16, #tpu.memory_space<vmem>>) attributes {dimension_semantics = [#tpu.dimension_semantics<parallel>, #tpu.dimension_semantics<parallel>], iteration_bounds = array<i64: 2, 2>, scalar_prefetch = 0 : i64, scratch_operands = 0 : i64, tpu.core_type = #tpu.core_type<tc>, window_params = [{transform_indices = @transform_0, window_bounds = array<i64: 1, 8, 24, 512>}, {pipeline_mode = #tpu.pipeline_mode<synchronous>, transform_indices = @transform_1, window_bounds = array<i64: 1, 512, 128>}, {pipeline_mode = #tpu.pipeline_mode<synchronous>, transform_indices = @transform_2, window_bounds = array<i64: 1, 128>}, {pipeline_mode = #tpu.pipeline_mode<synchronous>, transform_indices = @transform_3, window_bounds = array<i64: 1, 128>}, {transform_indices = @transform_4, window_bounds = array<i64: 1, 8, 16, 128>}]} {
    %c0 = arith.constant 0 : index
    %c0_0 = arith.constant 0 : index
    %c0_1 = arith.constant 0 : index
    %c0_2 = arith.constant 0 : index
    %0 = vector.load %arg2[%c0, %c0_0, %c0_1, %c0_2] : memref<1x8x24x512xbf16, #tpu.memory_space<vmem>>, vector<1x8x24x512xbf16>
    %1 = vector.shape_cast %0 : vector<1x8x24x512xbf16> to vector<8x24x512xbf16>
    %2 = vector.shape_cast %1 : vector<8x24x512xbf16> to vector<192x512xbf16>
    %c0_3 = arith.constant 0 : index
    %c0_4 = arith.constant 0 : index
    %c0_5 = arith.constant 0 : index
    %3 = vector.load %arg3[%c0_3, %c0_4, %c0_5] : memref<1x512x128xbf16, #tpu.memory_space<vmem>>, vector<1x512x128xbf16>
    %4 = vector.shape_cast %3 : vector<1x512x128xbf16> to vector<512x128xbf16>
    %cst = arith.constant dense<0.000000e+00> : vector<192x128xf32>
    %5 = tpu.matmul %2, %4, %cst {dimension_numbers = #tpu.dot_dimension_numbers<[1], [0], [0], [1], [0, 0, 1, 1], [], []>} : vector<192x512xbf16>, vector<512x128xbf16>, vector<192x128xf32> -> vector<192x128xf32>
    %6 = vector.shape_cast %5 : vector<192x128xf32> to vector<8x24x128xf32>
    %7 = vector.extract_strided_slice %6 {offsets = [0, 0, 0], sizes = [8, 16, 128], strides = [1, 1, 1]} : vector<8x24x128xf32> to vector<8x16x128xf32>
    %c0_6 = arith.constant 0 : index
    %c0_7 = arith.constant 0 : index
    %8 = vector.load %arg4[%c0_6, %c0_7] : memref<1x128xf32, #tpu.memory_space<vmem>>, vector<1x128xf32>
    %9 = vector.shape_cast %8 : vector<1x128xf32> to vector<1x1x128xf32>
    %10 = vector.broadcast %9 : vector<1x1x128xf32> to vector<8x16x128xf32>
    %11 = arith.mulf %7, %10 : vector<8x16x128xf32>
    %c0_8 = arith.constant 0 : index
    %c0_9 = arith.constant 0 : index
    %12 = vector.load %arg5[%c0_8, %c0_9] : memref<1x128xf32, #tpu.memory_space<vmem>>, vector<1x128xf32>
    %13 = vector.shape_cast %12 : vector<1x128xf32> to vector<1x1x128xf32>
    %14 = vector.broadcast %13 : vector<1x1x128xf32> to vector<8x16x128xf32>
    %15 = arith.addf %11, %14 : vector<8x16x128xf32>
    %16 = arith.truncf %15 : vector<8x16x128xf32> to vector<8x16x128xbf16>
    %c0_10 = arith.constant 0 : index
    %c0_11 = arith.constant 0 : index
    %c0_12 = arith.constant 0 : index
    %c0_13 = arith.constant 0 : index
    %17 = vector.load %arg6[%c0_10, %c0_11, %c0_12, %c0_13] : memref<1x8x16x128xbf16, #tpu.memory_space<vmem>>, vector<1x8x16x128xbf16>
    %18 = vector.shape_cast %17 : vector<1x8x16x128xbf16> to vector<8x16x128xbf16>
    %19 = vector.shape_cast %16 : vector<8x16x128xbf16> to vector<1x8x16x128xbf16>
    tpu.vector_store %arg6[%c0_10, %c0_11, %c0_12, %c0_13], %19 {strides = array<i32>} : memref<1x8x16x128xbf16, #tpu.memory_space<vmem>>, vector<1x8x16x128xbf16>,
    return
  }
  func.func @transform_0(%arg0: i32, %arg1: i32) -> (i32, i32, i32, i32) {
    %c0_i32 = arith.constant 0 : i32
    %c0_i32_0 = arith.constant 0 : i32
    %c0_i32_1 = arith.constant 0 : i32
    return %arg0, %arg1, %c0_i32, %c0_i32_0 : i32, i32, i32, i32
  }
  func.func @transform_1(%arg0: i32, %arg1: i32) -> (i32, i32, i32) {
    %c0_i32 = arith.constant 0 : i32
    %c0_i32_0 = arith.constant 0 : i32
    %c0_i32_1 = arith.constant 0 : i32
    %c0_i32_2 = arith.constant 0 : i32
    return %c0_i32, %c0_i32_0, %c0_i32_1 : i32, i32, i32
  }
  func.func @transform_2(%arg0: i32, %arg1: i32) -> (i32, i32) {
    %c0_i32 = arith.constant 0 : i32
    %c0_i32_0 = arith.constant 0 : i32
    %c0_i32_1 = arith.constant 0 : i32
    return %c0_i32, %c0_i32_0 : i32, i32
  }
  func.func @transform_3(%arg0: i32, %arg1: i32) -> (i32, i32) {
    %c0_i32 = arith.constant 0 : i32
    %c0_i32_0 = arith.constant 0 : i32
    %c0_i32_1 = arith.constant 0 : i32
    return %c0_i32, %c0_i32_0 : i32, i32
  }
  func.func @transform_4(%arg0: i32, %arg1: i32) -> (i32, i32, i32, i32) {
    %c0_i32 = arith.constant 0 : i32
    %c0_i32_0 = arith.constant 0 : i32
    %c0_i32_1 = arith.constant 0 : i32
    return %arg0, %arg1, %c0_i32, %c0_i32_0 : i32, i32, i32, i32
  }
}

module attributes {stable_mosaic.version = 11 : i64} {
  func.func @_k_halo(%arg0: i32, %arg1: i32, %arg2: memref<1x8x24x512xbf16, #tpu.memory_space<vmem>>, %arg3: memref<1x1x24x512xbf16, #tpu.memory_space<vmem>>, %arg4: memref<4x512x128xbf16, #tpu.memory_space<vmem>>, %arg5: memref<1x128xf32, #tpu.memory_space<vmem>>, %arg6: memref<1x128xf32, #tpu.memory_space<vmem>>, %arg7: memref<1x8x16x128xbf16, #tpu.memory_space<vmem>>) attributes {dimension_semantics = [#tpu.dimension_semantics<parallel>, #tpu.dimension_semantics<parallel>], iteration_bounds = array<i64: 2, 2>, scalar_prefetch = 0 : i64, scratch_operands = 0 : i64, tpu.core_type = #tpu.core_type<tc>, window_params = [{transform_indices = @transform_0, window_bounds = array<i64: 1, 8, 24, 512>}, {transform_indices = @transform_1, window_bounds = array<i64: 1, 1, 24, 512>}, {pipeline_mode = #tpu.pipeline_mode<synchronous>, transform_indices = @transform_2, window_bounds = array<i64: 4, 512, 128>}, {pipeline_mode = #tpu.pipeline_mode<synchronous>, transform_indices = @transform_3, window_bounds = array<i64: 1, 128>}, {pipeline_mode = #tpu.pipeline_mode<synchronous>, transform_indices = @transform_4, window_bounds = array<i64: 1, 128>}, {transform_indices = @transform_5, window_bounds = array<i64: 1, 8, 16, 128>}]} {
    %c0 = arith.constant 0 : index
    %c0_0 = arith.constant 0 : index
    %c0_1 = arith.constant 0 : index
    %c0_2 = arith.constant 0 : index
    %0 = vector.load %arg2[%c0, %c0_0, %c0_1, %c0_2] : memref<1x8x24x512xbf16, #tpu.memory_space<vmem>>, vector<1x8x24x512xbf16>
    %1 = vector.shape_cast %0 : vector<1x8x24x512xbf16> to vector<8x24x512xbf16>
    %c0_3 = arith.constant 0 : index
    %c0_4 = arith.constant 0 : index
    %c0_5 = arith.constant 0 : index
    %c0_6 = arith.constant 0 : index
    %2 = vector.load %arg3[%c0_3, %c0_4, %c0_5, %c0_6] : memref<1x1x24x512xbf16, #tpu.memory_space<vmem>>, vector<1x1x24x512xbf16>
    %3 = vector.shape_cast %2 : vector<1x1x24x512xbf16> to vector<1x24x512xbf16>
    %4 = tpu.concatenate %1, %3 in 0 : vector<8x24x512xbf16>, vector<1x24x512xbf16> -> vector<9x24x512xbf16>
    %5 = vector.shape_cast %4 : vector<9x24x512xbf16> to vector<216x512xbf16>
    %6 = vector.extract_strided_slice %5 {offsets = [0, 0], sizes = [192, 512], strides = [1, 1]} : vector<216x512xbf16> to vector<192x512xbf16>
    %c0_7 = arith.constant 0 : index
    %c0_8 = arith.constant 0 : index
    %c0_9 = arith.constant 0 : index
    %7 = vector.load %arg4[%c0_7, %c0_8, %c0_9] : memref<4x512x128xbf16, #tpu.memory_space<vmem>>, vector<1x512x128xbf16>
    %8 = vector.shape_cast %7 : vector<1x512x128xbf16> to vector<512x128xbf16>
    %cst = arith.constant dense<0.000000e+00> : vector<192x128xf32>
    %9 = tpu.matmul %6, %8, %cst {dimension_numbers = #tpu.dot_dimension_numbers<[1], [0], [0], [1], [0, 0, 1, 1], [], []>} : vector<192x512xbf16>, vector<512x128xbf16>, vector<192x128xf32> -> vector<192x128xf32>
    %10 = vector.extract_strided_slice %5 {offsets = [24, 0], sizes = [192, 512], strides = [1, 1]} : vector<216x512xbf16> to vector<192x512xbf16>
    %c2 = arith.constant 2 : index
    %c0_10 = arith.constant 0 : index
    %c0_11 = arith.constant 0 : index
    %11 = vector.load %arg4[%c2, %c0_10, %c0_11] : memref<4x512x128xbf16, #tpu.memory_space<vmem>>, vector<1x512x128xbf16>
    %12 = vector.shape_cast %11 : vector<1x512x128xbf16> to vector<512x128xbf16>
    %cst_12 = arith.constant dense<0.000000e+00> : vector<192x128xf32>
    %13 = tpu.matmul %10, %12, %cst_12 {dimension_numbers = #tpu.dot_dimension_numbers<[1], [0], [0], [1], [0, 0, 1, 1], [], []>} : vector<192x512xbf16>, vector<512x128xbf16>, vector<192x128xf32> -> vector<192x128xf32>
    %14 = arith.addf %9, %13 : vector<192x128xf32>
    %15 = vector.extract_strided_slice %5 {offsets = [0, 0], sizes = [192, 512], strides = [1, 1]} : vector<216x512xbf16> to vector<192x512xbf16>
    %c1 = arith.constant 1 : index
    %c0_13 = arith.constant 0 : index
    %c0_14 = arith.constant 0 : index
    %16 = vector.load %arg4[%c1, %c0_13, %c0_14] : memref<4x512x128xbf16, #tpu.memory_space<vmem>>, vector<1x512x128xbf16>
    %17 = vector.shape_cast %16 : vector<1x512x128xbf16> to vector<512x128xbf16>
    %cst_15 = arith.constant dense<0.000000e+00> : vector<192x128xf32>
    %18 = tpu.matmul %15, %17, %cst_15 {dimension_numbers = #tpu.dot_dimension_numbers<[1], [0], [0], [1], [0, 0, 1, 1], [], []>} : vector<192x512xbf16>, vector<512x128xbf16>, vector<192x128xf32> -> vector<192x128xf32>
    %19 = vector.extract_strided_slice %5 {offsets = [24, 0], sizes = [192, 512], strides = [1, 1]} : vector<216x512xbf16> to vector<192x512xbf16>
    %c3 = arith.constant 3 : index
    %c0_16 = arith.constant 0 : index
    %c0_17 = arith.constant 0 : index
    %20 = vector.load %arg4[%c3, %c0_16, %c0_17] : memref<4x512x128xbf16, #tpu.memory_space<vmem>>, vector<1x512x128xbf16>
    %21 = vector.shape_cast %20 : vector<1x512x128xbf16> to vector<512x128xbf16>
    %cst_18 = arith.constant dense<0.000000e+00> : vector<192x128xf32>
    %22 = tpu.matmul %19, %21, %cst_18 {dimension_numbers = #tpu.dot_dimension_numbers<[1], [0], [0], [1], [0, 0, 1, 1], [], []>} : vector<192x512xbf16>, vector<512x128xbf16>, vector<192x128xf32> -> vector<192x128xf32>
    %23 = arith.addf %18, %22 : vector<192x128xf32>
    %c191_i32 = arith.constant 191 : i32
    %24 = tpu.dynamic_rotate %23 by %c191_i32 dim 0 : vector<192x128xf32>, i32 -> vector<192x128xf32>
    %25 = arith.addf %14, %24 : vector<192x128xf32>
    %26 = vector.shape_cast %25 : vector<192x128xf32> to vector<8x24x128xf32>
    %27 = vector.extract_strided_slice %26 {offsets = [0, 0, 0], sizes = [8, 16, 128], strides = [1, 1, 1]} : vector<8x24x128xf32> to vector<8x16x128xf32>
    %c0_19 = arith.constant 0 : index
    %c0_20 = arith.constant 0 : index
    %28 = vector.load %arg5[%c0_19, %c0_20] : memref<1x128xf32, #tpu.memory_space<vmem>>, vector<1x128xf32>
    %29 = vector.shape_cast %28 : vector<1x128xf32> to vector<1x1x128xf32>
    %30 = vector.broadcast %29 : vector<1x1x128xf32> to vector<8x16x128xf32>
    %31 = arith.mulf %27, %30 : vector<8x16x128xf32>
    %c0_21 = arith.constant 0 : index
    %c0_22 = arith.constant 0 : index
    %32 = vector.load %arg6[%c0_21, %c0_22] : memref<1x128xf32, #tpu.memory_space<vmem>>, vector<1x128xf32>
    %33 = vector.shape_cast %32 : vector<1x128xf32> to vector<1x1x128xf32>
    %34 = vector.broadcast %33 : vector<1x1x128xf32> to vector<8x16x128xf32>
    %35 = arith.addf %31, %34 : vector<8x16x128xf32>
    %cst_23 = arith.constant 0.000000e+00 : f32
    %36 = vector.broadcast %cst_23 : f32 to vector<8x16x128xf32>
    %37 = arith.maximumf %35, %36 : vector<8x16x128xf32>
    %38 = arith.truncf %37 : vector<8x16x128xf32> to vector<8x16x128xbf16>
    %c0_24 = arith.constant 0 : index
    %c0_25 = arith.constant 0 : index
    %c0_26 = arith.constant 0 : index
    %c0_27 = arith.constant 0 : index
    %39 = vector.load %arg7[%c0_24, %c0_25, %c0_26, %c0_27] : memref<1x8x16x128xbf16, #tpu.memory_space<vmem>>, vector<1x8x16x128xbf16>
    %40 = vector.shape_cast %39 : vector<1x8x16x128xbf16> to vector<8x16x128xbf16>
    %41 = vector.shape_cast %38 : vector<8x16x128xbf16> to vector<1x8x16x128xbf16>
    tpu.vector_store %arg7[%c0_24, %c0_25, %c0_26, %c0_27], %41 {strides = array<i32>} : memref<1x8x16x128xbf16, #tpu.memory_space<vmem>>, vector<1x8x16x128xbf16>,
    return
  }
  func.func @transform_0(%arg0: i32, %arg1: i32) -> (i32, i32, i32, i32) {
    %c0_i32 = arith.constant 0 : i32
    %c0_i32_0 = arith.constant 0 : i32
    %c0_i32_1 = arith.constant 0 : i32
    return %arg0, %arg1, %c0_i32, %c0_i32_0 : i32, i32, i32, i32
  }
  func.func @transform_1(%arg0: i32, %arg1: i32) -> (i32, i32, i32, i32) {
    %c1_i32 = arith.constant 1 : i32
    %0 = arith.addi %arg1, %c1_i32 : i32
    %c8_i32 = arith.constant 8 : i32
    %1 = arith.muli %0, %c8_i32 : i32
    %c0_i32 = arith.constant 0 : i32
    %c0_i32_0 = arith.constant 0 : i32
    %c0_i32_1 = arith.constant 0 : i32
    return %arg0, %1, %c0_i32, %c0_i32_0 : i32, i32, i32, i32
  }
  func.func @transform_2(%arg0: i32, %arg1: i32) -> (i32, i32, i32) {
    %c0_i32 = arith.constant 0 : i32
    %c0_i32_0 = arith.constant 0 : i32
    %c0_i32_1 = arith.constant 0 : i32
    %c0_i32_2 = arith.constant 0 : i32
    return %c0_i32, %c0_i32_0, %c0_i32_1 : i32, i32, i32
  }
  func.func @transform_3(%arg0: i32, %arg1: i32) -> (i32, i32) {
    %c0_i32 = arith.constant 0 : i32
    %c0_i32_0 = arith.constant 0 : i32
    %c0_i32_1 = arith.constant 0 : i32
    return %c0_i32, %c0_i32_0 : i32, i32
  }
  func.func @transform_4(%arg0: i32, %arg1: i32) -> (i32, i32) {
    %c0_i32 = arith.constant 0 : i32
    %c0_i32_0 = arith.constant 0 : i32
    %c0_i32_1 = arith.constant 0 : i32
    return %c0_i32, %c0_i32_0 : i32, i32
  }
  func.func @transform_5(%arg0: i32, %arg1: i32) -> (i32, i32, i32, i32) {
    %c0_i32 = arith.constant 0 : i32
    %c0_i32_0 = arith.constant 0 : i32
    %c0_i32_1 = arith.constant 0 : i32
    return %arg0, %arg1, %c0_i32, %c0_i32_0 : i32, i32, i32, i32
  }
}

module attributes {stable_mosaic.version = 11 : i64} {
  func.func @_k_halo_res(%arg0: i32, %arg1: i32, %arg2: memref<1x8x24x128xbf16, #tpu.memory_space<vmem>>, %arg3: memref<1x2x24x128xbf16, #tpu.memory_space<vmem>>, %arg4: memref<9x128x128xbf16, #tpu.memory_space<vmem>>, %arg5: memref<1x128xf32, #tpu.memory_space<vmem>>, %arg6: memref<1x128xf32, #tpu.memory_space<vmem>>, %arg7: memref<1x8x16x128xbf16, #tpu.memory_space<vmem>>, %arg8: memref<1x8x16x128xbf16, #tpu.memory_space<vmem>>) attributes {dimension_semantics = [#tpu.dimension_semantics<parallel>, #tpu.dimension_semantics<parallel>], iteration_bounds = array<i64: 2, 2>, scalar_prefetch = 0 : i64, scratch_operands = 0 : i64, tpu.core_type = #tpu.core_type<tc>, window_params = [{transform_indices = @transform_0, window_bounds = array<i64: 1, 8, 24, 128>}, {transform_indices = @transform_1, window_bounds = array<i64: 1, 2, 24, 128>}, {pipeline_mode = #tpu.pipeline_mode<synchronous>, transform_indices = @transform_2, window_bounds = array<i64: 9, 128, 128>}, {pipeline_mode = #tpu.pipeline_mode<synchronous>, transform_indices = @transform_3, window_bounds = array<i64: 1, 128>}, {pipeline_mode = #tpu.pipeline_mode<synchronous>, transform_indices = @transform_4, window_bounds = array<i64: 1, 128>}, {transform_indices = @transform_5, window_bounds = array<i64: 1, 8, 16, 128>}, {transform_indices = @transform_6, window_bounds = array<i64: 1, 8, 16, 128>}]} {
    %c0 = arith.constant 0 : index
    %c0_0 = arith.constant 0 : index
    %c0_1 = arith.constant 0 : index
    %c0_2 = arith.constant 0 : index
    %0 = vector.load %arg2[%c0, %c0_0, %c0_1, %c0_2] : memref<1x8x24x128xbf16, #tpu.memory_space<vmem>>, vector<1x8x24x128xbf16>
    %1 = vector.shape_cast %0 : vector<1x8x24x128xbf16> to vector<8x24x128xbf16>
    %c0_3 = arith.constant 0 : index
    %c0_4 = arith.constant 0 : index
    %c0_5 = arith.constant 0 : index
    %c0_6 = arith.constant 0 : index
    %2 = vector.load %arg3[%c0_3, %c0_4, %c0_5, %c0_6] : memref<1x2x24x128xbf16, #tpu.memory_space<vmem>>, vector<1x2x24x128xbf16>
    %3 = vector.shape_cast %2 : vector<1x2x24x128xbf16> to vector<2x24x128xbf16>
    %4 = tpu.concatenate %1, %3 in 0 : vector<8x24x128xbf16>, vector<2x24x128xbf16> -> vector<10x24x128xbf16>
    %5 = vector.shape_cast %4 : vector<10x24x128xbf16> to vector<240x128xbf16>
    %6 = vector.extract_strided_slice %5 {offsets = [0, 0], sizes = [192, 128], strides = [1, 1]} : vector<240x128xbf16> to vector<192x128xbf16>
    %c0_7 = arith.constant 0 : index
    %c0_8 = arith.constant 0 : index
    %c0_9 = arith.constant 0 : index
    %7 = vector.load %arg4[%c0_7, %c0_8, %c0_9] : memref<9x128x128xbf16, #tpu.memory_space<vmem>>, vector<1x128x128xbf16>
    %8 = vector.shape_cast %7 : vector<1x128x128xbf16> to vector<128x128xbf16>
    %cst = arith.constant dense<0.000000e+00> : vector<192x128xf32>
    %9 = tpu.matmul %6, %8, %cst {dimension_numbers = #tpu.dot_dimension_numbers<[1], [0], [0], [1], [0, 0, 1, 1], [], []>} : vector<192x128xbf16>, vector<128x128xbf16>, vector<192x128xf32> -> vector<192x128xf32>
    %10 = vector.extract_strided_slice %5 {offsets = [24, 0], sizes = [192, 128], strides = [1, 1]} : vector<240x128xbf16> to vector<192x128xbf16>
    %c3 = arith.constant 3 : index
    %c0_10 = arith.constant 0 : index
    %c0_11 = arith.constant 0 : index
    %11 = vector.load %arg4[%c3, %c0_10, %c0_11] : memref<9x128x128xbf16, #tpu.memory_space<vmem>>, vector<1x128x128xbf16>
    %12 = vector.shape_cast %11 : vector<1x128x128xbf16> to vector<128x128xbf16>
    %cst_12 = arith.constant dense<0.000000e+00> : vector<192x128xf32>
    %13 = tpu.matmul %10, %12, %cst_12 {dimension_numbers = #tpu.dot_dimension_numbers<[1], [0], [0], [1], [0, 0, 1, 1], [], []>} : vector<192x128xbf16>, vector<128x128xbf16>, vector<192x128xf32> -> vector<192x128xf32>
    %14 = arith.addf %9, %13 : vector<192x128xf32>
    %15 = vector.extract_strided_slice %5 {offsets = [48, 0], sizes = [192, 128], strides = [1, 1]} : vector<240x128xbf16> to vector<192x128xbf16>
    %c6 = arith.constant 6 : index
    %c0_13 = arith.constant 0 : index
    %c0_14 = arith.constant 0 : index
    %16 = vector.load %arg4[%c6, %c0_13, %c0_14] : memref<9x128x128xbf16, #tpu.memory_space<vmem>>, vector<1x128x128xbf16>
    %17 = vector.shape_cast %16 : vector<1x128x128xbf16> to vector<128x128xbf16>
    %cst_15 = arith.constant dense<0.000000e+00> : vector<192x128xf32>
    %18 = tpu.matmul %15, %17, %cst_15 {dimension_numbers = #tpu.dot_dimension_numbers<[1], [0], [0], [1], [0, 0, 1, 1], [], []>} : vector<192x128xbf16>, vector<128x128xbf16>, vector<192x128xf32> -> vector<192x128xf32>
    %19 = arith.addf %14, %18 : vector<192x128xf32>
    %20 = vector.extract_strided_slice %5 {offsets = [0, 0], sizes = [192, 128], strides = [1, 1]} : vector<240x128xbf16> to vector<192x128xbf16>
    %c1 = arith.constant 1 : index
    %c0_16 = arith.constant 0 : index
    %c0_17 = arith.constant 0 : index
    %21 = vector.load %arg4[%c1, %c0_16, %c0_17] : memref<9x128x128xbf16, #tpu.memory_space<vmem>>, vector<1x128x128xbf16>
    %22 = vector.shape_cast %21 : vector<1x128x128xbf16> to vector<128x128xbf16>
    %cst_18 = arith.constant dense<0.000000e+00> : vector<192x128xf32>
    %23 = tpu.matmul %20, %22, %cst_18 {dimension_numbers = #tpu.dot_dimension_numbers<[1], [0], [0], [1], [0, 0, 1, 1], [], []>} : vector<192x128xbf16>, vector<128x128xbf16>, vector<192x128xf32> -> vector<192x128xf32>
    %24 = vector.extract_strided_slice %5 {offsets = [24, 0], sizes = [192, 128], strides = [1, 1]} : vector<240x128xbf16> to vector<192x128xbf16>
    %c4 = arith.constant 4 : index
    %c0_19 = arith.constant 0 : index
    %c0_20 = arith.constant 0 : index
    %25 = vector.load %arg4[%c4, %c0_19, %c0_20] : memref<9x128x128xbf16, #tpu.memory_space<vmem>>, vector<1x128x128xbf16>
    %26 = vector.shape_cast %25 : vector<1x128x128xbf16> to vector<128x128xbf16>
    %cst_21 = arith.constant dense<0.000000e+00> : vector<192x128xf32>
    %27 = tpu.matmul %24, %26, %cst_21 {dimension_numbers = #tpu.dot_dimension_numbers<[1], [0], [0], [1], [0, 0, 1, 1], [], []>} : vector<192x128xbf16>, vector<128x128xbf16>, vector<192x128xf32> -> vector<192x128xf32>
    %28 = arith.addf %23, %27 : vector<192x128xf32>
    %29 = vector.extract_strided_slice %5 {offsets = [48, 0], sizes = [192, 128], strides = [1, 1]} : vector<240x128xbf16> to vector<192x128xbf16>
    %c7 = arith.constant 7 : index
    %c0_22 = arith.constant 0 : index
    %c0_23 = arith.constant 0 : index
    %30 = vector.load %arg4[%c7, %c0_22, %c0_23] : memref<9x128x128xbf16, #tpu.memory_space<vmem>>, vector<1x128x128xbf16>
    %31 = vector.shape_cast %30 : vector<1x128x128xbf16> to vector<128x128xbf16>
    %cst_24 = arith.constant dense<0.000000e+00> : vector<192x128xf32>
    %32 = tpu.matmul %29, %31, %cst_24 {dimension_numbers = #tpu.dot_dimension_numbers<[1], [0], [0], [1], [0, 0, 1, 1], [], []>} : vector<192x128xbf16>, vector<128x128xbf16>, vector<192x128xf32> -> vector<192x128xf32>
    %33 = arith.addf %28, %32 : vector<192x128xf32>
    %c191_i32 = arith.constant 191 : i32
    %34 = tpu.dynamic_rotate %33 by %c191_i32 dim 0 : vector<192x128xf32>, i32 -> vector<192x128xf32>
    %35 = arith.addf %19, %34 : vector<192x128xf32>
    %36 = vector.extract_strided_slice %5 {offsets = [0, 0], sizes = [192, 128], strides = [1, 1]} : vector<240x128xbf16> to vector<192x128xbf16>
    %c2 = arith.constant 2 : index
    %c0_25 = arith.constant 0 : index
    %c0_26 = arith.constant 0 : index
    %37 = vector.load %arg4[%c2, %c0_25, %c0_26] : memref<9x128x128xbf16, #tpu.memory_space<vmem>>, vector<1x128x128xbf16>
    %38 = vector.shape_cast %37 : vector<1x128x128xbf16> to vector<128x128xbf16>
    %cst_27 = arith.constant dense<0.000000e+00> : vector<192x128xf32>
    %39 = tpu.matmul %36, %38, %cst_27 {dimension_numbers = #tpu.dot_dimension_numbers<[1], [0], [0], [1], [0, 0, 1, 1], [], []>} : vector<192x128xbf16>, vector<128x128xbf16>, vector<192x128xf32> -> vector<192x128xf32>
    %40 = vector.extract_strided_slice %5 {offsets = [24, 0], sizes = [192, 128], strides = [1, 1]} : vector<240x128xbf16> to vector<192x128xbf16>
    %c5 = arith.constant 5 : index
    %c0_28 = arith.constant 0 : index
    %c0_29 = arith.constant 0 : index
    %41 = vector.load %arg4[%c5, %c0_28, %c0_29] : memref<9x128x128xbf16, #tpu.memory_space<vmem>>, vector<1x128x128xbf16>
    %42 = vector.shape_cast %41 : vector<1x128x128xbf16> to vector<128x128xbf16>
    %cst_30 = arith.constant dense<0.000000e+00> : vector<192x128xf32>
    %43 = tpu.matmul %40, %42, %cst_30 {dimension_numbers = #tpu.dot_dimension_numbers<[1], [0], [0], [1], [0, 0, 1, 1], [], []>} : vector<192x128xbf16>, vector<128x128xbf16>, vector<192x128xf32> -> vector<192x128xf32>
    %44 = arith.addf %39, %43 : vector<192x128xf32>
    %45 = vector.extract_strided_slice %5 {offsets = [48, 0], sizes = [192, 128], strides = [1, 1]} : vector<240x128xbf16> to vector<192x128xbf16>
    %c8 = arith.constant 8 : index
    %c0_31 = arith.constant 0 : index
    %c0_32 = arith.constant 0 : index
    %46 = vector.load %arg4[%c8, %c0_31, %c0_32] : memref<9x128x128xbf16, #tpu.memory_space<vmem>>, vector<1x128x128xbf16>
    %47 = vector.shape_cast %46 : vector<1x128x128xbf16> to vector<128x128xbf16>
    %cst_33 = arith.constant dense<0.000000e+00> : vector<192x128xf32>
    %48 = tpu.matmul %45, %47, %cst_33 {dimension_numbers = #tpu.dot_dimension_numbers<[1], [0], [0], [1], [0, 0, 1, 1], [], []>} : vector<192x128xbf16>, vector<128x128xbf16>, vector<192x128xf32> -> vector<192x128xf32>
    %49 = arith.addf %44, %48 : vector<192x128xf32>
    %c190_i32 = arith.constant 190 : i32
    %50 = tpu.dynamic_rotate %49 by %c190_i32 dim 0 : vector<192x128xf32>, i32 -> vector<192x128xf32>
    %51 = arith.addf %35, %50 : vector<192x128xf32>
    %52 = vector.shape_cast %51 : vector<192x128xf32> to vector<8x24x128xf32>
    %53 = vector.extract_strided_slice %52 {offsets = [0, 0, 0], sizes = [8, 16, 128], strides = [1, 1, 1]} : vector<8x24x128xf32> to vector<8x16x128xf32>
    %c0_34 = arith.constant 0 : index
    %c0_35 = arith.constant 0 : index
    %54 = vector.load %arg5[%c0_34, %c0_35] : memref<1x128xf32, #tpu.memory_space<vmem>>, vector<1x128xf32>
    %55 = vector.shape_cast %54 : vector<1x128xf32> to vector<1x1x128xf32>
    %56 = vector.broadcast %55 : vector<1x1x128xf32> to vector<8x16x128xf32>
    %57 = arith.mulf %53, %56 : vector<8x16x128xf32>
    %c0_36 = arith.constant 0 : index
    %c0_37 = arith.constant 0 : index
    %58 = vector.load %arg6[%c0_36, %c0_37] : memref<1x128xf32, #tpu.memory_space<vmem>>, vector<1x128xf32>
    %59 = vector.shape_cast %58 : vector<1x128xf32> to vector<1x1x128xf32>
    %60 = vector.broadcast %59 : vector<1x1x128xf32> to vector<8x16x128xf32>
    %61 = arith.addf %57, %60 : vector<8x16x128xf32>
    %c0_38 = arith.constant 0 : index
    %c0_39 = arith.constant 0 : index
    %c0_40 = arith.constant 0 : index
    %c0_41 = arith.constant 0 : index
    %62 = vector.load %arg7[%c0_38, %c0_39, %c0_40, %c0_41] : memref<1x8x16x128xbf16, #tpu.memory_space<vmem>>, vector<1x8x16x128xbf16>
    %63 = vector.shape_cast %62 : vector<1x8x16x128xbf16> to vector<8x16x128xbf16>
    %64 = arith.extf %63 : vector<8x16x128xbf16> to vector<8x16x128xf32>
    %65 = arith.addf %61, %64 : vector<8x16x128xf32>
    %cst_42 = arith.constant 0.000000e+00 : f32
    %66 = vector.broadcast %cst_42 : f32 to vector<8x16x128xf32>
    %67 = arith.maximumf %65, %66 : vector<8x16x128xf32>
    %68 = arith.truncf %67 : vector<8x16x128xf32> to vector<8x16x128xbf16>
    %c0_43 = arith.constant 0 : index
    %c0_44 = arith.constant 0 : index
    %c0_45 = arith.constant 0 : index
    %c0_46 = arith.constant 0 : index
    %69 = vector.load %arg8[%c0_43, %c0_44, %c0_45, %c0_46] : memref<1x8x16x128xbf16, #tpu.memory_space<vmem>>, vector<1x8x16x128xbf16>
    %70 = vector.shape_cast %69 : vector<1x8x16x128xbf16> to vector<8x16x128xbf16>
    %71 = vector.shape_cast %68 : vector<8x16x128xbf16> to vector<1x8x16x128xbf16>
    tpu.vector_store %arg8[%c0_43, %c0_44, %c0_45, %c0_46], %71 {strides = array<i32>} : memref<1x8x16x128xbf16, #tpu.memory_space<vmem>>, vector<1x8x16x128xbf16>,
    return
  }
  func.func @transform_0(%arg0: i32, %arg1: i32) -> (i32, i32, i32, i32) {
    %c0_i32 = arith.constant 0 : i32
    %c0_i32_0 = arith.constant 0 : i32
    %c0_i32_1 = arith.constant 0 : i32
    return %arg0, %arg1, %c0_i32, %c0_i32_0 : i32, i32, i32, i32
  }
  func.func @transform_1(%arg0: i32, %arg1: i32) -> (i32, i32, i32, i32) {
    %c1_i32 = arith.constant 1 : i32
    %0 = arith.addi %arg1, %c1_i32 : i32
    %c4_i32 = arith.constant 4 : i32
    %1 = arith.muli %0, %c4_i32 : i32
    %c0_i32 = arith.constant 0 : i32
    %c0_i32_0 = arith.constant 0 : i32
    %c0_i32_1 = arith.constant 0 : i32
    return %arg0, %1, %c0_i32, %c0_i32_0 : i32, i32, i32, i32
  }
  func.func @transform_2(%arg0: i32, %arg1: i32) -> (i32, i32, i32) {
    %c0_i32 = arith.constant 0 : i32
    %c0_i32_0 = arith.constant 0 : i32
    %c0_i32_1 = arith.constant 0 : i32
    %c0_i32_2 = arith.constant 0 : i32
    return %c0_i32, %c0_i32_0, %c0_i32_1 : i32, i32, i32
  }
  func.func @transform_3(%arg0: i32, %arg1: i32) -> (i32, i32) {
    %c0_i32 = arith.constant 0 : i32
    %c0_i32_0 = arith.constant 0 : i32
    %c0_i32_1 = arith.constant 0 : i32
    return %c0_i32, %c0_i32_0 : i32, i32
  }
  func.func @transform_4(%arg0: i32, %arg1: i32) -> (i32, i32) {
    %c0_i32 = arith.constant 0 : i32
    %c0_i32_0 = arith.constant 0 : i32
    %c0_i32_1 = arith.constant 0 : i32
    return %c0_i32, %c0_i32_0 : i32, i32
  }
  func.func @transform_5(%arg0: i32, %arg1: i32) -> (i32, i32, i32, i32) {
    %c0_i32 = arith.constant 0 : i32
    %c0_i32_0 = arith.constant 0 : i32
    %c0_i32_1 = arith.constant 0 : i32
    return %arg0, %arg1, %c0_i32, %c0_i32_0 : i32, i32, i32, i32
  }
  func.func @transform_6(%arg0: i32, %arg1: i32) -> (i32, i32, i32, i32) {
    %c0_i32 = arith.constant 0 : i32
    %c0_i32_0 = arith.constant 0 : i32
    %c0_i32_1 = arith.constant 0 : i32
    return %arg0, %arg1, %c0_i32, %c0_i32_0 : i32, i32, i32, i32
  }
}

</mosaic_0001>

<bundles_post_ra>
// kernel: _lambda_.5
= control target key start
LH: loop header
LB: loop body
LE: loop exit
PB: predicated region body
PF: predicated region fallthrough
CT: control target
= control target key end

     0   :  { %s5033_s18 = smov 0   ;;  %s5035_s19 = smov 0   ;;  %s6527_s0 = inlined_call_operand.vmem [shape: bf16[2,34,40,128], index: 0, kind: input, shape index: {}, may-alias: {0,1}]   ;;  %s6528_s1 = inlined_call_operand.vmem [shape: bf16[2,34,40,128], index: 1, kind: input, shape index: {}, may-alias: {0,1}]   ;;  %s6529_s2 = inlined_call_operand.vmem [shape: bf16[9,128,128], index: 2, kind: input, shape index: {}]   ;;  %s6530_s3 = inlined_call_operand.vmem [shape: f32[1,128], index: 3, kind: input, shape index: {}]   ;;  %s6531_s4 = inlined_call_operand.vmem [shape: f32[1,128], index: 4, kind: input, shape index: {}]   ;;  %s6532_s5 = inlined_call_operand.vmem [shape: bf16[2,32,32,128], index: 5, kind: output, shape index: {}]  }
   0x1   :  { %s5037_s20 = smov 0   ;;  %s5039_s21 = smov 0  }
   0x2   :  { %s5041_s22 = smov 0  }
   0x3 LB: > { %s24_s23 = sadd.s32 1, %s4993_s20  ;;  %s27_s24 = sadd.s32 1, %s4997_s21  ;;  %s5001_s22 = sphi %s5041_s22, %s15_s22   ;;  %s4997_s21 = sphi %s5039_s21, %s6693_s21   ;;  %s4993_s20 = sphi %s5037_s20, %s6692_s20   ;;  %s4989_s19 = sphi %s5035_s19, %s6691_s19   ;;  %s4985_s18 = sphi %s5033_s18, %s6690_s18  }
   0x4   : > { %p25_p0 = scmp.ge.s32.totalorder %s24_s23, 4  ;;  %p3605_p1 = scmp.ge.s32.totalorder %s5001_s22, 1 }
   0x5   : > { %p245_p2 = scmp.lt.s32.totalorder %s5001_s22, 9 }
   0x6   : > { %s6695_s23 = smov (%p25_p0, %s24_s23), 0  ;;  %s6697_s24 = smov (!%p25_p0, %s27_s24), %s4997_s21 }
   0x7   : > { %p246_p3 = pnand %p3605_p1, %p245_p2  ;;  %p29_p4 = scmp.ge.s32.totalorder %s6697_s24, 2 }
   0x9   : > { %s6699_s24 = smov (%p29_p4, %s6697_s24), 0  ;;  %249 = sbr.rel (%p246_p3) target bundleno = 616 (0x268), region = 40 }
   0xe   : > { %v4847_v0 = vld [vmem:[%s6529_s2 + $0xf8] sm:$0xff]   ;;  %s5066_s27 = sshll.u32 %s4985_s18, 3  ;;  %v4848_v1 = vld [vmem:[%s6529_s2 + $0xf0] sm:$0xff]   ;;  %p306_p5 = scmp.lt.s32.totalorder %s4989_s19, 1  ;;  %v4849_v2 = vld [vmem:[%s6529_s2 + $0xe8] sm:$0xff]  }
   0xf   : > { %4284 = vmatprep.subr.bf16.mxu0 %v4847_v0  ;;  %4788 = vmatprep.subr.bf16.mxu1 %v4847_v0  ;;  %p308_p6 = scmp.lt.s32.totalorder %s5066_s27, 33  ;;  %s4016_s10 = sadd.s32 8, %s5066_s27  ;;  %v4850_v3 = vld [vmem:[%s6529_s2 + $0xe0] sm:$0xff]   ;;  %v4851_v7 = vld [vmem:[%s6529_s2 + $0xd8] sm:$0xff]   ;;  %v4852_v16 = vld [vmem:[%s6529_s2 + $0xd0] sm:$0xff]  }
  0x10   : > { %4285 = vmatpush3.bf16.msra.mxu0 %v4847_v0  ;;  %4796 = vmatpush3.bf16.msra.mxu1 %v4847_v0  ;;  %s6701_s19 = smov (!%p306_p5, %s4989_s19), 1  ;;  %p5090_p7 = scmp.lt.s32.totalorder %s4016_s10, 33  ;;  %v4853_v20 = vld [vmem:[%s6529_s2 + $0xc8] sm:$0xff]   ;;  %v4854_v27 = vld [vmem:[%s6529_s2 + $0xc0] sm:$0xff]   ;;  %v4860_v28 = vld [vmem:[%s6529_s2 + $0x38] sm:$0xff]  }
  0x11   : > { %4286 = vmatprep.subr.bf16.mxu0 %v4848_v1  ;;  %4789 = vmatprep.subr.bf16.mxu1 %v4848_v1  ;;  %s309_s7 = scalar_select %p308_p6, %s5066_s27, 33  ;;  %v4861_v29 = vld [vmem:[%s6529_s2 + $0x1b8] sm:$0xff]   ;;  %v4862_v42 = vld [vmem:[%s6529_s2 + $0x30] sm:$0xff]   ;;  %v4871_v52 = vld [vmem:[%s6529_s2 + $0x28] sm:$0xff]  }
  0x12   : > { %s4805_s8 = smul.u32 170, %s6701_s19  ;;  %s6703_s10 = smov (!%p5090_p7, %s4016_s10), 33  ;;  %v4866_v44 = vld [vmem:[%s6529_s2 + $0x1b0] sm:$0xff]   ;;  %v4872_v54 = vld [vmem:[%s6529_s2 + $0x1a8] sm:$0xff]   ;;  %v4877_v62 = vld [vmem:[%s6529_s2 + $0x20] sm:$0xff]  }
  0x13   : > { %s4804_s9 = smul.u32 5, %s309_s7  ;;  %p339_p8 = scmp.lt.s32.totalorder %s5066_s27, 31 }
  0x14   : > { %4287 = vmatpush3.bf16.msra.mxu0 %v4848_v1  ;;  %4797 = vmatpush3.bf16.msra.mxu1 %v4848_v1  ;;  %s4806_s7 = smul.u32 5, %s6703_s10  ;;  %v4882_v1 = vld [vmem:[%s6529_s2 + $0x1a0] sm:$0xff]  }
  0x15   : > { %4288 = vmatprep.subr.bf16.mxu0 %v4849_v2  ;;  %4790 = vmatprep.subr.bf16.mxu1 %v4849_v2  ;;  %s312_s13 = sadd.s32 %s4805_s8, %s4804_s9  ;;  %s6705_s27 = smov (!%p339_p8, %s5066_s27), 31 }
  0x16   : > { %s3607_s14 = sshll.u32 %s312_s13, 2  ;;  %s330_s9 = sadd.s32 %s4806_s7, %s4805_s8 }
  0x17   : > { %s5088_s17 = scalar_lea.vmem %s6527_s0, %s3607_s14  ;;  %s3610_s8 = sshll.u32 %s330_s9, 2 }
  0x18   : > { %4289 = vmatpush3.bf16.msra.mxu0 %v4849_v2  ;;  %4798 = vmatpush3.bf16.msra.mxu1 %v4849_v2  ;;  %v5095_v4 = vld [vmem:[%s5088_s17 + $0x14] sm:$0xf]  ;;  %v5098_v5 = vld [vmem:[%s5088_s17 + $0x18] sm:$0xf]  ;;  %v5101_v6 = vld [vmem:[%s5088_s17 + $0x64] sm:$0xf]  ;;  %s5197_s25 = scalar_lea.vmem %s6528_s1, %s3610_s8 }
  0x19   : > { %4290 = vmatprep.subr.bf16.mxu0 %v4850_v3  ;;  %4791 = vmatprep.subr.bf16.mxu1 %v4850_v3  ;;  %v5108_v8 = vcombine.low %v5095_v4, %v5098_v5  ;;  %v374_v9 = vld [vmem:[%s5088_s17 + $0x68] sm:$0xf]  ;;  %v375_v11 = vld [vmem:[%s5088_s17 + $0x6c] sm:$0xf]  ;;  %v376_v12 = vld [vmem:[%s5088_s17 + $0x70] sm:$0xf] }
  0x1a   : > { %v5112_v10 = vcombine.low %v5101_v6, %v374_v9  ;;  %v5117_v13 = vcombine.low %v374_v9, %v375_v11  ;;  %v377_v14 = vld [vmem:[%s5088_s17 + $0x74] sm:$0xf]  ;;  %v378_v17 = vld [vmem:[%s5088_s17 + $0x78] sm:$0xf]  ;;  %v5129_v18 = vld [vmem:[%s5088_s17 + $0x7c] sm:$0xf]  ;;  %v5207_v41 = vcombine.low %v375_v11, %v376_v12 }
  0x1b   : > { %4300 = vmatprep.mubr.bf16.mxu0 %v5108_v8  ;;  %v5120_v15 = vcombine.low %v376_v12, %v377_v14  ;;  %v5133_v19 = vcombine.low %v378_v17, %v5129_v18  ;;  %v380_v21 = vld [vmem:[%s5088_s17 + $0x80] sm:$0xf]  ;;  %v5140_v22 = vld [vmem:[%s5088_s17 + $0x84] sm:$0xf]  ;;  %v5146_v24 = vld [vmem:[%s5088_s17 + $0x88] sm:$0xf]  ;;  %v5225_v47 = vcombine.low %v377_v14, %v378_v17 }
  0x1c   : > { %6550 = vst [vmem:[#allocation2_spill] sm:$0xff] %v5117_v13  ;;  %4291 = vmatpush3.bf16.msra.mxu0 %v4850_v3  ;;  %4799 = vmatpush3.bf16.msra.mxu1 %v4850_v3  ;;  %v5143_v23 = vcombine.low %v380_v21, %v5140_v22  ;;  %v5149_v25 = vld [vmem:[%s5088_s17 + $0x8c] sm:$0xf]  ;;  %v5167_v30 = vld [vmem:[%s5088_s17 + $0x90] sm:$0xf]  ;;  %v5268_v59 = vcombine.low %v5129_v18, %v380_v21  ;;  %v4883_v2 = vld [vmem:[%s6529_s2 + $0x18] sm:$0xff]  }
  0x1d   : > { %6551 = vst [vmem:[#allocation3_spill] sm:$0xff] %v5120_v15  ;;  %4292 = vmatprep.subr.bf16.mxu0 %v4851_v7  ;;  %4792 = vmatprep.subr.bf16.mxu1 %v4851_v7  ;;  %v5153_v26 = vcombine.low %v5146_v24, %v5149_v25  ;;  %v5170_v31 = vld [vmem:[%s5088_s17 + $0x94] sm:$0xf]  ;;  %v5173_v32 = vld [vmem:[%s5088_s17 + $0x1c] sm:$0xf]  ;;  %v5276_v61 = vcombine.low %v5140_v22, %v5146_v24  ;;  %v4894_v22 = vld [vmem:[%s6529_s2 + $0x8] sm:$0xff]  }
  0x1e   : > { %4320 = vmatprep.mubr.bf16.mxu1 %v5112_v10  ;;  %v5176_v33 = vld [vmem:[%s5088_s17 + $0x20] sm:$0xf]  ;;  %v5179_v34 = vld [vmem:[%s5088_s17 + $0x24] sm:$0xf]  ;;  %v5183_v35 = vcombine.low %v5167_v30, %v5170_v31  ;;  %v5186_v36 = vld [vmem:[%s5088_s17 + $0x98] sm:$0xf]  ;;  %v5312_v12 = vcombine.low %v5149_v25, %v5167_v30 }
  0x1f   : > { %v5189_v37 = vld [vmem:[%s5088_s17 + $0x9c] sm:$0xf]  ;;  %v5192_v38 = vld [vmem:[%s5088_s17 + $0x28] sm:$0xf]  ;;  %v5205_v40 = vcombine.low %v5173_v32, %v5176_v33  ;;  %v5220_v45 = vld [vmem:[%s5197_s25] sm:$0xf] }
  0x20   : > { %4293 = vmatpush3.bf16.msra.mxu0 %v4851_v7  ;;  %4800 = vmatpush3.bf16.msra.mxu1 %v4851_v7  ;;  %v5201_v39 = vcombine.low %v5186_v36, %v5189_v37  ;;  %v5214_v43 = vcombine.low %v5179_v34, %v5192_v38  ;;  %v5223_v46 = vld [vmem:[%s5197_s25 + $0x4] sm:$0xf]  ;;  %v5228_v48 = vld [vmem:[%s5088_s17 + $0x2c] sm:$0xf]  ;;  %v5231_v49 = vld [vmem:[%s5088_s17 + $0x30] sm:$0xf] }
  0x21   : > { %4294 = vmatprep.subr.bf16.mxu0 %v4852_v16  ;;  %4793 = vmatprep.subr.bf16.mxu1 %v4852_v16  ;;  %v5234_v50 = vld [vmem:[%s5197_s25 + $0x8] sm:$0xf]  ;;  %v5238_v51 = vcombine.low %v5220_v45, %v5223_v46  ;;  %v5246_v53 = vld [vmem:[%s5197_s25 + $0xc] sm:$0xf]  ;;  %v5257_v56 = vld [vmem:[%s5088_s17 + $0x34] sm:$0xf]  ;;  %v5265_v58 = vcombine.low %v5228_v48, %v5231_v49 }
  0x22   : > { %v5253_v55 = vcombine.low %v5234_v50, %v5246_v53  ;;  %v5261_v57 = vld [vmem:[%s5088_s17 + $0x38] sm:$0xf]  ;;  %v5282_v63 = vld [vmem:[%s5088_s17 + $0x3c] sm:$0xf]  ;;  %v5285_v0 = vld [vmem:[%s5088_s17 + $0x40] sm:$0xf] }
  0x23   : > { %v5272_v60 = vcombine.low %v5257_v56, %v5261_v57  ;;  %v4884_v3 = vld [vmem:[%s6529_s2 + $0x198] sm:$0xff]   ;;  %v5299_v7 = vld [vmem:[%s5088_s17 + $0x44] sm:$0xf]  ;;  %v5304_v9 = vld [vmem:[%s5088_s17 + $0x48] sm:$0xf]  ;;  %v5308_v11 = vcombine.low %v5282_v63, %v5285_v0  ;;  %s3612_s30 = sshll.u32 %s6705_s27, 2 }
  0x24   : > { %4295 = vmatpush3.bf16.msra.mxu0 %v4852_v16  ;;  %4801 = vmatpush3.bf16.msra.mxu1 %v4852_v16  ;;  %v5316_v14 = vcombine.low %v5299_v7, %v5304_v9  ;;  %v5320_v16 = vcombine.low %v5170_v31, %v5186_v36  ;;  %v4892_v17 = vld [vmem:[%s6529_s2 + $0x10] sm:$0xff]   ;;  %v5326_v18 = vld [vmem:[%s5088_s17 + $0x4c] sm:$0xf]  ;;  %v5344_v25 = vld [vmem:[%s5088_s17 + $0x58] sm:$0xf]  ;;  %v5358_v31 = vcombine.low %v5189_v37, %v5220_v45 }
  0x25   : > { %4296 = vmatprep.subr.bf16.mxu0 %v4853_v20  ;;  %4794 = vmatprep.subr.bf16.mxu1 %v4853_v20  ;;  %v4893_v21 = vld [vmem:[%s6529_s2 + $0x190] sm:$0xff]   ;;  %v4904_v37 = vld [vmem:[%s6529_s2 + $0x180] sm:$0xff]   ;;  %v371_v45 = vld [vmem:[%s5088_s17 + $0x5c] sm:$0xf] }
  0x26   : > { %v5340_v24 = vld [vmem:[%s5088_s17 + $0x54] sm:$0xf] }
  0x28   : > { %4297 = vmatpush3.bf16.msra.mxu0 %v4853_v20  ;;  %4802 = vmatpush3.bf16.msra.mxu1 %v4853_v20  ;;  %v5329_v20 = vld [vmem:[%s5088_s17 + $0x50] sm:$0xf] }
  0x29   : > { %4298 = vmatprep.subr.bf16.mxu0 %v4854_v27  ;;  %4795 = vmatprep.subr.bf16.mxu1 %v4854_v27  ;;  %v5354_v30 = vcombine.low %v5326_v18, %v5329_v20 }
  0x2c   : > { %4299 = vmatpush3.bf16.msra.mxu0 %v4854_v27  ;;  %4803 = vmatpush3.bf16.msra.mxu1 %v4854_v27  ;;  %v392_v27 = vld [vmem:[%s5197_s25 + $0x10] sm:$0xf] }
  0x2d   : > { %4340 = vmatprep.subr.bf16.mxu1 %v4860_v28  ;;  %4396 = vmatprep.subr.bf16.mxu0 %v4861_v29 }
  0x2f   : > { %4301 = vmatmul.mubr.bf16.vlgmr.msra.gmra.mxu0 %v5205_v40  ;;  %4321 = vmatmul.mubr.bf16.vlgmr.msra.gmra.mxu1 %v5207_v41 }
  0x30   : > { %4341 = vmatpush3.bf16.msra.mxu1 %v4860_v28  ;;  %4397 = vmatpush3.bf16.msra.mxu0 %v4861_v29  ;;  %v4902_v28 = vld [vmem:[%s6529_s2 + $0x188] sm:$0xff]   ;;  %v393_v29 = vld [vmem:[%s5197_s25 + $0x14] sm:$0xf] }
  0x31   : > { %4342 = vmatprep.subr.bf16.mxu1 %v4862_v42  ;;  %4304 = vmatprep.mubr.bf16.mxu0 %v5214_v43  ;;  %v5360_v36 = vcombine.low %v392_v27, %v393_v29  ;;  %v4916_v29 = vld [vmem:[%s6529_s2 + $0x120] sm:$0xff]  }
  0x32   : > { %4324 = vmatprep.mubr.bf16.mxu1 %v5225_v47  ;;  %4398 = vmatprep.subr.bf16.mxu0 %v4866_v44 }
  0x34   : > { %4343 = vmatpush3.bf16.msra.mxu1 %v4862_v42  ;;  %4399 = vmatpush3.bf16.msra.mxu0 %v4866_v44  ;;  %v5364_v42 = vcombine.low %v5340_v24, %v5344_v25  ;;  %v5368_v44 = vcombine.low %v5223_v46, %v5234_v50  ;;  %v5382_v46 = vld [vmem:[%s5088_s17 + $0x60] sm:$0xf]  ;;  %v4907_v50 = vld [vmem:[%s6529_s2 + $0x138] sm:$0xff]  }
  0x35   : > { %4344 = vmatprep.subr.bf16.mxu1 %v4871_v52  ;;  %4400 = vmatprep.subr.bf16.mxu0 %v4872_v54 }
  0x37   : > { %4305 = vmatmul.mubr.bf16.gmra.mxu0 %v5265_v58  ;;  %4325 = vmatmul.mubr.bf16.gmra.mxu1 %v5268_v59 }
  0x38   : > { %4345 = vmatpush3.bf16.msra.mxu1 %v4871_v52  ;;  %4401 = vmatpush3.bf16.msra.mxu0 %v4872_v54  ;;  %v4903_v52 = vld [vmem:[%s6529_s2] sm:$0xff]   ;;  %v4908_v54 = vld [vmem:[%s6529_s2 + $0x78] sm:$0xff]  }
  0x39   : > { %4308 = vmatprep.mubr.bf16.mxu0 %v5272_v60  ;;  %4328 = vmatprep.mubr.bf16.mxu1 %v5276_v61 }
  0x3a   : > { %4346 = vmatprep.subr.bf16.mxu1 %v4877_v62  ;;  %4402 = vmatprep.subr.bf16.mxu0 %v4882_v1 }
  0x3c   : > { %4347 = vmatpush3.bf16.msra.mxu1 %v4877_v62  ;;  %4403 = vmatpush3.bf16.msra.mxu0 %v4882_v1  ;;  %v5391_v62 = vcombine.low %v371_v45, %v5382_v46  ;;  %v5394_v1 = vcombine.low %v5246_v53, %v392_v27  ;;  %v352_v53 = vld [vmem:[%s5088_s17 + $0x10] sm:$0xf] }
  0x3d   : > { %4348 = vmatprep.subr.bf16.mxu1 %v4883_v2  ;;  %4404 = vmatprep.subr.bf16.mxu0 %v4884_v3  ;;  %v5426_v27 = vcombine.low %v352_v53, %v5095_v4  ;;  %v5440_v4 = vcombine.low %v5285_v0, %v5299_v7  ;;  %v4917_v0 = vld [vmem:[%s6529_s2 + $0x60] sm:$0xff]   ;;  %v4920_v7 = vld [vmem:[%s6529_s2 + $0x110] sm:$0xff]   ;;  %v4935_v53 = vld [vmem:[%s6529_s2 + $0x1e8] sm:$0xff]  }
  0x3f   : > { %4309 = vmatmul.mubr.bf16.gmra.mxu0 %v5308_v11  ;;  %4329 = vmatmul.mubr.bf16.gmra.mxu1 %v5312_v12  ;;  %6552 = vst [vmem:[#allocation4_spill] sm:$0xff] %v5440_v4 }
  0x40   : > { %4349 = vmatpush3.bf16.msra.mxu1 %v4883_v2  ;;  %4312 = vmatprep.mubr.bf16.mxu0 %v5316_v14  ;;  %v5398_v2 = vcombine.low %v5192_v38, %v5228_v48  ;;  %v5413_v38 = vcombine.low %v5231_v49, %v5257_v56  ;;  %v4911_v48 = vld [vmem:[%s6529_s2 + $0x130] sm:$0xff]   ;;  %v4914_v49 = vld [vmem:[%s6529_s2 + $0x128] sm:$0xff]  }
  0x41   : > { %4332 = vmatprep.mubr.bf16.mxu1 %v5320_v16  ;;  %4405 = vmatpush3.bf16.msra.mxu0 %v4884_v3  ;;  %v5401_v3 = vld [vmem:[%s5088_s17] sm:$0xff]   ;;  %v4915_v56 = vld [vmem:[%s6529_s2 + $0x68] sm:$0xff]  }
  0x42   : > { %4350 = vmatprep.subr.bf16.mxu1 %v4892_v17  ;;  %4406 = vmatprep.subr.bf16.mxu0 %v4893_v21 }
  0x44   : > { %4351 = vmatpush3.bf16.msra.mxu1 %v4892_v17  ;;  %v5409_v17 = vld [vmem:[%s5088_s17 + $0x8] sm:$0xff]   ;;  %s3613_s17 = sshll.u32 %s6701_s19, 7 }
  0x45   : > { %4407 = vmatpush3.bf16.msra.mxu0 %v4893_v21  ;;  %4352 = vmatprep.subr.bf16.mxu1 %v4894_v22  ;;  %v4912_v21 = vld [vmem:[%s6529_s2 + $0x70] sm:$0xff]   ;;  %s6299_s19 = sadd.s32 %s3613_s17, %s3612_s30 }
  0x46   : > { %4408 = vmatprep.subr.bf16.mxu0 %v4902_v28  ;;  %s3614_s10 = sshll.u32 %s6299_s19, 2 }
  0x47   : > { %4313 = vmatmul.mubr.bf16.gmra.mxu0 %v5354_v30  ;;  %4333 = vmatmul.mubr.bf16.gmra.mxu1 %v5358_v31  ;;  %s6323_s13 = scalar_lea.vmem %s6532_s5, %s3614_s10 }
  0x48   : > { %4316 = vmatprep.mubr.bf16.mxu0 %v5364_v42  ;;  %4336 = vmatprep.mubr.bf16.mxu1 %v5368_v44 }
  0x49   : > { %4353 = vmatpush3.bf16.msra.mxu1 %v4894_v22  ;;  %4409 = vmatpush3.bf16.msra.mxu0 %v4902_v28  ;;  %v5423_v22 = vcombine.low %v5261_v57, %v5282_v63  ;;  %v5444_v57 = vcombine.low %v5098_v5, %v5173_v32  ;;  %v5448_v63 = vcombine.low %v5304_v9, %v5326_v18  ;;  %v4918_v5 = vld [vmem:[%s6529_s2 + $0x118] sm:$0xff]   ;;  %v4921_v9 = vld [vmem:[%s6529_s2 + $0x50] sm:$0xff]   ;;  %v4923_v18 = vld [vmem:[%s6529_s2 + $0x108] sm:$0xff]  }
  0x4a   : > { %4354 = vmatprep.subr.bf16.mxu1 %v4903_v52  ;;  %4410 = vmatprep.subr.bf16.mxu0 %v4904_v37  ;;  %v5452_v28 = vcombine.low %v5176_v33, %v5179_v34  ;;  %v4919_v32 = vld [vmem:[%s6529_s2 + $0x58] sm:$0xff]   ;;  %v5472_v33 = vcombine.low %v5329_v20, %v5340_v24  ;;  %v5475_v34 = vcombine.low %v5344_v25, %v371_v45  ;;  %v4924_v20 = vld [vmem:[%s6529_s2 + $0x48] sm:$0xff]   ;;  %v4927_v25 = vld [vmem:[%s6529_s2 + $0x100] sm:$0xff]  }
  0x4b   : > { %6553 = vst [vmem:[#allocation5_spill] sm:$0xff] %v5444_v57  ;;  %6554 = vst [vmem:[#allocation6_spill] sm:$0xff] %v5448_v63  ;;  %v5495_v24 = vcombine.low %v5382_v46, %v5101_v6  ;;  %v4931_v6 = vld [vmem:[%s6529_s2 + $0x1f8] sm:$0xff]   ;;  %v5537_v46 = vld [vmem:[%s5197_s25 + $0x20] sm:$0xff]  }
  0x4c   : > { %6555 = vst [vmem:[#allocation7_spill] sm:$0xff] %v5452_v28  ;;  %6556 = vst [vmem:[#allocation8_spill] sm:$0xff] %v5472_v33  ;;  %v5530_v45 = vld [vmem:[%s5197_s25 + $0x18] sm:$0xff]  }
  0x4d   : > { %4355 = vmatpush3.bf16.msra.mxu1 %v4903_v52  ;;  %4411 = vmatpush3.bf16.msra.mxu0 %v4904_v37  ;;  %6557 = vst [vmem:[#allocation9_spill] sm:$0xff] %v5475_v34  ;;  %6558 = vst [vmem:[#allocation10_spill] sm:$0xff] %v5495_v24  ;;  %v4930_v52 = vld [vmem:[%s6529_s2 + $0x40] sm:$0xff]   ;;  %v4932_v37 = vld [vmem:[%s6529_s2 + $0x178] sm:$0xff]  }
  0x4e   : > { %4452 = vmatprep.subr.bf16.mxu1 %v4907_v50  ;;  %4508 = vmatprep.subr.bf16.mxu0 %v4908_v54 }
  0x4f   : > { %4317 = vmatmul.mubr.bf16.gmra.mxu0 %v5391_v62  ;;  %4337 = vmatmul.mubr.bf16.gmra.mxu1 %v5394_v1 }
  0x50   : > { %4356 = vmatprep.mubr.bf16.mxu1 %v5401_v3  ;;  %4412 = vmatprep.mubr.bf16.mxu0 %v5398_v2 }
  0x57   : > { %4357 = vmatmul.mubr.bf16.vlgmr.msra.gmra.mxu1 %v5409_v17  ;;  %4413 = vmatmul.mubr.bf16.vlgmr.msra.gmra.mxu0 %v5413_v38 }
  0x58   : > { %4453 = vmatpush3.bf16.msra.mxu1 %v4907_v50  ;;  %4509 = vmatpush3.bf16.msra.mxu0 %v4908_v54  ;;  %v4933_v50 = vld [vmem:[%s6529_s2 + $0x1f0] sm:$0xff]  }
  0x59   : > { %4360 = vmatprep.mubr.bf16.mxu1 %v5426_v27  ;;  %4416 = vmatprep.mubr.bf16.mxu0 %v5423_v22  ;;  %v4934_v54 = vld [vmem:[%s6529_s2 + $0x170] sm:$0xff]  }
  0x5a   : > { %4454 = vmatprep.subr.bf16.mxu1 %v4911_v48  ;;  %4510 = vmatprep.subr.bf16.mxu0 %v4912_v21 }
  0x5c   : > { %4455 = vmatpush3.bf16.msra.mxu1 %v4911_v48  ;;  %4511 = vmatpush3.bf16.msra.mxu0 %v4912_v21  ;;  %v4936_v48 = vld [vmem:[%s6529_s2 + $0x168] sm:$0xff]   ;;  %v4937_v21 = vld [vmem:[%s6529_s2 + $0x1e0] sm:$0xff]  }
  0x5d   : > { %4456 = vmatprep.subr.bf16.mxu1 %v4914_v49  ;;  %4512 = vmatprep.subr.bf16.mxu0 %v4915_v56 }
  0x5f   : > { %4361 = vmatmul.mubr.bf16.gmra.mxu1 %v5444_v57  ;;  %4417 = vmatmul.mubr.bf16.gmra.mxu0 %v5440_v4 }
  0x60   : > { %4364 = vmatprep.mubr.bf16.mxu1 %v5452_v28  ;;  %4420 = vmatprep.mubr.bf16.mxu0 %v5448_v63 }
  0x61   : > { %4457 = vmatpush3.bf16.msra.mxu1 %v4914_v49  ;;  %4513 = vmatpush3.bf16.msra.mxu0 %v4915_v56  ;;  %v4938_v49 = vld [vmem:[%s6529_s2 + $0x160] sm:$0xff]   ;;  %v4939_v56 = vld [vmem:[%s6529_s2 + $0x1d8] sm:$0xff]  }
  0x62   : > { %4458 = vmatprep.subr.bf16.mxu1 %v4916_v29  ;;  %4514 = vmatprep.subr.bf16.mxu0 %v4917_v0 }
  0x65   : > { %4459 = vmatpush3.bf16.msra.mxu1 %v4916_v29  ;;  %4515 = vmatpush3.bf16.msra.mxu0 %v4917_v0  ;;  %v4940_v29 = vld [vmem:[%s6529_s2 + $0x158] sm:$0xff]   ;;  %v4941_v0 = vld [vmem:[%s6529_s2 + $0x1d0] sm:$0xff]  }
  0x66   : > { %4460 = vmatprep.subr.bf16.mxu1 %v4918_v5  ;;  %4516 = vmatprep.subr.bf16.mxu0 %v4919_v32 }
  0x67   : > { %4365 = vmatmul.mubr.bf16.gmra.mxu1 %v5398_v2  ;;  %4421 = vmatmul.mubr.bf16.gmra.mxu0 %v5472_v33 }
  0x68   : > { %4368 = vmatprep.mubr.bf16.mxu1 %v5413_v38  ;;  %4424 = vmatprep.mubr.bf16.mxu0 %v5475_v34 }
  0x69   : > { %4461 = vmatpush3.bf16.msra.mxu1 %v4918_v5  ;;  %4517 = vmatpush3.bf16.msra.mxu0 %v4919_v32  ;;  %v4942_v5 = vld [vmem:[%s6529_s2 + $0x150] sm:$0xff]   ;;  %v4943_v32 = vld [vmem:[%s6529_s2 + $0x1c8] sm:$0xff]  }
  0x6a   : > { %4462 = vmatprep.subr.bf16.mxu1 %v4920_v7  ;;  %4518 = vmatprep.subr.bf16.mxu0 %v4921_v9 }
  0x6d   : > { %4463 = vmatpush3.bf16.msra.mxu1 %v4920_v7  ;;  %4519 = vmatpush3.bf16.msra.mxu0 %v4921_v9  ;;  %v4944_v7 = vld [vmem:[%s6529_s2 + $0x148] sm:$0xff]   ;;  %v4945_v9 = vld [vmem:[%s6529_s2 + $0x1c0] sm:$0xff]  }
  0x6e   : > { %4464 = vmatprep.subr.bf16.mxu1 %v4923_v18  ;;  %4520 = vmatprep.subr.bf16.mxu0 %v4924_v20 }
  0x6f   : > { %4369 = vmatmul.mubr.bf16.gmra.mxu1 %v5423_v22  ;;  %4425 = vmatmul.mubr.bf16.gmra.mxu0 %v5495_v24 }
  0x70   : > { %4372 = vmatprep.mubr.bf16.mxu1 %v5440_v4  ;;  %4428 = vmatprep.mubr.bf16.mxu0 %v5117_v13 }
  0x71   : > { %4465 = vmatpush3.bf16.msra.mxu1 %v4923_v18  ;;  %4521 = vmatpush3.bf16.msra.mxu0 %v4924_v20  ;;  %v4946_v18 = vld [vmem:[%s6529_s2 + $0x140] sm:$0xff]   ;;  %v4947_v20 = vld [vmem:[%s6529_s2 + $0xb8] sm:$0xff]  }
  0x72   : > { %4466 = vmatprep.subr.bf16.mxu1 %v4927_v25  ;;  %4522 = vmatprep.subr.bf16.mxu0 %v4930_v52 }
  0x75   : > { %4467 = vmatpush3.bf16.msra.mxu1 %v4927_v25  ;;  %4523 = vmatpush3.bf16.msra.mxu0 %v4930_v52  ;;  %v4948_v25 = vld [vmem:[%s6529_s2 + $0x238] sm:$0xff]  }
  0x76   : > { %4564 = vmatprep.subr.bf16.mxu1 %v4931_v6  ;;  %4620 = vmatprep.subr.bf16.mxu0 %v4932_v37 }
  0x77   : > { %4373 = vmatmul.mubr.bf16.gmra.mxu1 %v5448_v63  ;;  %4429 = vmatmul.mubr.bf16.gmra.mxu0 %v5120_v15 }
  0x78   : > { %4376 = vmatprep.mubr.bf16.mxu1 %v5472_v33  ;;  %4432 = vmatprep.mubr.bf16.mxu0 %v5133_v19 }
  0x7f   : > { %4377 = vmatmul.mubr.bf16.gmra.mxu1 %v5475_v34  ;;  %4433 = vmatmul.mubr.bf16.gmra.mxu0 %v5143_v23 }
  0x80   : > { %4380 = vmatprep.mubr.bf16.mxu1 %v5495_v24  ;;  %4436 = vmatprep.mubr.bf16.mxu0 %v5153_v26 }
  0x87   : > { %4381 = vmatmul.mubr.bf16.gmra.mxu1 %v5117_v13  ;;  %4437 = vmatmul.mubr.bf16.gmra.mxu0 %v5183_v35 }
  0x88   : > { %4384 = vmatprep.mubr.bf16.mxu1 %v5120_v15  ;;  %4440 = vmatprep.mubr.bf16.mxu0 %v5201_v39 }
  0x8f   : > { %4385 = vmatmul.mubr.bf16.gmra.mxu1 %v5133_v19  ;;  %4441 = vmatmul.mubr.bf16.gmra.mxu0 %v5238_v51 }
  0x90   : > { %4388 = vmatprep.mubr.bf16.mxu1 %v5143_v23  ;;  %4444 = vmatprep.mubr.bf16.mxu0 %v5253_v55 }
  0x97   : > { %4389 = vmatmul.mubr.bf16.gmra.mxu1 %v5153_v26  ;;  %4445 = vmatmul.mubr.bf16.gmra.mxu0 %v5360_v36 }
  0x98   : > { %4392 = vmatprep.mubr.bf16.mxu1 %v5183_v35  ;;  %4448 = vmatprep.mubr.bf16.mxu0 %v5530_v45 }
  0x9f   : > { %4393 = vmatmul.mubr.bf16.gmra.mxu1 %v5201_v39  ;;  %4449 = vmatmul.mubr.bf16.gmra.mxu0 %v5537_v46 }
  0xa0   : > { %4468 = vmatprep.mubr.bf16.mxu1 %v5108_v8  ;;  %4524 = vmatprep.mubr.bf16.mxu0 %v5401_v3 }
  0xa7   : > { %4469 = vmatmul.mubr.bf16.vlgmr.msra.gmra.mxu1 %v5205_v40  ;;  %4525 = vmatmul.mubr.bf16.vlgmr.msra.gmra.mxu0 %v5409_v17 }
  0xa8   : > { %4565 = vmatpush3.bf16.msra.mxu1 %v4931_v6  ;;  %4621 = vmatpush3.bf16.msra.mxu0 %v4932_v37 }
  0xa9   : > { %4472 = vmatprep.mubr.bf16.mxu1 %v5214_v43  ;;  %4528 = vmatprep.mubr.bf16.mxu0 %v5426_v27 }
  0xaa   : > { %4566 = vmatprep.subr.bf16.mxu1 %v4933_v50  ;;  %4622 = vmatprep.subr.bf16.mxu0 %v4934_v54 }
  0xac   : > { %4567 = vmatpush3.bf16.msra.mxu1 %v4933_v50  ;;  %4623 = vmatpush3.bf16.msra.mxu0 %v4934_v54 }
  0xad   : > { %4568 = vmatprep.subr.bf16.mxu1 %v4935_v53  ;;  %4624 = vmatprep.subr.bf16.mxu0 %v4936_v48 }
  0xaf   : > { %4473 = vmatmul.mubr.bf16.gmra.mxu1 %v5265_v58  ;;  %4529 = vmatmul.mubr.bf16.gmra.mxu0 %v5444_v57 }
  0xb0   : > { %4476 = vmatprep.mubr.bf16.mxu1 %v5272_v60  ;;  %4532 = vmatprep.mubr.bf16.mxu0 %v5452_v28  ;;  %v4955_v28 = vld [vmem:[%s6529_s2 + $0x98] sm:$0xff]  }
  0xb1   : > { %4569 = vmatpush3.bf16.msra.mxu1 %v4935_v53  ;;  %4625 = vmatpush3.bf16.msra.mxu0 %v4936_v48 }
  0xb2   : > { %4570 = vmatprep.subr.bf16.mxu1 %v4937_v21  ;;  %4626 = vmatprep.subr.bf16.mxu0 %v4938_v49 }
  0xb5   : > { %4571 = vmatpush3.bf16.msra.mxu1 %v4937_v21  ;;  %4627 = vmatpush3.bf16.msra.mxu0 %v4938_v49  ;;  %v4949_v49 = vld [vmem:[%s6529_s2 + $0xb0] sm:$0xff]  }
  0xb6   : > { %4572 = vmatprep.subr.bf16.mxu1 %v4939_v56  ;;  %4628 = vmatprep.subr.bf16.mxu0 %v4940_v29 }
  0xb7   : > { %4477 = vmatmul.mubr.bf16.gmra.mxu1 %v5308_v11  ;;  %4533 = vmatmul.mubr.bf16.gmra.mxu0 %v5398_v2 }
  0xb8   : > { %4480 = vmatprep.mubr.bf16.mxu1 %v5316_v14  ;;  %4536 = vmatprep.mubr.bf16.mxu0 %v5413_v38 }
  0xb9   : > { %4573 = vmatpush3.bf16.msra.mxu1 %v4939_v56  ;;  %4629 = vmatpush3.bf16.msra.mxu0 %v4940_v29 }
  0xba   : > { %4574 = vmatprep.subr.bf16.mxu1 %v4941_v0  ;;  %4630 = vmatprep.subr.bf16.mxu0 %v4942_v5 }
  0xbd   : > { %4575 = vmatpush3.bf16.msra.mxu1 %v4941_v0  ;;  %4631 = vmatpush3.bf16.msra.mxu0 %v4942_v5 }
  0xbe   : > { %4576 = vmatprep.subr.bf16.mxu1 %v4943_v32  ;;  %4632 = vmatprep.subr.bf16.mxu0 %v4944_v7 }
  0xbf   : > { %4481 = vmatmul.mubr.bf16.gmra.mxu1 %v5354_v30  ;;  %4537 = vmatmul.mubr.bf16.gmra.mxu0 %v5423_v22 }
  0xc0   : > { %4484 = vmatprep.mubr.bf16.mxu1 %v5364_v42  ;;  %4540 = vmatprep.mubr.bf16.mxu0 %v5440_v4 }
  0xc1   : > { %4577 = vmatpush3.bf16.msra.mxu1 %v4943_v32  ;;  %4633 = vmatpush3.bf16.msra.mxu0 %v4944_v7  ;;  %v4951_v32 = vld [vmem:[%s6529_s2 + $0xa8] sm:$0xff]  }
  0xc2   : > { %4578 = vmatprep.subr.bf16.mxu1 %v4945_v9  ;;  %4634 = vmatprep.subr.bf16.mxu0 %v4946_v18  ;;  %v4952_v7 = vld [vmem:[%s6529_s2 + $0x228] sm:$0xff]  }
  0xc5   : > { %4579 = vmatpush3.bf16.msra.mxu1 %v4945_v9  ;;  %4635 = vmatpush3.bf16.msra.mxu0 %v4946_v18 }
  0xc6   : > { %4676 = vmatprep.subr.bf16.mxu1 %v4947_v20  ;;  %4732 = vmatprep.subr.bf16.mxu0 %v4948_v25 }
  0xc7   : > { %4485 = vmatmul.mubr.bf16.gmra.mxu1 %v5391_v62  ;;  %4541 = vmatmul.mubr.bf16.gmra.mxu0 %v5448_v63 }
  0xc8   : > { %4488 = vmatprep.mubr.bf16.mxu1 %v5112_v10  ;;  %4544 = vmatprep.mubr.bf16.mxu0 %v5472_v33 }
  0xcf   : > { %4489 = vmatmul.mubr.bf16.gmra.mxu1 %v5207_v41  ;;  %4545 = vmatmul.mubr.bf16.gmra.mxu0 %v5475_v34 }
  0xd0   : > { %4492 = vmatprep.mubr.bf16.mxu1 %v5225_v47  ;;  %4548 = vmatprep.mubr.bf16.mxu0 %v5495_v24 }
  0xd7   : > { %4493 = vmatmul.mubr.bf16.gmra.mxu1 %v5268_v59  ;;  %4549 = vmatmul.mubr.bf16.gmra.mxu0 %v5117_v13 }
  0xd8   : > { %4496 = vmatprep.mubr.bf16.mxu1 %v5276_v61  ;;  %4552 = vmatprep.mubr.bf16.mxu0 %v5120_v15 }
  0xdf   : > { %4497 = vmatmul.mubr.bf16.gmra.mxu1 %v5312_v12  ;;  %4553 = vmatmul.mubr.bf16.gmra.mxu0 %v5133_v19 }
  0xe0   : > { %4500 = vmatprep.mubr.bf16.mxu1 %v5320_v16  ;;  %4556 = vmatprep.mubr.bf16.mxu0 %v5143_v23 }
  0xe7   : > { %4501 = vmatmul.mubr.bf16.gmra.mxu1 %v5358_v31  ;;  %4557 = vmatmul.mubr.bf16.gmra.mxu0 %v5153_v26 }
  0xe8   : > { %4504 = vmatprep.mubr.bf16.mxu1 %v5368_v44  ;;  %4560 = vmatprep.mubr.bf16.mxu0 %v5183_v35 }
  0xef   : > { %v5627_v52 = vpop.f32.mrf.mxu0  ;;  %v5629_v6 = vpop.f32.mrf.mxu1  ;;  %4505 = vmatmul.mubr.bf16.gmra.mxu1 %v5394_v1  ;;  %4561 = vmatmul.mubr.bf16.gmra.mxu0 %v5201_v39 }
  0xf0   : > { %4580 = vmatprep.mubr.bf16.mxu1 %v5398_v2  ;;  %4636 = vmatprep.mubr.bf16.mxu0 %v5108_v8  ;;  %v4950_v8 = vld [vmem:[%s6529_s2 + $0x230] sm:$0xff]  }
  0xf1   : > { %v5635_v37 = vpop.f32.mrf.mxu0  ;;  %v5637_v50 = vpop.f32.mrf.mxu1 }
  0xf3   : > { %v5639_v54 = vpop.f32.mrf.mxu0  ;;  %v5641_v53 = vpop.f32.mrf.mxu1 }
  0xf5   : > { %v5643_v48 = vpop.f32.mrf.mxu0  ;;  %v5645_v21 = vpop.f32.mrf.mxu1 }
  0xf7   : > { %v5653_v56 = vpop.f32.mrf.mxu0  ;;  %v5655_v29 = vpop.f32.mrf.mxu1  ;;  %4581 = vmatmul.mubr.bf16.vlgmr.msra.gmra.mxu1 %v5413_v38  ;;  %4637 = vmatmul.mubr.bf16.vlgmr.msra.gmra.mxu0 %v5205_v40 }
  0xf8   : > { %4677 = vmatpush3.bf16.msra.mxu1 %v4947_v20  ;;  %4733 = vmatpush3.bf16.msra.mxu0 %v4948_v25  ;;  %v4954_v25 = vld [vmem:[%s6529_s2 + $0x220] sm:$0xff]  }
  0xf9   : > { %v649_v0 = vpop.f32.mrf.mxu0  ;;  %v725_v5 = vpop.f32.mrf.mxu1  ;;  %4584 = vmatprep.mubr.bf16.mxu1 %v5423_v22  ;;  %4640 = vmatprep.mubr.bf16.mxu0 %v5214_v43  ;;  %v4953_v43 = vld [vmem:[%s6529_s2 + $0xa0] sm:$0xff]  }
  0xfa   : > { %4678 = vmatprep.subr.bf16.mxu1 %v4949_v49  ;;  %4734 = vmatprep.subr.bf16.mxu0 %v4950_v8 }
  0xfb   : > { %v5667_v9 = vpop.f32.mrf.mxu0  ;;  %v5669_v40 = vpop.f32.mrf.mxu1 }
  0xfc   : > { %4679 = vmatpush3.bf16.msra.mxu1 %v4949_v49  ;;  %4735 = vmatpush3.bf16.msra.mxu0 %v4950_v8 }
  0xfd   : > { %v5671_v18 = vpop.f32.mrf.mxu0  ;;  %v5673_v20 = vpop.f32.mrf.mxu1  ;;  %4680 = vmatprep.subr.bf16.mxu1 %v4951_v32  ;;  %4736 = vmatprep.subr.bf16.mxu0 %v4952_v7 }
  0xff   : > { %v5681_v0 = vpop.f32.mrf.mxu0  ;;  %v5683_v5 = vpop.f32.mrf.mxu1  ;;  %4585 = vmatmul.mubr.bf16.gmra.mxu1 %v5440_v4  ;;  %4641 = vmatmul.mubr.bf16.gmra.mxu0 %v5265_v58  ;;  %v4956_v58 = vld [vmem:[%s6529_s2 + $0x218] sm:$0xff]  }
 0x100   : > { %6559 = vst [vmem:[#allocation11_spill] sm:$0xff] %v5683_v5  ;;  %4588 = vmatprep.mubr.bf16.mxu1 %v5448_v63  ;;  %4644 = vmatprep.mubr.bf16.mxu0 %v5272_v60 }
 0x101   : > { %v5689_v49 = vpop.f32.mrf.mxu0  ;;  %v5691_v8 = vpop.f32.mrf.mxu1  ;;  %4681 = vmatpush3.bf16.msra.mxu1 %v4951_v32  ;;  %4737 = vmatpush3.bf16.msra.mxu0 %v4952_v7  ;;  %v4957_v32 = vld [vmem:[%s6529_s2 + $0x90] sm:$0xff]  }
 0x102   : > { %6560 = vst [vmem:[#allocation12_spill] sm:$0xff] %v5691_v8  ;;  %4682 = vmatprep.subr.bf16.mxu1 %v4953_v43  ;;  %4738 = vmatprep.subr.bf16.mxu0 %v4954_v25  ;;  %v4958_v7 = vld [vmem:[%s6529_s2 + $0x210] sm:$0xff]  }
 0x103   : > { %v5699_v5 = vpop.f32.mrf.mxu0  ;;  %v5701_v63 = vpop.f32.mrf.mxu1 }
 0x105   : > { %v667_v60 = vpop.f32.mrf.mxu0  ;;  %v743_v4 = vpop.f32.mrf.mxu1  ;;  %4683 = vmatpush3.bf16.msra.mxu1 %v4953_v43  ;;  %4739 = vmatpush3.bf16.msra.mxu0 %v4954_v25 }
 0x106   : > { %4684 = vmatprep.subr.bf16.mxu1 %v4955_v28  ;;  %4740 = vmatprep.subr.bf16.mxu0 %v4956_v58 }
 0x107   : > { %v4314_v8 = vpop.f32.mrf.mxu0  ;;  %v4334_v57 = vpop.f32.mrf.mxu1  ;;  %4589 = vmatmul.mubr.bf16.gmra.mxu1 %v5472_v33  ;;  %4645 = vmatmul.mubr.bf16.gmra.mxu0 %v5308_v11  ;;  %v4960_v11 = vld [vmem:[%s6529_s2 + $0x208] sm:$0xff]  }
 0x108   : > { %4592 = vmatprep.mubr.bf16.mxu1 %v5475_v34  ;;  %4648 = vmatprep.mubr.bf16.mxu0 %v5316_v14  ;;  %v4959_v57 = vld [vmem:[%s6529_s2 + $0x88] sm:$0xff]  }
 0x109   : > { %v5713_v4 = vpop.f32.mrf.mxu0  ;;  %v5715_v43 = vpop.f32.mrf.mxu1  ;;  %4685 = vmatpush3.bf16.msra.mxu1 %v4955_v28  ;;  %4741 = vmatpush3.bf16.msra.mxu0 %v4956_v58  ;;  %v4961_v28 = vld [vmem:[%s6529_s2 + $0x80] sm:$0xff]  }
 0x10a   : > { %6561 = vst [vmem:[#allocation13_spill] sm:$0xff] %v5715_v43  ;;  %4686 = vmatprep.subr.bf16.mxu1 %v4957_v32  ;;  %4742 = vmatprep.subr.bf16.mxu0 %v4958_v7  ;;  %v4962_v58 = vld [vmem:[%s6529_s2 + $0x200] sm:$0xff]  }
 0x10b   : > { %v5723_v25 = vpop.f32.mrf.mxu0  ;;  %v5725_v8 = vpop.f32.mrf.mxu1 }
 0x10c   : > { %6562 = vst [vmem:[#allocation14_spill] sm:$0xff] %v5725_v8 }
 0x10d   : > { %v5727_v14 = vpop.f32.mrf.mxu0  ;;  %v5729_v60 = vpop.f32.mrf.mxu1  ;;  %4687 = vmatpush3.bf16.msra.mxu1 %v4957_v32  ;;  %4743 = vmatpush3.bf16.msra.mxu0 %v4958_v7 }
 0x10e   : > { %6563 = vst [vmem:[#allocation15_spill] sm:$0xff] %v5729_v60  ;;  %4688 = vmatprep.subr.bf16.mxu1 %v4959_v57  ;;  %4744 = vmatprep.subr.bf16.mxu0 %v4960_v11 }
 0x10f   : > { %v5737_v43 = vpop.f32.mrf.mxu0  ;;  %v5739_v34 = vpop.f32.mrf.mxu1  ;;  %4593 = vmatmul.mubr.bf16.gmra.mxu1 %v5495_v24  ;;  %4649 = vmatmul.mubr.bf16.gmra.mxu0 %v5354_v30 }
 0x110   : > { %6564 = vst [vmem:[#allocation16_spill] sm:$0xff] %v5739_v34  ;;  %4596 = vmatprep.mubr.bf16.mxu1 %v5117_v13  ;;  %4652 = vmatprep.mubr.bf16.mxu0 %v5364_v42 }
 0x111   : > { %v5745_v32 = vpop.f32.mrf.mxu0  ;;  %v5747_v7 = vpop.f32.mrf.mxu1  ;;  %4689 = vmatpush3.bf16.msra.mxu1 %v4959_v57  ;;  %4745 = vmatpush3.bf16.msra.mxu0 %v4960_v11 }
 0x112   : > { %6565 = vst [vmem:[#allocation17_spill] sm:$0xff] %v5747_v7  ;;  %4690 = vmatprep.subr.bf16.mxu1 %v4961_v28  ;;  %4746 = vmatprep.subr.bf16.mxu0 %v4962_v58 }
 0x113   : > { %v4319_v60 = vpop.f32.mrf.mxu0  ;;  %v4339_v8 = vpop.f32.mrf.mxu1 }
 0x115   : > { %v5749_v33 = vpop.f32.mrf.mxu0  ;;  %v5751_v34 = vpop.f32.mrf.mxu1  ;;  %4691 = vmatpush3.bf16.msra.mxu1 %v4961_v28  ;;  %4747 = vmatpush3.bf16.msra.mxu0 %v4962_v58 }
 0x116   : > { %6566 = vst [vmem:[#allocation18_spill] sm:$0xff] %v5751_v34 }
 0x117   : > { %v4358_v30 = vpop.f32.mrf.mxu1  ;;  %v4414_v13 = vpop.f32.mrf.mxu0  ;;  %4597 = vmatmul.mubr.bf16.gmra.mxu1 %v5120_v15  ;;  %4653 = vmatmul.mubr.bf16.gmra.mxu0 %v5391_v62 }
 0x118   : > { %v925_v42 = vadd.f32 %v4358_v30, %v5627_v52  ;;  %4600 = vmatprep.mubr.bf16.mxu1 %v5133_v19  ;;  %4656 = vmatprep.mubr.bf16.mxu0 %v5112_v10 }
 0x119   : > { %v916_v57 = vpop.f32.mrf.mxu1  ;;  %v1186_v11 = vpop.f32.mrf.mxu0 }
 0x11a   : > { %v5758_v8 = vadd.f32 %v4414_v13, %v925_v42  ;;  %v917_v60 = vadd.f32 %v916_v57, %v5635_v37 }
 0x11b   : > { %v4359_v28 = vpop.f32.mrf.mxu1  ;;  %v4415_v58 = vpop.f32.mrf.mxu0 }
 0x11c   : > { %v5761_v34 = vadd.f32 %v1186_v11, %v917_v60  ;;  %v928_v15 = vadd.f32 %v4359_v28, %v5639_v54 }
 0x11d   : > { %v919_v7 = vpop.f32.mrf.mxu1  ;;  %v1189_v62 = vpop.f32.mrf.mxu0 }
 0x11e   : > { %v5764_v24 = vadd.f32 %v4415_v58, %v928_v15  ;;  %v920_v52 = vadd.f32 %v919_v7, %v5643_v48 }
 0x11f   : > { %v4362_v30 = vpop.f32.mrf.mxu1  ;;  %v4418_v10 = vpop.f32.mrf.mxu0  ;;  %4601 = vmatmul.mubr.bf16.gmra.mxu1 %v5143_v23  ;;  %4657 = vmatmul.mubr.bf16.gmra.mxu0 %v5207_v41 }
 0x120   : > { %v5769_v13 = vadd.f32 %v1189_v62, %v920_v52  ;;  %v940_v37 = vadd.f32 %v4362_v30, %v5653_v56  ;;  %4604 = vmatprep.mubr.bf16.mxu1 %v5153_v26  ;;  %4660 = vmatprep.mubr.bf16.mxu0 %v5225_v47 }
 0x121   : > { %v932_v54 = vpop.f32.mrf.mxu1  ;;  %v1202_v42 = vpop.f32.mrf.mxu0 }
 0x122   : > { %v5774_v15 = vadd.f32 %v4418_v10, %v940_v37 }
 0x123   : > { %v4363_v57 = vpop.f32.mrf.mxu1  ;;  %v4419_v48 = vpop.f32.mrf.mxu0 }
 0x124   : > { %v943_v7 = vadd.f32 %v4363_v57, %v5667_v9 }
 0x125   : > { %v934_v11 = vpop.f32.mrf.mxu1  ;;  %v1204_v60 = vpop.f32.mrf.mxu0 }
 0x126   : > { %v5777_v28 = vadd.f32 %v4419_v48, %v943_v7  ;;  %v935_v41 = vadd.f32 %v934_v11, %v5671_v18 }
 0x127   : > { %v4366_v58 = vpop.f32.mrf.mxu1  ;;  %v4422_v56 = vpop.f32.mrf.mxu0  ;;  %4605 = vmatmul.mubr.bf16.gmra.mxu1 %v5183_v35  ;;  %4661 = vmatmul.mubr.bf16.gmra.mxu0 %v5268_v59 }
 0x128   : > { %v5782_v47 = vadd.f32 %v1204_v60, %v935_v41  ;;  %v955_v62 = vadd.f32 %v4366_v58, %v5681_v0  ;;  %4608 = vmatprep.mubr.bf16.mxu1 %v5201_v39  ;;  %4664 = vmatprep.mubr.bf16.mxu0 %v5276_v61 }
 0x129   : > { %v947_v9 = vpop.f32.mrf.mxu1  ;;  %v1217_v52 = vpop.f32.mrf.mxu0 }
 0x12a   : > { %v5787_v30 = vadd.f32 %v4422_v56, %v955_v62  ;;  %v948_v18 = vadd.f32 %v947_v9, %v5689_v49 }
 0x12b   : > { %v4367_v10 = vpop.f32.mrf.mxu1  ;;  %v4423_v37 = vpop.f32.mrf.mxu0 }
 0x12c   : > { %v5790_v54 = vadd.f32 %v1217_v52, %v948_v18  ;;  %v958_v59 = vadd.f32 %v4367_v10, %v5699_v5 }
 0x12d   : > { %v950_v42 = vpop.f32.mrf.mxu1  ;;  %v1220_v57 = vpop.f32.mrf.mxu0 }
 0x12e   : > { %v5793_v48 = vadd.f32 %v4423_v37, %v958_v59 }
 0x12f   : > { %v4370_v0 = vpop.f32.mrf.mxu1  ;;  %v4426_v7 = vpop.f32.mrf.mxu0  ;;  %4609 = vmatmul.mubr.bf16.gmra.mxu1 %v5238_v51  ;;  %4665 = vmatmul.mubr.bf16.gmra.mxu0 %v5312_v12 }
 0x130   : > { %4612 = vmatprep.mubr.bf16.mxu1 %v5253_v55  ;;  %4668 = vmatprep.mubr.bf16.mxu0 %v5320_v16 }
 0x131   : > { %v962_v61 = vpop.f32.mrf.mxu1  ;;  %v1232_v49 = vpop.f32.mrf.mxu0 }
 0x132   : > { %v963_v11 = vadd.f32 %v962_v61, %v5713_v4 }
 0x133   : > { %v4371_v60 = vpop.f32.mrf.mxu1  ;;  %v4427_v5 = vpop.f32.mrf.mxu0 }
 0x134   : > { %v5800_v41 = vadd.f32 %v1232_v49, %v963_v11  ;;  %v973_v58 = vadd.f32 %v4371_v60, %v5723_v25 }
 0x135   : > { %v965_v56 = vpop.f32.mrf.mxu1  ;;  %v1235_v62 = vpop.f32.mrf.mxu0 }
 0x136   : > { %v5803_v9 = vadd.f32 %v4427_v5, %v973_v58  ;;  %v966_v12 = vadd.f32 %v965_v56, %v5727_v14 }
 0x137   : > { %v4374_v52 = vpop.f32.mrf.mxu1  ;;  %v4430_v18 = vpop.f32.mrf.mxu0  ;;  %4613 = vmatmul.mubr.bf16.gmra.mxu1 %v5360_v36  ;;  %4669 = vmatmul.mubr.bf16.gmra.mxu0 %v5358_v31 }
 0x138   : > { %v5808_v16 = vadd.f32 %v1235_v62, %v966_v12  ;;  %v986_v4 = vadd.f32 %v4374_v52, %v5737_v43  ;;  %4616 = vmatprep.mubr.bf16.mxu1 %v5530_v45  ;;  %4672 = vmatprep.mubr.bf16.mxu0 %v5368_v44 }
 0x139   : > { %v977_v25 = vpop.f32.mrf.mxu1  ;;  %v1247_v10 = vpop.f32.mrf.mxu0 }
 0x13a   : > { %v5813_v37 = vadd.f32 %v4430_v18, %v986_v4  ;;  %v978_v14 = vadd.f32 %v977_v25, %v5745_v32 }
 0x13b   : > { %v4375_v59 = vpop.f32.mrf.mxu1  ;;  %v4431_v42 = vpop.f32.mrf.mxu0 }
 0x13c   : > { %v5816_v57 = vadd.f32 %v1247_v10, %v978_v14 }
 0x13d   : > { %v980_v0 = vpop.f32.mrf.mxu1  ;;  %v1250_v31 = vpop.f32.mrf.mxu0 }
 0x13e   : > { %v981_v7 = vadd.f32 %v980_v0, %v5749_v33 }
 0x13f   : > { %v4378_v61 = vpop.f32.mrf.mxu1  ;;  %v4434_v43 = vpop.f32.mrf.mxu0  ;;  %4617 = vmatmul.mubr.bf16.gmra.mxu1 %v5537_v46  ;;  %4673 = vmatmul.mubr.bf16.gmra.mxu0 %v5394_v1 }
 0x140   : > { %v5821_v44 = vadd.f32 %v1250_v31, %v981_v7  ;;  %v1001_v49 = vadd.f32 %v4378_v61, %v5629_v6  ;;  %4692 = vmatprep.mubr.bf16.mxu1 %v5401_v3  ;;  %4748 = vmatprep.mubr.bf16.mxu0 %v5398_v2  ;;  %v6570_v61 = vld [vmem:[#allocation5_spill] sm:$0xff] }
 0x141   : > { %v992_v32 = vpop.f32.mrf.mxu1  ;;  %v1262_v11 = vpop.f32.mrf.mxu0 }
 0x142   : > { %v5826_v60 = vadd.f32 %v4434_v43, %v1001_v49  ;;  %v993_v33 = vadd.f32 %v992_v32, %v5637_v50  ;;  %v6573_v49 = vld [vmem:[#allocation11_spill] sm:$0xff] }
 0x143   : > { %v4379_v5 = vpop.f32.mrf.mxu1  ;;  %v4435_v58 = vpop.f32.mrf.mxu0 }
 0x144   : > { %v5829_v56 = vadd.f32 %v1262_v11, %v993_v33  ;;  %v1004_v1 = vadd.f32 %v4379_v5, %v5641_v53  ;;  %v6574_v11 = vld [vmem:[#allocation7_spill] sm:$0xff]  ;;  %v6575_v33 = vld [vmem:[#allocation6_spill] sm:$0xff] }
 0x145   : > { %v995_v62 = vpop.f32.mrf.mxu1  ;;  %v1265_v12 = vpop.f32.mrf.mxu0 }
 0x146   : > { %v5832_v52 = vadd.f32 %v4435_v58, %v1004_v1  ;;  %v996_v3 = vadd.f32 %v995_v62, %v5645_v21  ;;  %v6577_v1 = vld [vmem:[#allocation12_spill] sm:$0xff] }
 0x147   : > { %v4382_v6 = vpop.f32.mrf.mxu1  ;;  %v4438_v18 = vpop.f32.mrf.mxu0  ;;  %4693 = vmatmul.mubr.bf16.vlgmr.msra.gmra.mxu1 %v5409_v17  ;;  %4749 = vmatmul.mubr.bf16.vlgmr.msra.gmra.mxu0 %v5413_v38 }
 0x148   : > { %6567 = vst [vmem:[#allocation19_spill] sm:$0xff] %v5832_v52  ;;  %v5837_v4 = vadd.f32 %v1265_v12, %v996_v3  ;;  %v1016_v50 = vadd.f32 %v4382_v6, %v5655_v29  ;;  %4696 = vmatprep.mubr.bf16.mxu1 %v5426_v27  ;;  %4752 = vmatprep.mubr.bf16.mxu0 %v5423_v22  ;;  %v6571_v27 = vld [vmem:[#allocation4_spill] sm:$0xff] }
 0x149   : > { %v1008_v53 = vpop.f32.mrf.mxu1  ;;  %v1278_v25 = vpop.f32.mrf.mxu0 }
 0x14a   : > { %v5842_v10 = vadd.f32 %v4438_v18, %v1016_v50 }
 0x14b   : > { %v4383_v14 = vpop.f32.mrf.mxu1  ;;  %v4439_v21 = vpop.f32.mrf.mxu0 }
 0x14c   : > { %6568 = vst [vmem:[#allocation20_spill] sm:$0xff] %v5842_v10  ;;  %v1019_v59 = vadd.f32 %v4383_v14, %v5669_v40 }
 0x14d   : > { %v1010_v42 = vpop.f32.mrf.mxu1  ;;  %v1280_v17 = vpop.f32.mrf.mxu0 }
 0x14e   : > { %v5845_v0 = vadd.f32 %v4439_v21, %v1019_v59  ;;  %v1011_v31 = vadd.f32 %v1010_v42, %v5673_v20  ;;  %v6580_v21 = vld [vmem:[#allocation8_spill] sm:$0xff]  ;;  %v6581_v59 = vld [vmem:[#allocation9_spill] sm:$0xff] }
 0x14f   : > { %v4386_v7 = vpop.f32.mrf.mxu1  ;;  %v4442_v29 = vpop.f32.mrf.mxu0  ;;  %4697 = vmatmul.mubr.bf16.gmra.mxu1 %v6570_v61  ;;  %4753 = vmatmul.mubr.bf16.gmra.mxu0 %v6571_v27 }
 0x150   : > { %6569 = vst [vmem:[#allocation21_spill] sm:$0xff] %v5845_v0  ;;  %v5850_v43 = vadd.f32 %v1280_v17, %v1011_v31  ;;  %v1031_v32 = vadd.f32 %v4386_v7, %v6573_v49  ;;  %4700 = vmatprep.mubr.bf16.mxu1 %v6574_v11  ;;  %4756 = vmatprep.mubr.bf16.mxu0 %v6575_v33  ;;  %v6582_v31 = vld [vmem:[#allocation13_spill] sm:$0xff]  ;;  %v6584_v49 = vld [vmem:[#allocation14_spill] sm:$0xff] }
 0x151   : > { %v1023_v40 = vpop.f32.mrf.mxu1  ;;  %v1293_v5 = vpop.f32.mrf.mxu0 }
 0x152   : > { %6572 = vst [vmem:[#allocation5_spill] sm:$0xff] %v5850_v43  ;;  %v5855_v58 = vadd.f32 %v4442_v29, %v1031_v32  ;;  %v1024_v20 = vadd.f32 %v1023_v40, %v6577_v1 }
 0x153   : > { %v4387_v62 = vpop.f32.mrf.mxu1  ;;  %v4443_v12 = vpop.f32.mrf.mxu0 }
 0x154   : > { %6576 = vst [vmem:[#allocation4_spill] sm:$0xff] %v5855_v58  ;;  %v5858_v3 = vadd.f32 %v1293_v5, %v1024_v20  ;;  %v1034_v6 = vadd.f32 %v4387_v62, %v5701_v63  ;;  %v6587_v62 = vld [vmem:[#allocation10_spill] sm:$0xff] }
 0x155   : > { %v1026_v18 = vpop.f32.mrf.mxu1  ;;  %v1296_v50 = vpop.f32.mrf.mxu0 }
 0x156   : > { %6578 = vst [vmem:[#allocation11_spill] sm:$0xff] %v5858_v3  ;;  %v5861_v53 = vadd.f32 %v4443_v12, %v1034_v6  ;;  %v6589_v6 = vld [vmem:[#allocation16_spill] sm:$0xff]  ;;  %v6590_v50 = vld [vmem:[#allocation2_spill] sm:$0xff] }
 0x157   : > { %v4390_v25 = vpop.f32.mrf.mxu1  ;;  %v4446_v14 = vpop.f32.mrf.mxu0  ;;  %4701 = vmatmul.mubr.bf16.gmra.mxu1 %v5398_v2  ;;  %4757 = vmatmul.mubr.bf16.gmra.mxu0 %v6580_v21  ;;  %v6586_v2 = vld [vmem:[#allocation15_spill] sm:$0xff] }
 0x158   : > { %6579 = vst [vmem:[#allocation7_spill] sm:$0xff] %v5861_v53  ;;  %4704 = vmatprep.mubr.bf16.mxu1 %v5413_v38  ;;  %4760 = vmatprep.mubr.bf16.mxu0 %v6581_v59 }
 0x159   : > { %v1038_v42 = vpop.f32.mrf.mxu1  ;;  %v1308_v17 = vpop.f32.mrf.mxu0 }
 0x15a   : > { %v1039_v7 = vadd.f32 %v1038_v42, %v6582_v31 }
 0x15b   : > { %v4391_v29 = vpop.f32.mrf.mxu1  ;;  %v4447_v63 = vpop.f32.mrf.mxu0 }
 0x15c   : > { %v5868_v61 = vadd.f32 %v1308_v17, %v1039_v7  ;;  %v1049_v32 = vadd.f32 %v4391_v29, %v6584_v49  ;;  %v6592_v17 = vld [vmem:[#allocation17_spill] sm:$0xff] }
 0x15d   : > { %v1041_v11 = vpop.f32.mrf.mxu1  ;;  %v1311_v40 = vpop.f32.mrf.mxu0 }
 0x15e   : > { %6583 = vst [vmem:[#allocation6_spill] sm:$0xff] %v5868_v61  ;;  %v5871_v5 = vadd.f32 %v4447_v63, %v1049_v32  ;;  %v1042_v1 = vadd.f32 %v1041_v11, %v6586_v2  ;;  %v6594_v32 = vld [vmem:[#allocation18_spill] sm:$0xff] }
 0x15f   : > { %v4394_v20 = vpop.f32.mrf.mxu1  ;;  %v4450_v38 = vpop.f32.mrf.mxu0  ;;  %4705 = vmatmul.mubr.bf16.gmra.mxu1 %v5423_v22  ;;  %4761 = vmatmul.mubr.bf16.gmra.mxu0 %v6587_v62 }
 0x160   : > { %6585 = vst [vmem:[#allocation12_spill] sm:$0xff] %v5871_v5  ;;  %v5876_v12 = vadd.f32 %v1311_v40, %v1042_v1  ;;  %v1062_v18 = vadd.f32 %v4394_v20, %v6589_v6  ;;  %4708 = vmatprep.mubr.bf16.mxu1 %v6571_v27  ;;  %4764 = vmatprep.mubr.bf16.mxu0 %v6590_v50  ;;  %v6595_v27 = vld [vmem:[#allocation3_spill] sm:$0xff] }
 0x161   : > { %v1053_v25 = vpop.f32.mrf.mxu1  ;;  %v1323_v14 = vpop.f32.mrf.mxu0 }
 0x162   : > { %6588 = vst [vmem:[#allocation8_spill] sm:$0xff] %v5876_v12  ;;  %v5881_v42 = vadd.f32 %v4450_v38, %v1062_v18  ;;  %v1054_v31 = vadd.f32 %v1053_v25, %v6592_v17 }
 0x163   : > { %v4395_v7 = vpop.f32.mrf.mxu1  ;;  %v4451_v29 = vpop.f32.mrf.mxu0 }
 0x164   : > { %6591 = vst [vmem:[#allocation9_spill] sm:$0xff] %v5881_v42  ;;  %v5884_v63 = vadd.f32 %v1323_v14, %v1054_v31 }
 0x165   : > { %v1056_v22 = vpop.f32.mrf.mxu1  ;;  %v1326_v49 = vpop.f32.mrf.mxu0 }
 0x166   : > { %6593 = vst [vmem:[#allocation13_spill] sm:$0xff] %v5884_v63  ;;  %v1057_v11 = vadd.f32 %v1056_v22, %v6594_v32 }
 0x167   : > { %v4470_v40 = vpop.f32.mrf.mxu1  ;;  %v4526_v2 = vpop.f32.mrf.mxu0  ;;  %4709 = vmatmul.mubr.bf16.gmra.mxu1 %v6575_v33  ;;  %4765 = vmatmul.mubr.bf16.gmra.mxu0 %v6595_v27 }
 0x168   : > { %v5889_v1 = vadd.f32 %v1326_v49, %v1057_v11  ;;  %v5891_v20 = vadd.f32 %v4526_v2, %v4470_v40  ;;  %4712 = vmatprep.mubr.bf16.mxu1 %v6580_v21  ;;  %4768 = vmatprep.mubr.bf16.mxu0 %v5133_v19 }
 0x169   : > { %v1485_v38 = vpop.f32.mrf.mxu1  ;;  %v1726_v6 = vpop.f32.mrf.mxu0 }
 0x16a   : > { %6596 = vst [vmem:[#allocation14_spill] sm:$0xff] %v5889_v1  ;;  %v5895_v18 = vadd.f32 %v1726_v6, %v1485_v38 }
 0x16b   : > { %v4471_v25 = vpop.f32.mrf.mxu1  ;;  %v4527_v14 = vpop.f32.mrf.mxu0 }
 0x16c   : > { %v5897_v17 = vadd.f32 %v4527_v14, %v4471_v25 }
 0x16d   : > { %v1488_v31 = vpop.f32.mrf.mxu1  ;;  %v1729_v33 = vpop.f32.mrf.mxu0 }
 0x16e   : > { %v5899_v7 = vadd.f32 %v1729_v33, %v1488_v31 }
 0x16f   : > { %v4474_v29 = vpop.f32.mrf.mxu1  ;;  %v4530_v22 = vpop.f32.mrf.mxu0  ;;  %4713 = vmatmul.mubr.bf16.gmra.mxu1 %v6581_v59  ;;  %4769 = vmatmul.mubr.bf16.gmra.mxu0 %v5143_v23 }
 0x170   : > { %v5903_v21 = vadd.f32 %v4530_v22, %v4474_v29  ;;  %4716 = vmatprep.mubr.bf16.mxu1 %v6587_v62  ;;  %4772 = vmatprep.mubr.bf16.mxu0 %v5153_v26 }
 0x171   : > { %v1501_v49 = vpop.f32.mrf.mxu1  ;;  %v1742_v32 = vpop.f32.mrf.mxu0 }
 0x172   : > { %v5907_v11 = vadd.f32 %v1742_v32, %v1501_v49 }
 0x173   : > { %v4475_v40 = vpop.f32.mrf.mxu1  ;;  %v4531_v2 = vpop.f32.mrf.mxu0 }
 0x174   : > { %v5909_v38 = vadd.f32 %v4531_v2, %v4475_v40 }
 0x175   : > { %v1504_v6 = vpop.f32.mrf.mxu1  ;;  %v1745_v25 = vpop.f32.mrf.mxu0 }
 0x176   : > { %v5911_v14 = vadd.f32 %v1745_v25, %v1504_v6 }
 0x177   : > { %v4478_v59 = vpop.f32.mrf.mxu1  ;;  %v4534_v31 = vpop.f32.mrf.mxu0  ;;  %4717 = vmatmul.mubr.bf16.gmra.mxu1 %v6590_v50  ;;  %4773 = vmatmul.mubr.bf16.gmra.mxu0 %v5183_v35 }
 0x178   : > { %v5915_v62 = vadd.f32 %v4534_v31, %v4478_v59  ;;  %4720 = vmatprep.mubr.bf16.mxu1 %v6595_v27  ;;  %4776 = vmatprep.mubr.bf16.mxu0 %v5201_v39 }
 0x179   : > { %v1517_v33 = vpop.f32.mrf.mxu1  ;;  %v1758_v29 = vpop.f32.mrf.mxu0 }
 0x17a   : > { %v5919_v22 = vadd.f32 %v1758_v29, %v1517_v33 }
 0x17b   : > { %v4479_v49 = vpop.f32.mrf.mxu1  ;;  %v4535_v32 = vpop.f32.mrf.mxu0 }
 0x17c   : > { %v5921_v40 = vadd.f32 %v4535_v32, %v4479_v49 }
 0x17d   : > { %v1520_v2 = vpop.f32.mrf.mxu1  ;;  %v1761_v6 = vpop.f32.mrf.mxu0 }
 0x17e   : > { %v5923_v25 = vadd.f32 %v1761_v6, %v1520_v2 }
 0x17f   : > { %v4482_v50 = vpop.f32.mrf.mxu1  ;;  %v4538_v1 = vpop.f32.mrf.mxu0  ;;  %4721 = vmatmul.mubr.bf16.gmra.mxu1 %v5133_v19  ;;  %4777 = vmatmul.mubr.bf16.gmra.mxu0 %v5238_v51 }
 0x180   : > { %v5927_v27 = vadd.f32 %v4538_v1, %v4482_v50  ;;  %4724 = vmatprep.mubr.bf16.mxu1 %v5143_v23  ;;  %4780 = vmatprep.mubr.bf16.mxu0 %v5253_v55 }
 0x181   : > { %v1533_v59 = vpop.f32.mrf.mxu1  ;;  %v1774_v31 = vpop.f32.mrf.mxu0 }
 0x182   : > { %v5931_v33 = vadd.f32 %v1774_v31, %v1533_v59 }
 0x183   : > { %v4483_v29 = vpop.f32.mrf.mxu1  ;;  %v4539_v49 = vpop.f32.mrf.mxu0 }
 0x184   : > { %v5933_v32 = vadd.f32 %v4539_v49, %v4483_v29 }
 0x185   : > { %v1536_v2 = vpop.f32.mrf.mxu1  ;;  %v1777_v6 = vpop.f32.mrf.mxu0 }
 0x186   : > { %v5935_v63 = vadd.f32 %v1777_v6, %v1536_v2 }
 0x187   : > { %v4486_v19 = vpop.f32.mrf.mxu1  ;;  %v4542_v51 = vpop.f32.mrf.mxu0  ;;  %4725 = vmatmul.mubr.bf16.gmra.mxu1 %v5153_v26  ;;  %4781 = vmatmul.mubr.bf16.gmra.mxu0 %v5360_v36 }
 0x188   : > { %v5939_v23 = vadd.f32 %v4542_v51, %v4486_v19  ;;  %4728 = vmatprep.mubr.bf16.mxu1 %v5183_v35  ;;  %4784 = vmatprep.mubr.bf16.mxu0 %v5530_v45 }
 0x189   : > { %v1549_v55 = vpop.f32.mrf.mxu1  ;;  %v1790_v1 = vpop.f32.mrf.mxu0 }
 0x18a   : > { %v5943_v50 = vadd.f32 %v1790_v1, %v1549_v55 }
 0x18b   : > { %v4487_v59 = vpop.f32.mrf.mxu1  ;;  %v4543_v31 = vpop.f32.mrf.mxu0 }
 0x18c   : > { %v5945_v29 = vadd.f32 %v4543_v31, %v4487_v59 }
 0x18d   : > { %v1552_v49 = vpop.f32.mrf.mxu1  ;;  %v1793_v2 = vpop.f32.mrf.mxu0 }
 0x18e   : > { %v5947_v6 = vadd.f32 %v1793_v2, %v1552_v49 }
 0x18f   : > { %v4490_v26 = vpop.f32.mrf.mxu1  ;;  %v4546_v36 = vpop.f32.mrf.mxu0  ;;  %4729 = vmatmul.mubr.bf16.gmra.mxu1 %v5201_v39  ;;  %4785 = vmatmul.mubr.bf16.gmra.mxu0 %v5537_v46 }
 0x190   : > { %v5951_v35 = vadd.f32 %v4546_v36, %v4490_v26 }
 0x191   : > { %v1565_v45 = vpop.f32.mrf.mxu1  ;;  %v1806_v19 = vpop.f32.mrf.mxu0 }
 0x192   : > { %v5953_v51 = vadd.f32 %v1806_v19, %v1565_v45 }
 0x193   : > { %v4491_v55 = vpop.f32.mrf.mxu1  ;;  %v4547_v1 = vpop.f32.mrf.mxu0 }
 0x194   : > { %v5955_v59 = vadd.f32 %v4547_v1, %v4491_v55 }
 0x195   : > { %v1568_v31 = vpop.f32.mrf.mxu1  ;;  %v1809_v42 = vpop.f32.mrf.mxu0 }
 0x196   : > { %v5957_v49 = vadd.f32 %v1809_v42, %v1568_v31 }
 0x197   : > { %v4494_v2 = vpop.f32.mrf.mxu1  ;;  %v4550_v5 = vpop.f32.mrf.mxu0 }
 0x198   : > { %v5959_v12 = vadd.f32 %v4550_v5, %v4494_v2 }
 0x199   : > { %v1581_v39 = vpop.f32.mrf.mxu1  ;;  %v1822_v46 = vpop.f32.mrf.mxu0 }
 0x19a   : > { %v5961_v26 = vadd.f32 %v1822_v46, %v1581_v39 }
 0x19b   : > { %v4495_v36 = vpop.f32.mrf.mxu1  ;;  %v4551_v61 = vpop.f32.mrf.mxu0 }
 0x19c   : > { %v5963_v45 = vadd.f32 %v4551_v61, %v4495_v36 }
 0x19d   : > { %v1584_v19 = vpop.f32.mrf.mxu1  ;;  %v1825_v53 = vpop.f32.mrf.mxu0 }
 0x19e   : > { %v5965_v55 = vadd.f32 %v1825_v53, %v1584_v19 }
 0x19f   : > { %v4498_v1 = vpop.f32.mrf.mxu1  ;;  %v4554_v3 = vpop.f32.mrf.mxu0 }
 0x1a0   : > { %v5967_v42 = vadd.f32 %v4554_v3, %v4498_v1 }
 0x1a1   : > { %v1597_v31 = vpop.f32.mrf.mxu1  ;;  %v1838_v58 = vpop.f32.mrf.mxu0 }
 0x1a2   : > { %6597 = vst [vmem:[#allocation15_spill] sm:$0xff] %v5967_v42  ;;  %v5969_v5 = vadd.f32 %v1838_v58, %v1597_v31 }
 0x1a3   : > { %v4499_v2 = vpop.f32.mrf.mxu1  ;;  %v4555_v0 = vpop.f32.mrf.mxu0 }
 0x1a4   : > { %6598 = vst [vmem:[#allocation10_spill] sm:$0xff] %v5969_v5  ;;  %v5971_v39 = vadd.f32 %v4555_v0, %v4499_v2 }
 0x1a5   : > { %v1600_v46 = vpop.f32.mrf.mxu1  ;;  %v1841_v43 = vpop.f32.mrf.mxu0 }
 0x1a6   : > { %6599 = vst [vmem:[#allocation16_spill] sm:$0xff] %v5971_v39  ;;  %v5973_v61 = vadd.f32 %v1841_v43, %v1600_v46 }
 0x1a7   : > { %v4502_v36 = vpop.f32.mrf.mxu1  ;;  %v4558_v10 = vpop.f32.mrf.mxu0 }
 0x1a8   : > { %6600 = vst [vmem:[#allocation2_spill] sm:$0xff] %v5973_v61  ;;  %v5975_v53 = vadd.f32 %v4558_v10, %v4502_v36 }
 0x1a9   : > { %v1613_v19 = vpop.f32.mrf.mxu1  ;;  %v1854_v52 = vpop.f32.mrf.mxu0 }
 0x1aa   : > { %6601 = vst [vmem:[#allocation17_spill] sm:$0xff] %v5975_v53  ;;  %v5977_v3 = vadd.f32 %v1854_v52, %v1613_v19 }
 0x1ab   : > { %v4503_v1 = vpop.f32.mrf.mxu1  ;;  %v4559_v42 = vpop.f32.mrf.mxu0 }
 0x1ac   : > { %6602 = vst [vmem:[#allocation18_spill] sm:$0xff] %v5977_v3  ;;  %v5979_v58 = vadd.f32 %v4559_v42, %v4503_v1  ;;  %v2223_v42 = vlaneseq }
 0x1ad   : > { %v1616_v31 = vpop.f32.mrf.mxu1  ;;  %v1857_v5 = vpop.f32.mrf.mxu0 }
 0x1ae   : > { %6603 = vst [vmem:[#allocation3_spill] sm:$0xff] %v5979_v58  ;;  %v5981_v0 = vadd.f32 %v1857_v5, %v1616_v31 }
 0x1af   : > { %v4506_v2 = vpop.f32.mrf.mxu1  ;;  %v4562_v39 = vpop.f32.mrf.mxu0 }
 0x1b0   : > { %v5983_v43 = vadd.f32 %v4562_v39, %v4506_v2 }
 0x1b1   : > { %v1629_v46 = vpop.f32.mrf.mxu1  ;;  %v1870_v61 = vpop.f32.mrf.mxu0 }
 0x1b2   : > { %6604 = vst [vmem:[#allocation22_spill] sm:$0xff] %v5983_v43  ;;  %v5985_v10 = vadd.f32 %v1870_v61, %v1629_v46  ;;  %v5996_v43 = vshrl.u32 %v2223_v42, 7 }
 0x1b3   : > { %v4507_v36 = vpop.f32.mrf.mxu1  ;;  %v4563_v53 = vpop.f32.mrf.mxu0 }
 0x1b4   : > { %v5987_v52 = vadd.f32 %v4563_v53, %v4507_v36  ;;  %vm2225_vm0 = vcmp.lt.s32.totalorder %v5996_v43, 7  ;;  %vm3144_vm1 = vcmp.lt.s32.totalorder %v5996_v43, 6 }
 0x1b5   : > { %v1632_v19 = vpop.f32.mrf.mxu1  ;;  %v1873_v3 = vpop.f32.mrf.mxu0 }
 0x1b6   : > { %6605 = vst [vmem:[#allocation23_spill] sm:$0xff] %v5987_v52  ;;  %v5989_v1 = vadd.f32 %v1873_v3, %v1632_v19 }
 0x1b7   : > { %v4582_v58 = vpop.f32.mrf.mxu1  ;;  %v5991_v5 = vpop.f32.mrf.mxu0 }
 0x1b8   : > { %6606 = vst [vmem:[#allocation24_spill] sm:$0xff] %v5989_v1  ;;  %6607 = vst [vmem:[#allocation25_spill] sm:$0xff] %v5991_v5  ;;  %v2145_v31 = vadd.f32 %v4582_v58, %v5891_v20 }
 0x1b9   : > { %v1984_v39 = vpop.f32.mrf.mxu1  ;;  %v5994_v2 = vpop.f32.mrf.mxu0 }
 0x1ba   : > { %6608 = vst [vmem:[#allocation26_spill] sm:$0xff] %v5994_v2  ;;  %v2143_v61 = vadd.f32 %v1984_v39, %v5895_v18  ;;  %v2185_v5 = vrot.slane %v2145_v31, 1 }
 0x1bb   : > { %v4583_v46 = vpop.f32.mrf.mxu1  ;;  %v5999_v53 = vpop.f32.mrf.mxu0 }
 0x1bc   : > { %6609 = vst [vmem:[#allocation27_spill] sm:$0xff] %v5999_v53  ;;  %v2146_v36 = vadd.f32 %v4583_v46, %v5897_v17  ;;  %v2183_v42 = vrot.slane %v2143_v61, 1 }
 0x1bd   : > { %v1987_v3 = vpop.f32.mrf.mxu1  ;;  %v6003_v19 = vpop.f32.mrf.mxu0 }
 0x1be   : > { %v2186_v1 = vrot.slane %v2146_v36, 1  ;;  %v2144_v20 = vadd.f32 %v1987_v3, %v5899_v7 }
 0x1bf   : > { %v4586_v58 = vpop.f32.mrf.mxu1  ;;  %v6006_v2 = vpop.f32.mrf.mxu0 }
 0x1c0   : > { %v2255_v18 = vsel %vm2225_vm0, %v2185_v5, %v2186_v1  ;;  %v2184_v39 = vrot.slane %v2144_v20, 1  ;;  %v2149_v53 = vadd.f32 %v4586_v58, %v5903_v21 }
 0x1c1   : > { %v6012_v17 = vadd.f32 %v2255_v18, %v5758_v8  ;;  %v2000_v46 = vpop.f32.mrf.mxu1  ;;  %v6014_v52 = vpop.f32.mrf.mxu0 }
 0x1c2   : > { %v2256_v31 = vsel %vm2225_vm0, %v2184_v39, %v2185_v5  ;;  %v2257_v7 = vsel %vm2225_vm0, %v2183_v42, %v2184_v39  ;;  %v2147_v61 = vadd.f32 %v2000_v46, %v5907_v11  ;;  %v2189_v5 = vrot.slane %v2149_v53, 1 }
 0x1c3   : > { %6610 = vst [vmem:[#allocation28_spill] sm:$0xff] %v6012_v17  ;;  %v6022_v36 = vadd.f32 %v2257_v7, %v5761_v34  ;;  %v6025_v3 = vadd.f32 %v2256_v31, %v5769_v13  ;;  %v4587_v21 = vpop.f32.mrf.mxu1  ;;  %v6027_v8 = vpop.f32.mrf.mxu0 }
 0x1c4   : > { %v2187_v20 = vrot.slane %v2147_v61, 1  ;;  %v2150_v58 = vadd.f32 %v4587_v21, %v5909_v38 }
 0x1c5   : > { %v2003_v18 = vpop.f32.mrf.mxu1  ;;  %v6030_v17 = vpop.f32.mrf.mxu0 }
 0x1c6   : > { %v2254_v42 = vsel %vm2225_vm0, %v2186_v1, %v2187_v20  ;;  %v2190_v11 = vrot.slane %v2150_v58, 1  ;;  %v2148_v34 = vadd.f32 %v2003_v18, %v5911_v14 }
 0x1c7   : > { %v6036_v39 = vadd.f32 %v2254_v42, %v5764_v24  ;;  %v4590_v13 = vpop.f32.mrf.mxu1  ;;  %v6038_v46 = vpop.f32.mrf.mxu0 }
 0x1c8   : > { %v2252_v31 = vsel %vm2225_vm0, %v2189_v5, %v2190_v11  ;;  %v2188_v38 = vrot.slane %v2148_v34, 1  ;;  %v2153_v7 = vadd.f32 %v4590_v13, %v5915_v62 }
 0x1c9   : > { %v6044_v53 = vadd.f32 %v2252_v31, %v5774_v15  ;;  %v2016_v61 = vpop.f32.mrf.mxu1  ;;  %v6046_v1 = vpop.f32.mrf.mxu0 }
 0x1ca   : > { %v2253_v14 = vsel %vm2225_vm0, %v2188_v38, %v2189_v5  ;;  %v2151_v24 = vadd.f32 %v2016_v61, %v5919_v22  ;;  %v2193_v34 = vrot.slane %v2153_v7, 1 }
 0x1cb   : > { %v6052_v21 = vadd.f32 %v2253_v14, %v5782_v47  ;;  %v4591_v20 = vpop.f32.mrf.mxu1  ;;  %v6054_v58 = vpop.f32.mrf.mxu0 }
 0x1cc   : > { %v2191_v18 = vrot.slane %v2151_v24, 1  ;;  %v2154_v62 = vadd.f32 %v4591_v20, %v5921_v40 }
 0x1cd   : > { %v2019_v42 = vpop.f32.mrf.mxu1  ;;  %v6057_v15 = vpop.f32.mrf.mxu0 }
 0x1ce   : > { %v2251_v13 = vsel %vm2225_vm0, %v2190_v11, %v2191_v18  ;;  %v2194_v31 = vrot.slane %v2154_v62, 1  ;;  %v2152_v5 = vadd.f32 %v2019_v42, %v5923_v25 }
 0x1cf   : > { %v6063_v22 = vadd.f32 %v2251_v13, %v5777_v28  ;;  %v4594_v47 = vpop.f32.mrf.mxu1  ;;  %v6065_v38 = vpop.f32.mrf.mxu0 }
 0x1d0   : > { %v2249_v61 = vsel %vm2225_vm0, %v2193_v34, %v2194_v31  ;;  %v2192_v40 = vrot.slane %v2152_v5, 1  ;;  %v2157_v14 = vadd.f32 %v4594_v47, %v5927_v27 }
 0x1d1   : > { %v6071_v7 = vadd.f32 %v2249_v61, %v5787_v30  ;;  %v2032_v24 = vpop.f32.mrf.mxu1  ;;  %v6073_v11 = vpop.f32.mrf.mxu0 }
 0x1d2   : > { %v2250_v25 = vsel %vm2225_vm0, %v2191_v18, %v2192_v40  ;;  %v2155_v28 = vadd.f32 %v2032_v24, %v5931_v33  ;;  %v2197_v61 = vrot.slane %v2157_v14, 1 }
 0x1d3   : > { %v6079_v20 = vadd.f32 %v2250_v25, %v5790_v54  ;;  %v4595_v62 = vpop.f32.mrf.mxu1  ;;  %v6081_v42 = vpop.f32.mrf.mxu0 }
 0x1d4   : > { %v2195_v34 = vrot.slane %v2155_v28, 1  ;;  %v2158_v27 = vadd.f32 %v4595_v62, %v5933_v32 }
 0x1d5   : > { %v2035_v13 = vpop.f32.mrf.mxu1  ;;  %v6084_v30 = vpop.f32.mrf.mxu0 }
 0x1d6   : > { %v2248_v5 = vsel %vm2225_vm0, %v2194_v31, %v2195_v34  ;;  %v2156_v47 = vadd.f32 %v2035_v13, %v5935_v63 }
 0x1d7   : > { %v6090_v18 = vadd.f32 %v2248_v5, %v5793_v48  ;;  %v4598_v33 = vpop.f32.mrf.mxu1  ;;  %v6092_v54 = vpop.f32.mrf.mxu0 }
 0x1d8   : > { %v2196_v40 = vrot.slane %v2156_v47, 1  ;;  %v2161_v24 = vadd.f32 %v4598_v33, %v5939_v23  ;;  %v2198_v23 = vrot.slane %v2158_v27, 1 }
 0x1d9   : > { %v2048_v25 = vpop.f32.mrf.mxu1  ;;  %v6095_v32 = vpop.f32.mrf.mxu0 }
 0x1da   : > { %6611 = vst [vmem:[#allocation29_spill] sm:$0xff] %v6095_v32  ;;  %v2246_v28 = vsel %vm2225_vm0, %v2196_v40, %v2197_v61  ;;  %v2247_v31 = vsel %vm2225_vm0, %v2195_v34, %v2196_v40  ;;  %v2159_v63 = vadd.f32 %v2048_v25, %v5943_v50  ;;  %v2201_v32 = vrot.slane %v2161_v24, 1 }
 0x1db   : > { %v6103_v48 = vadd.f32 %v2247_v31, %v5800_v41  ;;  %v6106_v62 = vadd.f32 %v2246_v28, %v5808_v16  ;;  %v4599_v14 = vpop.f32.mrf.mxu1  ;;  %v6108_v13 = vpop.f32.mrf.mxu0 }
 0x1dc   : > { %v2199_v5 = vrot.slane %v2159_v63, 1  ;;  %v2162_v47 = vadd.f32 %v4599_v14, %v5945_v29 }
 0x1dd   : > { %v2051_v33 = vpop.f32.mrf.mxu1  ;;  %v6111_v61 = vpop.f32.mrf.mxu0 }
 0x1de   : > { %v2245_v50 = vsel %vm2225_vm0, %v2198_v23, %v2199_v5  ;;  %v2202_v34 = vrot.slane %v2162_v47, 1  ;;  %v2160_v41 = vadd.f32 %v2051_v33, %v5947_v6 }
 0x1df   : > { %v6117_v16 = vadd.f32 %v2245_v50, %v5803_v9  ;;  %v4602_v40 = vpop.f32.mrf.mxu1  ;;  %v6119_v25 = vpop.f32.mrf.mxu0 }
 0x1e0   : > { %v2242_v27 = vsel %vm2225_vm0, %v2201_v32, %v2202_v34  ;;  %v2200_v29 = vrot.slane %v2160_v41, 1  ;;  %v2165_v28 = vadd.f32 %v4602_v40, %v5951_v35 }
 0x1e1   : > { %v6125_v24 = vadd.f32 %v2242_v27, %v5813_v37  ;;  %v2064_v31 = vpop.f32.mrf.mxu1  ;;  %v6127_v63 = vpop.f32.mrf.mxu0 }
 0x1e2   : > { %v2243_v6 = vsel %vm2225_vm0, %v2200_v29, %v2201_v32  ;;  %v2244_v9 = vsel %vm2225_vm0, %v2199_v5, %v2200_v29  ;;  %v2163_v14 = vadd.f32 %v2064_v31, %v5953_v51  ;;  %v2205_v32 = vrot.slane %v2165_v28, 1 }
 0x1e3   : > { %v6135_v23 = vadd.f32 %v2244_v9, %v5816_v57  ;;  %v6138_v47 = vadd.f32 %v2243_v6, %v5821_v44  ;;  %v4603_v35 = vpop.f32.mrf.mxu1  ;;  %v6140_v37 = vpop.f32.mrf.mxu0 }
 0x1e4   : > { %v2166_v33 = vadd.f32 %v4603_v35, %v5955_v59  ;;  %v2203_v57 = vrot.slane %v2163_v14, 1 }
 0x1e5   : > { %v2067_v50 = vpop.f32.mrf.mxu1  ;;  %v6143_v34 = vpop.f32.mrf.mxu0 }
 0x1e6   : > { %v2206_v41 = vrot.slane %v2166_v33, 1  ;;  %v2164_v5 = vadd.f32 %v2067_v50, %v5957_v49 }
 0x1e7   : > { %v4606_v40 = vpop.f32.mrf.mxu1  ;;  %v6146_v51 = vpop.f32.mrf.mxu0 }
 0x1e8   : > { %v2239_v44 = vsel %vm2225_vm0, %v2205_v32, %v2206_v41  ;;  %v2204_v27 = vrot.slane %v2164_v5, 1  ;;  %v2169_v29 = vadd.f32 %v4606_v40, %v5959_v12 }
 0x1e9   : > { %v6152_v31 = vadd.f32 %v2239_v44, %v5826_v60  ;;  %v2080_v59 = vpop.f32.mrf.mxu1  ;;  %v6154_v6 = vpop.f32.mrf.mxu0  ;;  %v6614_v44 = vld [vmem:[#allocation19_spill] sm:$0xff] }
 0x1ea   : > { %v2240_v28 = vsel %vm2225_vm0, %v2204_v27, %v2205_v32  ;;  %v2241_v49 = vsel %vm2225_vm0, %v2203_v57, %v2204_v27  ;;  %v2167_v9 = vadd.f32 %v2080_v59, %v5961_v26  ;;  %v2209_v32 = vrot.slane %v2169_v29, 1 }
 0x1eb   : > { %v6162_v14 = vadd.f32 %v2241_v49, %v5829_v56  ;;  %v6165_v35 = vadd.f32 %v2240_v28, %v5837_v4  ;;  %v4607_v12 = vpop.f32.mrf.mxu1  ;;  %v6167_v60 = vpop.f32.mrf.mxu0  ;;  %v6617_v49 = vld [vmem:[#allocation15_spill] sm:$0xff] }
 0x1ec   : > { %6612 = vst [vmem:[#allocation30_spill] sm:$0xff] %v6167_v60  ;;  %v2207_v33 = vrot.slane %v2167_v9, 1  ;;  %v2170_v50 = vadd.f32 %v4607_v12, %v5963_v45  ;;  %v6618_v12 = vld [vmem:[#allocation20_spill] sm:$0xff] }
 0x1ed   : > { %v2083_v5 = vpop.f32.mrf.mxu1  ;;  %v6170_v40 = vpop.f32.mrf.mxu0 }
 0x1ee   : > { %6613 = vst [vmem:[#allocation31_spill] sm:$0xff] %v6170_v40  ;;  %v2238_v57 = vsel %vm2225_vm0, %v2206_v41, %v2207_v33  ;;  %v2210_v26 = vrot.slane %v2170_v50, 1  ;;  %v2168_v56 = vadd.f32 %v2083_v5, %v5965_v55  ;;  %v6621_v33 = vld [vmem:[#allocation10_spill] sm:$0xff]  ;;  %v6622_v5 = vld [vmem:[#allocation5_spill] sm:$0xff] }
 0x1ef   : > { %v6176_v27 = vadd.f32 %v2238_v57, %v6614_v44  ;;  %v4610_v4 = vpop.f32.mrf.mxu1  ;;  %v6178_v59 = vpop.f32.mrf.mxu0 }
 0x1f0   : > { %6616 = vst [vmem:[#allocation32_spill] sm:$0xff] %v6178_v59  ;;  %v2236_v28 = vsel %vm2225_vm0, %v2209_v32, %v2210_v26  ;;  %v2208_v45 = vrot.slane %v2168_v56, 1  ;;  %v2173_v9 = vadd.f32 %v4610_v4, %v6617_v49  ;;  %v6625_v59 = vld [vmem:[#allocation16_spill] sm:$0xff] }
 0x1f1   : > { %6615 = vst [vmem:[#allocation19_spill] sm:$0xff] %v6176_v27  ;;  %v6184_v29 = vadd.f32 %v2236_v28, %v6618_v12  ;;  %v2096_v40 = vpop.f32.mrf.mxu1  ;;  %v6186_v41 = vpop.f32.mrf.mxu0 }
 0x1f2   : > { %6620 = vst [vmem:[#allocation20_spill] sm:$0xff] %v6186_v41  ;;  %v2237_v55 = vsel %vm2225_vm0, %v2208_v45, %v2209_v32  ;;  %v2171_v50 = vadd.f32 %v2096_v40, %v6621_v33  ;;  %v2213_v12 = vrot.slane %v2173_v9, 1  ;;  %v6627_v32 = vld [vmem:[#allocation2_spill] sm:$0xff]  ;;  %v6628_v40 = vld [vmem:[#allocation21_spill] sm:$0xff] }
 0x1f3   : > { %6619 = vst [vmem:[#allocation15_spill] sm:$0xff] %v6184_v29  ;;  %v6192_v57 = vadd.f32 %v2237_v55, %v6622_v5  ;;  %v4611_v44 = vpop.f32.mrf.mxu1  ;;  %v6194_v27 = vpop.f32.mrf.mxu0 }
 0x1f4   : > { %6624 = vst [vmem:[#allocation5_spill] sm:$0xff] %v6194_v27  ;;  %v2211_v56 = vrot.slane %v2171_v50, 1  ;;  %v2174_v4 = vadd.f32 %v4611_v44, %v6625_v59  ;;  %v6631_v44 = vld [vmem:[#allocation17_spill] sm:$0xff] }
 0x1f5   : > { %6623 = vst [vmem:[#allocation10_spill] sm:$0xff] %v6192_v57  ;;  %v2099_v49 = vpop.f32.mrf.mxu1  ;;  %v6197_v28 = vpop.f32.mrf.mxu0 }
 0x1f6   : > { %6626 = vst [vmem:[#allocation16_spill] sm:$0xff] %v6197_v28  ;;  %v2235_v29 = vsel %vm2225_vm0, %v2210_v26, %v2211_v56  ;;  %v2214_v41 = vrot.slane %v2174_v4, 1  ;;  %v2172_v45 = vadd.f32 %v2099_v49, %v6627_v32  ;;  %v6632_v28 = vld [vmem:[#allocation4_spill] sm:$0xff]  ;;  %v6636_v32 = vld [vmem:[#allocation11_spill] sm:$0xff] }
 0x1f7   : > { %v6203_v33 = vadd.f32 %v2235_v29, %v6628_v40  ;;  %v4614_v55 = vpop.f32.mrf.mxu1  ;;  %v6205_v5 = vpop.f32.mrf.mxu0  ;;  %v6635_v29 = vld [vmem:[#allocation18_spill] sm:$0xff] }
 0x1f8   : > { %6630 = vst [vmem:[#allocation21_spill] sm:$0xff] %v6205_v5  ;;  %v2233_v50 = vsel %vm2225_vm0, %v2213_v12, %v2214_v41  ;;  %v2212_v59 = vrot.slane %v2172_v45, 1  ;;  %v2177_v57 = vadd.f32 %v4614_v55, %v6631_v44  ;;  %v6639_v45 = vld [vmem:[#allocation3_spill] sm:$0xff] }
 0x1f9   : > { %6629 = vst [vmem:[#allocation2_spill] sm:$0xff] %v6203_v33  ;;  %v6211_v9 = vadd.f32 %v2233_v50, %v6632_v28  ;;  %v2112_v27 = vpop.f32.mrf.mxu1  ;;  %v6213_v26 = vpop.f32.mrf.mxu0 }
 0x1fa   : > { %6634 = vst [vmem:[#allocation4_spill] sm:$0xff] %v6213_v26  ;;  %v2234_v4 = vsel %vm2225_vm0, %v2211_v56, %v2212_v59  ;;  %v2175_v49 = vadd.f32 %v2112_v27, %v6635_v29  ;;  %v6641_v56 = vld [vmem:[#allocation7_spill] sm:$0xff]  ;;  %v2217_v29 = vrot.slane %v2177_v57, 1 }
 0x1fb   : > { %6633 = vst [vmem:[#allocation17_spill] sm:$0xff] %v6211_v9  ;;  %v6219_v40 = vadd.f32 %v2234_v4, %v6636_v32  ;;  %v4615_v5 = vpop.f32.mrf.mxu1  ;;  %v6221_v33 = vpop.f32.mrf.mxu0 }
 0x1fc   : > { %6638 = vst [vmem:[#allocation11_spill] sm:$0xff] %v6221_v33  ;;  %v2215_v12 = vrot.slane %v2175_v49, 1  ;;  %v2178_v55 = vadd.f32 %v4615_v5, %v6639_v45  ;;  %v6644_v33 = vld [vmem:[#allocation22_spill] sm:$0xff] }
 0x1fd   : > { %6637 = vst [vmem:[#allocation18_spill] sm:$0xff] %v6219_v40  ;;  %v2115_v44 = vpop.f32.mrf.mxu1  ;;  %v6224_v28 = vpop.f32.mrf.mxu0 }
 0x1fe   : > { %6640 = vst [vmem:[#allocation3_spill] sm:$0xff] %v6224_v28  ;;  %v2232_v50 = vsel %vm2225_vm0, %v2214_v41, %v2215_v12  ;;  %v2176_v9 = vadd.f32 %v2115_v44, %v5981_v0  ;;  %v6646_v44 = vld [vmem:[#allocation6_spill] sm:$0xff] }
 0x1ff   : > { %v6230_v59 = vadd.f32 %v2232_v50, %v6641_v56  ;;  %v4618_v27 = vpop.f32.mrf.mxu1  ;;  %v6232_v4 = vpop.f32.mrf.mxu0  ;;  %v6648_v56 = vld [vmem:[#allocation8_spill] sm:$0xff] }
 0x200   : > { %6643 = vst [vmem:[#allocation33_spill] sm:$0xff] %v6232_v4  ;;  %v2216_v32 = vrot.slane %v2176_v9, 1  ;;  %v2181_v49 = vadd.f32 %v4618_v27, %v6644_v33  ;;  %v2218_v33 = vrot.slane %v2178_v55, 1 }
 0x201   : > { %6642 = vst [vmem:[#allocation7_spill] sm:$0xff] %v6230_v59  ;;  %v2128_v40 = vpop.f32.mrf.mxu1  ;;  %v6235_v5 = vpop.f32.mrf.mxu0 }
 0x202   : > { %6645 = vst [vmem:[#allocation22_spill] sm:$0xff] %v6235_v5  ;;  %v2230_v45 = vsel %vm2225_vm0, %v2216_v32, %v2217_v29  ;;  %v2231_v41 = vsel %vm2225_vm0, %v2215_v12, %v2216_v32  ;;  %v2179_v0 = vadd.f32 %v2128_v40, %v5985_v10  ;;  %v6651_v5 = vld [vmem:[#allocation23_spill] sm:$0xff]  ;;  %v2221_v26 = vrot.slane %v2181_v49, 1  ;;  %v6653_v12 = vld [vmem:[#allocation24_spill] sm:$0xff] }
 0x203   : > { %v6243_v50 = vadd.f32 %v2231_v41, %v6646_v44  ;;  %v6246_v4 = vadd.f32 %v2230_v45, %v6648_v56  ;;  %v4619_v57 = vpop.f32.mrf.mxu1  ;;  %v6248_v9 = vpop.f32.mrf.mxu0  ;;  %v6654_v41 = vld [vmem:[#allocation12_spill] sm:$0xff] }
 0x204   : > { %6650 = vst [vmem:[#allocation34_spill] sm:$0xff] %v6248_v9  ;;  %v2219_v27 = vrot.slane %v2179_v0, 1  ;;  %v2182_v59 = vadd.f32 %v4619_v57, %v6651_v5  ;;  %v6656_v0 = vld [vmem:[#allocation25_spill] sm:$0xff] }
 0x205   : > { %6647 = vst [vmem:[#allocation6_spill] sm:$0xff] %v6243_v50  ;;  %6649 = vst [vmem:[#allocation8_spill] sm:$0xff] %v6246_v4  ;;  %v2131_v28 = vpop.f32.mrf.mxu1  ;;  %v6251_v29 = vpop.f32.mrf.mxu0 }
 0x206   : > { %6652 = vst [vmem:[#allocation23_spill] sm:$0xff] %v6251_v29  ;;  %v2229_v10 = vsel %vm2225_vm0, %v2218_v33, %v2219_v27  ;;  %v2222_v40 = vrot.slane %v2182_v59, 1  ;;  %v2180_v32 = vadd.f32 %v2131_v28, %v6653_v12  ;;  %v6657_v29 = vld [vmem:[#allocation9_spill] sm:$0xff] }
 0x207   : > { %v6257_v45 = vadd.f32 %v2229_v10, %v6654_v41  ;;  %v4694_v44 = vpop.f32.mrf.mxu1  ;;  %v4750_v56 = vpop.f32.mrf.mxu0  ;;  %v6659_v10 = vld [vmem:[#allocation26_spill] sm:$0xff]  ;;  %v6660_v41 = vld [vmem:[#allocation13_spill] sm:$0xff] }
 0x208   : > { %v2226_v55 = vsel %vm2225_vm0, %v2221_v26, %v2222_v40  ;;  %v2220_v5 = vrot.slane %v2180_v32, 1  ;;  %v2656_v57 = vadd.f32 %v4694_v44, %v6656_v0  ;;  %v6661_v40 = vld [vmem:[#allocation14_spill] sm:$0xff]  ;;  %v6662_v0 = vld [vmem:[#allocation27_spill] sm:$0xff] }
 0x209   : > { %6655 = vst [vmem:[#allocation24_spill] sm:$0xff] %v6257_v45  ;;  %v6263_v49 = vadd.f32 %v2226_v55, %v6657_v29  ;;  %v2647_v9 = vpop.f32.mrf.mxu1  ;;  %v2905_v33 = vpop.f32.mrf.mxu0 }
 0x20a   : > { %v2227_v28 = vsel %vm2225_vm0, %v2220_v5, %v2221_v26  ;;  %v2228_v59 = vsel %vm2225_vm0, %v2219_v27, %v2220_v5  ;;  %v2648_v12 = vadd.f32 %v2647_v9, %v6659_v10  ;;  %v3066_v55 = vadd.f32 %v4750_v56, %v2656_v57 }
 0x20b   : > { %6658 = vst [vmem:[#allocation12_spill] sm:$0xff] %v6263_v49  ;;  %v6271_v45 = vadd.f32 %v2228_v59, %v6660_v41  ;;  %v6274_v32 = vadd.f32 %v2227_v28, %v6661_v40  ;;  %v4695_v44 = vpop.f32.mrf.mxu1  ;;  %v4751_v29 = vpop.f32.mrf.mxu0 }
 0x20c   : > { %v2659_v49 = vadd.f32 %v4695_v44, %v6662_v0  ;;  %v3064_v4 = vadd.f32 %v2905_v33, %v2648_v12  ;;  %v3106_v28 = vrot.slane %v3066_v55, 2  ;;  %v6663_v12 = vld [vmem:[#allocation28_spill] sm:$0xff] }
 0x20d   : > { %v2650_v26 = vpop.f32.mrf.mxu1  ;;  %v2908_v50 = vpop.f32.mrf.mxu0 }
 0x20e   : > { %v3067_v60 = vadd.f32 %v4751_v29, %v2659_v49  ;;  %v2651_v27 = vadd.f32 %v2650_v26, %v6003_v19  ;;  %v3104_v41 = vrot.slane %v3064_v4, 2 }
 0x20f   : > { %v4698_v9 = vpop.f32.mrf.mxu1  ;;  %v4754_v5 = vpop.f32.mrf.mxu0 }
 0x210   : > { %v3107_v59 = vrot.slane %v3067_v60, 2  ;;  %v3065_v10 = vadd.f32 %v2908_v50, %v2651_v27  ;;  %v2672_v49 = vadd.f32 %v4698_v9, %v6006_v2  ;;  %v6290_v60 = vld [vmem:[%s6530_s3] ss:$0 sm:$0xff] }
 0x211   : > { %v2663_v40 = vpop.f32.mrf.mxu1  ;;  %v2921_v56 = vpop.f32.mrf.mxu0 }
 0x212   : > { %v3174_v57 = vsel %vm3144_vm1, %v3106_v28, %v3107_v59  ;;  %v3105_v33 = vrot.slane %v3065_v10, 2  ;;  %v2664_v19 = vadd.f32 %v2663_v40, %v6014_v52  ;;  %v3070_v10 = vadd.f32 %v4754_v5, %v2672_v49 }
 0x213   : > { %v3179_v44 = vadd.f32 %v3174_v57, %v6663_v12  ;;  %v4699_v29 = vpop.f32.mrf.mxu1  ;;  %v4755_v0 = vpop.f32.mrf.mxu0 }
 0x214   : > { %v3175_v4 = vsel %vm3144_vm1, %v3105_v33, %v3106_v28  ;;  %v3176_v50 = vsel %vm3144_vm1, %v3104_v41, %v3105_v33  ;;  %v3068_v2 = vadd.f32 %v2921_v56, %v2664_v19  ;;  %v2675_v26 = vadd.f32 %v4699_v29, %v6027_v8  ;;  %v6308_v8 = vld [vmem:[%s6531_s4] ss:$0 sm:$0xff] }
 0x215   : > { %v3177_v52 = vadd.f32 %v3176_v50, %v6022_v36  ;;  %v3178_v55 = vadd.f32 %v3175_v4, %v6025_v3  ;;  %v2666_v27 = vpop.f32.mrf.mxu1  ;;  %v2924_v9 = vpop.f32.mrf.mxu0  ;;  %v3218_v28 = vmul.f32 %v6290_v60, %v3179_v44  ;;  %v3110_v4 = vrot.slane %v3070_v10, 2 }
 0x216   : > { %v3108_v40 = vrot.slane %v3068_v2, 2  ;;  %v2667_v57 = vadd.f32 %v2666_v27, %v6030_v17  ;;  %v3071_v36 = vadd.f32 %v4755_v0, %v2675_v26 }
 0x217   : > { %v3216_v41 = vmul.f32 %v6290_v60, %v3177_v52  ;;  %v3217_v56 = vmul.f32 %v6290_v60, %v3178_v55  ;;  %v4702_v33 = vpop.f32.mrf.mxu1  ;;  %v4758_v3 = vpop.f32.mrf.mxu0  ;;  %v3257_v55 = vadd.f32 %v6308_v8, %v3218_v28 }
 0x218   : > { %v3173_v5 = vsel %vm3144_vm1, %v3107_v59, %v3108_v40  ;;  %v3069_v49 = vadd.f32 %v2924_v9, %v2667_v57  ;;  %v2688_v17 = vadd.f32 %v4702_v33, %v6038_v46  ;;  %v3111_v50 = vrot.slane %v3071_v36, 2 }
 0x219   : > { %v3255_v19 = vadd.f32 %v6308_v8, %v3216_v41  ;;  %v3256_v12 = vadd.f32 %v6308_v8, %v3217_v56  ;;  %v3180_v44 = vadd.f32 %v3173_v5, %v6036_v39  ;;  %v2679_v29 = vpop.f32.mrf.mxu1  ;;  %v2937_v0 = vpop.f32.mrf.mxu0 }
 0x21a   : > { %v3109_v2 = vrot.slane %v3069_v49, 2  ;;  %v2680_v52 = vadd.f32 %v2679_v29, %v6046_v1  ;;  %v3171_v39 = vsel %vm3144_vm1, %v3110_v4, %v3111_v50  ;;  %v3074_v10 = vadd.f32 %v4758_v3, %v2688_v17 }
 0x21b   : > { %v3287_v59 = vmax.f32 %v3255_v19, 0.0  ;;  %v3288_v26 = vmax.f32 %v3256_v12, 0.0  ;;  %v3219_v46 = vmul.f32 %v6290_v60, %v3180_v44  ;;  %v4703_v27 = vpop.f32.mrf.mxu1  ;;  %v4759_v9 = vpop.f32.mrf.mxu0  ;;  %v3182_v41 = vadd.f32 %v3171_v39, %v6044_v53 }
 0x21c   : > { %v3172_v1 = vsel %vm3144_vm1, %v3109_v2, %v3110_v4  ;;  %v3072_v40 = vadd.f32 %v2937_v0, %v2680_v52  ;;  %v2691_v49 = vadd.f32 %v4703_v27, %v6054_v58  ;;  %v3289_v12 = vmax.f32 %v3257_v55, 0.0 }
 0x21d   : > { %v3938_v57 = vpack.c.bf16 %v3288_v26, %v3287_v59  ;;  %v3258_v28 = vadd.f32 %v6308_v8, %v3219_v46  ;;  %v3181_v56 = vadd.f32 %v3172_v1, %v6052_v21  ;;  %v2682_v36 = vpop.f32.mrf.mxu1  ;;  %v2940_v33 = vpop.f32.mrf.mxu0  ;;  %v3221_v3 = vmul.f32 %v6290_v60, %v3182_v41 }
 0x21e   : > { %v3112_v5 = vrot.slane %v3072_v40, 2  ;;  %v2683_v19 = vadd.f32 %v2682_v36, %v6057_v15  ;;  %v3114_v53 = vrot.slane %v3074_v10, 2  ;;  %v3075_v4 = vadd.f32 %v4759_v9, %v2691_v49 }
 0x21f   : > { %3939 = vst [vmem:[%s6323_s13] sm:$0xff] %v3938_v57   ;;  %v3290_v44 = vmax.f32 %v3258_v28, 0.0  ;;  %v3220_v17 = vmul.f32 %v6290_v60, %v3181_v56  ;;  %v4706_v29 = vpop.f32.mrf.mxu1  ;;  %v4762_v0 = vpop.f32.mrf.mxu0  ;;  %v3260_v58 = vadd.f32 %v6308_v8, %v3221_v3 }
 0x220   : > { %v3170_v21 = vsel %vm3144_vm1, %v3111_v50, %v3112_v5  ;;  %v3073_v2 = vadd.f32 %v2940_v33, %v2683_v19  ;;  %v3115_v46 = vrot.slane %v3075_v4, 2  ;;  %v2704_v39 = vadd.f32 %v4706_v29, %v6065_v38 }
 0x221   : > { %v3943_v52 = vpack.c.bf16 %v3290_v44, %v3289_v12  ;;  %v3259_v15 = vadd.f32 %v6308_v8, %v3220_v17  ;;  %v3183_v55 = vadd.f32 %v3170_v21, %v6063_v22  ;;  %v2695_v59 = vpop.f32.mrf.mxu1  ;;  %v2953_v26 = vpop.f32.mrf.mxu0  ;;  %v3292_v10 = vmax.f32 %v3260_v58, 0.0 }
 0x222   : > { %v3113_v27 = vrot.slane %v3073_v2, 2  ;;  %v2696_v1 = vadd.f32 %v2695_v59, %v6073_v11  ;;  %v3168_v28 = vsel %vm3144_vm1, %v3114_v53, %v3115_v46  ;;  %v3078_v49 = vadd.f32 %v4762_v0, %v2704_v39 }
 0x223   : > { %4017 = vst [vmem:[%s6323_s13 + $0x8] sm:$0xff] %v3943_v52   ;;  %v3291_v50 = vmax.f32 %v3259_v15, 0.0  ;;  %v3222_v9 = vmul.f32 %v6290_v60, %v3183_v55  ;;  %v4707_v40 = vpop.f32.mrf.mxu1  ;;  %v4763_v57 = vpop.f32.mrf.mxu0  ;;  %v3185_v38 = vadd.f32 %v3168_v28, %v6071_v7  ;;  %v6664_v15 = vld [vmem:[#allocation29_spill] sm:$0xff] }
 0x224   : > { %v3169_v22 = vsel %vm3144_vm1, %v3112_v5, %v3113_v27  ;;  %v3076_v41 = vadd.f32 %v2953_v26, %v2696_v1  ;;  %v2707_v12 = vadd.f32 %v4707_v40, %v6081_v42  ;;  %v3118_v2 = vrot.slane %v3078_v49, 2 }
 0x225   : > { %v3948_v56 = vpack.c.bf16 %v3292_v10, %v3291_v50  ;;  %v3184_v11 = vadd.f32 %v3169_v22, %v6079_v20  ;;  %v2698_v36 = vpop.f32.mrf.mxu1  ;;  %v2956_v33 = vpop.f32.mrf.mxu0  ;;  %v3261_v3 = vadd.f32 %v6308_v8, %v3222_v9  ;;  %v3224_v17 = vmul.f32 %v6290_v60, %v3185_v38 }
 0x226   : > { %v3116_v19 = vrot.slane %v3076_v41, 2  ;;  %v2699_v44 = vadd.f32 %v2698_v36, %v6084_v30  ;;  %v3079_v20 = vadd.f32 %v4763_v57, %v2707_v12 }
 0x227   : > { %4018 = vst [vmem:[%s6323_s13 + $0x10] sm:$0xff] %v3948_v56   ;;  %v3223_v5 = vmul.f32 %v6290_v60, %v3184_v11  ;;  %v4710_v29 = vpop.f32.mrf.mxu1  ;;  %v4766_v53 = vpop.f32.mrf.mxu0  ;;  %v3293_v59 = vmax.f32 %v3261_v3, 0.0  ;;  %v3263_v26 = vadd.f32 %v6308_v8, %v3224_v17 }
 0x228   : > { %v3167_v7 = vsel %vm3144_vm1, %v3115_v46, %v3116_v19  ;;  %v3077_v21 = vadd.f32 %v2956_v33, %v2699_v44  ;;  %v2720_v58 = vadd.f32 %v4710_v29, %v6092_v54  ;;  %v3119_v10 = vrot.slane %v3079_v20, 2 }
 0x229   : > { %v3262_v0 = vadd.f32 %v6308_v8, %v3223_v5  ;;  %v3186_v42 = vadd.f32 %v3167_v7, %v6090_v18  ;;  %v2711_v4 = vpop.f32.mrf.mxu1  ;;  %v2969_v30 = vpop.f32.mrf.mxu0  ;;  %v3295_v33 = vmax.f32 %v3263_v26, 0.0 }
 0x22a   : > { %v3117_v52 = vrot.slane %v3077_v21, 2  ;;  %v2712_v55 = vadd.f32 %v2711_v4, %v6664_v15  ;;  %v3082_v56 = vadd.f32 %v4766_v53, %v2720_v58 }
 0x22b   : > { %v3294_v27 = vmax.f32 %v3262_v0, 0.0  ;;  %v3225_v46 = vmul.f32 %v6290_v60, %v3186_v42  ;;  %v4711_v39 = vpop.f32.mrf.mxu1  ;;  %v4767_v1 = vpop.f32.mrf.mxu0 }
 0x22c   : > { %v3165_v18 = vsel %vm3144_vm1, %v3117_v52, %v3118_v2  ;;  %v3166_v50 = vsel %vm3144_vm1, %v3116_v19, %v3117_v52  ;;  %v3080_v9 = vadd.f32 %v2969_v30, %v2712_v55  ;;  %v2723_v11 = vadd.f32 %v4711_v39, %v6108_v13 }
 0x22d   : > { %v3953_v54 = vpack.c.bf16 %v3294_v27, %v3293_v59  ;;  %v3264_v40 = vadd.f32 %v6308_v8, %v3225_v46  ;;  %v3187_v57 = vadd.f32 %v3166_v50, %v6103_v48  ;;  %v3188_v28 = vadd.f32 %v3165_v18, %v6106_v62  ;;  %v2714_v22 = vpop.f32.mrf.mxu1  ;;  %v2972_v41 = vpop.f32.mrf.mxu0 }
 0x22e   : > { %v3120_v38 = vrot.slane %v3080_v9, 2  ;;  %v2715_v36 = vadd.f32 %v2714_v22, %v6111_v61  ;;  %v3083_v3 = vadd.f32 %v4767_v1, %v2723_v11  ;;  %v3122_v21 = vrot.slane %v3082_v56, 2 }
 0x22f   : > { %4019 = vst [vmem:[%s6323_s13 + $0x18] sm:$0xff] %v3953_v54   ;;  %v3296_v49 = vmax.f32 %v3264_v40, 0.0  ;;  %v3226_v19 = vmul.f32 %v6290_v60, %v3187_v57  ;;  %v3227_v12 = vmul.f32 %v6290_v60, %v3188_v28  ;;  %v4714_v44 = vpop.f32.mrf.mxu1  ;;  %v4770_v48 = vpop.f32.mrf.mxu0 }
 0x230   : > { %v3164_v62 = vsel %vm3144_vm1, %v3119_v10, %v3120_v38  ;;  %v3081_v17 = vadd.f32 %v2972_v41, %v2715_v36  ;;  %v2736_v5 = vadd.f32 %v4714_v44, %v6119_v25  ;;  %v3123_v0 = vrot.slane %v3083_v3, 2 }
 0x231   : > { %v3958_v13 = vpack.c.bf16 %v3296_v49, %v3295_v33  ;;  %v3265_v61 = vadd.f32 %v6308_v8, %v3226_v19  ;;  %v3266_v29 = vadd.f32 %v6308_v8, %v3227_v12  ;;  %v3189_v53 = vadd.f32 %v3164_v62, %v6117_v16  ;;  %v2727_v7 = vpop.f32.mrf.mxu1  ;;  %v2985_v20 = vpop.f32.mrf.mxu0 }
 0x232   : > { %v3121_v42 = vrot.slane %v3081_v17, 2  ;;  %v2728_v4 = vadd.f32 %v2727_v7, %v6127_v63  ;;  %v3161_v15 = vsel %vm3144_vm1, %v3122_v21, %v3123_v0  ;;  %v3086_v59 = vadd.f32 %v4770_v48, %v2736_v5 }
 0x233   : > { %4020 = vst [vmem:[%s6323_s13 + $0x20] sm:$0xff] %v3958_v13   ;;  %v3297_v30 = vmax.f32 %v3265_v61, 0.0  ;;  %v3298_v2 = vmax.f32 %v3266_v29, 0.0  ;;  %v3228_v52 = vmul.f32 %v6290_v60, %v3189_v53  ;;  %v4715_v25 = vpop.f32.mrf.mxu1  ;;  %v4771_v58 = vpop.f32.mrf.mxu0  ;;  %v3192_v63 = vadd.f32 %v3161_v15, %v6125_v24 }
 0x234   : > { %v3162_v16 = vsel %vm3144_vm1, %v3121_v42, %v3122_v21  ;;  %v3163_v55 = vsel %vm3144_vm1, %v3120_v38, %v3121_v42  ;;  %v3084_v10 = vadd.f32 %v2985_v20, %v2728_v4  ;;  %v2739_v18 = vadd.f32 %v4715_v25, %v6140_v37  ;;  %v6665_v4 = vld [vmem:[#allocation30_spill] sm:$0xff] }
 0x235   : > { %v3963_v26 = vpack.c.bf16 %v3298_v2, %v3297_v30  ;;  %v3190_v27 = vadd.f32 %v3163_v55, %v6135_v23  ;;  %v2730_v46 = vpop.f32.mrf.mxu1  ;;  %v2988_v39 = vpop.f32.mrf.mxu0  ;;  %v3191_v1 = vadd.f32 %v3162_v16, %v6138_v47  ;;  %v3267_v9 = vadd.f32 %v6308_v8, %v3228_v52  ;;  %v6667_v55 = vld [vmem:[#allocation32_spill] sm:$0xff] }
 0x236   : > { %v2731_v50 = vadd.f32 %v2730_v46, %v6143_v34  ;;  %v3231_v54 = vmul.f32 %v6290_v60, %v3192_v63  ;;  %v3126_v28 = vrot.slane %v3086_v59, 2  ;;  %v3087_v22 = vadd.f32 %v4771_v58, %v2739_v18 }
 0x237   : > { %4021 = vst [vmem:[%s6323_s13 + $0x28] sm:$0xff] %v3963_v26   ;;  %v3229_v40 = vmul.f32 %v6290_v60, %v3190_v27  ;;  %v4718_v57 = vpop.f32.mrf.mxu1  ;;  %v4774_v24 = vpop.f32.mrf.mxu0  ;;  %v3230_v23 = vmul.f32 %v6290_v60, %v3191_v1  ;;  %v3124_v56 = vrot.slane %v3084_v10, 2  ;;  %v3299_v12 = vmax.f32 %v3267_v9, 0.0 }
 0x238   : > { %v3085_v41 = vadd.f32 %v2988_v39, %v2731_v50  ;;  %v3270_v47 = vadd.f32 %v6308_v8, %v3231_v54  ;;  %v2752_v34 = vadd.f32 %v4718_v57, %v6146_v51  ;;  %v3127_v33 = vrot.slane %v3087_v22, 2  ;;  %v6668_v50 = vld [vmem:[#allocation20_spill] sm:$0xff] }
 0x239   : > { %v3268_v37 = vadd.f32 %v6308_v8, %v3229_v40  ;;  %v2743_v38 = vpop.f32.mrf.mxu1  ;;  %v3001_v11 = vpop.f32.mrf.mxu0  ;;  %v3269_v36 = vadd.f32 %v6308_v8, %v3230_v23 }
 0x23a   : > { %v3125_v49 = vrot.slane %v3085_v41, 2  ;;  %v2744_v19 = vadd.f32 %v2743_v38, %v6154_v6  ;;  %v3302_v44 = vmax.f32 %v3270_v47, 0.0  ;;  %v3158_v5 = vsel %vm3144_vm1, %v3126_v28, %v3127_v33 }
 0x23b   : > { %v3300_v48 = vmax.f32 %v3268_v37, 0.0  ;;  %v4719_v62 = vpop.f32.mrf.mxu1  ;;  %v4775_v3 = vpop.f32.mrf.mxu0  ;;  %v3301_v17 = vmax.f32 %v3269_v36, 0.0  ;;  %v3195_v29 = vadd.f32 %v3158_v5, %v6152_v31  ;;  %v3090_v0 = vadd.f32 %v4774_v24, %v2752_v34  ;;  %v6666_v31 = vld [vmem:[#allocation31_spill] sm:$0xff] }
 0x23c   : > { %v3159_v51 = vsel %vm3144_vm1, %v3125_v49, %v3126_v28  ;;  %v3160_v13 = vsel %vm3144_vm1, %v3124_v56, %v3125_v49  ;;  %v3088_v42 = vadd.f32 %v3001_v11, %v2744_v19  ;;  %v2755_v30 = vadd.f32 %v4719_v62, %v6665_v4  ;;  %v6669_v24 = vld [vmem:[#allocation19_spill] sm:$0xff]  ;;  %v6672_v62 = vld [vmem:[#allocation16_spill] sm:$0xff] }
 0x23d   : > { %v3968_v61 = vpack.c.bf16 %v3300_v48, %v3299_v12  ;;  %v3193_v6 = vadd.f32 %v3160_v13, %v6162_v14  ;;  %v3194_v53 = vadd.f32 %v3159_v51, %v6165_v35  ;;  %v2746_v7 = vpop.f32.mrf.mxu1  ;;  %v3004_v20 = vpop.f32.mrf.mxu0  ;;  %v3973_v21 = vpack.c.bf16 %v3302_v44, %v3301_v17  ;;  %v6670_v11 = vld [vmem:[#allocation15_spill] sm:$0xff]  ;;  %v6673_v51 = vld [vmem:[#allocation10_spill] sm:$0xff] }
 0x23e   : > { %v3234_v2 = vmul.f32 %v6290_v60, %v3195_v29  ;;  %v2747_v58 = vadd.f32 %v2746_v7, %v6666_v31  ;;  %v3128_v35 = vrot.slane %v3088_v42, 2  ;;  %v3091_v16 = vadd.f32 %v4775_v3, %v2755_v30  ;;  %v6674_v30 = vld [vmem:[#allocation2_spill] sm:$0xff] }
 0x23f   : > { %4022 = vst [vmem:[%s6323_s13 + $0x30] sm:$0xff] %v3968_v61   ;;  %v3232_v52 = vmul.f32 %v6290_v60, %v3193_v6  ;;  %v3233_v25 = vmul.f32 %v6290_v60, %v3194_v53  ;;  %v4722_v15 = vpop.f32.mrf.mxu1  ;;  %v4778_v14 = vpop.f32.mrf.mxu0  ;;  %4023 = vst [vmem:[%s6323_s13 + $0x38] sm:$0xff] %v3973_v21   ;;  %v3130_v1 = vrot.slane %v3090_v0, 2 }
 0x240   : > { %v2768_v59 = vadd.f32 %v4722_v15, %v6667_v55  ;;  %v3089_v27 = vadd.f32 %v3004_v20, %v2747_v58  ;;  %v3157_v10 = vsel %vm3144_vm1, %v3127_v33, %v3128_v35  ;;  %v3131_v18 = vrot.slane %v3091_v16, 2  ;;  %v6671_v33 = vld [vmem:[#allocation5_spill] sm:$0xff]  ;;  %v6676_v35 = vld [vmem:[#allocation4_spill] sm:$0xff] }
 0x241   : > { %v3271_v26 = vadd.f32 %v6308_v8, %v3232_v52  ;;  %v3272_v63 = vadd.f32 %v6308_v8, %v3233_v25  ;;  %v2759_v46 = vpop.f32.mrf.mxu1  ;;  %v3017_v39 = vpop.f32.mrf.mxu0  ;;  %v3273_v54 = vadd.f32 %v6308_v8, %v3234_v2  ;;  %v3196_v23 = vadd.f32 %v3157_v10, %v6669_v24  ;;  %v6675_v15 = vld [vmem:[#allocation21_spill] sm:$0xff] }
 0x242   : > { %v2760_v9 = vadd.f32 %v2759_v46, %v6668_v50  ;;  %v3155_v41 = vsel %vm3144_vm1, %v3130_v1, %v3131_v18  ;;  %v3129_v47 = vrot.slane %v3089_v27, 2  ;;  %v3094_v37 = vadd.f32 %v4778_v14, %v2768_v59  ;;  %v6677_v50 = vld [vmem:[#allocation17_spill] sm:$0xff] }
 0x243   : > { %v3303_v40 = vmax.f32 %v3271_v26, 0.0  ;;  %v3304_v57 = vmax.f32 %v3272_v63, 0.0  ;;  %v4723_v28 = vpop.f32.mrf.mxu1  ;;  %v4779_v22 = vpop.f32.mrf.mxu0  ;;  %v3235_v38 = vmul.f32 %v6290_v60, %v3196_v23  ;;  %v3198_v36 = vadd.f32 %v3155_v41, %v6670_v11 }
 0x244   : > { %v3092_v56 = vadd.f32 %v3017_v39, %v2760_v9  ;;  %v2771_v49 = vadd.f32 %v4723_v28, %v6671_v33  ;;  %v3156_v44 = vsel %vm3144_vm1, %v3129_v47, %v3130_v1  ;;  %v3305_v53 = vmax.f32 %v3273_v54, 0.0  ;;  %v6678_v54 = vld [vmem:[#allocation18_spill] sm:$0xff]  ;;  %v6680_v47 = vld [vmem:[#allocation3_spill] sm:$0xff] }
 0x245   : > { %v3978_v34 = vpack.c.bf16 %v3304_v57, %v3303_v40  ;;  %v2762_v19 = vpop.f32.mrf.mxu1  ;;  %v3020_v12 = vpop.f32.mrf.mxu0  ;;  %v3274_v17 = vadd.f32 %v6308_v8, %v3235_v38  ;;  %v3237_v5 = vmul.f32 %v6290_v60, %v3198_v36  ;;  %v3197_v13 = vadd.f32 %v3156_v44, %v6673_v51 }
 0x246   : > { %v3132_v48 = vrot.slane %v3092_v56, 2  ;;  %v2763_v3 = vadd.f32 %v2762_v19, %v6672_v62  ;;  %v3095_v61 = vadd.f32 %v4779_v22, %v2771_v49  ;;  %v3134_v7 = vrot.slane %v3094_v37, 2  ;;  %v6679_v22 = vld [vmem:[#allocation11_spill] sm:$0xff] }
 0x247   : > { %4024 = vst [vmem:[%s6323_s13 + $0x40] sm:$0xff] %v3978_v34   ;;  %v4726_v29 = vpop.f32.mrf.mxu1  ;;  %v4782_v6 = vpop.f32.mrf.mxu0  ;;  %v3306_v0 = vmax.f32 %v3274_v17, 0.0  ;;  %v3276_v42 = vadd.f32 %v6308_v8, %v3237_v5  ;;  %v3236_v4 = vmul.f32 %v6290_v60, %v3197_v13  ;;  %v6682_v13 = vld [vmem:[#allocation33_spill] sm:$0xff] }
 0x248   : > { %v3154_v20 = vsel %vm3144_vm1, %v3131_v18, %v3132_v48  ;;  %v3093_v21 = vadd.f32 %v3020_v12, %v2763_v3  ;;  %v3135_v31 = vrot.slane %v3095_v61, 2  ;;  %v2784_v14 = vadd.f32 %v4726_v29, %v6675_v15  ;;  %v6683_v29 = vld [vmem:[#allocation22_spill] sm:$0xff] }
 0x249   : > { %v3199_v2 = vadd.f32 %v3154_v20, %v6674_v30  ;;  %v2775_v52 = vpop.f32.mrf.mxu1  ;;  %v3033_v25 = vpop.f32.mrf.mxu0  ;;  %v3983_v55 = vpack.c.bf16 %v3306_v0, %v3305_v53  ;;  %v3275_v59 = vadd.f32 %v6308_v8, %v3236_v4  ;;  %v3308_v10 = vmax.f32 %v3276_v42, 0.0 }
 0x24a   : > { %v3133_v58 = vrot.slane %v3093_v21, 2  ;;  %v2776_v16 = vadd.f32 %v2775_v52, %v6676_v35  ;;  %v3152_v46 = vsel %vm3144_vm1, %v3134_v7, %v3135_v31  ;;  %v3098_v23 = vadd.f32 %v4782_v6, %v2784_v14  ;;  %v6685_v14 = vld [vmem:[#allocation8_spill] sm:$0xff] }
 0x24b   : > { %v3238_v26 = vmul.f32 %v6290_v60, %v3199_v2  ;;  %v4727_v63 = vpop.f32.mrf.mxu1  ;;  %v4783_v27 = vpop.f32.mrf.mxu0  ;;  %4025 = vst [vmem:[%s6323_s13 + $0x48] sm:$0xff] %v3983_v55   ;;  %v3307_v18 = vmax.f32 %v3275_v59, 0.0  ;;  %v3201_v9 = vadd.f32 %v3152_v46, %v6677_v50 }
 0x24c   : > { %v3153_v39 = vsel %vm3144_vm1, %v3132_v48, %v3133_v58  ;;  %v3096_v1 = vadd.f32 %v3033_v25, %v2776_v16  ;;  %v2787_v41 = vadd.f32 %v4727_v63, %v6679_v22  ;;  %v6681_v48 = vld [vmem:[#allocation7_spill] sm:$0xff]  ;;  %v3138_v5 = vrot.slane %v3098_v23, 2  ;;  %v6684_v58 = vld [vmem:[#allocation6_spill] sm:$0xff] }
 0x24d   : > { %v3200_v40 = vadd.f32 %v3153_v39, %v6678_v54  ;;  %v2778_v57 = vpop.f32.mrf.mxu1  ;;  %v3036_v24 = vpop.f32.mrf.mxu0  ;;  %v3988_v56 = vpack.c.bf16 %v3308_v10, %v3307_v18  ;;  %v3277_v34 = vadd.f32 %v6308_v8, %v3238_v26  ;;  %v3240_v38 = vmul.f32 %v6290_v60, %v3201_v9  ;;  %v6686_v26 = vld [vmem:[#allocation34_spill] sm:$0xff] }
 0x24e   : > { %v3136_v28 = vrot.slane %v3096_v1, 2  ;;  %v2779_v37 = vadd.f32 %v2778_v57, %v6680_v47  ;;  %v3099_v19 = vadd.f32 %v4783_v27, %v2787_v41  ;;  %v6687_v27 = vld [vmem:[#allocation23_spill] sm:$0xff] }
 0x24f   : > { %v3239_v11 = vmul.f32 %v6290_v60, %v3200_v40  ;;  %v4730_v36 = vpop.f32.mrf.mxu1  ;;  %v4786_v33 = vpop.f32.mrf.mxu0  ;;  %4026 = vst [vmem:[%s6323_s13 + $0x50] sm:$0xff] %v3988_v56   ;;  %v3309_v53 = vmax.f32 %v3277_v34, 0.0  ;;  %v3279_v7 = vadd.f32 %v6308_v8, %v3240_v38 }
 0x250   : > { %v3151_v49 = vsel %vm3144_vm1, %v3135_v31, %v3136_v28  ;;  %v3097_v12 = vadd.f32 %v3036_v24, %v2779_v37  ;;  %v2800_v61 = vadd.f32 %v4730_v36, %v6682_v13  ;;  %v3139_v4 = vrot.slane %v3099_v19, 2  ;;  %v6689_v19 = vld [vmem:[#allocation12_spill] sm:$0xff] }
 0x251   : > { %v3278_v44 = vadd.f32 %v6308_v8, %v3239_v11  ;;  %v3202_v62 = vadd.f32 %v3151_v49, %v6681_v48  ;;  %v2791_v3 = vpop.f32.mrf.mxu1  ;;  %v3049_v17 = vpop.f32.mrf.mxu0  ;;  %v3311_v39 = vmax.f32 %v3279_v7, 0.0 }
 0x252   : > { %v3137_v51 = vrot.slane %v3097_v12, 2  ;;  %v2792_v6 = vadd.f32 %v2791_v3, %v6683_v29  ;;  %v3102_v55 = vadd.f32 %v4786_v33, %v2800_v61 }
 0x253   : > { %v3310_v20 = vmax.f32 %v3278_v44, 0.0  ;;  %v3241_v21 = vmul.f32 %v6290_v60, %v3202_v62  ;;  %v4731_v0 = vpop.f32.mrf.mxu1  ;;  %v4787_v42 = vpop.f32.mrf.mxu0 }
 0x254   : > { %v3149_v30 = vsel %vm3144_vm1, %v3137_v51, %v3138_v5  ;;  %v3150_v2 = vsel %vm3144_vm1, %v3136_v28, %v3137_v51  ;;  %v3100_v52 = vadd.f32 %v3049_v17, %v2792_v6  ;;  %v2803_v63 = vadd.f32 %v4731_v0, %v6686_v26  ;;  %v6688_v28 = vld [vmem:[#allocation24_spill] sm:$0xff] }
 0x255   : > { %v3993_v25 = vpack.c.bf16 %v3310_v20, %v3309_v53  ;;  %v3280_v31 = vadd.f32 %v6308_v8, %v3241_v21  ;;  %v3203_v15 = vadd.f32 %v3150_v2, %v6684_v58  ;;  %v3204_v35 = vadd.f32 %v3149_v30, %v6685_v14  ;;  %v2794_v16 = vpop.f32.mrf.mxu1  ;;  %v3052_v50 = vpop.f32.mrf.mxu0 }
 0x256   : > { %v3140_v59 = vrot.slane %v3100_v52, 2  ;;  %v2795_v46 = vadd.f32 %v2794_v16, %v6687_v27  ;;  %v3103_v54 = vadd.f32 %v4787_v42, %v2803_v63  ;;  %v3142_v41 = vrot.slane %v3102_v55, 2 }
 0x257   : > { %4027 = vst [vmem:[%s6323_s13 + $0x58] sm:$0xff] %v3993_v25   ;;  %v3312_v1 = vmax.f32 %v3280_v31, 0.0  ;;  %v3242_v10 = vmul.f32 %v6290_v60, %v3203_v15  ;;  %v3243_v18 = vmul.f32 %v6290_v60, %v3204_v35 }
 0x258   : > { %v3148_v9 = vsel %vm3144_vm1, %v3139_v4, %v3140_v59  ;;  %v3101_v40 = vadd.f32 %v3052_v50, %v2795_v46  ;;  %v3143_v47 = vrot.slane %v3103_v54, 2 }
 0x259   : > { %v3998_v57 = vpack.c.bf16 %v3312_v1, %v3311_v39  ;;  %v3281_v24 = vadd.f32 %v6308_v8, %v3242_v10  ;;  %v3282_v23 = vadd.f32 %v6308_v8, %v3243_v18  ;;  %v3205_v22 = vadd.f32 %v3148_v9, %v6688_v28 }
 0x25a   : > { %v3141_v37 = vrot.slane %v3101_v40, 2  ;;  %v3145_v11 = vsel %vm3144_vm1, %v3142_v41, %v3143_v47 }
 0x25b   : > { %4028 = vst [vmem:[%s6323_s13 + $0x60] sm:$0xff] %v3998_v57   ;;  %v3313_v56 = vmax.f32 %v3281_v24, 0.0  ;;  %v3314_v34 = vmax.f32 %v3282_v23, 0.0  ;;  %v3244_v38 = vmul.f32 %v6290_v60, %v3205_v22  ;;  %v3208_v12 = vadd.f32 %v3145_v11, %v6689_v19 }
 0x25c   : > { %v3146_v36 = vsel %vm3144_vm1, %v3141_v37, %v3142_v41  ;;  %v3147_v33 = vsel %vm3144_vm1, %v3140_v59, %v3141_v37 }
 0x25d   : > { %v4003_v49 = vpack.c.bf16 %v3314_v34, %v3313_v56  ;;  %v3206_v44 = vadd.f32 %v3147_v33, %v6271_v45  ;;  %v3207_v48 = vadd.f32 %v3146_v36, %v6274_v32  ;;  %v3283_v62 = vadd.f32 %v6308_v8, %v3244_v38 }
 0x25e   : > { %v3247_v3 = vmul.f32 %v6290_v60, %v3208_v12 }
 0x25f   : > { %4029 = vst [vmem:[%s6323_s13 + $0x68] sm:$0xff] %v4003_v49   ;;  %v3245_v17 = vmul.f32 %v6290_v60, %v3206_v44  ;;  %v3246_v5 = vmul.f32 %v6290_v60, %v3207_v48  ;;  %v3315_v45 = vmax.f32 %v3283_v62, 0.0 }
 0x260   : > { %v3286_v43 = vadd.f32 %v6308_v8, %v3247_v3 }
 0x261   : > { %v3284_v51 = vadd.f32 %v6308_v8, %v3245_v17  ;;  %v3285_v13 = vadd.f32 %v6308_v8, %v3246_v5 }
 0x262   : > { %v3318_v29 = vmax.f32 %v3286_v43, 0.0 }
 0x263   : > { %v3316_v61 = vmax.f32 %v3284_v51, 0.0  ;;  %v3317_v32 = vmax.f32 %v3285_v13, 0.0 }
 0x265   : > { %v4008_v6 = vpack.c.bf16 %v3316_v61, %v3315_v45  ;;  %v4013_v53 = vpack.c.bf16 %v3318_v29, %v3317_v32 }
 0x267   : > { %4030 = vst [vmem:[%s6323_s13 + $0x70] sm:$0xff] %v4008_v6   ;;  %4031 = vst [vmem:[%s6323_s13 + $0x78] sm:$0xff] %v4013_v53  }
 0x268 PF: > { %s15_s22 = sadd.s32 1, %s5001_s22   ;;  %s6690_s18 = smov %s4993_s20 }
 0x269   : > { %p12_p9 = scmp.ge.s32.totalorder %s15_s22, 10   ;;  %s6691_s19 = smov %s4997_s21 }
 0x26a   : > { %s6692_s20 = smov %s6695_s23  ;;  %s6693_s21 = smov %s6699_s24 }
 0x26b   :  { %14 = sbr.rel (!%p12_p9) target bundleno = 3 (0x3), region = 81 }

// kernel: _lambda_.6
= control target key start
LH: loop header
LB: loop body
LE: loop exit
PB: predicated region body
PF: predicated region fallthrough
CT: control target
= control target key end

     0   :  { %s5304_s21 = smov 0   ;;  %s5306_s22 = smov 0   ;;  %s6941_s0 = inlined_call_operand.vmem [shape: bf16[2,34,40,128], index: 0, kind: input, shape index: {}, may-alias: {0,1}]   ;;  %s6942_s1 = inlined_call_operand.vmem [shape: bf16[2,34,40,128], index: 1, kind: input, shape index: {}, may-alias: {0,1}]   ;;  %s6943_s2 = inlined_call_operand.vmem [shape: bf16[9,128,128], index: 2, kind: input, shape index: {}]   ;;  %s6944_s3 = inlined_call_operand.vmem [shape: f32[1,128], index: 3, kind: input, shape index: {}]   ;;  %s6945_s4 = inlined_call_operand.vmem [shape: f32[1,128], index: 4, kind: input, shape index: {}]   ;;  %s6946_s5 = inlined_call_operand.vmem [shape: bf16[2,32,32,128], index: 5, kind: input, shape index: {}]   ;;  %s6947_s6 = inlined_call_operand.vmem [shape: bf16[2,32,32,128], index: 6, kind: output, shape index: {}]  }
   0x1   :  { %s5308_s23 = smov 0   ;;  %s5310_s24 = smov 0  }
   0x2   :  { %s5312_s25 = smov 0  }
   0x3 LB: > { %s25_s26 = sadd.s32 1, %s5259_s23  ;;  %s28_s27 = sadd.s32 1, %s5263_s24  ;;  %s5267_s25 = sphi %s5312_s25, %s16_s25   ;;  %s5263_s24 = sphi %s5310_s24, %s7165_s24   ;;  %s5259_s23 = sphi %s5308_s23, %s7164_s23   ;;  %s5255_s22 = sphi %s5306_s22, %s7163_s22   ;;  %s5251_s21 = sphi %s5304_s21, %s7162_s21  }
   0x4   : > { %p26_p0 = scmp.ge.s32.totalorder %s25_s26, 4  ;;  %p3788_p1 = scmp.ge.s32.totalorder %s5267_s25, 1 }
   0x5   : > { %p288_p2 = scmp.lt.s32.totalorder %s5267_s25, 9 }
   0x6   : > { %s7167_s26 = smov (%p26_p0, %s25_s26), 0  ;;  %s7169_s27 = smov (!%p26_p0, %s28_s27), %s5263_s24 }
   0x7   : > { %p289_p3 = pnand %p3788_p1, %p288_p2  ;;  %p30_p4 = scmp.ge.s32.totalorder %s7169_s27, 2 }
   0x9   : > { %s7171_s27 = smov (%p30_p4, %s7169_s27), 0  ;;  %292 = sbr.rel (%p289_p3) target bundleno = 624 (0x270), region = 44 }
   0xe   : > { %v5113_v0 = vld [vmem:[%s6943_s2 + $0xf8] sm:$0xff]   ;;  %s5337_s30 = sshll.u32 %s5251_s21, 3  ;;  %v5114_v1 = vld [vmem:[%s6943_s2 + $0xf0] sm:$0xff]   ;;  %p361_p5 = scmp.lt.s32.totalorder %s5255_s22, 1  ;;  %v5115_v2 = vld [vmem:[%s6943_s2 + $0xe8] sm:$0xff]  }
   0xf   : > { %4550 = vmatprep.subr.bf16.mxu0 %v5113_v0  ;;  %5054 = vmatprep.subr.bf16.mxu1 %v5113_v0  ;;  %p363_p6 = scmp.lt.s32.totalorder %s5337_s30, 33  ;;  %s4267_s14 = sadd.s32 8, %s5337_s30  ;;  %v5116_v3 = vld [vmem:[%s6943_s2 + $0xe0] sm:$0xff]   ;;  %v5117_v7 = vld [vmem:[%s6943_s2 + $0xd8] sm:$0xff]   ;;  %v5118_v16 = vld [vmem:[%s6943_s2 + $0xd0] sm:$0xff]  }
  0x10   : > { %4551 = vmatpush3.bf16.msra.mxu0 %v5113_v0  ;;  %5062 = vmatpush3.bf16.msra.mxu1 %v5113_v0  ;;  %s7173_s22 = smov (!%p361_p5, %s5255_s22), 1  ;;  %p5361_p7 = scmp.lt.s32.totalorder %s4267_s14, 33  ;;  %v5119_v20 = vld [vmem:[%s6943_s2 + $0xc8] sm:$0xff]   ;;  %v5120_v27 = vld [vmem:[%s6943_s2 + $0xc0] sm:$0xff]   ;;  %v5126_v28 = vld [vmem:[%s6943_s2 + $0x38] sm:$0xff]  }
  0x11   : > { %4552 = vmatprep.subr.bf16.mxu0 %v5114_v1  ;;  %5055 = vmatprep.subr.bf16.mxu1 %v5114_v1  ;;  %s364_s11 = scalar_select %p363_p6, %s5337_s30, 33  ;;  %v5127_v29 = vld [vmem:[%s6943_s2 + $0x1b8] sm:$0xff]   ;;  %v5128_v42 = vld [vmem:[%s6943_s2 + $0x30] sm:$0xff]   ;;  %v5137_v52 = vld [vmem:[%s6943_s2 + $0x28] sm:$0xff]  }
  0x12   : > { %s5071_s12 = smul.u32 170, %s7173_s22  ;;  %s7175_s14 = smov (!%p5361_p7, %s4267_s14), 33  ;;  %v5132_v44 = vld [vmem:[%s6943_s2 + $0x1b0] sm:$0xff]   ;;  %v5138_v54 = vld [vmem:[%s6943_s2 + $0x1a8] sm:$0xff]   ;;  %v5143_v62 = vld [vmem:[%s6943_s2 + $0x20] sm:$0xff]  }
  0x13   : > { %s5070_s13 = smul.u32 5, %s364_s11  ;;  %p394_p8 = scmp.lt.s32.totalorder %s5337_s30, 31 }
  0x14   : > { %4553 = vmatpush3.bf16.msra.mxu0 %v5114_v1  ;;  %5063 = vmatpush3.bf16.msra.mxu1 %v5114_v1  ;;  %v5148_v1 = vld [vmem:[%s6943_s2 + $0x1a0] sm:$0xff]   ;;  %s3796_s19 = sshll.u32 %s7173_s22, 7 }
  0x15   : > { %4554 = vmatprep.subr.bf16.mxu0 %v5115_v2  ;;  %5056 = vmatprep.subr.bf16.mxu1 %v5115_v2  ;;  %s367_s17 = sadd.s32 %s5071_s12, %s5070_s13  ;;  %s5072_s13 = smul.u32 5, %s7175_s14 }
  0x16   : > { %s3790_s18 = sshll.u32 %s367_s17, 2  ;;  %s7177_s30 = smov (!%p394_p8, %s5337_s30), 31 }
  0x17   : > { %s5359_s21 = scalar_lea.vmem %s6941_s0, %s3790_s18  ;;  %s385_s14 = sadd.s32 %s5072_s13, %s5071_s12 }
  0x18   : > { %4555 = vmatpush3.bf16.msra.mxu0 %v5115_v2  ;;  %5064 = vmatpush3.bf16.msra.mxu1 %v5115_v2  ;;  %v5366_v4 = vld [vmem:[%s5359_s21 + $0x14] sm:$0xf]  ;;  %v5369_v5 = vld [vmem:[%s5359_s21 + $0x18] sm:$0xf]  ;;  %v5372_v6 = vld [vmem:[%s5359_s21 + $0x64] sm:$0xf] }
  0x19   : > { %4556 = vmatprep.subr.bf16.mxu0 %v5116_v3  ;;  %5057 = vmatprep.subr.bf16.mxu1 %v5116_v3  ;;  %v5379_v8 = vcombine.low %v5366_v4, %v5369_v5  ;;  %v440_v9 = vld [vmem:[%s5359_s21 + $0x68] sm:$0xf]  ;;  %v441_v11 = vld [vmem:[%s5359_s21 + $0x6c] sm:$0xf]  ;;  %v442_v12 = vld [vmem:[%s5359_s21 + $0x70] sm:$0xf] }
  0x1a   : > { %v5383_v10 = vcombine.low %v5372_v6, %v440_v9  ;;  %v5388_v13 = vcombine.low %v440_v9, %v441_v11  ;;  %v443_v14 = vld [vmem:[%s5359_s21 + $0x74] sm:$0xf]  ;;  %v444_v17 = vld [vmem:[%s5359_s21 + $0x78] sm:$0xf]  ;;  %v5400_v18 = vld [vmem:[%s5359_s21 + $0x7c] sm:$0xf]  ;;  %v5478_v41 = vcombine.low %v441_v11, %v442_v12 }
  0x1b   : > { %4566 = vmatprep.mubr.bf16.mxu0 %v5379_v8  ;;  %v5391_v15 = vcombine.low %v442_v12, %v443_v14  ;;  %v5404_v19 = vcombine.low %v444_v17, %v5400_v18  ;;  %v446_v21 = vld [vmem:[%s5359_s21 + $0x80] sm:$0xf]  ;;  %v5411_v22 = vld [vmem:[%s5359_s21 + $0x84] sm:$0xf]  ;;  %v5417_v24 = vld [vmem:[%s5359_s21 + $0x88] sm:$0xf]  ;;  %v5496_v47 = vcombine.low %v443_v14, %v444_v17 }
  0x1c   : > { %6973 = vst [vmem:[#allocation2_spill] sm:$0xff] %v5388_v13  ;;  %4557 = vmatpush3.bf16.msra.mxu0 %v5116_v3  ;;  %5065 = vmatpush3.bf16.msra.mxu1 %v5116_v3  ;;  %v5414_v23 = vcombine.low %v446_v21, %v5411_v22  ;;  %v5420_v25 = vld [vmem:[%s5359_s21 + $0x8c] sm:$0xf]  ;;  %v5438_v30 = vld [vmem:[%s5359_s21 + $0x90] sm:$0xf]  ;;  %s3793_s12 = sshll.u32 %s385_s14, 2  ;;  %v5539_v59 = vcombine.low %v5400_v18, %v446_v21 }
  0x1d   : > { %6974 = vst [vmem:[#allocation3_spill] sm:$0xff] %v5391_v15  ;;  %4558 = vmatprep.subr.bf16.mxu0 %v5117_v7  ;;  %5058 = vmatprep.subr.bf16.mxu1 %v5117_v7  ;;  %v5424_v26 = vcombine.low %v5417_v24, %v5420_v25  ;;  %v5441_v31 = vld [vmem:[%s5359_s21 + $0x94] sm:$0xf]  ;;  %v5444_v32 = vld [vmem:[%s5359_s21 + $0x1c] sm:$0xf]  ;;  %s5468_s7 = scalar_lea.vmem %s6942_s1, %s3793_s12  ;;  %v5547_v61 = vcombine.low %v5411_v22, %v5417_v24  ;;  %v5160_v22 = vld [vmem:[%s6943_s2 + $0x8] sm:$0xff]  }
  0x1e   : > { %4586 = vmatprep.mubr.bf16.mxu1 %v5383_v10  ;;  %v5447_v33 = vld [vmem:[%s5359_s21 + $0x20] sm:$0xf]  ;;  %v5450_v34 = vld [vmem:[%s5359_s21 + $0x24] sm:$0xf]  ;;  %v5454_v35 = vcombine.low %v5438_v30, %v5441_v31  ;;  %v5457_v36 = vld [vmem:[%s5359_s21 + $0x98] sm:$0xf]  ;;  %v5583_v12 = vcombine.low %v5420_v25, %v5438_v30 }
  0x1f   : > { %v5460_v37 = vld [vmem:[%s5359_s21 + $0x9c] sm:$0xf]  ;;  %v5463_v38 = vld [vmem:[%s5359_s21 + $0x28] sm:$0xf]  ;;  %v5476_v40 = vcombine.low %v5444_v32, %v5447_v33  ;;  %v5491_v45 = vld [vmem:[%s5468_s7] sm:$0xf] }
  0x20   : > { %4559 = vmatpush3.bf16.msra.mxu0 %v5117_v7  ;;  %5066 = vmatpush3.bf16.msra.mxu1 %v5117_v7  ;;  %v5472_v39 = vcombine.low %v5457_v36, %v5460_v37  ;;  %v5485_v43 = vcombine.low %v5450_v34, %v5463_v38  ;;  %v5494_v46 = vld [vmem:[%s5468_s7 + $0x4] sm:$0xf]  ;;  %v5499_v48 = vld [vmem:[%s5359_s21 + $0x2c] sm:$0xf]  ;;  %v5502_v49 = vld [vmem:[%s5359_s21 + $0x30] sm:$0xf] }
  0x21   : > { %4560 = vmatprep.subr.bf16.mxu0 %v5118_v16  ;;  %5059 = vmatprep.subr.bf16.mxu1 %v5118_v16  ;;  %v5505_v50 = vld [vmem:[%s5468_s7 + $0x8] sm:$0xf]  ;;  %v5509_v51 = vcombine.low %v5491_v45, %v5494_v46  ;;  %v5517_v53 = vld [vmem:[%s5468_s7 + $0xc] sm:$0xf]  ;;  %v5528_v56 = vld [vmem:[%s5359_s21 + $0x34] sm:$0xf]  ;;  %v5536_v58 = vcombine.low %v5499_v48, %v5502_v49 }
  0x22   : > { %v5524_v55 = vcombine.low %v5505_v50, %v5517_v53  ;;  %v5532_v57 = vld [vmem:[%s5359_s21 + $0x38] sm:$0xf]  ;;  %v5553_v63 = vld [vmem:[%s5359_s21 + $0x3c] sm:$0xf]  ;;  %v5556_v0 = vld [vmem:[%s5359_s21 + $0x40] sm:$0xf] }
  0x23   : > { %v5543_v60 = vcombine.low %v5528_v56, %v5532_v57  ;;  %v5149_v2 = vld [vmem:[%s6943_s2 + $0x18] sm:$0xff]   ;;  %v5570_v7 = vld [vmem:[%s5359_s21 + $0x44] sm:$0xf]  ;;  %v5575_v9 = vld [vmem:[%s5359_s21 + $0x48] sm:$0xf]  ;;  %v5579_v11 = vcombine.low %v5553_v63, %v5556_v0  ;;  %s3795_s18 = sshll.u32 %s7177_s30, 2 }
  0x24   : > { %4561 = vmatpush3.bf16.msra.mxu0 %v5118_v16  ;;  %5067 = vmatpush3.bf16.msra.mxu1 %v5118_v16  ;;  %v5150_v3 = vld [vmem:[%s6943_s2 + $0x198] sm:$0xff]   ;;  %v5587_v14 = vcombine.low %v5570_v7, %v5575_v9  ;;  %v5591_v16 = vcombine.low %v5441_v31, %v5457_v36  ;;  %v5158_v17 = vld [vmem:[%s6943_s2 + $0x10] sm:$0xff]   ;;  %v5597_v18 = vld [vmem:[%s5359_s21 + $0x4c] sm:$0xf]  ;;  %v5629_v31 = vcombine.low %v5460_v37, %v5491_v45  ;;  %s6503_s20 = sadd.s32 %s3796_s19, %s3795_s18 }
  0x25   : > { %4562 = vmatprep.subr.bf16.mxu0 %v5119_v20  ;;  %5060 = vmatprep.subr.bf16.mxu1 %v5119_v20  ;;  %v5159_v21 = vld [vmem:[%s6943_s2 + $0x190] sm:$0xff]   ;;  %v5615_v25 = vld [vmem:[%s5359_s21 + $0x58] sm:$0xf]  ;;  %v5170_v37 = vld [vmem:[%s6943_s2 + $0x180] sm:$0xff]   ;;  %s3797_s22 = sshll.u32 %s6503_s20, 2 }
  0x26   : > { %v5611_v24 = vld [vmem:[%s5359_s21 + $0x54] sm:$0xf]  ;;  %v437_v45 = vld [vmem:[%s5359_s21 + $0x5c] sm:$0xf]  ;;  %s6533_s28 = scalar_lea.vmem %s6946_s5, %s3797_s22  ;;  %s6678_s14 = scalar_lea.vmem %s6947_s6, %s3797_s22 }
  0x28   : > { %4563 = vmatpush3.bf16.msra.mxu0 %v5119_v20  ;;  %5068 = vmatpush3.bf16.msra.mxu1 %v5119_v20  ;;  %v5600_v20 = vld [vmem:[%s5359_s21 + $0x50] sm:$0xf] }
  0x29   : > { %4564 = vmatprep.subr.bf16.mxu0 %v5120_v27  ;;  %5061 = vmatprep.subr.bf16.mxu1 %v5120_v27  ;;  %v5625_v30 = vcombine.low %v5597_v18, %v5600_v20 }
  0x2c   : > { %4565 = vmatpush3.bf16.msra.mxu0 %v5120_v27  ;;  %5069 = vmatpush3.bf16.msra.mxu1 %v5120_v27  ;;  %v458_v27 = vld [vmem:[%s5468_s7 + $0x10] sm:$0xf] }
  0x2d   : > { %4606 = vmatprep.subr.bf16.mxu1 %v5126_v28  ;;  %4662 = vmatprep.subr.bf16.mxu0 %v5127_v29 }
  0x2f   : > { %4567 = vmatmul.mubr.bf16.vlgmr.msra.gmra.mxu0 %v5476_v40  ;;  %4587 = vmatmul.mubr.bf16.vlgmr.msra.gmra.mxu1 %v5478_v41 }
  0x30   : > { %4607 = vmatpush3.bf16.msra.mxu1 %v5126_v28  ;;  %4663 = vmatpush3.bf16.msra.mxu0 %v5127_v29  ;;  %v5168_v28 = vld [vmem:[%s6943_s2 + $0x188] sm:$0xff]   ;;  %v459_v29 = vld [vmem:[%s5468_s7 + $0x14] sm:$0xf] }
  0x31   : > { %4608 = vmatprep.subr.bf16.mxu1 %v5128_v42  ;;  %4570 = vmatprep.mubr.bf16.mxu0 %v5485_v43  ;;  %v5631_v36 = vcombine.low %v458_v27, %v459_v29  ;;  %v5182_v29 = vld [vmem:[%s6943_s2 + $0x120] sm:$0xff]  }
  0x32   : > { %4590 = vmatprep.mubr.bf16.mxu1 %v5496_v47  ;;  %4664 = vmatprep.subr.bf16.mxu0 %v5132_v44 }
  0x34   : > { %4609 = vmatpush3.bf16.msra.mxu1 %v5128_v42  ;;  %4665 = vmatpush3.bf16.msra.mxu0 %v5132_v44  ;;  %v5635_v42 = vcombine.low %v5611_v24, %v5615_v25  ;;  %v5639_v44 = vcombine.low %v5494_v46, %v5505_v50  ;;  %v5653_v46 = vld [vmem:[%s5359_s21 + $0x60] sm:$0xf]  ;;  %v5173_v50 = vld [vmem:[%s6943_s2 + $0x138] sm:$0xff]  }
  0x35   : > { %4610 = vmatprep.subr.bf16.mxu1 %v5137_v52  ;;  %4666 = vmatprep.subr.bf16.mxu0 %v5138_v54 }
  0x37   : > { %4571 = vmatmul.mubr.bf16.gmra.mxu0 %v5536_v58  ;;  %4591 = vmatmul.mubr.bf16.gmra.mxu1 %v5539_v59 }
  0x38   : > { %4611 = vmatpush3.bf16.msra.mxu1 %v5137_v52  ;;  %4667 = vmatpush3.bf16.msra.mxu0 %v5138_v54  ;;  %v5169_v52 = vld [vmem:[%s6943_s2] sm:$0xff]   ;;  %v5174_v54 = vld [vmem:[%s6943_s2 + $0x78] sm:$0xff]  }
  0x39   : > { %4574 = vmatprep.mubr.bf16.mxu0 %v5543_v60  ;;  %4594 = vmatprep.mubr.bf16.mxu1 %v5547_v61 }
  0x3a   : > { %4612 = vmatprep.subr.bf16.mxu1 %v5143_v62  ;;  %4668 = vmatprep.subr.bf16.mxu0 %v5148_v1 }
  0x3c   : > { %4613 = vmatpush3.bf16.msra.mxu1 %v5143_v62  ;;  %4669 = vmatpush3.bf16.msra.mxu0 %v5148_v1  ;;  %v5662_v62 = vcombine.low %v437_v45, %v5653_v46  ;;  %v5665_v1 = vcombine.low %v5517_v53, %v458_v27  ;;  %v418_v53 = vld [vmem:[%s5359_s21 + $0x10] sm:$0xf] }
  0x3d   : > { %4614 = vmatprep.subr.bf16.mxu1 %v5149_v2  ;;  %4670 = vmatprep.subr.bf16.mxu0 %v5150_v3  ;;  %v5697_v27 = vcombine.low %v418_v53, %v5366_v4  ;;  %v5711_v4 = vcombine.low %v5556_v0, %v5570_v7  ;;  %v5183_v0 = vld [vmem:[%s6943_s2 + $0x60] sm:$0xff]   ;;  %v5186_v7 = vld [vmem:[%s6943_s2 + $0x110] sm:$0xff]   ;;  %v5201_v53 = vld [vmem:[%s6943_s2 + $0x1e8] sm:$0xff]  }
  0x3f   : > { %4575 = vmatmul.mubr.bf16.gmra.mxu0 %v5579_v11  ;;  %4595 = vmatmul.mubr.bf16.gmra.mxu1 %v5583_v12  ;;  %6975 = vst [vmem:[#allocation4_spill] sm:$0xff] %v5711_v4 }
  0x40   : > { %4615 = vmatpush3.bf16.msra.mxu1 %v5149_v2  ;;  %4578 = vmatprep.mubr.bf16.mxu0 %v5587_v14  ;;  %v5669_v2 = vcombine.low %v5463_v38, %v5499_v48  ;;  %v5684_v38 = vcombine.low %v5502_v49, %v5528_v56  ;;  %v5177_v48 = vld [vmem:[%s6943_s2 + $0x130] sm:$0xff]   ;;  %v5180_v49 = vld [vmem:[%s6943_s2 + $0x128] sm:$0xff]  }
  0x41   : > { %4598 = vmatprep.mubr.bf16.mxu1 %v5591_v16  ;;  %4671 = vmatpush3.bf16.msra.mxu0 %v5150_v3  ;;  %v5672_v3 = vld [vmem:[%s5359_s21] sm:$0xff]   ;;  %v5181_v56 = vld [vmem:[%s6943_s2 + $0x68] sm:$0xff]  }
  0x42   : > { %4616 = vmatprep.subr.bf16.mxu1 %v5158_v17  ;;  %4672 = vmatprep.subr.bf16.mxu0 %v5159_v21 }
  0x44   : > { %4617 = vmatpush3.bf16.msra.mxu1 %v5158_v17  ;;  %v5680_v17 = vld [vmem:[%s5359_s21 + $0x8] sm:$0xff]  }
  0x45   : > { %4673 = vmatpush3.bf16.msra.mxu0 %v5159_v21  ;;  %4618 = vmatprep.subr.bf16.mxu1 %v5160_v22  ;;  %v5178_v21 = vld [vmem:[%s6943_s2 + $0x70] sm:$0xff]  }
  0x46   : > { %4674 = vmatprep.subr.bf16.mxu0 %v5168_v28 }
  0x47   : > { %4579 = vmatmul.mubr.bf16.gmra.mxu0 %v5625_v30  ;;  %4599 = vmatmul.mubr.bf16.gmra.mxu1 %v5629_v31 }
  0x48   : > { %4582 = vmatprep.mubr.bf16.mxu0 %v5635_v42  ;;  %4602 = vmatprep.mubr.bf16.mxu1 %v5639_v44 }
  0x49   : > { %4619 = vmatpush3.bf16.msra.mxu1 %v5160_v22  ;;  %4675 = vmatpush3.bf16.msra.mxu0 %v5168_v28  ;;  %v5694_v22 = vcombine.low %v5532_v57, %v5553_v63  ;;  %v5715_v57 = vcombine.low %v5369_v5, %v5444_v32  ;;  %v5719_v63 = vcombine.low %v5575_v9, %v5597_v18  ;;  %v5184_v5 = vld [vmem:[%s6943_s2 + $0x118] sm:$0xff]   ;;  %v5187_v9 = vld [vmem:[%s6943_s2 + $0x50] sm:$0xff]   ;;  %v5189_v18 = vld [vmem:[%s6943_s2 + $0x108] sm:$0xff]  }
  0x4a   : > { %4620 = vmatprep.subr.bf16.mxu1 %v5169_v52  ;;  %4676 = vmatprep.subr.bf16.mxu0 %v5170_v37  ;;  %v5723_v28 = vcombine.low %v5447_v33, %v5450_v34  ;;  %v5185_v32 = vld [vmem:[%s6943_s2 + $0x58] sm:$0xff]   ;;  %v5743_v33 = vcombine.low %v5600_v20, %v5611_v24  ;;  %v5746_v34 = vcombine.low %v5615_v25, %v437_v45  ;;  %v5190_v20 = vld [vmem:[%s6943_s2 + $0x48] sm:$0xff]   ;;  %v5193_v25 = vld [vmem:[%s6943_s2 + $0x100] sm:$0xff]  }
  0x4b   : > { %6976 = vst [vmem:[#allocation5_spill] sm:$0xff] %v5715_v57  ;;  %6977 = vst [vmem:[#allocation6_spill] sm:$0xff] %v5719_v63  ;;  %v5766_v24 = vcombine.low %v5653_v46, %v5372_v6  ;;  %v5197_v6 = vld [vmem:[%s6943_s2 + $0x1f8] sm:$0xff]   ;;  %v5808_v46 = vld [vmem:[%s5468_s7 + $0x20] sm:$0xff]  }
  0x4c   : > { %6978 = vst [vmem:[#allocation7_spill] sm:$0xff] %v5723_v28  ;;  %6979 = vst [vmem:[#allocation8_spill] sm:$0xff] %v5743_v33  ;;  %v5801_v45 = vld [vmem:[%s5468_s7 + $0x18] sm:$0xff]  }
  0x4d   : > { %4621 = vmatpush3.bf16.msra.mxu1 %v5169_v52  ;;  %4677 = vmatpush3.bf16.msra.mxu0 %v5170_v37  ;;  %6980 = vst [vmem:[#allocation9_spill] sm:$0xff] %v5746_v34  ;;  %6981 = vst [vmem:[#allocation10_spill] sm:$0xff] %v5766_v24  ;;  %v5196_v52 = vld [vmem:[%s6943_s2 + $0x40] sm:$0xff]   ;;  %v5198_v37 = vld [vmem:[%s6943_s2 + $0x178] sm:$0xff]  }
  0x4e   : > { %4718 = vmatprep.subr.bf16.mxu1 %v5173_v50  ;;  %4774 = vmatprep.subr.bf16.mxu0 %v5174_v54 }
  0x4f   : > { %4583 = vmatmul.mubr.bf16.gmra.mxu0 %v5662_v62  ;;  %4603 = vmatmul.mubr.bf16.gmra.mxu1 %v5665_v1 }
  0x50   : > { %4622 = vmatprep.mubr.bf16.mxu1 %v5672_v3  ;;  %4678 = vmatprep.mubr.bf16.mxu0 %v5669_v2 }
  0x57   : > { %4623 = vmatmul.mubr.bf16.vlgmr.msra.gmra.mxu1 %v5680_v17  ;;  %4679 = vmatmul.mubr.bf16.vlgmr.msra.gmra.mxu0 %v5684_v38 }
  0x58   : > { %4719 = vmatpush3.bf16.msra.mxu1 %v5173_v50  ;;  %4775 = vmatpush3.bf16.msra.mxu0 %v5174_v54  ;;  %v5199_v50 = vld [vmem:[%s6943_s2 + $0x1f0] sm:$0xff]  }
  0x59   : > { %4626 = vmatprep.mubr.bf16.mxu1 %v5697_v27  ;;  %4682 = vmatprep.mubr.bf16.mxu0 %v5694_v22  ;;  %v5200_v54 = vld [vmem:[%s6943_s2 + $0x170] sm:$0xff]  }
  0x5a   : > { %4720 = vmatprep.subr.bf16.mxu1 %v5177_v48  ;;  %4776 = vmatprep.subr.bf16.mxu0 %v5178_v21 }
  0x5c   : > { %4721 = vmatpush3.bf16.msra.mxu1 %v5177_v48  ;;  %4777 = vmatpush3.bf16.msra.mxu0 %v5178_v21  ;;  %v5202_v48 = vld [vmem:[%s6943_s2 + $0x168] sm:$0xff]   ;;  %v5203_v21 = vld [vmem:[%s6943_s2 + $0x1e0] sm:$0xff]  }
  0x5d   : > { %4722 = vmatprep.subr.bf16.mxu1 %v5180_v49  ;;  %4778 = vmatprep.subr.bf16.mxu0 %v5181_v56 }
  0x5f   : > { %4627 = vmatmul.mubr.bf16.gmra.mxu1 %v5715_v57  ;;  %4683 = vmatmul.mubr.bf16.gmra.mxu0 %v5711_v4 }
  0x60   : > { %4630 = vmatprep.mubr.bf16.mxu1 %v5723_v28  ;;  %4686 = vmatprep.mubr.bf16.mxu0 %v5719_v63 }
  0x61   : > { %4723 = vmatpush3.bf16.msra.mxu1 %v5180_v49  ;;  %4779 = vmatpush3.bf16.msra.mxu0 %v5181_v56  ;;  %v5204_v49 = vld [vmem:[%s6943_s2 + $0x160] sm:$0xff]   ;;  %v5205_v56 = vld [vmem:[%s6943_s2 + $0x1d8] sm:$0xff]  }
  0x62   : > { %4724 = vmatprep.subr.bf16.mxu1 %v5182_v29  ;;  %4780 = vmatprep.subr.bf16.mxu0 %v5183_v0 }
  0x65   : > { %4725 = vmatpush3.bf16.msra.mxu1 %v5182_v29  ;;  %4781 = vmatpush3.bf16.msra.mxu0 %v5183_v0  ;;  %v5206_v29 = vld [vmem:[%s6943_s2 + $0x158] sm:$0xff]   ;;  %v5207_v0 = vld [vmem:[%s6943_s2 + $0x1d0] sm:$0xff]  }
  0x66   : > { %4726 = vmatprep.subr.bf16.mxu1 %v5184_v5  ;;  %4782 = vmatprep.subr.bf16.mxu0 %v5185_v32 }
  0x67   : > { %4631 = vmatmul.mubr.bf16.gmra.mxu1 %v5669_v2  ;;  %4687 = vmatmul.mubr.bf16.gmra.mxu0 %v5743_v33 }
  0x68   : > { %4634 = vmatprep.mubr.bf16.mxu1 %v5684_v38  ;;  %4690 = vmatprep.mubr.bf16.mxu0 %v5746_v34 }
  0x69   : > { %4727 = vmatpush3.bf16.msra.mxu1 %v5184_v5  ;;  %4783 = vmatpush3.bf16.msra.mxu0 %v5185_v32  ;;  %v5208_v5 = vld [vmem:[%s6943_s2 + $0x150] sm:$0xff]   ;;  %v5209_v32 = vld [vmem:[%s6943_s2 + $0x1c8] sm:$0xff]  }
  0x6a   : > { %4728 = vmatprep.subr.bf16.mxu1 %v5186_v7  ;;  %4784 = vmatprep.subr.bf16.mxu0 %v5187_v9 }
  0x6d   : > { %4729 = vmatpush3.bf16.msra.mxu1 %v5186_v7  ;;  %4785 = vmatpush3.bf16.msra.mxu0 %v5187_v9  ;;  %v5210_v7 = vld [vmem:[%s6943_s2 + $0x148] sm:$0xff]   ;;  %v5211_v9 = vld [vmem:[%s6943_s2 + $0x1c0] sm:$0xff]  }
  0x6e   : > { %4730 = vmatprep.subr.bf16.mxu1 %v5189_v18  ;;  %4786 = vmatprep.subr.bf16.mxu0 %v5190_v20 }
  0x6f   : > { %4635 = vmatmul.mubr.bf16.gmra.mxu1 %v5694_v22  ;;  %4691 = vmatmul.mubr.bf16.gmra.mxu0 %v5766_v24 }
  0x70   : > { %4638 = vmatprep.mubr.bf16.mxu1 %v5711_v4  ;;  %4694 = vmatprep.mubr.bf16.mxu0 %v5388_v13 }
  0x71   : > { %4731 = vmatpush3.bf16.msra.mxu1 %v5189_v18  ;;  %4787 = vmatpush3.bf16.msra.mxu0 %v5190_v20  ;;  %v5212_v18 = vld [vmem:[%s6943_s2 + $0x140] sm:$0xff]   ;;  %v5213_v20 = vld [vmem:[%s6943_s2 + $0xb8] sm:$0xff]  }
  0x72   : > { %4732 = vmatprep.subr.bf16.mxu1 %v5193_v25  ;;  %4788 = vmatprep.subr.bf16.mxu0 %v5196_v52 }
  0x75   : > { %4733 = vmatpush3.bf16.msra.mxu1 %v5193_v25  ;;  %4789 = vmatpush3.bf16.msra.mxu0 %v5196_v52  ;;  %v5214_v25 = vld [vmem:[%s6943_s2 + $0x238] sm:$0xff]  }
  0x76   : > { %4830 = vmatprep.subr.bf16.mxu1 %v5197_v6  ;;  %4886 = vmatprep.subr.bf16.mxu0 %v5198_v37 }
  0x77   : > { %4639 = vmatmul.mubr.bf16.gmra.mxu1 %v5719_v63  ;;  %4695 = vmatmul.mubr.bf16.gmra.mxu0 %v5391_v15 }
  0x78   : > { %4642 = vmatprep.mubr.bf16.mxu1 %v5743_v33  ;;  %4698 = vmatprep.mubr.bf16.mxu0 %v5404_v19 }
  0x7f   : > { %4643 = vmatmul.mubr.bf16.gmra.mxu1 %v5746_v34  ;;  %4699 = vmatmul.mubr.bf16.gmra.mxu0 %v5414_v23 }
  0x80   : > { %4646 = vmatprep.mubr.bf16.mxu1 %v5766_v24  ;;  %4702 = vmatprep.mubr.bf16.mxu0 %v5424_v26 }
  0x87   : > { %4647 = vmatmul.mubr.bf16.gmra.mxu1 %v5388_v13  ;;  %4703 = vmatmul.mubr.bf16.gmra.mxu0 %v5454_v35 }
  0x88   : > { %4650 = vmatprep.mubr.bf16.mxu1 %v5391_v15  ;;  %4706 = vmatprep.mubr.bf16.mxu0 %v5472_v39 }
  0x8f   : > { %4651 = vmatmul.mubr.bf16.gmra.mxu1 %v5404_v19  ;;  %4707 = vmatmul.mubr.bf16.gmra.mxu0 %v5509_v51 }
  0x90   : > { %4654 = vmatprep.mubr.bf16.mxu1 %v5414_v23  ;;  %4710 = vmatprep.mubr.bf16.mxu0 %v5524_v55 }
  0x97   : > { %4655 = vmatmul.mubr.bf16.gmra.mxu1 %v5424_v26  ;;  %4711 = vmatmul.mubr.bf16.gmra.mxu0 %v5631_v36 }
  0x98   : > { %4658 = vmatprep.mubr.bf16.mxu1 %v5454_v35  ;;  %4714 = vmatprep.mubr.bf16.mxu0 %v5801_v45 }
  0x9f   : > { %4659 = vmatmul.mubr.bf16.gmra.mxu1 %v5472_v39  ;;  %4715 = vmatmul.mubr.bf16.gmra.mxu0 %v5808_v46 }
  0xa0   : > { %4734 = vmatprep.mubr.bf16.mxu1 %v5379_v8  ;;  %4790 = vmatprep.mubr.bf16.mxu0 %v5672_v3 }
  0xa7   : > { %4735 = vmatmul.mubr.bf16.vlgmr.msra.gmra.mxu1 %v5476_v40  ;;  %4791 = vmatmul.mubr.bf16.vlgmr.msra.gmra.mxu0 %v5680_v17 }
  0xa8   : > { %4831 = vmatpush3.bf16.msra.mxu1 %v5197_v6  ;;  %4887 = vmatpush3.bf16.msra.mxu0 %v5198_v37 }
  0xa9   : > { %4738 = vmatprep.mubr.bf16.mxu1 %v5485_v43  ;;  %4794 = vmatprep.mubr.bf16.mxu0 %v5697_v27 }
  0xaa   : > { %4832 = vmatprep.subr.bf16.mxu1 %v5199_v50  ;;  %4888 = vmatprep.subr.bf16.mxu0 %v5200_v54 }
  0xac   : > { %4833 = vmatpush3.bf16.msra.mxu1 %v5199_v50  ;;  %4889 = vmatpush3.bf16.msra.mxu0 %v5200_v54 }
  0xad   : > { %4834 = vmatprep.subr.bf16.mxu1 %v5201_v53  ;;  %4890 = vmatprep.subr.bf16.mxu0 %v5202_v48 }
  0xaf   : > { %4739 = vmatmul.mubr.bf16.gmra.mxu1 %v5536_v58  ;;  %4795 = vmatmul.mubr.bf16.gmra.mxu0 %v5715_v57 }
  0xb0   : > { %4742 = vmatprep.mubr.bf16.mxu1 %v5543_v60  ;;  %4798 = vmatprep.mubr.bf16.mxu0 %v5723_v28  ;;  %v5221_v28 = vld [vmem:[%s6943_s2 + $0x98] sm:$0xff]  }
  0xb1   : > { %4835 = vmatpush3.bf16.msra.mxu1 %v5201_v53  ;;  %4891 = vmatpush3.bf16.msra.mxu0 %v5202_v48 }
  0xb2   : > { %4836 = vmatprep.subr.bf16.mxu1 %v5203_v21  ;;  %4892 = vmatprep.subr.bf16.mxu0 %v5204_v49 }
  0xb5   : > { %4837 = vmatpush3.bf16.msra.mxu1 %v5203_v21  ;;  %4893 = vmatpush3.bf16.msra.mxu0 %v5204_v49  ;;  %v5215_v49 = vld [vmem:[%s6943_s2 + $0xb0] sm:$0xff]  }
  0xb6   : > { %4838 = vmatprep.subr.bf16.mxu1 %v5205_v56  ;;  %4894 = vmatprep.subr.bf16.mxu0 %v5206_v29 }
  0xb7   : > { %4743 = vmatmul.mubr.bf16.gmra.mxu1 %v5579_v11  ;;  %4799 = vmatmul.mubr.bf16.gmra.mxu0 %v5669_v2 }
  0xb8   : > { %4746 = vmatprep.mubr.bf16.mxu1 %v5587_v14  ;;  %4802 = vmatprep.mubr.bf16.mxu0 %v5684_v38 }
  0xb9   : > { %4839 = vmatpush3.bf16.msra.mxu1 %v5205_v56  ;;  %4895 = vmatpush3.bf16.msra.mxu0 %v5206_v29 }
  0xba   : > { %4840 = vmatprep.subr.bf16.mxu1 %v5207_v0  ;;  %4896 = vmatprep.subr.bf16.mxu0 %v5208_v5 }
  0xbd   : > { %4841 = vmatpush3.bf16.msra.mxu1 %v5207_v0  ;;  %4897 = vmatpush3.bf16.msra.mxu0 %v5208_v5 }
  0xbe   : > { %4842 = vmatprep.subr.bf16.mxu1 %v5209_v32  ;;  %4898 = vmatprep.subr.bf16.mxu0 %v5210_v7 }
  0xbf   : > { %4747 = vmatmul.mubr.bf16.gmra.mxu1 %v5625_v30  ;;  %4803 = vmatmul.mubr.bf16.gmra.mxu0 %v5694_v22 }
  0xc0   : > { %4750 = vmatprep.mubr.bf16.mxu1 %v5635_v42  ;;  %4806 = vmatprep.mubr.bf16.mxu0 %v5711_v4 }
  0xc1   : > { %4843 = vmatpush3.bf16.msra.mxu1 %v5209_v32  ;;  %4899 = vmatpush3.bf16.msra.mxu0 %v5210_v7  ;;  %v5217_v32 = vld [vmem:[%s6943_s2 + $0xa8] sm:$0xff]  }
  0xc2   : > { %4844 = vmatprep.subr.bf16.mxu1 %v5211_v9  ;;  %4900 = vmatprep.subr.bf16.mxu0 %v5212_v18  ;;  %v5218_v7 = vld [vmem:[%s6943_s2 + $0x228] sm:$0xff]  }
  0xc5   : > { %4845 = vmatpush3.bf16.msra.mxu1 %v5211_v9  ;;  %4901 = vmatpush3.bf16.msra.mxu0 %v5212_v18 }
  0xc6   : > { %4942 = vmatprep.subr.bf16.mxu1 %v5213_v20  ;;  %4998 = vmatprep.subr.bf16.mxu0 %v5214_v25 }
  0xc7   : > { %4751 = vmatmul.mubr.bf16.gmra.mxu1 %v5662_v62  ;;  %4807 = vmatmul.mubr.bf16.gmra.mxu0 %v5719_v63 }
  0xc8   : > { %4754 = vmatprep.mubr.bf16.mxu1 %v5383_v10  ;;  %4810 = vmatprep.mubr.bf16.mxu0 %v5743_v33 }
  0xcf   : > { %4755 = vmatmul.mubr.bf16.gmra.mxu1 %v5478_v41  ;;  %4811 = vmatmul.mubr.bf16.gmra.mxu0 %v5746_v34 }
  0xd0   : > { %4758 = vmatprep.mubr.bf16.mxu1 %v5496_v47  ;;  %4814 = vmatprep.mubr.bf16.mxu0 %v5766_v24 }
  0xd7   : > { %4759 = vmatmul.mubr.bf16.gmra.mxu1 %v5539_v59  ;;  %4815 = vmatmul.mubr.bf16.gmra.mxu0 %v5388_v13 }
  0xd8   : > { %4762 = vmatprep.mubr.bf16.mxu1 %v5547_v61  ;;  %4818 = vmatprep.mubr.bf16.mxu0 %v5391_v15 }
  0xdf   : > { %4763 = vmatmul.mubr.bf16.gmra.mxu1 %v5583_v12  ;;  %4819 = vmatmul.mubr.bf16.gmra.mxu0 %v5404_v19 }
  0xe0   : > { %4766 = vmatprep.mubr.bf16.mxu1 %v5591_v16  ;;  %4822 = vmatprep.mubr.bf16.mxu0 %v5414_v23 }
  0xe7   : > { %4767 = vmatmul.mubr.bf16.gmra.mxu1 %v5629_v31  ;;  %4823 = vmatmul.mubr.bf16.gmra.mxu0 %v5424_v26 }
  0xe8   : > { %4770 = vmatprep.mubr.bf16.mxu1 %v5639_v44  ;;  %4826 = vmatprep.mubr.bf16.mxu0 %v5454_v35 }
  0xef   : > { %v5898_v52 = vpop.f32.mrf.mxu0  ;;  %v5900_v6 = vpop.f32.mrf.mxu1  ;;  %4771 = vmatmul.mubr.bf16.gmra.mxu1 %v5665_v1  ;;  %4827 = vmatmul.mubr.bf16.gmra.mxu0 %v5472_v39 }
  0xf0   : > { %4846 = vmatprep.mubr.bf16.mxu1 %v5669_v2  ;;  %4902 = vmatprep.mubr.bf16.mxu0 %v5379_v8  ;;  %v5216_v8 = vld [vmem:[%s6943_s2 + $0x230] sm:$0xff]  }
  0xf1   : > { %v5906_v37 = vpop.f32.mrf.mxu0  ;;  %v5908_v50 = vpop.f32.mrf.mxu1 }
  0xf3   : > { %v5910_v54 = vpop.f32.mrf.mxu0  ;;  %v5912_v53 = vpop.f32.mrf.mxu1 }
  0xf5   : > { %v5914_v48 = vpop.f32.mrf.mxu0  ;;  %v5916_v21 = vpop.f32.mrf.mxu1 }
  0xf7   : > { %v5924_v56 = vpop.f32.mrf.mxu0  ;;  %v5926_v29 = vpop.f32.mrf.mxu1  ;;  %4847 = vmatmul.mubr.bf16.vlgmr.msra.gmra.mxu1 %v5684_v38  ;;  %4903 = vmatmul.mubr.bf16.vlgmr.msra.gmra.mxu0 %v5476_v40 }
  0xf8   : > { %4943 = vmatpush3.bf16.msra.mxu1 %v5213_v20  ;;  %4999 = vmatpush3.bf16.msra.mxu0 %v5214_v25  ;;  %v5220_v25 = vld [vmem:[%s6943_s2 + $0x220] sm:$0xff]  }
  0xf9   : > { %v715_v0 = vpop.f32.mrf.mxu0  ;;  %v791_v5 = vpop.f32.mrf.mxu1  ;;  %4850 = vmatprep.mubr.bf16.mxu1 %v5694_v22  ;;  %4906 = vmatprep.mubr.bf16.mxu0 %v5485_v43  ;;  %v5219_v43 = vld [vmem:[%s6943_s2 + $0xa0] sm:$0xff]  }
  0xfa   : > { %4944 = vmatprep.subr.bf16.mxu1 %v5215_v49  ;;  %5000 = vmatprep.subr.bf16.mxu0 %v5216_v8 }
  0xfb   : > { %v5938_v9 = vpop.f32.mrf.mxu0  ;;  %v5940_v40 = vpop.f32.mrf.mxu1 }
  0xfc   : > { %4945 = vmatpush3.bf16.msra.mxu1 %v5215_v49  ;;  %5001 = vmatpush3.bf16.msra.mxu0 %v5216_v8 }
  0xfd   : > { %v5942_v18 = vpop.f32.mrf.mxu0  ;;  %v5944_v20 = vpop.f32.mrf.mxu1  ;;  %4946 = vmatprep.subr.bf16.mxu1 %v5217_v32  ;;  %5002 = vmatprep.subr.bf16.mxu0 %v5218_v7 }
  0xff   : > { %v5952_v0 = vpop.f32.mrf.mxu0  ;;  %v5954_v5 = vpop.f32.mrf.mxu1  ;;  %4851 = vmatmul.mubr.bf16.gmra.mxu1 %v5711_v4  ;;  %4907 = vmatmul.mubr.bf16.gmra.mxu0 %v5536_v58  ;;  %v5222_v58 = vld [vmem:[%s6943_s2 + $0x218] sm:$0xff]  }
 0x100   : > { %6982 = vst [vmem:[#allocation11_spill] sm:$0xff] %v5954_v5  ;;  %4854 = vmatprep.mubr.bf16.mxu1 %v5719_v63  ;;  %4910 = vmatprep.mubr.bf16.mxu0 %v5543_v60 }
 0x101   : > { %v5960_v49 = vpop.f32.mrf.mxu0  ;;  %v5962_v8 = vpop.f32.mrf.mxu1  ;;  %4947 = vmatpush3.bf16.msra.mxu1 %v5217_v32  ;;  %5003 = vmatpush3.bf16.msra.mxu0 %v5218_v7  ;;  %v5223_v32 = vld [vmem:[%s6943_s2 + $0x90] sm:$0xff]  }
 0x102   : > { %6983 = vst [vmem:[#allocation12_spill] sm:$0xff] %v5962_v8  ;;  %4948 = vmatprep.subr.bf16.mxu1 %v5219_v43  ;;  %5004 = vmatprep.subr.bf16.mxu0 %v5220_v25  ;;  %v5224_v7 = vld [vmem:[%s6943_s2 + $0x210] sm:$0xff]  }
 0x103   : > { %v5970_v5 = vpop.f32.mrf.mxu0  ;;  %v5972_v63 = vpop.f32.mrf.mxu1 }
 0x105   : > { %v733_v60 = vpop.f32.mrf.mxu0  ;;  %v809_v4 = vpop.f32.mrf.mxu1  ;;  %4949 = vmatpush3.bf16.msra.mxu1 %v5219_v43  ;;  %5005 = vmatpush3.bf16.msra.mxu0 %v5220_v25 }
 0x106   : > { %4950 = vmatprep.subr.bf16.mxu1 %v5221_v28  ;;  %5006 = vmatprep.subr.bf16.mxu0 %v5222_v58 }
 0x107   : > { %v4580_v8 = vpop.f32.mrf.mxu0  ;;  %v4600_v57 = vpop.f32.mrf.mxu1  ;;  %4855 = vmatmul.mubr.bf16.gmra.mxu1 %v5743_v33  ;;  %4911 = vmatmul.mubr.bf16.gmra.mxu0 %v5579_v11  ;;  %v5226_v11 = vld [vmem:[%s6943_s2 + $0x208] sm:$0xff]  }
 0x108   : > { %4858 = vmatprep.mubr.bf16.mxu1 %v5746_v34  ;;  %4914 = vmatprep.mubr.bf16.mxu0 %v5587_v14  ;;  %v5225_v57 = vld [vmem:[%s6943_s2 + $0x88] sm:$0xff]  }
 0x109   : > { %v5984_v4 = vpop.f32.mrf.mxu0  ;;  %v5986_v43 = vpop.f32.mrf.mxu1  ;;  %4951 = vmatpush3.bf16.msra.mxu1 %v5221_v28  ;;  %5007 = vmatpush3.bf16.msra.mxu0 %v5222_v58  ;;  %v5227_v28 = vld [vmem:[%s6943_s2 + $0x80] sm:$0xff]  }
 0x10a   : > { %6984 = vst [vmem:[#allocation13_spill] sm:$0xff] %v5986_v43  ;;  %4952 = vmatprep.subr.bf16.mxu1 %v5223_v32  ;;  %5008 = vmatprep.subr.bf16.mxu0 %v5224_v7  ;;  %v5228_v58 = vld [vmem:[%s6943_s2 + $0x200] sm:$0xff]  }
 0x10b   : > { %v5994_v25 = vpop.f32.mrf.mxu0  ;;  %v5996_v8 = vpop.f32.mrf.mxu1 }
 0x10c   : > { %6985 = vst [vmem:[#allocation14_spill] sm:$0xff] %v5996_v8 }
 0x10d   : > { %v5998_v14 = vpop.f32.mrf.mxu0  ;;  %v6000_v60 = vpop.f32.mrf.mxu1  ;;  %4953 = vmatpush3.bf16.msra.mxu1 %v5223_v32  ;;  %5009 = vmatpush3.bf16.msra.mxu0 %v5224_v7 }
 0x10e   : > { %6986 = vst [vmem:[#allocation15_spill] sm:$0xff] %v6000_v60  ;;  %4954 = vmatprep.subr.bf16.mxu1 %v5225_v57  ;;  %5010 = vmatprep.subr.bf16.mxu0 %v5226_v11 }
 0x10f   : > { %v6008_v43 = vpop.f32.mrf.mxu0  ;;  %v6010_v34 = vpop.f32.mrf.mxu1  ;;  %4859 = vmatmul.mubr.bf16.gmra.mxu1 %v5766_v24  ;;  %4915 = vmatmul.mubr.bf16.gmra.mxu0 %v5625_v30 }
 0x110   : > { %6987 = vst [vmem:[#allocation16_spill] sm:$0xff] %v6010_v34  ;;  %4862 = vmatprep.mubr.bf16.mxu1 %v5388_v13  ;;  %4918 = vmatprep.mubr.bf16.mxu0 %v5635_v42 }
 0x111   : > { %v6016_v32 = vpop.f32.mrf.mxu0  ;;  %v6018_v7 = vpop.f32.mrf.mxu1  ;;  %4955 = vmatpush3.bf16.msra.mxu1 %v5225_v57  ;;  %5011 = vmatpush3.bf16.msra.mxu0 %v5226_v11 }
 0x112   : > { %6988 = vst [vmem:[#allocation17_spill] sm:$0xff] %v6018_v7  ;;  %4956 = vmatprep.subr.bf16.mxu1 %v5227_v28  ;;  %5012 = vmatprep.subr.bf16.mxu0 %v5228_v58 }
 0x113   : > { %v4585_v60 = vpop.f32.mrf.mxu0  ;;  %v4605_v8 = vpop.f32.mrf.mxu1 }
 0x115   : > { %v6020_v33 = vpop.f32.mrf.mxu0  ;;  %v6022_v34 = vpop.f32.mrf.mxu1  ;;  %4957 = vmatpush3.bf16.msra.mxu1 %v5227_v28  ;;  %5013 = vmatpush3.bf16.msra.mxu0 %v5228_v58 }
 0x116   : > { %6989 = vst [vmem:[#allocation18_spill] sm:$0xff] %v6022_v34 }
 0x117   : > { %v4624_v30 = vpop.f32.mrf.mxu1  ;;  %v4680_v13 = vpop.f32.mrf.mxu0  ;;  %4863 = vmatmul.mubr.bf16.gmra.mxu1 %v5391_v15  ;;  %4919 = vmatmul.mubr.bf16.gmra.mxu0 %v5662_v62 }
 0x118   : > { %v991_v42 = vadd.f32 %v4624_v30, %v5898_v52  ;;  %4866 = vmatprep.mubr.bf16.mxu1 %v5404_v19  ;;  %4922 = vmatprep.mubr.bf16.mxu0 %v5383_v10 }
 0x119   : > { %v982_v57 = vpop.f32.mrf.mxu1  ;;  %v1252_v11 = vpop.f32.mrf.mxu0 }
 0x11a   : > { %v6029_v8 = vadd.f32 %v4680_v13, %v991_v42  ;;  %v983_v60 = vadd.f32 %v982_v57, %v5906_v37 }
 0x11b   : > { %v4625_v28 = vpop.f32.mrf.mxu1  ;;  %v4681_v58 = vpop.f32.mrf.mxu0 }
 0x11c   : > { %v6032_v34 = vadd.f32 %v1252_v11, %v983_v60  ;;  %v994_v15 = vadd.f32 %v4625_v28, %v5910_v54 }
 0x11d   : > { %v985_v7 = vpop.f32.mrf.mxu1  ;;  %v1255_v62 = vpop.f32.mrf.mxu0 }
 0x11e   : > { %v6035_v24 = vadd.f32 %v4681_v58, %v994_v15  ;;  %v986_v52 = vadd.f32 %v985_v7, %v5914_v48 }
 0x11f   : > { %v4628_v30 = vpop.f32.mrf.mxu1  ;;  %v4684_v10 = vpop.f32.mrf.mxu0  ;;  %4867 = vmatmul.mubr.bf16.gmra.mxu1 %v5414_v23  ;;  %4923 = vmatmul.mubr.bf16.gmra.mxu0 %v5478_v41 }
 0x120   : > { %v6040_v13 = vadd.f32 %v1255_v62, %v986_v52  ;;  %v1006_v37 = vadd.f32 %v4628_v30, %v5924_v56  ;;  %4870 = vmatprep.mubr.bf16.mxu1 %v5424_v26  ;;  %4926 = vmatprep.mubr.bf16.mxu0 %v5496_v47 }
 0x121   : > { %v998_v54 = vpop.f32.mrf.mxu1  ;;  %v1268_v42 = vpop.f32.mrf.mxu0 }
 0x122   : > { %v6045_v15 = vadd.f32 %v4684_v10, %v1006_v37 }
 0x123   : > { %v4629_v57 = vpop.f32.mrf.mxu1  ;;  %v4685_v48 = vpop.f32.mrf.mxu0 }
 0x124   : > { %v1009_v7 = vadd.f32 %v4629_v57, %v5938_v9 }
 0x125   : > { %v1000_v11 = vpop.f32.mrf.mxu1  ;;  %v1270_v60 = vpop.f32.mrf.mxu0 }
 0x126   : > { %v6048_v28 = vadd.f32 %v4685_v48, %v1009_v7  ;;  %v1001_v41 = vadd.f32 %v1000_v11, %v5942_v18 }
 0x127   : > { %v4632_v58 = vpop.f32.mrf.mxu1  ;;  %v4688_v56 = vpop.f32.mrf.mxu0  ;;  %4871 = vmatmul.mubr.bf16.gmra.mxu1 %v5454_v35  ;;  %4927 = vmatmul.mubr.bf16.gmra.mxu0 %v5539_v59 }
 0x128   : > { %v6053_v47 = vadd.f32 %v1270_v60, %v1001_v41  ;;  %v1021_v62 = vadd.f32 %v4632_v58, %v5952_v0  ;;  %4874 = vmatprep.mubr.bf16.mxu1 %v5472_v39  ;;  %4930 = vmatprep.mubr.bf16.mxu0 %v5547_v61 }
 0x129   : > { %v1013_v9 = vpop.f32.mrf.mxu1  ;;  %v1283_v52 = vpop.f32.mrf.mxu0 }
 0x12a   : > { %v6058_v30 = vadd.f32 %v4688_v56, %v1021_v62  ;;  %v1014_v18 = vadd.f32 %v1013_v9, %v5960_v49 }
 0x12b   : > { %v4633_v10 = vpop.f32.mrf.mxu1  ;;  %v4689_v37 = vpop.f32.mrf.mxu0 }
 0x12c   : > { %v6061_v54 = vadd.f32 %v1283_v52, %v1014_v18  ;;  %v1024_v59 = vadd.f32 %v4633_v10, %v5970_v5 }
 0x12d   : > { %v1016_v42 = vpop.f32.mrf.mxu1  ;;  %v1286_v57 = vpop.f32.mrf.mxu0 }
 0x12e   : > { %v6064_v48 = vadd.f32 %v4689_v37, %v1024_v59 }
 0x12f   : > { %v4636_v0 = vpop.f32.mrf.mxu1  ;;  %v4692_v7 = vpop.f32.mrf.mxu0  ;;  %4875 = vmatmul.mubr.bf16.gmra.mxu1 %v5509_v51  ;;  %4931 = vmatmul.mubr.bf16.gmra.mxu0 %v5583_v12 }
 0x130   : > { %4878 = vmatprep.mubr.bf16.mxu1 %v5524_v55  ;;  %4934 = vmatprep.mubr.bf16.mxu0 %v5591_v16 }
 0x131   : > { %v1028_v61 = vpop.f32.mrf.mxu1  ;;  %v1298_v49 = vpop.f32.mrf.mxu0 }
 0x132   : > { %v1029_v11 = vadd.f32 %v1028_v61, %v5984_v4 }
 0x133   : > { %v4637_v60 = vpop.f32.mrf.mxu1  ;;  %v4693_v5 = vpop.f32.mrf.mxu0 }
 0x134   : > { %v6071_v41 = vadd.f32 %v1298_v49, %v1029_v11  ;;  %v1039_v58 = vadd.f32 %v4637_v60, %v5994_v25 }
 0x135   : > { %v1031_v56 = vpop.f32.mrf.mxu1  ;;  %v1301_v62 = vpop.f32.mrf.mxu0 }
 0x136   : > { %v6074_v9 = vadd.f32 %v4693_v5, %v1039_v58  ;;  %v1032_v12 = vadd.f32 %v1031_v56, %v5998_v14 }
 0x137   : > { %v4640_v52 = vpop.f32.mrf.mxu1  ;;  %v4696_v18 = vpop.f32.mrf.mxu0  ;;  %4879 = vmatmul.mubr.bf16.gmra.mxu1 %v5631_v36  ;;  %4935 = vmatmul.mubr.bf16.gmra.mxu0 %v5629_v31 }
 0x138   : > { %v6079_v16 = vadd.f32 %v1301_v62, %v1032_v12  ;;  %v1052_v4 = vadd.f32 %v4640_v52, %v6008_v43  ;;  %4882 = vmatprep.mubr.bf16.mxu1 %v5801_v45  ;;  %4938 = vmatprep.mubr.bf16.mxu0 %v5639_v44 }
 0x139   : > { %v1043_v25 = vpop.f32.mrf.mxu1  ;;  %v1313_v10 = vpop.f32.mrf.mxu0 }
 0x13a   : > { %v6084_v37 = vadd.f32 %v4696_v18, %v1052_v4  ;;  %v1044_v14 = vadd.f32 %v1043_v25, %v6016_v32 }
 0x13b   : > { %v4641_v59 = vpop.f32.mrf.mxu1  ;;  %v4697_v42 = vpop.f32.mrf.mxu0 }
 0x13c   : > { %v6087_v57 = vadd.f32 %v1313_v10, %v1044_v14 }
 0x13d   : > { %v1046_v0 = vpop.f32.mrf.mxu1  ;;  %v1316_v31 = vpop.f32.mrf.mxu0 }
 0x13e   : > { %v1047_v7 = vadd.f32 %v1046_v0, %v6020_v33 }
 0x13f   : > { %v4644_v61 = vpop.f32.mrf.mxu1  ;;  %v4700_v43 = vpop.f32.mrf.mxu0  ;;  %4883 = vmatmul.mubr.bf16.gmra.mxu1 %v5808_v46  ;;  %4939 = vmatmul.mubr.bf16.gmra.mxu0 %v5665_v1 }
 0x140   : > { %v6092_v44 = vadd.f32 %v1316_v31, %v1047_v7  ;;  %v1067_v49 = vadd.f32 %v4644_v61, %v5900_v6  ;;  %4958 = vmatprep.mubr.bf16.mxu1 %v5672_v3  ;;  %5014 = vmatprep.mubr.bf16.mxu0 %v5669_v2  ;;  %v6993_v61 = vld [vmem:[#allocation5_spill] sm:$0xff] }
 0x141   : > { %v1058_v32 = vpop.f32.mrf.mxu1  ;;  %v1328_v11 = vpop.f32.mrf.mxu0 }
 0x142   : > { %v6097_v60 = vadd.f32 %v4700_v43, %v1067_v49  ;;  %v1059_v33 = vadd.f32 %v1058_v32, %v5908_v50  ;;  %v6996_v49 = vld [vmem:[#allocation11_spill] sm:$0xff] }
 0x143   : > { %v4645_v5 = vpop.f32.mrf.mxu1  ;;  %v4701_v58 = vpop.f32.mrf.mxu0 }
 0x144   : > { %v6100_v56 = vadd.f32 %v1328_v11, %v1059_v33  ;;  %v1070_v1 = vadd.f32 %v4645_v5, %v5912_v53  ;;  %v6997_v11 = vld [vmem:[#allocation7_spill] sm:$0xff]  ;;  %v6998_v33 = vld [vmem:[#allocation6_spill] sm:$0xff] }
 0x145   : > { %v1061_v62 = vpop.f32.mrf.mxu1  ;;  %v1331_v12 = vpop.f32.mrf.mxu0 }
 0x146   : > { %v6103_v52 = vadd.f32 %v4701_v58, %v1070_v1  ;;  %v1062_v3 = vadd.f32 %v1061_v62, %v5916_v21  ;;  %v7000_v1 = vld [vmem:[#allocation12_spill] sm:$0xff] }
 0x147   : > { %v4648_v6 = vpop.f32.mrf.mxu1  ;;  %v4704_v18 = vpop.f32.mrf.mxu0  ;;  %4959 = vmatmul.mubr.bf16.vlgmr.msra.gmra.mxu1 %v5680_v17  ;;  %5015 = vmatmul.mubr.bf16.vlgmr.msra.gmra.mxu0 %v5684_v38 }
 0x148   : > { %6990 = vst [vmem:[#allocation19_spill] sm:$0xff] %v6103_v52  ;;  %v6108_v4 = vadd.f32 %v1331_v12, %v1062_v3  ;;  %v1082_v50 = vadd.f32 %v4648_v6, %v5926_v29  ;;  %4962 = vmatprep.mubr.bf16.mxu1 %v5697_v27  ;;  %5018 = vmatprep.mubr.bf16.mxu0 %v5694_v22  ;;  %v6994_v27 = vld [vmem:[#allocation4_spill] sm:$0xff] }
 0x149   : > { %v1074_v53 = vpop.f32.mrf.mxu1  ;;  %v1344_v25 = vpop.f32.mrf.mxu0 }
 0x14a   : > { %v6113_v10 = vadd.f32 %v4704_v18, %v1082_v50 }
 0x14b   : > { %v4649_v14 = vpop.f32.mrf.mxu1  ;;  %v4705_v21 = vpop.f32.mrf.mxu0 }
 0x14c   : > { %6991 = vst [vmem:[#allocation20_spill] sm:$0xff] %v6113_v10  ;;  %v1085_v59 = vadd.f32 %v4649_v14, %v5940_v40 }
 0x14d   : > { %v1076_v42 = vpop.f32.mrf.mxu1  ;;  %v1346_v17 = vpop.f32.mrf.mxu0 }
 0x14e   : > { %v6116_v0 = vadd.f32 %v4705_v21, %v1085_v59  ;;  %v1077_v31 = vadd.f32 %v1076_v42, %v5944_v20  ;;  %v7003_v21 = vld [vmem:[#allocation8_spill] sm:$0xff]  ;;  %v7004_v59 = vld [vmem:[#allocation9_spill] sm:$0xff] }
 0x14f   : > { %v4652_v7 = vpop.f32.mrf.mxu1  ;;  %v4708_v29 = vpop.f32.mrf.mxu0  ;;  %4963 = vmatmul.mubr.bf16.gmra.mxu1 %v6993_v61  ;;  %5019 = vmatmul.mubr.bf16.gmra.mxu0 %v6994_v27 }
 0x150   : > { %6992 = vst [vmem:[#allocation21_spill] sm:$0xff] %v6116_v0  ;;  %v6121_v43 = vadd.f32 %v1346_v17, %v1077_v31  ;;  %v1097_v32 = vadd.f32 %v4652_v7, %v6996_v49  ;;  %4966 = vmatprep.mubr.bf16.mxu1 %v6997_v11  ;;  %5022 = vmatprep.mubr.bf16.mxu0 %v6998_v33  ;;  %v7005_v31 = vld [vmem:[#allocation13_spill] sm:$0xff]  ;;  %v7007_v49 = vld [vmem:[#allocation14_spill] sm:$0xff] }
 0x151   : > { %v1089_v40 = vpop.f32.mrf.mxu1  ;;  %v1359_v5 = vpop.f32.mrf.mxu0 }
 0x152   : > { %6995 = vst [vmem:[#allocation5_spill] sm:$0xff] %v6121_v43  ;;  %v6126_v58 = vadd.f32 %v4708_v29, %v1097_v32  ;;  %v1090_v20 = vadd.f32 %v1089_v40, %v7000_v1 }
 0x153   : > { %v4653_v62 = vpop.f32.mrf.mxu1  ;;  %v4709_v12 = vpop.f32.mrf.mxu0 }
 0x154   : > { %6999 = vst [vmem:[#allocation4_spill] sm:$0xff] %v6126_v58  ;;  %v6129_v3 = vadd.f32 %v1359_v5, %v1090_v20  ;;  %v1100_v6 = vadd.f32 %v4653_v62, %v5972_v63  ;;  %v7010_v62 = vld [vmem:[#allocation10_spill] sm:$0xff] }
 0x155   : > { %v1092_v18 = vpop.f32.mrf.mxu1  ;;  %v1362_v50 = vpop.f32.mrf.mxu0 }
 0x156   : > { %7001 = vst [vmem:[#allocation11_spill] sm:$0xff] %v6129_v3  ;;  %v6132_v53 = vadd.f32 %v4709_v12, %v1100_v6  ;;  %v7012_v6 = vld [vmem:[#allocation16_spill] sm:$0xff]  ;;  %v7013_v50 = vld [vmem:[#allocation2_spill] sm:$0xff] }
 0x157   : > { %v4656_v25 = vpop.f32.mrf.mxu1  ;;  %v4712_v14 = vpop.f32.mrf.mxu0  ;;  %4967 = vmatmul.mubr.bf16.gmra.mxu1 %v5669_v2  ;;  %5023 = vmatmul.mubr.bf16.gmra.mxu0 %v7003_v21  ;;  %v7009_v2 = vld [vmem:[#allocation15_spill] sm:$0xff] }
 0x158   : > { %7002 = vst [vmem:[#allocation7_spill] sm:$0xff] %v6132_v53  ;;  %4970 = vmatprep.mubr.bf16.mxu1 %v5684_v38  ;;  %5026 = vmatprep.mubr.bf16.mxu0 %v7004_v59 }
 0x159   : > { %v1104_v42 = vpop.f32.mrf.mxu1  ;;  %v1374_v17 = vpop.f32.mrf.mxu0 }
 0x15a   : > { %v1105_v7 = vadd.f32 %v1104_v42, %v7005_v31 }
 0x15b   : > { %v4657_v29 = vpop.f32.mrf.mxu1  ;;  %v4713_v63 = vpop.f32.mrf.mxu0 }
 0x15c   : > { %v6139_v61 = vadd.f32 %v1374_v17, %v1105_v7  ;;  %v1115_v32 = vadd.f32 %v4657_v29, %v7007_v49  ;;  %v7015_v17 = vld [vmem:[#allocation17_spill] sm:$0xff] }
 0x15d   : > { %v1107_v11 = vpop.f32.mrf.mxu1  ;;  %v1377_v40 = vpop.f32.mrf.mxu0 }
 0x15e   : > { %7006 = vst [vmem:[#allocation6_spill] sm:$0xff] %v6139_v61  ;;  %v6142_v5 = vadd.f32 %v4713_v63, %v1115_v32  ;;  %v1108_v1 = vadd.f32 %v1107_v11, %v7009_v2  ;;  %v7017_v32 = vld [vmem:[#allocation18_spill] sm:$0xff] }
 0x15f   : > { %v4660_v20 = vpop.f32.mrf.mxu1  ;;  %v4716_v38 = vpop.f32.mrf.mxu0  ;;  %4971 = vmatmul.mubr.bf16.gmra.mxu1 %v5694_v22  ;;  %5027 = vmatmul.mubr.bf16.gmra.mxu0 %v7010_v62 }
 0x160   : > { %7008 = vst [vmem:[#allocation12_spill] sm:$0xff] %v6142_v5  ;;  %v6147_v12 = vadd.f32 %v1377_v40, %v1108_v1  ;;  %v1128_v18 = vadd.f32 %v4660_v20, %v7012_v6  ;;  %4974 = vmatprep.mubr.bf16.mxu1 %v6994_v27  ;;  %5030 = vmatprep.mubr.bf16.mxu0 %v7013_v50  ;;  %v7018_v27 = vld [vmem:[#allocation3_spill] sm:$0xff] }
 0x161   : > { %v1119_v25 = vpop.f32.mrf.mxu1  ;;  %v1389_v14 = vpop.f32.mrf.mxu0 }
 0x162   : > { %7011 = vst [vmem:[#allocation8_spill] sm:$0xff] %v6147_v12  ;;  %v6152_v42 = vadd.f32 %v4716_v38, %v1128_v18  ;;  %v1120_v31 = vadd.f32 %v1119_v25, %v7015_v17 }
 0x163   : > { %v4661_v7 = vpop.f32.mrf.mxu1  ;;  %v4717_v29 = vpop.f32.mrf.mxu0 }
 0x164   : > { %7014 = vst [vmem:[#allocation9_spill] sm:$0xff] %v6152_v42  ;;  %v6155_v63 = vadd.f32 %v1389_v14, %v1120_v31 }
 0x165   : > { %v1122_v22 = vpop.f32.mrf.mxu1  ;;  %v1392_v49 = vpop.f32.mrf.mxu0 }
 0x166   : > { %7016 = vst [vmem:[#allocation13_spill] sm:$0xff] %v6155_v63  ;;  %v1123_v11 = vadd.f32 %v1122_v22, %v7017_v32 }
 0x167   : > { %v4736_v40 = vpop.f32.mrf.mxu1  ;;  %v4792_v2 = vpop.f32.mrf.mxu0  ;;  %4975 = vmatmul.mubr.bf16.gmra.mxu1 %v6998_v33  ;;  %5031 = vmatmul.mubr.bf16.gmra.mxu0 %v7018_v27 }
 0x168   : > { %v6160_v1 = vadd.f32 %v1392_v49, %v1123_v11  ;;  %v6162_v20 = vadd.f32 %v4792_v2, %v4736_v40  ;;  %4978 = vmatprep.mubr.bf16.mxu1 %v7003_v21  ;;  %5034 = vmatprep.mubr.bf16.mxu0 %v5404_v19 }
 0x169   : > { %v1551_v38 = vpop.f32.mrf.mxu1  ;;  %v1792_v6 = vpop.f32.mrf.mxu0 }
 0x16a   : > { %7019 = vst [vmem:[#allocation14_spill] sm:$0xff] %v6160_v1  ;;  %v6166_v18 = vadd.f32 %v1792_v6, %v1551_v38 }
 0x16b   : > { %v4737_v25 = vpop.f32.mrf.mxu1  ;;  %v4793_v14 = vpop.f32.mrf.mxu0 }
 0x16c   : > { %v6168_v17 = vadd.f32 %v4793_v14, %v4737_v25 }
 0x16d   : > { %v1554_v31 = vpop.f32.mrf.mxu1  ;;  %v1795_v33 = vpop.f32.mrf.mxu0 }
 0x16e   : > { %v6170_v7 = vadd.f32 %v1795_v33, %v1554_v31 }
 0x16f   : > { %v4740_v29 = vpop.f32.mrf.mxu1  ;;  %v4796_v22 = vpop.f32.mrf.mxu0  ;;  %4979 = vmatmul.mubr.bf16.gmra.mxu1 %v7004_v59  ;;  %5035 = vmatmul.mubr.bf16.gmra.mxu0 %v5414_v23 }
 0x170   : > { %v6174_v21 = vadd.f32 %v4796_v22, %v4740_v29  ;;  %4982 = vmatprep.mubr.bf16.mxu1 %v7010_v62  ;;  %5038 = vmatprep.mubr.bf16.mxu0 %v5424_v26 }
 0x171   : > { %v1567_v49 = vpop.f32.mrf.mxu1  ;;  %v1808_v32 = vpop.f32.mrf.mxu0 }
 0x172   : > { %v6178_v11 = vadd.f32 %v1808_v32, %v1567_v49 }
 0x173   : > { %v4741_v40 = vpop.f32.mrf.mxu1  ;;  %v4797_v2 = vpop.f32.mrf.mxu0 }
 0x174   : > { %v6180_v38 = vadd.f32 %v4797_v2, %v4741_v40 }
 0x175   : > { %v1570_v6 = vpop.f32.mrf.mxu1  ;;  %v1811_v25 = vpop.f32.mrf.mxu0 }
 0x176   : > { %v6182_v14 = vadd.f32 %v1811_v25, %v1570_v6 }
 0x177   : > { %v4744_v59 = vpop.f32.mrf.mxu1  ;;  %v4800_v31 = vpop.f32.mrf.mxu0  ;;  %4983 = vmatmul.mubr.bf16.gmra.mxu1 %v7013_v50  ;;  %5039 = vmatmul.mubr.bf16.gmra.mxu0 %v5454_v35 }
 0x178   : > { %v6186_v62 = vadd.f32 %v4800_v31, %v4744_v59  ;;  %4986 = vmatprep.mubr.bf16.mxu1 %v7018_v27  ;;  %5042 = vmatprep.mubr.bf16.mxu0 %v5472_v39 }
 0x179   : > { %v1583_v33 = vpop.f32.mrf.mxu1  ;;  %v1824_v29 = vpop.f32.mrf.mxu0 }
 0x17a   : > { %v6190_v22 = vadd.f32 %v1824_v29, %v1583_v33 }
 0x17b   : > { %v4745_v49 = vpop.f32.mrf.mxu1  ;;  %v4801_v32 = vpop.f32.mrf.mxu0 }
 0x17c   : > { %v6192_v40 = vadd.f32 %v4801_v32, %v4745_v49 }
 0x17d   : > { %v1586_v2 = vpop.f32.mrf.mxu1  ;;  %v1827_v6 = vpop.f32.mrf.mxu0 }
 0x17e   : > { %v6194_v25 = vadd.f32 %v1827_v6, %v1586_v2 }
 0x17f   : > { %v4748_v50 = vpop.f32.mrf.mxu1  ;;  %v4804_v1 = vpop.f32.mrf.mxu0  ;;  %4987 = vmatmul.mubr.bf16.gmra.mxu1 %v5404_v19  ;;  %5043 = vmatmul.mubr.bf16.gmra.mxu0 %v5509_v51 }
 0x180   : > { %v6198_v27 = vadd.f32 %v4804_v1, %v4748_v50  ;;  %4990 = vmatprep.mubr.bf16.mxu1 %v5414_v23  ;;  %5046 = vmatprep.mubr.bf16.mxu0 %v5524_v55 }
 0x181   : > { %v1599_v59 = vpop.f32.mrf.mxu1  ;;  %v1840_v31 = vpop.f32.mrf.mxu0 }
 0x182   : > { %v6202_v33 = vadd.f32 %v1840_v31, %v1599_v59 }
 0x183   : > { %v4749_v29 = vpop.f32.mrf.mxu1  ;;  %v4805_v49 = vpop.f32.mrf.mxu0 }
 0x184   : > { %v6204_v32 = vadd.f32 %v4805_v49, %v4749_v29 }
 0x185   : > { %v1602_v2 = vpop.f32.mrf.mxu1  ;;  %v1843_v6 = vpop.f32.mrf.mxu0 }
 0x186   : > { %v6206_v63 = vadd.f32 %v1843_v6, %v1602_v2 }
 0x187   : > { %v4752_v19 = vpop.f32.mrf.mxu1  ;;  %v4808_v51 = vpop.f32.mrf.mxu0  ;;  %4991 = vmatmul.mubr.bf16.gmra.mxu1 %v5424_v26  ;;  %5047 = vmatmul.mubr.bf16.gmra.mxu0 %v5631_v36 }
 0x188   : > { %v6210_v23 = vadd.f32 %v4808_v51, %v4752_v19  ;;  %4994 = vmatprep.mubr.bf16.mxu1 %v5454_v35  ;;  %5050 = vmatprep.mubr.bf16.mxu0 %v5801_v45 }
 0x189   : > { %v1615_v55 = vpop.f32.mrf.mxu1  ;;  %v1856_v1 = vpop.f32.mrf.mxu0 }
 0x18a   : > { %v6214_v50 = vadd.f32 %v1856_v1, %v1615_v55 }
 0x18b   : > { %v4753_v59 = vpop.f32.mrf.mxu1  ;;  %v4809_v31 = vpop.f32.mrf.mxu0 }
 0x18c   : > { %v6216_v29 = vadd.f32 %v4809_v31, %v4753_v59 }
 0x18d   : > { %v1618_v49 = vpop.f32.mrf.mxu1  ;;  %v1859_v2 = vpop.f32.mrf.mxu0 }
 0x18e   : > { %v6218_v6 = vadd.f32 %v1859_v2, %v1618_v49 }
 0x18f   : > { %v4756_v26 = vpop.f32.mrf.mxu1  ;;  %v4812_v36 = vpop.f32.mrf.mxu0  ;;  %4995 = vmatmul.mubr.bf16.gmra.mxu1 %v5472_v39  ;;  %5051 = vmatmul.mubr.bf16.gmra.mxu0 %v5808_v46 }
 0x190   : > { %v6222_v35 = vadd.f32 %v4812_v36, %v4756_v26 }
 0x191   : > { %v1631_v45 = vpop.f32.mrf.mxu1  ;;  %v1872_v19 = vpop.f32.mrf.mxu0 }
 0x192   : > { %v6224_v51 = vadd.f32 %v1872_v19, %v1631_v45 }
 0x193   : > { %v4757_v55 = vpop.f32.mrf.mxu1  ;;  %v4813_v1 = vpop.f32.mrf.mxu0 }
 0x194   : > { %v6226_v59 = vadd.f32 %v4813_v1, %v4757_v55 }
 0x195   : > { %v1634_v31 = vpop.f32.mrf.mxu1  ;;  %v1875_v42 = vpop.f32.mrf.mxu0 }
 0x196   : > { %v6228_v49 = vadd.f32 %v1875_v42, %v1634_v31 }
 0x197   : > { %v4760_v2 = vpop.f32.mrf.mxu1  ;;  %v4816_v5 = vpop.f32.mrf.mxu0 }
 0x198   : > { %v6230_v12 = vadd.f32 %v4816_v5, %v4760_v2 }
 0x199   : > { %v1647_v39 = vpop.f32.mrf.mxu1  ;;  %v1888_v46 = vpop.f32.mrf.mxu0 }
 0x19a   : > { %v6232_v26 = vadd.f32 %v1888_v46, %v1647_v39 }
 0x19b   : > { %v4761_v36 = vpop.f32.mrf.mxu1  ;;  %v4817_v61 = vpop.f32.mrf.mxu0 }
 0x19c   : > { %v6234_v45 = vadd.f32 %v4817_v61, %v4761_v36 }
 0x19d   : > { %v1650_v19 = vpop.f32.mrf.mxu1  ;;  %v1891_v53 = vpop.f32.mrf.mxu0 }
 0x19e   : > { %v6236_v55 = vadd.f32 %v1891_v53, %v1650_v19 }
 0x19f   : > { %v4764_v1 = vpop.f32.mrf.mxu1  ;;  %v4820_v3 = vpop.f32.mrf.mxu0 }
 0x1a0   : > { %v6238_v42 = vadd.f32 %v4820_v3, %v4764_v1 }
 0x1a1   : > { %v1663_v31 = vpop.f32.mrf.mxu1  ;;  %v1904_v58 = vpop.f32.mrf.mxu0 }
 0x1a2   : > { %7020 = vst [vmem:[#allocation15_spill] sm:$0xff] %v6238_v42  ;;  %v6240_v5 = vadd.f32 %v1904_v58, %v1663_v31 }
 0x1a3   : > { %v4765_v2 = vpop.f32.mrf.mxu1  ;;  %v4821_v0 = vpop.f32.mrf.mxu0 }
 0x1a4   : > { %7021 = vst [vmem:[#allocation10_spill] sm:$0xff] %v6240_v5  ;;  %v6242_v39 = vadd.f32 %v4821_v0, %v4765_v2 }
 0x1a5   : > { %v1666_v46 = vpop.f32.mrf.mxu1  ;;  %v1907_v43 = vpop.f32.mrf.mxu0 }
 0x1a6   : > { %7022 = vst [vmem:[#allocation16_spill] sm:$0xff] %v6242_v39  ;;  %v6244_v61 = vadd.f32 %v1907_v43, %v1666_v46 }
 0x1a7   : > { %v4768_v36 = vpop.f32.mrf.mxu1  ;;  %v4824_v10 = vpop.f32.mrf.mxu0 }
 0x1a8   : > { %7023 = vst [vmem:[#allocation2_spill] sm:$0xff] %v6244_v61  ;;  %v6246_v53 = vadd.f32 %v4824_v10, %v4768_v36 }
 0x1a9   : > { %v1679_v19 = vpop.f32.mrf.mxu1  ;;  %v1920_v52 = vpop.f32.mrf.mxu0 }
 0x1aa   : > { %7024 = vst [vmem:[#allocation17_spill] sm:$0xff] %v6246_v53  ;;  %v6248_v3 = vadd.f32 %v1920_v52, %v1679_v19 }
 0x1ab   : > { %v4769_v1 = vpop.f32.mrf.mxu1  ;;  %v4825_v42 = vpop.f32.mrf.mxu0 }
 0x1ac   : > { %7025 = vst [vmem:[#allocation18_spill] sm:$0xff] %v6248_v3  ;;  %v6250_v58 = vadd.f32 %v4825_v42, %v4769_v1  ;;  %v2289_v42 = vlaneseq }
 0x1ad   : > { %v1682_v31 = vpop.f32.mrf.mxu1  ;;  %v1923_v5 = vpop.f32.mrf.mxu0 }
 0x1ae   : > { %7026 = vst [vmem:[#allocation3_spill] sm:$0xff] %v6250_v58  ;;  %v6252_v0 = vadd.f32 %v1923_v5, %v1682_v31 }
 0x1af   : > { %v4772_v2 = vpop.f32.mrf.mxu1  ;;  %v4828_v39 = vpop.f32.mrf.mxu0 }
 0x1b0   : > { %v6254_v43 = vadd.f32 %v4828_v39, %v4772_v2 }
 0x1b1   : > { %v1695_v46 = vpop.f32.mrf.mxu1  ;;  %v1936_v61 = vpop.f32.mrf.mxu0 }
 0x1b2   : > { %7027 = vst [vmem:[#allocation22_spill] sm:$0xff] %v6254_v43  ;;  %v6256_v10 = vadd.f32 %v1936_v61, %v1695_v46  ;;  %v6267_v43 = vshrl.u32 %v2289_v42, 7 }
 0x1b3   : > { %v4773_v36 = vpop.f32.mrf.mxu1  ;;  %v4829_v53 = vpop.f32.mrf.mxu0 }
 0x1b4   : > { %v6258_v52 = vadd.f32 %v4829_v53, %v4773_v36  ;;  %vm2291_vm0 = vcmp.lt.s32.totalorder %v6267_v43, 7  ;;  %vm3210_vm1 = vcmp.lt.s32.totalorder %v6267_v43, 6 }
 0x1b5   : > { %v1698_v19 = vpop.f32.mrf.mxu1  ;;  %v1939_v3 = vpop.f32.mrf.mxu0 }
 0x1b6   : > { %7028 = vst [vmem:[#allocation23_spill] sm:$0xff] %v6258_v52  ;;  %v6260_v1 = vadd.f32 %v1939_v3, %v1698_v19 }
 0x1b7   : > { %v4848_v58 = vpop.f32.mrf.mxu1  ;;  %v6262_v5 = vpop.f32.mrf.mxu0 }
 0x1b8   : > { %7029 = vst [vmem:[#allocation24_spill] sm:$0xff] %v6260_v1  ;;  %7030 = vst [vmem:[#allocation25_spill] sm:$0xff] %v6262_v5  ;;  %v2211_v31 = vadd.f32 %v4848_v58, %v6162_v20 }
 0x1b9   : > { %v2050_v39 = vpop.f32.mrf.mxu1  ;;  %v6265_v2 = vpop.f32.mrf.mxu0 }
 0x1ba   : > { %7031 = vst [vmem:[#allocation26_spill] sm:$0xff] %v6265_v2  ;;  %v2209_v61 = vadd.f32 %v2050_v39, %v6166_v18  ;;  %v2251_v5 = vrot.slane %v2211_v31, 1 }
 0x1bb   : > { %v4849_v46 = vpop.f32.mrf.mxu1  ;;  %v6270_v53 = vpop.f32.mrf.mxu0 }
 0x1bc   : > { %7032 = vst [vmem:[#allocation27_spill] sm:$0xff] %v6270_v53  ;;  %v2212_v36 = vadd.f32 %v4849_v46, %v6168_v17  ;;  %v2249_v42 = vrot.slane %v2209_v61, 1 }
 0x1bd   : > { %v2053_v3 = vpop.f32.mrf.mxu1  ;;  %v6274_v19 = vpop.f32.mrf.mxu0 }
 0x1be   : > { %v2252_v1 = vrot.slane %v2212_v36, 1  ;;  %v2210_v20 = vadd.f32 %v2053_v3, %v6170_v7 }
 0x1bf   : > { %v4852_v58 = vpop.f32.mrf.mxu1  ;;  %v6277_v2 = vpop.f32.mrf.mxu0 }
 0x1c0   : > { %v2321_v18 = vsel %vm2291_vm0, %v2251_v5, %v2252_v1  ;;  %v2250_v39 = vrot.slane %v2210_v20, 1  ;;  %v2215_v53 = vadd.f32 %v4852_v58, %v6174_v21 }
 0x1c1   : > { %v6283_v17 = vadd.f32 %v2321_v18, %v6029_v8  ;;  %v2066_v46 = vpop.f32.mrf.mxu1  ;;  %v6285_v52 = vpop.f32.mrf.mxu0 }
 0x1c2   : > { %v2322_v31 = vsel %vm2291_vm0, %v2250_v39, %v2251_v5  ;;  %v2323_v7 = vsel %vm2291_vm0, %v2249_v42, %v2250_v39  ;;  %v2213_v61 = vadd.f32 %v2066_v46, %v6178_v11  ;;  %v2255_v5 = vrot.slane %v2215_v53, 1 }
 0x1c3   : > { %7033 = vst [vmem:[#allocation28_spill] sm:$0xff] %v6283_v17  ;;  %v6293_v36 = vadd.f32 %v2323_v7, %v6032_v34  ;;  %v6296_v3 = vadd.f32 %v2322_v31, %v6040_v13  ;;  %v4853_v21 = vpop.f32.mrf.mxu1  ;;  %v6298_v8 = vpop.f32.mrf.mxu0 }
 0x1c4   : > { %v2253_v20 = vrot.slane %v2213_v61, 1  ;;  %v2216_v58 = vadd.f32 %v4853_v21, %v6180_v38 }
 0x1c5   : > { %v2069_v18 = vpop.f32.mrf.mxu1  ;;  %v6301_v17 = vpop.f32.mrf.mxu0 }
 0x1c6   : > { %v2320_v42 = vsel %vm2291_vm0, %v2252_v1, %v2253_v20  ;;  %v2256_v11 = vrot.slane %v2216_v58, 1  ;;  %v2214_v34 = vadd.f32 %v2069_v18, %v6182_v14 }
 0x1c7   : > { %v6307_v39 = vadd.f32 %v2320_v42, %v6035_v24  ;;  %v4856_v13 = vpop.f32.mrf.mxu1  ;;  %v6309_v46 = vpop.f32.mrf.mxu0 }
 0x1c8   : > { %v2318_v31 = vsel %vm2291_vm0, %v2255_v5, %v2256_v11  ;;  %v2254_v38 = vrot.slane %v2214_v34, 1  ;;  %v2219_v7 = vadd.f32 %v4856_v13, %v6186_v62 }
 0x1c9   : > { %v6315_v53 = vadd.f32 %v2318_v31, %v6045_v15  ;;  %v2082_v61 = vpop.f32.mrf.mxu1  ;;  %v6317_v1 = vpop.f32.mrf.mxu0 }
 0x1ca   : > { %v2319_v14 = vsel %vm2291_vm0, %v2254_v38, %v2255_v5  ;;  %v2217_v24 = vadd.f32 %v2082_v61, %v6190_v22  ;;  %v2259_v34 = vrot.slane %v2219_v7, 1 }
 0x1cb   : > { %v6323_v21 = vadd.f32 %v2319_v14, %v6053_v47  ;;  %v4857_v20 = vpop.f32.mrf.mxu1  ;;  %v6325_v58 = vpop.f32.mrf.mxu0 }
 0x1cc   : > { %v2257_v18 = vrot.slane %v2217_v24, 1  ;;  %v2220_v62 = vadd.f32 %v4857_v20, %v6192_v40 }
 0x1cd   : > { %v2085_v42 = vpop.f32.mrf.mxu1  ;;  %v6328_v15 = vpop.f32.mrf.mxu0 }
 0x1ce   : > { %v2317_v13 = vsel %vm2291_vm0, %v2256_v11, %v2257_v18  ;;  %v2260_v31 = vrot.slane %v2220_v62, 1  ;;  %v2218_v5 = vadd.f32 %v2085_v42, %v6194_v25 }
 0x1cf   : > { %v6334_v22 = vadd.f32 %v2317_v13, %v6048_v28  ;;  %v4860_v47 = vpop.f32.mrf.mxu1  ;;  %v6336_v38 = vpop.f32.mrf.mxu0 }
 0x1d0   : > { %v2315_v61 = vsel %vm2291_vm0, %v2259_v34, %v2260_v31  ;;  %v2258_v40 = vrot.slane %v2218_v5, 1  ;;  %v2223_v14 = vadd.f32 %v4860_v47, %v6198_v27 }
 0x1d1   : > { %v6342_v7 = vadd.f32 %v2315_v61, %v6058_v30  ;;  %v2098_v24 = vpop.f32.mrf.mxu1  ;;  %v6344_v11 = vpop.f32.mrf.mxu0 }
 0x1d2   : > { %v2316_v25 = vsel %vm2291_vm0, %v2257_v18, %v2258_v40  ;;  %v2221_v28 = vadd.f32 %v2098_v24, %v6202_v33  ;;  %v2263_v61 = vrot.slane %v2223_v14, 1 }
 0x1d3   : > { %v6350_v20 = vadd.f32 %v2316_v25, %v6061_v54  ;;  %v4861_v62 = vpop.f32.mrf.mxu1  ;;  %v6352_v42 = vpop.f32.mrf.mxu0 }
 0x1d4   : > { %v2261_v34 = vrot.slane %v2221_v28, 1  ;;  %v2224_v27 = vadd.f32 %v4861_v62, %v6204_v32 }
 0x1d5   : > { %v2101_v13 = vpop.f32.mrf.mxu1  ;;  %v6355_v30 = vpop.f32.mrf.mxu0 }
 0x1d6   : > { %v2314_v5 = vsel %vm2291_vm0, %v2260_v31, %v2261_v34  ;;  %v2222_v47 = vadd.f32 %v2101_v13, %v6206_v63 }
 0x1d7   : > { %v6361_v18 = vadd.f32 %v2314_v5, %v6064_v48  ;;  %v4864_v33 = vpop.f32.mrf.mxu1  ;;  %v6363_v54 = vpop.f32.mrf.mxu0 }
 0x1d8   : > { %v2262_v40 = vrot.slane %v2222_v47, 1  ;;  %v2227_v24 = vadd.f32 %v4864_v33, %v6210_v23  ;;  %v2264_v23 = vrot.slane %v2224_v27, 1 }
 0x1d9   : > { %v2114_v25 = vpop.f32.mrf.mxu1  ;;  %v6366_v32 = vpop.f32.mrf.mxu0 }
 0x1da   : > { %7034 = vst [vmem:[#allocation29_spill] sm:$0xff] %v6366_v32  ;;  %v2312_v28 = vsel %vm2291_vm0, %v2262_v40, %v2263_v61  ;;  %v2313_v31 = vsel %vm2291_vm0, %v2261_v34, %v2262_v40  ;;  %v2225_v63 = vadd.f32 %v2114_v25, %v6214_v50  ;;  %v2267_v32 = vrot.slane %v2227_v24, 1 }
 0x1db   : > { %v6374_v48 = vadd.f32 %v2313_v31, %v6071_v41  ;;  %v6377_v62 = vadd.f32 %v2312_v28, %v6079_v16  ;;  %v4865_v14 = vpop.f32.mrf.mxu1  ;;  %v6379_v13 = vpop.f32.mrf.mxu0 }
 0x1dc   : > { %v2265_v5 = vrot.slane %v2225_v63, 1  ;;  %v2228_v47 = vadd.f32 %v4865_v14, %v6216_v29 }
 0x1dd   : > { %v2117_v33 = vpop.f32.mrf.mxu1  ;;  %v6382_v61 = vpop.f32.mrf.mxu0 }
 0x1de   : > { %v2311_v50 = vsel %vm2291_vm0, %v2264_v23, %v2265_v5  ;;  %v2268_v34 = vrot.slane %v2228_v47, 1  ;;  %v2226_v41 = vadd.f32 %v2117_v33, %v6218_v6 }
 0x1df   : > { %v6388_v16 = vadd.f32 %v2311_v50, %v6074_v9  ;;  %v4868_v40 = vpop.f32.mrf.mxu1  ;;  %v6390_v25 = vpop.f32.mrf.mxu0 }
 0x1e0   : > { %v2308_v27 = vsel %vm2291_vm0, %v2267_v32, %v2268_v34  ;;  %v2266_v29 = vrot.slane %v2226_v41, 1  ;;  %v2231_v28 = vadd.f32 %v4868_v40, %v6222_v35 }
 0x1e1   : > { %v6396_v24 = vadd.f32 %v2308_v27, %v6084_v37  ;;  %v2130_v31 = vpop.f32.mrf.mxu1  ;;  %v6398_v63 = vpop.f32.mrf.mxu0 }
 0x1e2   : > { %v2309_v6 = vsel %vm2291_vm0, %v2266_v29, %v2267_v32  ;;  %v2310_v9 = vsel %vm2291_vm0, %v2265_v5, %v2266_v29  ;;  %v2229_v14 = vadd.f32 %v2130_v31, %v6224_v51  ;;  %v2271_v32 = vrot.slane %v2231_v28, 1 }
 0x1e3   : > { %v6406_v23 = vadd.f32 %v2310_v9, %v6087_v57  ;;  %v6409_v47 = vadd.f32 %v2309_v6, %v6092_v44  ;;  %v4869_v35 = vpop.f32.mrf.mxu1  ;;  %v6411_v37 = vpop.f32.mrf.mxu0 }
 0x1e4   : > { %v2232_v33 = vadd.f32 %v4869_v35, %v6226_v59  ;;  %v2269_v57 = vrot.slane %v2229_v14, 1 }
 0x1e5   : > { %7035 = vst [vmem:[#allocation30_spill] sm:$0xff] %v6406_v23  ;;  %7036 = vst [vmem:[#allocation31_spill] sm:$0xff] %v6409_v47  ;;  %v2133_v50 = vpop.f32.mrf.mxu1  ;;  %v6414_v34 = vpop.f32.mrf.mxu0  ;;  %v6628_v47 = vld [vmem:[%s6533_s28 + $0x58] sm:$0xff]  }
 0x1e6   : > { %7037 = vst [vmem:[#allocation32_spill] sm:$0xff] %v6414_v34  ;;  %v2272_v41 = vrot.slane %v2232_v33, 1  ;;  %v2230_v5 = vadd.f32 %v2133_v50, %v6228_v49 }
 0x1e7   : > { %v4872_v40 = vpop.f32.mrf.mxu1  ;;  %v6417_v51 = vpop.f32.mrf.mxu0 }
 0x1e8   : > { %7038 = vst [vmem:[#allocation33_spill] sm:$0xff] %v6417_v51  ;;  %v2305_v44 = vsel %vm2291_vm0, %v2271_v32, %v2272_v41  ;;  %v2270_v27 = vrot.slane %v2230_v5, 1  ;;  %v2235_v29 = vadd.f32 %v4872_v40, %v6230_v12 }
 0x1e9   : > { %v6423_v31 = vadd.f32 %v2305_v44, %v6097_v60  ;;  %v2146_v59 = vpop.f32.mrf.mxu1  ;;  %v6425_v6 = vpop.f32.mrf.mxu0  ;;  %v7045_v44 = vld [vmem:[#allocation19_spill] sm:$0xff] }
 0x1ea   : > { %7040 = vst [vmem:[#allocation35_spill] sm:$0xff] %v6425_v6  ;;  %v2306_v28 = vsel %vm2291_vm0, %v2270_v27, %v2271_v32  ;;  %v2307_v49 = vsel %vm2291_vm0, %v2269_v57, %v2270_v27  ;;  %v2233_v9 = vadd.f32 %v2146_v59, %v6232_v26  ;;  %v2275_v32 = vrot.slane %v2235_v29, 1  ;;  %v7049_v29 = vld [vmem:[#allocation20_spill] sm:$0xff] }
 0x1eb   : > { %7039 = vst [vmem:[#allocation34_spill] sm:$0xff] %v6423_v31  ;;  %v6433_v14 = vadd.f32 %v2307_v49, %v6100_v56  ;;  %v6436_v35 = vadd.f32 %v2306_v28, %v6108_v4  ;;  %v4873_v12 = vpop.f32.mrf.mxu1  ;;  %v6438_v60 = vpop.f32.mrf.mxu0  ;;  %v7048_v49 = vld [vmem:[#allocation15_spill] sm:$0xff] }
 0x1ec   : > { %7043 = vst [vmem:[#allocation38_spill] sm:$0xff] %v6438_v60  ;;  %v2273_v33 = vrot.slane %v2233_v9, 1  ;;  %v2236_v50 = vadd.f32 %v4873_v12, %v6234_v45  ;;  %v6601_v60 = vld [vmem:[%s6533_s28 + $0x40] sm:$0xff]  }
 0x1ed   : > { %7041 = vst [vmem:[#allocation36_spill] sm:$0xff] %v6433_v14  ;;  %7042 = vst [vmem:[#allocation37_spill] sm:$0xff] %v6436_v35  ;;  %v2149_v5 = vpop.f32.mrf.mxu1  ;;  %v6441_v40 = vpop.f32.mrf.mxu0 }
 0x1ee   : > { %7044 = vst [vmem:[#allocation39_spill] sm:$0xff] %v6441_v40  ;;  %v2304_v57 = vsel %vm2291_vm0, %v2272_v41, %v2273_v33  ;;  %v2276_v26 = vrot.slane %v2236_v50, 1  ;;  %v2234_v56 = vadd.f32 %v2149_v5, %v6236_v55  ;;  %v7052_v50 = vld [vmem:[#allocation10_spill] sm:$0xff] }
 0x1ef   : > { %v6447_v4 = vadd.f32 %v2304_v57, %v7045_v44  ;;  %v4876_v27 = vpop.f32.mrf.mxu1  ;;  %v6449_v59 = vpop.f32.mrf.mxu0  ;;  %v7053_v57 = vld [vmem:[#allocation5_spill] sm:$0xff] }
 0x1f0   : > { %7047 = vst [vmem:[#allocation40_spill] sm:$0xff] %v6449_v59  ;;  %v2302_v45 = vsel %vm2291_vm0, %v2275_v32, %v2276_v26  ;;  %v2274_v28 = vrot.slane %v2234_v56, 1  ;;  %v2239_v9 = vadd.f32 %v4876_v27, %v7048_v49  ;;  %v7056_v27 = vld [vmem:[#allocation16_spill] sm:$0xff] }
 0x1f1   : > { %7046 = vst [vmem:[#allocation19_spill] sm:$0xff] %v6447_v4  ;;  %v6455_v12 = vadd.f32 %v2302_v45, %v7049_v29  ;;  %v2162_v41 = vpop.f32.mrf.mxu1  ;;  %v6457_v33 = vpop.f32.mrf.mxu0 }
 0x1f2   : > { %7051 = vst [vmem:[#allocation20_spill] sm:$0xff] %v6457_v33  ;;  %v2303_v55 = vsel %vm2291_vm0, %v2274_v28, %v2275_v32  ;;  %v2237_v5 = vadd.f32 %v2162_v41, %v7052_v50  ;;  %v7058_v41 = vld [vmem:[#allocation2_spill] sm:$0xff]  ;;  %v7059_v33 = vld [vmem:[#allocation21_spill] sm:$0xff] }
 0x1f3   : > { %7050 = vst [vmem:[#allocation15_spill] sm:$0xff] %v6455_v12  ;;  %v6463_v44 = vadd.f32 %v2303_v55, %v7053_v57  ;;  %v4877_v59 = vpop.f32.mrf.mxu1  ;;  %v6465_v4 = vpop.f32.mrf.mxu0  ;;  %v2279_v12 = vrot.slane %v2239_v9, 1 }
 0x1f4   : > { %7055 = vst [vmem:[#allocation5_spill] sm:$0xff] %v6465_v4  ;;  %v2277_v56 = vrot.slane %v2237_v5, 1  ;;  %v2240_v45 = vadd.f32 %v4877_v59, %v7056_v27  ;;  %v7062_v27 = vld [vmem:[#allocation17_spill] sm:$0xff] }
 0x1f5   : > { %7054 = vst [vmem:[#allocation10_spill] sm:$0xff] %v6463_v44  ;;  %v2165_v49 = vpop.f32.mrf.mxu1  ;;  %v6469_v29 = vpop.f32.mrf.mxu0 }
 0x1f6   : > { %7057 = vst [vmem:[#allocation16_spill] sm:$0xff] %v6469_v29  ;;  %v2301_v32 = vsel %vm2291_vm0, %v2276_v26, %v2277_v56  ;;  %v2280_v28 = vrot.slane %v2240_v45, 1  ;;  %v2238_v50 = vadd.f32 %v2165_v49, %v7058_v41  ;;  %v7063_v29 = vld [vmem:[#allocation4_spill] sm:$0xff]  ;;  %v7066_v49 = vld [vmem:[#allocation18_spill] sm:$0xff]  ;;  %v7067_v41 = vld [vmem:[#allocation11_spill] sm:$0xff] }
 0x1f7   : > { %v6475_v55 = vadd.f32 %v2301_v32, %v7059_v33  ;;  %v4880_v57 = vpop.f32.mrf.mxu1  ;;  %v6477_v4 = vpop.f32.mrf.mxu0 }
 0x1f8   : > { %7061 = vst [vmem:[#allocation21_spill] sm:$0xff] %v6477_v4  ;;  %v2299_v59 = vsel %vm2291_vm0, %v2279_v12, %v2280_v28  ;;  %v2278_v5 = vrot.slane %v2238_v50, 1  ;;  %v2243_v9 = vadd.f32 %v4880_v57, %v7062_v27  ;;  %v7070_v50 = vld [vmem:[#allocation3_spill] sm:$0xff] }
 0x1f9   : > { %7060 = vst [vmem:[#allocation2_spill] sm:$0xff] %v6475_v55  ;;  %v6484_v44 = vadd.f32 %v2299_v59, %v7063_v29  ;;  %v2178_v26 = vpop.f32.mrf.mxu1  ;;  %v6486_v45 = vpop.f32.mrf.mxu0 }
 0x1fa   : > { %7065 = vst [vmem:[#allocation4_spill] sm:$0xff] %v6486_v45  ;;  %v2300_v33 = vsel %vm2291_vm0, %v2277_v56, %v2278_v5  ;;  %v2241_v32 = vadd.f32 %v2178_v26, %v7066_v49  ;;  %v7072_v5 = vld [vmem:[#allocation7_spill] sm:$0xff] }
 0x1fb   : > { %7064 = vst [vmem:[#allocation17_spill] sm:$0xff] %v6484_v44  ;;  %v6492_v55 = vadd.f32 %v2300_v33, %v7067_v41  ;;  %v4881_v4 = vpop.f32.mrf.mxu1  ;;  %v6494_v40 = vpop.f32.mrf.mxu0  ;;  %v7075_v41 = vld [vmem:[#allocation22_spill] sm:$0xff] }
 0x1fc   : > { %7069 = vst [vmem:[#allocation11_spill] sm:$0xff] %v6494_v40  ;;  %v2281_v12 = vrot.slane %v2241_v32, 1  ;;  %v2244_v29 = vadd.f32 %v4881_v4, %v7070_v50  ;;  %v2283_v32 = vrot.slane %v2243_v9, 1  ;;  %v7079_v9 = vld [vmem:[#allocation8_spill] sm:$0xff] }
 0x1fd   : > { %7068 = vst [vmem:[#allocation18_spill] sm:$0xff] %v6492_v55  ;;  %v2181_v57 = vpop.f32.mrf.mxu1  ;;  %v6498_v59 = vpop.f32.mrf.mxu0 }
 0x1fe   : > { %7071 = vst [vmem:[#allocation3_spill] sm:$0xff] %v6498_v59  ;;  %v2298_v27 = vsel %vm2291_vm0, %v2280_v28, %v2281_v12  ;;  %v2242_v56 = vadd.f32 %v2181_v57, %v6252_v0 }
 0x1ff   : > { %v6506_v26 = vadd.f32 %v2298_v27, %v7072_v5  ;;  %v4884_v33 = vpop.f32.mrf.mxu1  ;;  %v6508_v49 = vpop.f32.mrf.mxu0  ;;  %v7077_v27 = vld [vmem:[#allocation6_spill] sm:$0xff] }
 0x200   : > { %7074 = vst [vmem:[#allocation41_spill] sm:$0xff] %v6508_v49  ;;  %v2282_v4 = vrot.slane %v2242_v56, 1  ;;  %v2247_v50 = vadd.f32 %v4884_v33, %v7075_v41  ;;  %v2284_v41 = vrot.slane %v2244_v29, 1  ;;  %v7082_v49 = vld [vmem:[#allocation23_spill] sm:$0xff] }
 0x201   : > { %7073 = vst [vmem:[#allocation7_spill] sm:$0xff] %v6506_v26  ;;  %v2194_v59 = vpop.f32.mrf.mxu1  ;;  %v6511_v40 = vpop.f32.mrf.mxu0 }
 0x202   : > { %7076 = vst [vmem:[#allocation22_spill] sm:$0xff] %v6511_v40  ;;  %v2296_v0 = vsel %vm2291_vm0, %v2282_v4, %v2283_v32  ;;  %v2297_v28 = vsel %vm2291_vm0, %v2281_v12, %v2282_v4  ;;  %v2245_v57 = vadd.f32 %v2194_v59, %v6256_v10  ;;  %v2287_v59 = vrot.slane %v2247_v50, 1  ;;  %v7084_v4 = vld [vmem:[#allocation24_spill] sm:$0xff] }
 0x203   : > { %v6520_v5 = vadd.f32 %v2297_v28, %v7077_v27  ;;  %v6523_v26 = vadd.f32 %v2296_v0, %v7079_v9  ;;  %v4885_v56 = vpop.f32.mrf.mxu1  ;;  %v6525_v33 = vpop.f32.mrf.mxu0  ;;  %v6544_v9 = vld [vmem:[%s6533_s28 + $0x8] sm:$0xff]  }
 0x204   : > { %7081 = vst [vmem:[#allocation42_spill] sm:$0xff] %v6525_v33  ;;  %v2285_v40 = vrot.slane %v2245_v57, 1  ;;  %v2248_v55 = vadd.f32 %v4885_v56, %v7082_v49  ;;  %v7085_v49 = vld [vmem:[#allocation12_spill] sm:$0xff]  ;;  %v7093_v33 = vld [vmem:[#allocation14_spill] sm:$0xff] }
 0x205   : > { %7078 = vst [vmem:[#allocation6_spill] sm:$0xff] %v6520_v5  ;;  %7080 = vst [vmem:[#allocation8_spill] sm:$0xff] %v6523_v26  ;;  %v2197_v10 = vpop.f32.mrf.mxu1  ;;  %v6535_v12 = vpop.f32.mrf.mxu0  ;;  %v6550_v5 = vld [vmem:[%s6533_s28] sm:$0xff]  }
 0x206   : > { %7083 = vst [vmem:[#allocation23_spill] sm:$0xff] %v6535_v12  ;;  %v2295_v32 = vsel %vm2291_vm0, %v2284_v41, %v2285_v40  ;;  %v2288_v29 = vrot.slane %v2248_v55, 1  ;;  %v2246_v0 = vadd.f32 %v2197_v10, %v7084_v4  ;;  %v7087_v12 = vld [vmem:[#allocation25_spill] sm:$0xff]  ;;  %v6557_v4 = vld [vmem:[%s6533_s28 + $0x10] sm:$0xff]  }
 0x207   : > { %v6541_v28 = vadd.f32 %v2295_v32, %v7085_v49  ;;  %v4960_v57 = vpop.f32.mrf.mxu1  ;;  %v5016_v27 = vpop.f32.mrf.mxu0  ;;  %v7088_v55 = vld [vmem:[#allocation9_spill] sm:$0xff] }
 0x208   : > { %v2292_v56 = vsel %vm2291_vm0, %v2287_v59, %v2288_v29  ;;  %v2286_v50 = vrot.slane %v2246_v0, 1  ;;  %v2722_v26 = vadd.f32 %v4960_v57, %v7087_v12  ;;  %v7090_v0 = vld [vmem:[#allocation26_spill] sm:$0xff]  ;;  %v6609_v57 = vld [vmem:[%s6533_s28 + $0x50] sm:$0xff]  }
 0x209   : > { %7086 = vst [vmem:[#allocation24_spill] sm:$0xff] %v6541_v28  ;;  %v6553_v41 = vadd.f32 %v2292_v56, %v7088_v55  ;;  %v2713_v10 = vpop.f32.mrf.mxu1  ;;  %v2971_v32 = vpop.f32.mrf.mxu0  ;;  %v6566_v56 = vld [vmem:[%s6533_s28 + $0x18] sm:$0xff]   ;;  %v6569_v55 = vld [vmem:[%s6533_s28 + $0x20] sm:$0xff]  }
 0x20a   : > { %v2293_v49 = vsel %vm2291_vm0, %v2286_v50, %v2287_v59  ;;  %v2294_v29 = vsel %vm2291_vm0, %v2285_v40, %v2286_v50  ;;  %v2714_v12 = vadd.f32 %v2713_v10, %v7090_v0  ;;  %v3132_v10 = vadd.f32 %v5016_v27, %v2722_v26  ;;  %v7095_v0 = vld [vmem:[#allocation27_spill] sm:$0xff] }
 0x20b   : > { %7089 = vst [vmem:[#allocation12_spill] sm:$0xff] %v6553_v41  ;;  %v7091_v41 = vld [vmem:[#allocation13_spill] sm:$0xff]  ;;  %v6575_v44 = vadd.f32 %v2293_v49, %v7093_v33  ;;  %v4961_v59 = vpop.f32.mrf.mxu1  ;;  %v5017_v45 = vpop.f32.mrf.mxu0  ;;  %7099 = vst [vmem:[#allocation27_spill] sm:$0xff] %v6601_v60 }
 0x20c   : > { %v6572_v28 = vadd.f32 %v2294_v29, %v7091_v41  ;;  %v2725_v35 = vadd.f32 %v4961_v59, %v7095_v0  ;;  %v6583_v41 = vld [vmem:[%s6533_s28 + $0x28] sm:$0xff]   ;;  %v6586_v29 = vld [vmem:[%s6533_s28 + $0x30] sm:$0xff]   ;;  %v6589_v33 = vld [vmem:[%s6533_s28 + $0x38] sm:$0xff]   ;;  %v3130_v49 = vadd.f32 %v2971_v32, %v2714_v12 }
 0x20d   : > { %7094 = vst [vmem:[#allocation9_spill] sm:$0xff] %v6575_v44  ;;  %7096 = vst [vmem:[#allocation26_spill] sm:$0xff] %v6586_v29  ;;  %v2716_v44 = vpop.f32.mrf.mxu1  ;;  %v2974_v40 = vpop.f32.mrf.mxu0 }
 0x20e   : > { %7092 = vst [vmem:[#allocation25_spill] sm:$0xff] %v6572_v28  ;;  %7097 = vst [vmem:[#allocation13_spill] sm:$0xff] %v6589_v33  ;;  %v3133_v59 = vadd.f32 %v5017_v45, %v2725_v35  ;;  %v2717_v0 = vadd.f32 %v2716_v44, %v6274_v19  ;;  %v6598_v28 = vld [vmem:[%s6533_s28 + $0x48] sm:$0xff]   ;;  %v3172_v45 = vrot.slane %v3132_v10, 2  ;;  %v3170_v31 = vrot.slane %v3130_v49, 2 }
 0x20f   : > { %7098 = vst [vmem:[#allocation14_spill] sm:$0xff] %v6598_v28  ;;  %v4964_v32 = vpop.f32.mrf.mxu1  ;;  %v5020_v12 = vpop.f32.mrf.mxu0  ;;  %v6645_v28 = vld [vmem:[%s6533_s28 + $0x60] sm:$0xff]  }
 0x210   : > { %v3173_v19 = vrot.slane %v3133_v59, 2  ;;  %v3131_v44 = vadd.f32 %v2974_v40, %v2717_v0  ;;  %v6619_v40 = vld [vmem:[%s6944_s3] ss:$0 sm:$0xff]  ;;  %v2738_v49 = vadd.f32 %v4964_v32, %v6277_v2  ;;  %v7100_v0 = vld [vmem:[#allocation28_spill] sm:$0xff]  ;;  %v4164_v32 = vunpack.c.l.bf16 %v6609_v57 }
 0x211   : > { %v2729_v6 = vpop.f32.mrf.mxu1  ;;  %v2987_v51 = vpop.f32.mrf.mxu0 }
 0x212   : > { %v3240_v35 = vsel %vm3210_vm1, %v3172_v45, %v3173_v19  ;;  %v3171_v10 = vrot.slane %v3131_v44, 2  ;;  %v2730_v59 = vadd.f32 %v2729_v6, %v6285_v52  ;;  %v6633_v44 = vld [vmem:[%s6945_s4] ss:$0 sm:$0xff]  ;;  %v3136_v23 = vadd.f32 %v5020_v12, %v2738_v49 }
 0x213   : > { %v3245_v14 = vadd.f32 %v3240_v35, %v7100_v0  ;;  %v4965_v34 = vpop.f32.mrf.mxu1  ;;  %v5021_v27 = vpop.f32.mrf.mxu0  ;;  %v4172_v49 = vunpack.c.l.bf16 %v6645_v28 }
 0x214   : > { %v3241_v52 = vsel %vm3210_vm1, %v3171_v10, %v3172_v45  ;;  %v3242_v2 = vsel %vm3210_vm1, %v3170_v31, %v3171_v10  ;;  %v3134_v6 = vadd.f32 %v2987_v51, %v2730_v59  ;;  %v2741_v50 = vadd.f32 %v4965_v34, %v6298_v8 }
 0x215   : > { %v3284_v35 = vmul.f32 %v6619_v40, %v3245_v14  ;;  %v3243_v0 = vadd.f32 %v3242_v2, %v6293_v36  ;;  %v3244_v33 = vadd.f32 %v3241_v52, %v6296_v3  ;;  %v2732_v26 = vpop.f32.mrf.mxu1  ;;  %v2990_v60 = vpop.f32.mrf.mxu0  ;;  %v4168_v51 = vunpack.c.l.bf16 %v6628_v47 }
 0x216   : > { %v3174_v45 = vrot.slane %v3134_v6, 2  ;;  %v2733_v29 = vadd.f32 %v2732_v26, %v6301_v17  ;;  %v3137_v10 = vadd.f32 %v5021_v27, %v2741_v50  ;;  %v7101_v17 = vunpack.c.l.bf16 %v6544_v9 }
 0x217   : > { %v3323_v31 = vadd.f32 %v6633_v44, %v3284_v35  ;;  %v3282_v14 = vmul.f32 %v6619_v40, %v3243_v0  ;;  %v3283_v36 = vmul.f32 %v6619_v40, %v3244_v33  ;;  %v4968_v3 = vpop.f32.mrf.mxu1  ;;  %v5024_v59 = vpop.f32.mrf.mxu0  ;;  %v3176_v6 = vrot.slane %v3136_v23, 2 }
 0x218   : > { %v3239_v8 = vsel %vm3210_vm1, %v3173_v19, %v3174_v45  ;;  %v3135_v34 = vadd.f32 %v2990_v60, %v2733_v29  ;;  %v2754_v12 = vadd.f32 %v4968_v3, %v6309_v46  ;;  %v3177_v35 = vrot.slane %v3137_v10, 2 }
 0x219   : > { %v3419_v26 = vadd.f32 %v7101_v17, %v3323_v31  ;;  %v3321_v52 = vadd.f32 %v6633_v44, %v3282_v14  ;;  %v3322_v2 = vadd.f32 %v6633_v44, %v3283_v36  ;;  %v3246_v33 = vadd.f32 %v3239_v8, %v6307_v39  ;;  %v2745_v50 = vpop.f32.mrf.mxu1  ;;  %v3003_v27 = vpop.f32.mrf.mxu0 }
 0x21a   : > { %v3175_v0 = vrot.slane %v3135_v34, 2  ;;  %v2746_v60 = vadd.f32 %v2745_v50, %v6317_v1  ;;  %v7102_v46 = vunpack.c.l.bf16 %v6550_v5  ;;  %v7103_v19 = vunpack.c.h.bf16 %v6550_v5 }
 0x21b   : > { %v3285_v31 = vmul.f32 %v6619_v40, %v3246_v33  ;;  %v3140_v14 = vadd.f32 %v5024_v59, %v2754_v12  ;;  %v4969_v36 = vpop.f32.mrf.mxu1  ;;  %v5025_v3 = vpop.f32.mrf.mxu0  ;;  %v3451_v39 = vmax.f32 %v3419_v26, 0.0  ;;  %v3237_v23 = vsel %vm3210_vm1, %v3176_v6, %v3177_v35 }
 0x21c   : > { %v3417_v29 = vadd.f32 %v7102_v46, %v3321_v52  ;;  %v3418_v45 = vadd.f32 %v7103_v19, %v3322_v2  ;;  %v3238_v10 = vsel %vm3210_vm1, %v3175_v0, %v3176_v6  ;;  %v3138_v1 = vadd.f32 %v3003_v27, %v2746_v60 }
 0x21d   : > { %v3324_v17 = vadd.f32 %v6633_v44, %v3285_v31  ;;  %v3248_v5 = vadd.f32 %v3237_v23, %v6315_v53  ;;  %v2748_v52 = vpop.f32.mrf.mxu1  ;;  %v3006_v2 = vpop.f32.mrf.mxu0  ;;  %v3247_v59 = vadd.f32 %v3238_v10, %v6323_v21  ;;  %v2757_v26 = vadd.f32 %v4969_v36, %v6325_v58 }
 0x21e   : > { %v3449_v8 = vmax.f32 %v3417_v29, 0.0  ;;  %v3450_v34 = vmax.f32 %v3418_v45, 0.0  ;;  %v3178_v12 = vrot.slane %v3138_v1, 2  ;;  %v2749_v33 = vadd.f32 %v2748_v52, %v6328_v15 }
 0x21f   : > { %v7104_v27 = vunpack.c.h.bf16 %v6544_v9  ;;  %v3287_v6 = vmul.f32 %v6619_v40, %v3248_v5  ;;  %v3180_v0 = vrot.slane %v3140_v14, 2  ;;  %v4972_v60 = vpop.f32.mrf.mxu1  ;;  %v5028_v46 = vpop.f32.mrf.mxu0  ;;  %v3286_v29 = vmul.f32 %v6619_v40, %v3247_v59 }
 0x220   : > { %v4189_v50 = vpack.c.bf16 %v3450_v34, %v3449_v8  ;;  %v3236_v19 = vsel %vm3210_vm1, %v3177_v35, %v3178_v12  ;;  %v3141_v21 = vadd.f32 %v5025_v3, %v2757_v26  ;;  %v3139_v45 = vadd.f32 %v3006_v2, %v2749_v33 }
 0x221   : > { %v3420_v53 = vadd.f32 %v7104_v27, %v3324_v17  ;;  %v3326_v15 = vadd.f32 %v6633_v44, %v3287_v6  ;;  %v3249_v31 = vadd.f32 %v3236_v19, %v6334_v22  ;;  %v2770_v9 = vadd.f32 %v4972_v60, %v6336_v38  ;;  %v2761_v36 = vpop.f32.mrf.mxu1  ;;  %v3019_v14 = vpop.f32.mrf.mxu0 }
 0x222   : > { %4190 = vst [vmem:[%s6678_s14] sm:$0xff] %v4189_v50   ;;  %v3325_v23 = vadd.f32 %v6633_v44, %v3286_v29  ;;  %v3181_v10 = vrot.slane %v3141_v21, 2  ;;  %v3179_v1 = vrot.slane %v3139_v45, 2  ;;  %v2762_v8 = vadd.f32 %v2761_v36, %v6344_v11 }
 0x223   : > { %v3452_v58 = vmax.f32 %v3420_v53, 0.0  ;;  %v7105_v3 = vunpack.c.h.bf16 %v6557_v4  ;;  %v3288_v17 = vmul.f32 %v6619_v40, %v3249_v31  ;;  %v4973_v5 = vpop.f32.mrf.mxu1  ;;  %v5029_v52 = vpop.f32.mrf.mxu0  ;;  %v4169_v22 = vunpack.c.h.bf16 %v6628_v47  ;;  %v7157_v47 = vld [vmem:[#allocation23_spill] sm:$0xff] }
 0x224   : > { %v7106_v38 = vunpack.c.l.bf16 %v6557_v4  ;;  %v3234_v59 = vsel %vm3210_vm1, %v3180_v0, %v3181_v10  ;;  %v3235_v26 = vsel %vm3210_vm1, %v3178_v12, %v3179_v1  ;;  %v3142_v11 = vadd.f32 %v3019_v14, %v2762_v8 }
 0x225   : > { %v4194_v35 = vpack.c.bf16 %v3452_v58, %v3451_v39  ;;  %v3422_v34 = vadd.f32 %v7105_v3, %v3326_v15  ;;  %v3327_v39 = vadd.f32 %v6633_v44, %v3288_v17  ;;  %v3251_v33 = vadd.f32 %v3234_v59, %v6342_v7  ;;  %v2764_v53 = vpop.f32.mrf.mxu1  ;;  %v3022_v6 = vpop.f32.mrf.mxu0 }
 0x226   : > { %v3421_v2 = vadd.f32 %v7106_v38, %v3325_v23  ;;  %v3250_v50 = vadd.f32 %v3235_v26, %v6350_v20  ;;  %v3144_v27 = vadd.f32 %v5028_v46, %v2770_v9  ;;  %v3182_v29 = vrot.slane %v3142_v11, 2 }
 0x227   : > { %4283 = vst [vmem:[%s6678_s14 + $0x8] sm:$0xff] %v4194_v35   ;;  %v3454_v60 = vmax.f32 %v3422_v34, 0.0  ;;  %v2773_v19 = vadd.f32 %v4973_v5, %v6352_v42  ;;  %v7107_v0 = vunpack.c.l.bf16 %v6566_v56  ;;  %v3290_v12 = vmul.f32 %v6619_v40, %v3251_v33  ;;  %v4976_v58 = vpop.f32.mrf.mxu1  ;;  %v5032_v20 = vpop.f32.mrf.mxu0  ;;  %v7108_v34 = vld [vmem:[#allocation29_spill] sm:$0xff] }
 0x228   : > { %v3453_v4 = vmax.f32 %v3421_v2, 0.0  ;;  %v3289_v45 = vmul.f32 %v6619_v40, %v3250_v50  ;;  %v2765_v7 = vadd.f32 %v2764_v53, %v6355_v30  ;;  %v3233_v15 = vsel %vm3210_vm1, %v3181_v10, %v3182_v29 }
 0x229   : > { %v3423_v21 = vadd.f32 %v7107_v0, %v3327_v39  ;;  %v3145_v31 = vadd.f32 %v5029_v52, %v2773_v19  ;;  %v2786_v9 = vadd.f32 %v4976_v58, %v6363_v54  ;;  %v3329_v42 = vadd.f32 %v6633_v44, %v3290_v12  ;;  %v2777_v23 = vpop.f32.mrf.mxu1  ;;  %v3035_v1 = vpop.f32.mrf.mxu0 }
 0x22a   : > { %v4199_v46 = vpack.c.bf16 %v3454_v60, %v3453_v4  ;;  %v3328_v36 = vadd.f32 %v6633_v44, %v3289_v45  ;;  %v3252_v14 = vadd.f32 %v3233_v15, %v6361_v18  ;;  %v4173_v8 = vunpack.c.h.bf16 %v6645_v28  ;;  %v7158_v28 = vld [vmem:[#allocation24_spill] sm:$0xff] }
 0x22b   : > { %v3184_v30 = vrot.slane %v3144_v27, 2  ;;  %v3143_v35 = vadd.f32 %v3022_v6, %v2765_v7  ;;  %v6723_v3 = vadd.f32 %v5032_v20, %v2786_v9  ;;  %v2778_v10 = vadd.f32 %v2777_v23, %v7108_v34  ;;  %v4977_v2 = vpop.f32.mrf.mxu1  ;;  %v5033_v59 = vpop.f32.mrf.mxu0  ;;  %v6751_v23 = vld [vmem:[%s6533_s28 + $0x68] sm:$0xff]  }
 0x22c   : > { %4284 = vst [vmem:[%s6678_s14 + $0x10] sm:$0xff] %v4199_v46   ;;  %v3455_v17 = vmax.f32 %v3423_v21, 0.0  ;;  %v7109_v54 = vunpack.c.l.bf16 %v6569_v55  ;;  %v7110_v52 = vunpack.c.h.bf16 %v6566_v56  ;;  %v3291_v18 = vmul.f32 %v6619_v40, %v3252_v14 }
 0x22d   : > { %v3185_v26 = vrot.slane %v3145_v31, 2  ;;  %v3183_v11 = vrot.slane %v3143_v35, 2  ;;  %v3146_v39 = vadd.f32 %v3035_v1, %v2778_v10  ;;  %v2789_v33 = vadd.f32 %v4977_v2, %v6379_v13  ;;  %v2780_v60 = vpop.f32.mrf.mxu1  ;;  %v3038_v4 = vpop.f32.mrf.mxu0 }
 0x22e   : > { %v3425_v5 = vadd.f32 %v7109_v54, %v3329_v42  ;;  %v3424_v38 = vadd.f32 %v7110_v52, %v3328_v36  ;;  %v3330_v53 = vadd.f32 %v6633_v44, %v3291_v18  ;;  %v3188_v6 = vrot.slane %v6723_v3, 2 }
 0x22f   : > { %v3231_v56 = vsel %vm3210_vm1, %v3183_v11, %v3184_v30  ;;  %v3232_v19 = vsel %vm3210_vm1, %v3182_v29, %v3183_v11  ;;  %v3186_v0 = vrot.slane %v3146_v39, 2  ;;  %v3149_v21 = vadd.f32 %v5033_v59, %v2789_v33  ;;  %v4980_v20 = vpop.f32.mrf.mxu1  ;;  %v5036_v46 = vpop.f32.mrf.mxu0 }
 0x230   : > { %v3457_v50 = vmax.f32 %v3425_v5, 0.0  ;;  %v3456_v27 = vmax.f32 %v3424_v38, 0.0  ;;  %v7111_v13 = vunpack.c.h.bf16 %v6569_v55  ;;  %v3253_v7 = vadd.f32 %v3232_v19, %v6374_v48 }
 0x231   : > { %v3254_v58 = vadd.f32 %v3231_v56, %v6377_v62  ;;  %v3230_v15 = vsel %vm3210_vm1, %v3185_v26, %v3186_v0  ;;  %v3189_v31 = vrot.slane %v3149_v21, 2  ;;  %v2781_v9 = vadd.f32 %v2780_v60, %v6382_v61  ;;  %v2793_v14 = vpop.f32.mrf.mxu1  ;;  %v3051_v62 = vpop.f32.mrf.mxu0  ;;  %v7116_v21 = vld [vmem:[#allocation30_spill] sm:$0xff] }
 0x232   : > { %v4204_v12 = vpack.c.bf16 %v3456_v27, %v3455_v17  ;;  %v3426_v45 = vadd.f32 %v7111_v13, %v3330_v53  ;;  %v2802_v29 = vadd.f32 %v4980_v20, %v6390_v25  ;;  %v3292_v55 = vmul.f32 %v6619_v40, %v3253_v7  ;;  %v7117_v7 = vld [vmem:[#allocation31_spill] sm:$0xff]  ;;  %v7118_v20 = vld [vmem:[#allocation32_spill] sm:$0xff] }
 0x233   : > { %v3293_v36 = vmul.f32 %v6619_v40, %v3254_v58  ;;  %v3255_v48 = vadd.f32 %v3230_v15, %v6388_v16  ;;  %v3227_v1 = vsel %vm3210_vm1, %v3188_v6, %v3189_v31  ;;  %v3147_v30 = vadd.f32 %v3038_v4, %v2781_v9  ;;  %v4981_v10 = vpop.f32.mrf.mxu1  ;;  %v5037_v17 = vpop.f32.mrf.mxu0  ;;  %v7119_v9 = vld [vmem:[#allocation33_spill] sm:$0xff] }
 0x234   : > { %4285 = vst [vmem:[%s6678_s14 + $0x18] sm:$0xff] %v4204_v12   ;;  %v3458_v42 = vmax.f32 %v3426_v45, 0.0  ;;  %v6755_v61 = vadd.f32 %v5036_v46, %v2802_v29  ;;  %v2794_v25 = vadd.f32 %v2793_v14, %v6398_v63  ;;  %v3331_v3 = vadd.f32 %v6633_v44, %v3292_v55 }
 0x235   : > { %v3332_v34 = vadd.f32 %v6633_v44, %v3293_v36  ;;  %v3294_v16 = vmul.f32 %v6619_v40, %v3255_v48  ;;  %v3258_v54 = vadd.f32 %v3227_v1, %v6396_v24  ;;  %v3187_v5 = vrot.slane %v3147_v30, 2  ;;  %v2796_v39 = vpop.f32.mrf.mxu1  ;;  %v3054_v33 = vpop.f32.mrf.mxu0  ;;  %v7120_v36 = vld [vmem:[#allocation13_spill] sm:$0xff] }
 0x236   : > { %v4209_v35 = vpack.c.bf16 %v3458_v42, %v3457_v50  ;;  %v3150_v52 = vadd.f32 %v3051_v62, %v2794_v25  ;;  %v4176_v38 = vunpack.c.l.bf16 %v6751_v23  ;;  %v7112_v18 = vunpack.c.l.bf16 %v6583_v41 }
 0x237   : > { %v7113_v63 = vunpack.c.h.bf16 %v6583_v41  ;;  %v3333_v26 = vadd.f32 %v6633_v44, %v3294_v16  ;;  %v2805_v11 = vadd.f32 %v4981_v10, %v6411_v37  ;;  %v3297_v50 = vmul.f32 %v6619_v40, %v3258_v54  ;;  %v7114_v41 = vld [vmem:[#allocation26_spill] sm:$0xff]  ;;  %v4984_v37 = vpop.f32.mrf.mxu1  ;;  %v5040_v13 = vpop.f32.mrf.mxu0 }
 0x238   : > { %4286 = vst [vmem:[%s6678_s14 + $0x20] sm:$0xff] %v4209_v35   ;;  %v3427_v2 = vadd.f32 %v7112_v18, %v3331_v3  ;;  %v3228_v24 = vsel %vm3210_vm1, %v3187_v5, %v3188_v6  ;;  %v3229_v27 = vsel %vm3210_vm1, %v3186_v0, %v3187_v5  ;;  %v3192_v53 = vrot.slane %v6755_v61, 2  ;;  %v7122_v3 = vld [vmem:[#allocation35_spill] sm:$0xff] }
 0x239   : > { %v3428_v59 = vadd.f32 %v7113_v63, %v3332_v34  ;;  %v7115_v56 = vunpack.c.l.bf16 %v7114_v41  ;;  %v3256_v12 = vadd.f32 %v3229_v27, %v7116_v21  ;;  %v3336_v45 = vadd.f32 %v6633_v44, %v3297_v50  ;;  %v2809_v42 = vpop.f32.mrf.mxu1  ;;  %v3067_v55 = vpop.f32.mrf.mxu0  ;;  %v7124_v63 = vld [vmem:[#allocation34_spill] sm:$0xff]  ;;  %v7127_v21 = vld [vmem:[#allocation36_spill] sm:$0xff] }
 0x23a   : > { %v3459_v60 = vmax.f32 %v3427_v2, 0.0  ;;  %v3257_v58 = vadd.f32 %v3228_v24, %v7117_v7  ;;  %v3153_v6 = vadd.f32 %v5037_v17, %v2805_v11  ;;  %v2797_v46 = vadd.f32 %v2796_v39, %v7118_v20 }
 0x23b   : > { %v3460_v4 = vmax.f32 %v3428_v59, 0.0  ;;  %v3429_v19 = vadd.f32 %v7115_v56, %v3333_v26  ;;  %v3295_v15 = vmul.f32 %v6619_v40, %v3256_v12  ;;  %v3190_v31 = vrot.slane %v3150_v52, 2  ;;  %v4985_v16 = vpop.f32.mrf.mxu1  ;;  %v5041_v10 = vpop.f32.mrf.mxu0 }
 0x23c   : > { %v2818_v29 = vadd.f32 %v4984_v37, %v7119_v9  ;;  %v7121_v48 = vunpack.c.h.bf16 %v7120_v36  ;;  %v3296_v62 = vmul.f32 %v6619_v40, %v3257_v58  ;;  %v3193_v1 = vrot.slane %v3153_v6, 2  ;;  %v7128_v37 = vld [vmem:[#allocation37_spill] sm:$0xff] }
 0x23d   : > { %v4214_v0 = vpack.c.bf16 %v3460_v4, %v3459_v60  ;;  %v3151_v30 = vadd.f32 %v3054_v33, %v2797_v46  ;;  %v3461_v61 = vmax.f32 %v3429_v19, 0.0  ;;  %v3334_v25 = vadd.f32 %v6633_v44, %v3295_v15  ;;  %v2812_v39 = vpop.f32.mrf.mxu1  ;;  %v3070_v33 = vpop.f32.mrf.mxu0  ;;  %v7126_v4 = vld [vmem:[#allocation38_spill] sm:$0xff]  ;;  %v7129_v46 = vld [vmem:[#allocation39_spill] sm:$0xff] }
 0x23e   : > { %v3432_v14 = vadd.f32 %v7121_v48, %v3336_v45  ;;  %v3156_v35 = vadd.f32 %v5040_v13, %v2818_v29  ;;  %v2810_v34 = vadd.f32 %v2809_v42, %v7122_v3  ;;  %v3335_v54 = vadd.f32 %v6633_v44, %v3296_v62  ;;  %v7130_v62 = vld [vmem:[#allocation14_spill] sm:$0xff]  ;;  %v7132_v3 = vld [vmem:[#allocation19_spill] sm:$0xff] }
 0x23f   : > { %4287 = vst [vmem:[%s6678_s14 + $0x28] sm:$0xff] %v4214_v0   ;;  %v3224_v5 = vsel %vm3210_vm1, %v3192_v53, %v3193_v1  ;;  %v3191_v52 = vrot.slane %v3151_v30, 2  ;;  %v7123_v18 = vunpack.c.h.bf16 %v7114_v41  ;;  %v7125_v50 = vunpack.c.l.bf16 %v7120_v36  ;;  %v4988_v45 = vpop.f32.mrf.mxu1  ;;  %v5044_v7 = vpop.f32.mrf.mxu0 }
 0x240   : > { %v3464_v17 = vmax.f32 %v3432_v14, 0.0  ;;  %v3261_v59 = vadd.f32 %v3224_v5, %v7124_v63  ;;  %v3196_v26 = vrot.slane %v3156_v35, 2  ;;  %v3154_v11 = vadd.f32 %v3067_v55, %v2810_v34 }
 0x241   : > { %v3430_v2 = vadd.f32 %v7123_v18, %v3334_v25  ;;  %v3431_v24 = vadd.f32 %v7125_v50, %v3335_v54  ;;  %v3225_v27 = vsel %vm3210_vm1, %v3191_v52, %v3192_v53  ;;  %v3226_v60 = vsel %vm3210_vm1, %v3190_v31, %v3191_v52  ;;  %v2825_v29 = vpop.f32.mrf.mxu1  ;;  %v3083_v42 = vpop.f32.mrf.mxu0  ;;  %v7134_v52 = vld [vmem:[#allocation20_spill] sm:$0xff] }
 0x242   : > { %v2821_v56 = vadd.f32 %v4985_v16, %v7126_v4  ;;  %v3300_v41 = vmul.f32 %v6619_v40, %v3261_v59  ;;  %v3259_v12 = vadd.f32 %v3226_v60, %v7127_v21  ;;  %v3260_v13 = vadd.f32 %v3225_v27, %v7128_v37  ;;  %v7138_v4 = vld [vmem:[#allocation15_spill] sm:$0xff] }
 0x243   : > { %v3462_v19 = vmax.f32 %v3430_v2, 0.0  ;;  %v3463_v58 = vmax.f32 %v3431_v24, 0.0  ;;  %v3194_v6 = vrot.slane %v3154_v11, 2  ;;  %v2813_v53 = vadd.f32 %v2812_v39, %v7129_v46  ;;  %v4989_v16 = vpop.f32.mrf.mxu1  ;;  %v7135_v2 = vld [vmem:[#allocation27_spill] sm:$0xff] }
 0x244   : > { %v3157_v20 = vadd.f32 %v5041_v10, %v2821_v56  ;;  %v3339_v15 = vadd.f32 %v6633_v44, %v3300_v41  ;;  %v3298_v31 = vmul.f32 %v6619_v40, %v3259_v12  ;;  %v3299_v9 = vmul.f32 %v6619_v40, %v3260_v13  ;;  %v5045_v10 = vpop.f32.mrf.mxu0  ;;  %v7139_v13 = vld [vmem:[#allocation10_spill] sm:$0xff] }
 0x245   : > { %v4219_v0 = vpack.c.bf16 %v3462_v19, %v3461_v61  ;;  %v4224_v55 = vpack.c.bf16 %v3464_v17, %v3463_v58  ;;  %v3223_v36 = vsel %vm3210_vm1, %v3193_v1, %v3194_v6  ;;  %v3155_v14 = vadd.f32 %v3070_v33, %v2813_v53  ;;  %v7133_v1 = vld [vmem:[#allocation40_spill] sm:$0xff]  ;;  %v2828_v50 = vpop.f32.mrf.mxu1 }
 0x246   : > { %v3197_v48 = vrot.slane %v3157_v20, 2  ;;  %v7131_v30 = vunpack.c.l.bf16 %v7130_v62  ;;  %v3337_v61 = vadd.f32 %v6633_v44, %v3298_v31  ;;  %v3338_v35 = vadd.f32 %v6633_v44, %v3299_v9  ;;  %v3086_v24 = vpop.f32.mrf.mxu0 }
 0x247   : > { %4288 = vst [vmem:[%s6678_s14 + $0x30] sm:$0xff] %v4219_v0   ;;  %v3262_v34 = vadd.f32 %v3223_v36, %v7132_v3  ;;  %4289 = vst [vmem:[%s6678_s14 + $0x38] sm:$0xff] %v4224_v55   ;;  %v3195_v54 = vrot.slane %v3155_v14, 2  ;;  %v2834_v5 = vadd.f32 %v4988_v45, %v7133_v1  ;;  %v2826_v18 = vadd.f32 %v2825_v29, %v7134_v52  ;;  %v4992_v58 = vpop.f32.mrf.mxu1  ;;  %v7140_v0 = vld [vmem:[#allocation5_spill] sm:$0xff] }
 0x248   : > { %v3435_v25 = vadd.f32 %v7131_v30, %v3339_v15  ;;  %v3221_v17 = vsel %vm3210_vm1, %v3196_v26, %v3197_v48  ;;  %v7136_v63 = vunpack.c.l.bf16 %v7135_v2  ;;  %v7137_v11 = vunpack.c.h.bf16 %v7135_v2  ;;  %v5048_v6 = vpop.f32.mrf.mxu0 }
 0x249   : > { %v3301_v33 = vmul.f32 %v6619_v40, %v3262_v34  ;;  %v4177_v27 = vunpack.c.h.bf16 %v6751_v23  ;;  %v3264_v56 = vadd.f32 %v3221_v17, %v7138_v4  ;;  %v3222_v19 = vsel %vm3210_vm1, %v3195_v54, %v3196_v26  ;;  %v2841_v36 = vpop.f32.mrf.mxu1  ;;  %v7160_v23 = vld [vmem:[#allocation25_spill] sm:$0xff] }
 0x24a   : > { %v3433_v59 = vadd.f32 %v7136_v63, %v3337_v61  ;;  %v3434_v39 = vadd.f32 %v7137_v11, %v3338_v35  ;;  %v3467_v60 = vmax.f32 %v3435_v25, 0.0  ;;  %v3158_v41 = vadd.f32 %v3083_v42, %v2826_v18  ;;  %v7142_v42 = vld [vmem:[#allocation16_spill] sm:$0xff]  ;;  %v3099_v14 = vpop.f32.mrf.mxu0 }
 0x24b   : > { %v3340_v37 = vadd.f32 %v6633_v44, %v3301_v33  ;;  %v3263_v45 = vadd.f32 %v3222_v19, %v7139_v13  ;;  %v3303_v20 = vmul.f32 %v6619_v40, %v3264_v56  ;;  %v3160_v46 = vadd.f32 %v5044_v7, %v2834_v5  ;;  %v7143_v7 = vld [vmem:[#allocation21_spill] sm:$0xff]  ;;  %v4993_v54 = vpop.f32.mrf.mxu1  ;;  %v7146_v63 = vld [vmem:[#allocation4_spill] sm:$0xff]  ;;  %v7148_v13 = vld [vmem:[#allocation18_spill] sm:$0xff] }
 0x24c   : > { %v3465_v21 = vmax.f32 %v3433_v59, 0.0  ;;  %v3466_v12 = vmax.f32 %v3434_v39, 0.0  ;;  %v3198_v53 = vrot.slane %v3158_v41, 2  ;;  %v2837_v15 = vadd.f32 %v4989_v16, %v7140_v0  ;;  %v5049_v1 = vpop.f32.mrf.mxu0  ;;  %v7150_v0 = vld [vmem:[#allocation3_spill] sm:$0xff] }
 0x24d   : > { %v7141_v9 = vunpack.c.h.bf16 %v7130_v62  ;;  %v3302_v29 = vmul.f32 %v6619_v40, %v3263_v45  ;;  %v2829_v55 = vadd.f32 %v2828_v50, %v7142_v42  ;;  %v3342_v30 = vadd.f32 %v6633_v44, %v3303_v20  ;;  %v7144_v62 = vld [vmem:[#allocation2_spill] sm:$0xff]  ;;  %v2844_v33 = vpop.f32.mrf.mxu1  ;;  %v7149_v20 = vld [vmem:[#allocation11_spill] sm:$0xff] }
 0x24e   : > { %v4229_v31 = vpack.c.bf16 %v3466_v12, %v3465_v21  ;;  %v3220_v25 = vsel %vm3210_vm1, %v3197_v48, %v3198_v53  ;;  %v3161_v61 = vadd.f32 %v5045_v10, %v2837_v15  ;;  %v2850_v35 = vadd.f32 %v4992_v58, %v7143_v7  ;;  %v3102_v50 = vpop.f32.mrf.mxu0  ;;  %v7147_v12 = vld [vmem:[#allocation17_spill] sm:$0xff]  ;;  %v7152_v7 = vld [vmem:[#allocation7_spill] sm:$0xff] }
 0x24f   : > { %v3436_v26 = vadd.f32 %v7141_v9, %v3340_v37  ;;  %v3341_v34 = vadd.f32 %v6633_v44, %v3302_v29  ;;  %v3265_v16 = vadd.f32 %v3220_v25, %v7144_v62  ;;  %v3159_v17 = vadd.f32 %v3086_v24, %v2829_v55 }
 0x250   : > { %4290 = vst [vmem:[%s6678_s14 + $0x40] sm:$0xff] %v4229_v31   ;;  %v7145_v5 = vunpack.c.h.bf16 %v6609_v57  ;;  %v3200_v18 = vrot.slane %v3160_v46, 2  ;;  %v3201_v2 = vrot.slane %v3161_v61, 2  ;;  %v2842_v48 = vadd.f32 %v2841_v36, %v7146_v63  ;;  %v5052_v37 = vpop.f32.mrf.mxu0 }
 0x251   : > { %v3468_v3 = vmax.f32 %v3436_v26, 0.0  ;;  %v3437_v59 = vadd.f32 %v4164_v32, %v3341_v34  ;;  %v3304_v11 = vmul.f32 %v6619_v40, %v3265_v16  ;;  %v3199_v39 = vrot.slane %v3159_v17, 2  ;;  %v4996_v32 = vpop.f32.mrf.mxu1  ;;  %v7151_v26 = vld [vmem:[#allocation41_spill] sm:$0xff]  ;;  %v7153_v17 = vld [vmem:[#allocation22_spill] sm:$0xff] }
 0x252   : > { %v3438_v52 = vadd.f32 %v7145_v5, %v3342_v30  ;;  %v3218_v4 = vsel %vm3210_vm1, %v3200_v18, %v3201_v2  ;;  %v3164_v56 = vadd.f32 %v5048_v6, %v2850_v35  ;;  %v3162_v19 = vadd.f32 %v3099_v14, %v2842_v48  ;;  %v7154_v18 = vld [vmem:[#allocation42_spill] sm:$0xff] }
 0x253   : > { %v4234_v10 = vpack.c.bf16 %v3468_v3, %v3467_v60  ;;  %v3469_v41 = vmax.f32 %v3437_v59, 0.0  ;;  %v3343_v21 = vadd.f32 %v6633_v44, %v3304_v11  ;;  %v3267_v60 = vadd.f32 %v3218_v4, %v7147_v12  ;;  %v2857_v42 = vpop.f32.mrf.mxu1 }
 0x254   : > { %v3470_v24 = vmax.f32 %v3438_v52, 0.0  ;;  %v3219_v57 = vsel %vm3210_vm1, %v3198_v53, %v3199_v39  ;;  %v3202_v58 = vrot.slane %v3162_v19, 2  ;;  %v2853_v46 = vadd.f32 %v4993_v54, %v7149_v20  ;;  %v3115_v53 = vpop.f32.mrf.mxu0 }
 0x255   : > { %4291 = vst [vmem:[%s6678_s14 + $0x48] sm:$0xff] %v4234_v10   ;;  %v3266_v45 = vadd.f32 %v3219_v57, %v7148_v13  ;;  %v2845_v6 = vadd.f32 %v2844_v33, %v7150_v0  ;;  %v3439_v31 = vadd.f32 %v4168_v51, %v3343_v21  ;;  %v3306_v9 = vmul.f32 %v6619_v40, %v3267_v60  ;;  %v4997_v3 = vpop.f32.mrf.mxu1 }
 0x256   : > { %v4239_v15 = vpack.c.bf16 %v3470_v24, %v3469_v41  ;;  %v2866_v29 = vadd.f32 %v4996_v32, %v7151_v26  ;;  %v3217_v36 = vsel %vm3210_vm1, %v3201_v2, %v3202_v58  ;;  %v3165_v14 = vadd.f32 %v5049_v1, %v2853_v46  ;;  %v5053_v63 = vpop.f32.mrf.mxu0  ;;  %v7156_v24 = vld [vmem:[#allocation8_spill] sm:$0xff] }
 0x257   : > { %v3305_v55 = vmul.f32 %v6619_v40, %v3266_v45  ;;  %v3163_v30 = vadd.f32 %v3102_v50, %v2845_v6  ;;  %v3345_v25 = vadd.f32 %v6633_v44, %v3306_v9  ;;  %v3204_v61 = vrot.slane %v3164_v56, 2  ;;  %v2860_v48 = vpop.f32.mrf.mxu1 }
 0x258   : > { %4292 = vst [vmem:[%s6678_s14 + $0x50] sm:$0xff] %v4239_v15   ;;  %v3268_v35 = vadd.f32 %v3217_v36, %v7152_v7  ;;  %v3168_v51 = vadd.f32 %v5052_v37, %v2866_v29  ;;  %v3471_v34 = vmax.f32 %v3439_v31, 0.0  ;;  %v2858_v54 = vadd.f32 %v2857_v42, %v7153_v17  ;;  %v3118_v37 = vpop.f32.mrf.mxu0  ;;  %v4281_v15 = vld [vmem:[%s6533_s28 + $0x70] sm:$0xff]  }
 0x259   : > { %v3344_v62 = vadd.f32 %v6633_v44, %v3305_v55  ;;  %v3203_v16 = vrot.slane %v3163_v30, 2  ;;  %v3441_v5 = vadd.f32 %v4172_v49, %v3345_v25  ;;  %v3205_v52 = vrot.slane %v3165_v14, 2  ;;  %v7155_v49 = vld [vmem:[#allocation6_spill] sm:$0xff]  ;;  %v4282_v55 = vld [vmem:[%s6533_s28 + $0x78] sm:$0xff]   ;;  %v7159_v14 = vld [vmem:[#allocation12_spill] sm:$0xff] }
 0x25a   : > { %v3307_v1 = vmul.f32 %v6619_v40, %v3268_v35  ;;  %v2869_v2 = vadd.f32 %v4997_v3, %v7154_v18  ;;  %v3166_v39 = vadd.f32 %v3115_v53, %v2858_v54  ;;  %v3208_v56 = vrot.slane %v3168_v51, 2 }
 0x25b   : > { %v3440_v10 = vadd.f32 %v4169_v22, %v3344_v62  ;;  %v3215_v59 = vsel %vm3210_vm1, %v3203_v16, %v3204_v61  ;;  %v3216_v11 = vsel %vm3210_vm1, %v3202_v58, %v3203_v16  ;;  %v2861_v22 = vadd.f32 %v2860_v48, %v7157_v47 }
 0x25c   : > { %v3346_v33 = vadd.f32 %v6633_v44, %v3307_v1  ;;  %v3269_v50 = vadd.f32 %v3216_v11, %v7155_v49  ;;  %v3270_v4 = vadd.f32 %v3215_v59, %v7156_v24  ;;  %v3206_v41 = vrot.slane %v3166_v39, 2 }
 0x25d   : > { %v3472_v19 = vmax.f32 %v3440_v10, 0.0  ;;  %v3169_v21 = vadd.f32 %v5053_v63, %v2869_v2  ;;  %v3473_v12 = vmax.f32 %v3441_v5, 0.0  ;;  %v3167_v20 = vadd.f32 %v3118_v37, %v2861_v22 }
 0x25e   : > { %v3442_v60 = vadd.f32 %v4173_v8, %v3346_v33  ;;  %v3308_v57 = vmul.f32 %v6619_v40, %v3269_v50  ;;  %v3309_v32 = vmul.f32 %v6619_v40, %v3270_v4  ;;  %v3214_v45 = vsel %vm3210_vm1, %v3205_v52, %v3206_v41 }
 0x25f   : > { %v4244_v13 = vpack.c.bf16 %v3472_v19, %v3471_v34  ;;  %v3209_v58 = vrot.slane %v3169_v21, 2  ;;  %v3271_v8 = vadd.f32 %v3214_v45, %v7158_v28  ;;  %v3207_v9 = vrot.slane %v3167_v20, 2  ;;  %v7161_v34 = vld [vmem:[#allocation9_spill] sm:$0xff] }
 0x260   : > { %v3474_v46 = vmax.f32 %v3442_v60, 0.0  ;;  %v3347_v0 = vadd.f32 %v6633_v44, %v3308_v57  ;;  %v3348_v6 = vadd.f32 %v6633_v44, %v3309_v32  ;;  %v4180_v36 = vunpack.c.l.bf16 %v4281_v15 }
 0x261   : > { %4293 = vst [vmem:[%s6678_s14 + $0x58] sm:$0xff] %v4244_v13   ;;  %v3211_v31 = vsel %vm3210_vm1, %v3208_v56, %v3209_v58  ;;  %v3310_v53 = vmul.f32 %v6619_v40, %v3271_v8  ;;  %v3212_v25 = vsel %vm3210_vm1, %v3207_v9, %v3208_v56  ;;  %v3213_v61 = vsel %vm3210_vm1, %v3206_v41, %v3207_v9 }
 0x262   : > { %v4249_v26 = vpack.c.bf16 %v3474_v46, %v3473_v12  ;;  %v3443_v29 = vadd.f32 %v4176_v38, %v3347_v0  ;;  %v3444_v42 = vadd.f32 %v4177_v27, %v3348_v6  ;;  %v3274_v30 = vadd.f32 %v3211_v31, %v7159_v14 }
 0x263   : > { %v3349_v38 = vadd.f32 %v6633_v44, %v3310_v53  ;;  %v3272_v27 = vadd.f32 %v3213_v61, %v7160_v23  ;;  %v4185_v3 = vunpack.c.h.bf16 %v4282_v55  ;;  %v3273_v62 = vadd.f32 %v3212_v25, %v7161_v34 }
 0x264   : > { %4294 = vst [vmem:[%s6678_s14 + $0x60] sm:$0xff] %v4249_v26   ;;  %v3475_v7 = vmax.f32 %v3443_v29, 0.0  ;;  %v3476_v35 = vmax.f32 %v3444_v42, 0.0  ;;  %v3313_v51 = vmul.f32 %v6619_v40, %v3274_v30  ;;  %v4181_v54 = vunpack.c.h.bf16 %v4281_v15 }
 0x265   : > { %v3311_v17 = vmul.f32 %v6619_v40, %v3272_v27  ;;  %v3312_v5 = vmul.f32 %v6619_v40, %v3273_v62  ;;  %v4184_v1 = vunpack.c.l.bf16 %v4282_v55  ;;  %v3445_v52 = vadd.f32 %v4180_v36, %v3349_v38 }
 0x266   : > { %v4254_v16 = vpack.c.bf16 %v3476_v35, %v3475_v7  ;;  %v3352_v43 = vadd.f32 %v6633_v44, %v3313_v51 }
 0x267   : > { %v3350_v18 = vadd.f32 %v6633_v44, %v3311_v17  ;;  %v3351_v63 = vadd.f32 %v6633_v44, %v3312_v5  ;;  %v3477_v59 = vmax.f32 %v3445_v52, 0.0 }
 0x268   : > { %4295 = vst [vmem:[%s6678_s14 + $0x68] sm:$0xff] %v4254_v16   ;;  %v3448_v2 = vadd.f32 %v4185_v3, %v3352_v43 }
 0x269   : > { %v3446_v48 = vadd.f32 %v4181_v54, %v3350_v18  ;;  %v3447_v10 = vadd.f32 %v4184_v1, %v3351_v63 }
 0x26a   : > { %v3480_v39 = vmax.f32 %v3448_v2, 0.0 }
 0x26b   : > { %v3478_v11 = vmax.f32 %v3446_v48, 0.0  ;;  %v3479_v33 = vmax.f32 %v3447_v10, 0.0 }
 0x26d   : > { %v4259_v49 = vpack.c.bf16 %v3478_v11, %v3477_v59  ;;  %v4264_v50 = vpack.c.bf16 %v3480_v39, %v3479_v33 }
 0x26f   : > { %4296 = vst [vmem:[%s6678_s14 + $0x70] sm:$0xff] %v4259_v49   ;;  %4297 = vst [vmem:[%s6678_s14 + $0x78] sm:$0xff] %v4264_v50  }
 0x270 PF: > { %s16_s25 = sadd.s32 1, %s5267_s25   ;;  %s7162_s21 = smov %s5259_s23 }
 0x271   : > { %p13_p9 = scmp.ge.s32.totalorder %s16_s25, 10   ;;  %s7163_s22 = smov %s5263_s24 }
 0x272   : > { %s7164_s23 = smov %s7167_s26  ;;  %s7165_s24 = smov %s7171_s27 }
 0x273   :  { %15 = sbr.rel (!%p13_p9) target bundleno = 3 (0x3), region = 88 }

// kernel: _lambda_.8
= control target key start
LH: loop header
LB: loop body
LE: loop exit
PB: predicated region body
PF: predicated region fallthrough
CT: control target
= control target key end

     0   :  { %s1845_s15 = smov 0   ;;  %s1847_s16 = smov 0   ;;  %s2111_s0 = inlined_call_operand.vmem [shape: bf16[2,17,24,512], index: 0, kind: input, shape index: {}]   ;;  %s2112_s1 = inlined_call_operand.vmem [shape: bf16[1,512,128], index: 1, kind: input, shape index: {}]   ;;  %s2113_s2 = inlined_call_operand.vmem [shape: f32[1,128], index: 2, kind: input, shape index: {}]   ;;  %s2114_s3 = inlined_call_operand.vmem [shape: f32[1,128], index: 3, kind: input, shape index: {}]   ;;  %s2115_s4 = inlined_call_operand.vmem [shape: bf16[2,16,16,128], index: 4, kind: output, shape index: {}]  }
   0x1   :  { %s1849_s17 = smov 0   ;;  %s1851_s18 = smov 0  }
   0x2   :  { %s1853_s19 = smov 0  }
   0x3 LB: > { %s23_s20 = sadd.s32 1, %s1810_s17  ;;  %s26_s21 = sadd.s32 1, %s1814_s18  ;;  %s1818_s19 = sphi %s1853_s19, %s14_s19   ;;  %s1814_s18 = sphi %s1851_s18, %s2119_s18   ;;  %s1810_s17 = sphi %s1849_s17, %s2118_s17   ;;  %s1806_s16 = sphi %s1847_s16, %s2117_s16   ;;  %s1802_s15 = sphi %s1845_s15, %s2116_s15  }
   0x4   : > { %p24_p0 = scmp.ge.s32.totalorder %s23_s20, 2  ;;  %p1288_p1 = scmp.ge.s32.totalorder %s1818_s19, 1 }
   0x5   : > { %p196_p2 = scmp.lt.s32.totalorder %s1818_s19, 5 }
   0x6   : > { %s2121_s20 = smov (%p24_p0, %s23_s20), 0  ;;  %s2123_s21 = smov (!%p24_p0, %s26_s21), %s1814_s18 }
   0x7   : > { %p197_p3 = pnand %p1288_p1, %p196_p2  ;;  %p28_p4 = scmp.ge.s32.totalorder %s2123_s21, 2 }
   0x8   : > { %s1907_s14 = sshll.u32 (!%p197_p3), %s1802_s15, 3  ;;  %p245_p5 = scmp.lt.s32.totalorder (!%p197_p3), %s1806_s16, 1 }
   0x9   : > { %s2125_s21 = smov (%p28_p4, %s2123_s21), 0  ;;  %200 = sbr.rel (%p197_p3) target bundleno = 343 (0x157), region = 36 }
   0xa   : > { %p247_p6 = scmp.lt.s32.totalorder (!%p197_p3), %s1907_s14, 16  ;;  %p264_p7 = scmp.lt.s32.totalorder (!%p197_p3), %s1907_s14, 15 }
   0xe   : > { %v1676_v0 = vld [vmem:[%s2112_s1 + $0x78] sm:$0xff]   ;;  %v1680_v4 = vld [vmem:[%s2112_s1 + $0x70] sm:$0xff]   ;;  %v1684_v8 = vld [vmem:[%s2112_s1 + $0x68] sm:$0xff]   ;;  %s2127_s16 = smov (!%p245_p5, %s1806_s16), 1 }
   0xf   : > { %v1677_v1 = vld [vmem:[%s2112_s1 + $0xf8] sm:$0xff]   ;;  %1458 = vmatprep.subr.bf16.mxu0 %v1676_v0  ;;  %v1681_v5 = vld [vmem:[%s2112_s1 + $0xf0] sm:$0xff]   ;;  %v1685_v9 = vld [vmem:[%s2112_s1 + $0xe8] sm:$0xff]   ;;  %s248_s9 = scalar_select %p247_p6, %s1907_s14, 16 }
  0x10   : > { %v1678_v2 = vld [vmem:[%s2112_s1 + $0x38] sm:$0xff]   ;;  %1546 = vmatprep.subr.bf16.mxu1 %v1677_v1  ;;  %v1682_v6 = vld [vmem:[%s2112_s1 + $0x30] sm:$0xff]   ;;  %v1686_v10 = vld [vmem:[%s2112_s1 + $0x28] sm:$0xff]   ;;  %s1635_s24 = smul.u32 204, %s2127_s16  ;;  %s2129_s14 = smov (!%p264_p7, %s1907_s14), 15 }
  0x11   : > { %v1679_v3 = vld [vmem:[%s2112_s1 + $0xb8] sm:$0xff]   ;;  %1459 = vmatpush3.bf16.msra.mxu0 %v1678_v2  ;;  %v1683_v7 = vld [vmem:[%s2112_s1 + $0xb0] sm:$0xff]   ;;  %v1687_v11 = vld [vmem:[%s2112_s1 + $0xa8] sm:$0xff]   ;;  %s1634_s27 = smul.u32 12, %s248_s9  ;;  %s1292_s11 = sshll.u32 %s2129_s14, 1 }
  0x12   : > { %1547 = vmatpush3.bf16.msra.mxu1 %v1679_v3  ;;  %1460 = vmatprep.subr.bf16.mxu0 %v1680_v4  ;;  %v1688_v12 = vld [vmem:[%s2112_s1 + $0x60] sm:$0xff]   ;;  %v1692_v16 = vld [vmem:[%s2112_s1 + $0x58] sm:$0xff]   ;;  %v1696_v20 = vld [vmem:[%s2112_s1 + $0x50] sm:$0xff]   ;;  %s1293_s12 = sshll.u32 %s2127_s16, 5 }
  0x13   : > { %1548 = vmatprep.subr.bf16.mxu1 %v1681_v5  ;;  %v1689_v13 = vld [vmem:[%s2112_s1 + $0xe0] sm:$0xff]   ;;  %v1693_v17 = vld [vmem:[%s2112_s1 + $0xd8] sm:$0xff]   ;;  %v1697_v21 = vld [vmem:[%s2112_s1 + $0xd0] sm:$0xff]   ;;  %s251_s9 = sadd.s32 %s1635_s24, %s1634_s27  ;;  %s268_s23 = sadd.s32 %s1293_s12, %s1292_s11 }
  0x14   : > { %v1690_v14 = vld [vmem:[%s2112_s1 + $0x20] sm:$0xff]   ;;  %v1694_v18 = vld [vmem:[%s2112_s1 + $0x18] sm:$0xff]   ;;  %v1698_v22 = vld [vmem:[%s2112_s1 + $0x10] sm:$0xff]   ;;  %s1290_s25 = sshll.u32 %s251_s9, 2  ;;  %s1294_s16 = sshll.u32 %s268_s23, 2 }
  0x15   : > { %1461 = vmatpush3.bf16.msra.mxu0 %v1682_v6  ;;  %v1691_v15 = vld [vmem:[%s2112_s1 + $0xa0] sm:$0xff]   ;;  %v1695_v19 = vld [vmem:[%s2112_s1 + $0x98] sm:$0xff]   ;;  %v1699_v23 = vld [vmem:[%s2112_s1 + $0x90] sm:$0xff]   ;;  %s1982_s6 = scalar_lea.vmem %s2111_s0, %s1290_s25  ;;  %s2058_s24 = scalar_lea.vmem %s2115_s4, %s1294_s16 }
  0x16   : > { %1549 = vmatpush3.bf16.msra.mxu1 %v1683_v7  ;;  %1462 = vmatprep.subr.bf16.mxu0 %v1684_v8  ;;  %v1700_v24 = vld [vmem:[%s2112_s1 + $0x48] sm:$0xff]   ;;  %v1704_v28 = vld [vmem:[%s2112_s1 + $0x40] sm:$0xff]  }
  0x17   : > { %1550 = vmatprep.subr.bf16.mxu1 %v1685_v9  ;;  %v1701_v25 = vld [vmem:[%s2112_s1 + $0xc8] sm:$0xff]   ;;  %v1705_v29 = vld [vmem:[%s2112_s1 + $0xc0] sm:$0xff]  }
  0x18   : > { %v1702_v26 = vld [vmem:[%s2112_s1 + $0x8] sm:$0xff]   ;;  %v1706_v30 = vld [vmem:[%s2112_s1] sm:$0xff]  }
  0x19   : > { %1463 = vmatpush3.bf16.msra.mxu0 %v1686_v10  ;;  %v1703_v27 = vld [vmem:[%s2112_s1 + $0x88] sm:$0xff]   ;;  %v1707_v31 = vld [vmem:[%s2112_s1 + $0x80] sm:$0xff]  }
  0x1a   : > { %1551 = vmatpush3.bf16.msra.mxu1 %v1687_v11  ;;  %1464 = vmatprep.subr.bf16.mxu0 %v1688_v12  ;;  %v1708_v32 = vld [vmem:[%s1982_s6] ss:$16 sps:$4 sm:$0xff]   ;;  %v1710_v33 = vld [vmem:[%s1982_s6 + $0x4] ss:$16 sps:$4 sm:$0xff]   ;;  %v1711_v34 = vld [vmem:[%s1982_s6 + $0x8] ss:$16 sps:$4 sm:$0xff]  }
  0x1b   : > { %1552 = vmatprep.subr.bf16.mxu1 %v1689_v13  ;;  %v1713_v35 = vld [vmem:[%s1982_s6 + $0xc] ss:$16 sps:$4 sm:$0xff]   ;;  %849 = vmatprep.mubr.bf16.mxu0 %v1710_v33  ;;  %v1714_v36 = vld [vmem:[%s1982_s6 + $0x24] ss:$16 sps:$4 sm:$0xff]   ;;  %v1718_v38 = vld [vmem:[%s1982_s6 + $0x20] ss:$16 sps:$4 sm:$0xff]  }
  0x1c   : > { %970 = vmatprep.mubr.bf16.mxu1 %v1713_v35  ;;  %v1716_v37 = vld [vmem:[%s1982_s6 + $0x2c] ss:$16 sps:$4 sm:$0xff]   ;;  %v1719_v39 = vld [vmem:[%s1982_s6 + $0x28] ss:$16 sps:$4 sm:$0xff]   ;;  %v1720_v40 = vld [vmem:[%s1982_s6 + $0x44] ss:$16 sps:$4 sm:$0xff]  }
  0x1d   : > { %1465 = vmatpush3.bf16.msra.mxu0 %v1690_v14  ;;  %v1722_v41 = vld [vmem:[%s1982_s6 + $0x4c] ss:$16 sps:$4 sm:$0xff]   ;;  %v1724_v42 = vld [vmem:[%s1982_s6 + $0x40] ss:$16 sps:$4 sm:$0xff]   ;;  %v1725_v43 = vld [vmem:[%s1982_s6 + $0x48] ss:$16 sps:$4 sm:$0xff]  }
  0x1e   : > { %1553 = vmatpush3.bf16.msra.mxu1 %v1691_v15  ;;  %1466 = vmatprep.subr.bf16.mxu0 %v1692_v16  ;;  %v1726_v44 = vld [vmem:[%s1982_s6 + $0x64] ss:$16 sps:$4 sm:$0xff]   ;;  %v1728_v45 = vld [vmem:[%s1982_s6 + $0x6c] ss:$16 sps:$4 sm:$0xff]   ;;  %v1730_v46 = vld [vmem:[%s1982_s6 + $0x60] ss:$16 sps:$4 sm:$0xff]  }
  0x1f   : > { %1554 = vmatprep.subr.bf16.mxu1 %v1693_v17  ;;  %v1731_v47 = vld [vmem:[%s1982_s6 + $0x68] ss:$16 sps:$4 sm:$0xff]   ;;  %v1732_v48 = vld [vmem:[%s1982_s6 + $0x84] ss:$16 sps:$4 sm:$0xff]   ;;  %v1734_v49 = vld [vmem:[%s1982_s6 + $0x8c] ss:$16 sps:$4 sm:$0xff]  }
  0x20   : > { %v1736_v50 = vld [vmem:[%s1982_s6 + $0x80] ss:$16 sps:$4 sm:$0xff]   ;;  %v1737_v51 = vld [vmem:[%s1982_s6 + $0x88] ss:$16 sps:$4 sm:$0xff]   ;;  %v1738_v52 = vld [vmem:[%s1982_s6 + $0xa4] ss:$16 sps:$4 sm:$0xff]  }
  0x21   : > { %1467 = vmatpush3.bf16.msra.mxu0 %v1694_v18  ;;  %v1740_v53 = vld [vmem:[%s1982_s6 + $0xac] ss:$16 sps:$4 sm:$0xff]   ;;  %v1742_v54 = vld [vmem:[%s1982_s6 + $0xa0] ss:$16 sps:$4 sm:$0xff]   ;;  %v1743_v55 = vld [vmem:[%s1982_s6 + $0xa8] ss:$16 sps:$4 sm:$0xff]  }
  0x22   : > { %1555 = vmatpush3.bf16.msra.mxu1 %v1695_v19  ;;  %1468 = vmatprep.subr.bf16.mxu0 %v1696_v20  ;;  %v1744_v56 = vld [vmem:[%s1982_s6 + $0xc4] ss:$16 sps:$4 sm:$0xff]   ;;  %v1746_v57 = vld [vmem:[%s1982_s6 + $0xcc] ss:$16 sps:$4 sm:$0xff]   ;;  %v1748_v58 = vld [vmem:[%s1982_s6 + $0xc0] ss:$16 sps:$4 sm:$0xff]  }
  0x23   : > { %1556 = vmatprep.subr.bf16.mxu1 %v1697_v21  ;;  %v1749_v59 = vld [vmem:[%s1982_s6 + $0xc8] ss:$16 sps:$4 sm:$0xff]   ;;  %v1750_v60 = vld [vmem:[%s1982_s6 + $0xe4] ss:$16 sps:$4 sm:$0xff]   ;;  %v1752_v61 = vld [vmem:[%s1982_s6 + $0xec] ss:$16 sps:$4 sm:$0xff]  }
  0x24   : > { %v1754_v62 = vld [vmem:[%s1982_s6 + $0xe0] ss:$16 sps:$4 sm:$0xff]   ;;  %v1755_v63 = vld [vmem:[%s1982_s6 + $0xe8] ss:$16 sps:$4 sm:$0xff]   ;;  %v1756_v0 = vld [vmem:[%s1982_s6 + $0x104] ss:$16 sps:$4 sm:$0xff]  }
  0x25   : > { %1469 = vmatpush3.bf16.msra.mxu0 %v1698_v22  ;;  %v1758_v1 = vld [vmem:[%s1982_s6 + $0x10c] ss:$16 sps:$4 sm:$0xff]   ;;  %v1760_v2 = vld [vmem:[%s1982_s6 + $0x100] ss:$16 sps:$4 sm:$0xff]   ;;  %v1761_v3 = vld [vmem:[%s1982_s6 + $0x108] ss:$16 sps:$4 sm:$0xff]  }
  0x26   : > { %1557 = vmatpush3.bf16.msra.mxu1 %v1699_v23  ;;  %1470 = vmatprep.subr.bf16.mxu0 %v1700_v24  ;;  %v1762_v4 = vld [vmem:[%s1982_s6 + $0x124] ss:$16 sps:$4 sm:$0xff]   ;;  %v1764_v5 = vld [vmem:[%s1982_s6 + $0x12c] ss:$16 sps:$4 sm:$0xff]   ;;  %v1766_v6 = vld [vmem:[%s1982_s6 + $0x120] ss:$16 sps:$4 sm:$0xff]  }
  0x27   : > { %1558 = vmatprep.subr.bf16.mxu1 %v1701_v25  ;;  %v1767_v7 = vld [vmem:[%s1982_s6 + $0x128] ss:$16 sps:$4 sm:$0xff]   ;;  %v1768_v8 = vld [vmem:[%s1982_s6 + $0x144] ss:$16 sps:$4 sm:$0xff]   ;;  %v1770_v9 = vld [vmem:[%s1982_s6 + $0x14c] ss:$16 sps:$4 sm:$0xff]  }
  0x28   : > { %v1772_v10 = vld [vmem:[%s1982_s6 + $0x140] ss:$16 sps:$4 sm:$0xff]   ;;  %v1773_v11 = vld [vmem:[%s1982_s6 + $0x148] ss:$16 sps:$4 sm:$0xff]   ;;  %v1774_v12 = vld [vmem:[%s1982_s6 + $0x164] ss:$16 sps:$4 sm:$0xff]  }
  0x29   : > { %1471 = vmatpush3.bf16.msra.mxu0 %v1702_v26  ;;  %v1776_v13 = vld [vmem:[%s1982_s6 + $0x16c] ss:$16 sps:$4 sm:$0xff]   ;;  %v1778_v14 = vld [vmem:[%s1982_s6 + $0x160] ss:$16 sps:$4 sm:$0xff]   ;;  %v1779_v15 = vld [vmem:[%s1982_s6 + $0x168] ss:$16 sps:$4 sm:$0xff]  }
  0x2a   : > { %1559 = vmatpush3.bf16.msra.mxu1 %v1703_v27  ;;  %1472 = vmatprep.subr.bf16.mxu0 %v1704_v28  ;;  %v2044_v26 = vld [vmem:[%s2113_s2] ss:$0 sm:$0xff] }
  0x2b   : > { %1560 = vmatprep.subr.bf16.mxu1 %v1705_v29  ;;  %v2050_v35 = vld [vmem:[%s2114_s3] ss:$0 sm:$0xff] }
  0x2d   : > { %1473 = vmatpush3.bf16.msra.mxu0 %v1706_v30 }
  0x2e   : > { %1561 = vmatpush3.bf16.msra.mxu1 %v1707_v31 }
  0x30   : > { %850 = vmatmul.mubr.bf16.vlgmr.msra.gmra.mxu0 %v1708_v32 }
  0x31   : > { %971 = vmatmul.mubr.bf16.vlgmr.msra.gmra.mxu1 %v1711_v34  ;;  %857 = vmatprep.mubr.bf16.mxu0 %v1714_v36 }
  0x32   : > { %978 = vmatprep.mubr.bf16.mxu1 %v1716_v37 }
  0x38   : > { %858 = vmatmul.mubr.bf16.gmra.mxu0 %v1718_v38 }
  0x39   : > { %979 = vmatmul.mubr.bf16.gmra.mxu1 %v1719_v39  ;;  %864 = vmatprep.mubr.bf16.mxu0 %v1720_v40 }
  0x3a   : > { %985 = vmatprep.mubr.bf16.mxu1 %v1722_v41 }
  0x40   : > { %865 = vmatmul.mubr.bf16.gmra.mxu0 %v1724_v42 }
  0x41   : > { %986 = vmatmul.mubr.bf16.gmra.mxu1 %v1725_v43  ;;  %871 = vmatprep.mubr.bf16.mxu0 %v1726_v44 }
  0x42   : > { %992 = vmatprep.mubr.bf16.mxu1 %v1728_v45 }
  0x48   : > { %872 = vmatmul.mubr.bf16.gmra.mxu0 %v1730_v46 }
  0x49   : > { %993 = vmatmul.mubr.bf16.gmra.mxu1 %v1731_v47  ;;  %879 = vmatprep.mubr.bf16.mxu0 %v1732_v48 }
  0x4a   : > { %1000 = vmatprep.mubr.bf16.mxu1 %v1734_v49 }
  0x50   : > { %880 = vmatmul.mubr.bf16.gmra.mxu0 %v1736_v50 }
  0x51   : > { %1001 = vmatmul.mubr.bf16.gmra.mxu1 %v1737_v51  ;;  %886 = vmatprep.mubr.bf16.mxu0 %v1738_v52 }
  0x52   : > { %1007 = vmatprep.mubr.bf16.mxu1 %v1740_v53 }
  0x58   : > { %887 = vmatmul.mubr.bf16.gmra.mxu0 %v1742_v54 }
  0x59   : > { %1008 = vmatmul.mubr.bf16.gmra.mxu1 %v1743_v55  ;;  %893 = vmatprep.mubr.bf16.mxu0 %v1744_v56 }
  0x5a   : > { %1014 = vmatprep.mubr.bf16.mxu1 %v1746_v57 }
  0x60   : > { %894 = vmatmul.mubr.bf16.gmra.mxu0 %v1748_v58 }
  0x61   : > { %1015 = vmatmul.mubr.bf16.gmra.mxu1 %v1749_v59  ;;  %901 = vmatprep.mubr.bf16.mxu0 %v1750_v60 }
  0x62   : > { %1022 = vmatprep.mubr.bf16.mxu1 %v1752_v61 }
  0x68   : > { %902 = vmatmul.mubr.bf16.gmra.mxu0 %v1754_v62 }
  0x69   : > { %1023 = vmatmul.mubr.bf16.gmra.mxu1 %v1755_v63  ;;  %908 = vmatprep.mubr.bf16.mxu0 %v1756_v0 }
  0x6a   : > { %1029 = vmatprep.mubr.bf16.mxu1 %v1758_v1 }
  0x70   : > { %909 = vmatmul.mubr.bf16.gmra.mxu0 %v1760_v2 }
  0x71   : > { %1030 = vmatmul.mubr.bf16.gmra.mxu1 %v1761_v3  ;;  %915 = vmatprep.mubr.bf16.mxu0 %v1762_v4 }
  0x72   : > { %1036 = vmatprep.mubr.bf16.mxu1 %v1764_v5 }
  0x78   : > { %916 = vmatmul.mubr.bf16.gmra.mxu0 %v1766_v6 }
  0x79   : > { %1037 = vmatmul.mubr.bf16.gmra.mxu1 %v1767_v7  ;;  %923 = vmatprep.mubr.bf16.mxu0 %v1768_v8 }
  0x7a   : > { %1044 = vmatprep.mubr.bf16.mxu1 %v1770_v9 }
  0x80   : > { %924 = vmatmul.mubr.bf16.gmra.mxu0 %v1772_v10 }
  0x81   : > { %1045 = vmatmul.mubr.bf16.gmra.mxu1 %v1773_v11  ;;  %930 = vmatprep.mubr.bf16.mxu0 %v1774_v12 }
  0x82   : > { %1051 = vmatprep.mubr.bf16.mxu1 %v1776_v13 }
  0x88   : > { %931 = vmatmul.mubr.bf16.gmra.mxu0 %v1778_v14 }
  0x89   : > { %1052 = vmatmul.mubr.bf16.gmra.mxu1 %v1779_v15 }
  0xf0   : > { %v1474_v16 = vpop.f32.mrf.mxu0 }
  0xf1   : > { %v1562_v17 = vpop.f32.mrf.mxu1 }
  0xf2   : > { %v1475_v18 = vpop.f32.mrf.mxu0 }
  0xf3   : > { %v1476_v19 = vadd.f32 %v1475_v18, %v1474_v16  ;;  %v1563_v20 = vpop.f32.mrf.mxu1 }
  0xf4   : > { %v1564_v21 = vadd.f32 %v1563_v20, %v1562_v17  ;;  %v1477_v22 = vpop.f32.mrf.mxu0 }
  0xf5   : > { %v1565_v23 = vpop.f32.mrf.mxu1 }
  0xf6   : > { %v973_v24 = vadd.f32 %v1564_v21, %v1476_v19  ;;  %v1478_v25 = vpop.f32.mrf.mxu0 }
  0xf7   : > { %v1479_v27 = vadd.f32 %v1478_v25, %v1477_v22  ;;  %v1566_v28 = vpop.f32.mrf.mxu1 }
  0xf8   : > { %v1567_v29 = vadd.f32 %v1566_v28, %v1565_v23  ;;  %v1480_v30 = vpop.f32.mrf.mxu0  ;;  %v1066_v32 = vmul.f32 %v2044_v26, %v973_v24 }
  0xf9   : > { %v1568_v31 = vpop.f32.mrf.mxu1 }
  0xfa   : > { %v976_v33 = vadd.f32 %v1567_v29, %v1479_v27  ;;  %v1481_v34 = vpop.f32.mrf.mxu0  ;;  %v1089_v40 = vadd.f32 %v2050_v35, %v1066_v32 }
  0xfb   : > { %v1569_v36 = vpop.f32.mrf.mxu1 }
  0xfc   : > { %v1067_v37 = vmul.f32 %v2044_v26, %v976_v33  ;;  %v1483_v38 = vpop.f32.mrf.mxu0 }
  0xfd   : > { %v1571_v39 = vpop.f32.mrf.mxu1 }
  0xfe   : > { %v1090_v41 = vadd.f32 %v2050_v35, %v1067_v37  ;;  %v1484_v42 = vpop.f32.mrf.mxu0 }
  0xff   : > { %v1485_v43 = vadd.f32 %v1484_v42, %v1483_v38  ;;  %v1572_v44 = vpop.f32.mrf.mxu1 }
 0x100   : > { %v1414_v45 = vpack.c.bf16 %v1090_v41, %v1089_v40  ;;  %v1573_v46 = vadd.f32 %v1572_v44, %v1571_v39  ;;  %v1486_v47 = vpop.f32.mrf.mxu0 }
 0x101   : > { %v1574_v48 = vpop.f32.mrf.mxu1 }
 0x102   : > { %1415 = vst [vmem:[%s2058_s24] sm:$0xff] %v1414_v45   ;;  %v983_v49 = vadd.f32 %v1573_v46, %v1485_v43  ;;  %v1487_v50 = vpop.f32.mrf.mxu0 }
 0x103   : > { %v1488_v51 = vadd.f32 %v1487_v50, %v1486_v47  ;;  %v1575_v52 = vpop.f32.mrf.mxu1 }
 0x104   : > { %v1576_v53 = vadd.f32 %v1575_v52, %v1574_v48  ;;  %v1489_v54 = vpop.f32.mrf.mxu0  ;;  %v1068_v56 = vmul.f32 %v2044_v26, %v983_v49 }
 0x105   : > { %v1577_v55 = vpop.f32.mrf.mxu1 }
 0x106   : > { %v988_v57 = vadd.f32 %v1576_v53, %v1488_v51  ;;  %v1490_v58 = vpop.f32.mrf.mxu0  ;;  %v1091_v63 = vadd.f32 %v2050_v35, %v1068_v56 }
 0x107   : > { %v1578_v59 = vpop.f32.mrf.mxu1 }
 0x108   : > { %v1069_v60 = vmul.f32 %v2044_v26, %v988_v57  ;;  %v1492_v61 = vpop.f32.mrf.mxu0 }
 0x109   : > { %v1580_v62 = vpop.f32.mrf.mxu1 }
 0x10a   : > { %v1092_v0 = vadd.f32 %v2050_v35, %v1069_v60  ;;  %v1493_v1 = vpop.f32.mrf.mxu0 }
 0x10b   : > { %v1494_v2 = vadd.f32 %v1493_v1, %v1492_v61  ;;  %v1581_v3 = vpop.f32.mrf.mxu1 }
 0x10c   : > { %v1419_v4 = vpack.c.bf16 %v1092_v0, %v1091_v63  ;;  %v1582_v5 = vadd.f32 %v1581_v3, %v1580_v62  ;;  %v1495_v6 = vpop.f32.mrf.mxu0 }
 0x10d   : > { %v1583_v7 = vpop.f32.mrf.mxu1 }
 0x10e   : > { %1451 = vst [vmem:[%s2058_s24 + $0x8] sm:$0xff] %v1419_v4   ;;  %v995_v8 = vadd.f32 %v1582_v5, %v1494_v2  ;;  %v1496_v9 = vpop.f32.mrf.mxu0 }
 0x10f   : > { %v1497_v10 = vadd.f32 %v1496_v9, %v1495_v6  ;;  %v1584_v11 = vpop.f32.mrf.mxu1 }
 0x110   : > { %v1585_v12 = vadd.f32 %v1584_v11, %v1583_v7  ;;  %v1498_v13 = vpop.f32.mrf.mxu0  ;;  %v1070_v15 = vmul.f32 %v2044_v26, %v995_v8 }
 0x111   : > { %v1586_v14 = vpop.f32.mrf.mxu1 }
 0x112   : > { %v998_v16 = vadd.f32 %v1585_v12, %v1497_v10  ;;  %v1499_v17 = vpop.f32.mrf.mxu0  ;;  %v1093_v22 = vadd.f32 %v2050_v35, %v1070_v15 }
 0x113   : > { %v1587_v18 = vpop.f32.mrf.mxu1 }
 0x114   : > { %v1071_v19 = vmul.f32 %v2044_v26, %v998_v16  ;;  %v1501_v20 = vpop.f32.mrf.mxu0 }
 0x115   : > { %v1589_v21 = vpop.f32.mrf.mxu1 }
 0x116   : > { %v1094_v23 = vadd.f32 %v2050_v35, %v1071_v19  ;;  %v1502_v24 = vpop.f32.mrf.mxu0 }
 0x117   : > { %v1503_v25 = vadd.f32 %v1502_v24, %v1501_v20  ;;  %v1590_v27 = vpop.f32.mrf.mxu1 }
 0x118   : > { %v1424_v28 = vpack.c.bf16 %v1094_v23, %v1093_v22  ;;  %v1591_v29 = vadd.f32 %v1590_v27, %v1589_v21  ;;  %v1504_v30 = vpop.f32.mrf.mxu0 }
 0x119   : > { %v1592_v31 = vpop.f32.mrf.mxu1 }
 0x11a   : > { %1452 = vst [vmem:[%s2058_s24 + $0x10] sm:$0xff] %v1424_v28   ;;  %v1005_v32 = vadd.f32 %v1591_v29, %v1503_v25  ;;  %v1505_v33 = vpop.f32.mrf.mxu0 }
 0x11b   : > { %v1506_v34 = vadd.f32 %v1505_v33, %v1504_v30  ;;  %v1593_v36 = vpop.f32.mrf.mxu1 }
 0x11c   : > { %v1594_v37 = vadd.f32 %v1593_v36, %v1592_v31  ;;  %v1507_v38 = vpop.f32.mrf.mxu0  ;;  %v1072_v40 = vmul.f32 %v2044_v26, %v1005_v32 }
 0x11d   : > { %v1595_v39 = vpop.f32.mrf.mxu1 }
 0x11e   : > { %v1010_v41 = vadd.f32 %v1594_v37, %v1506_v34  ;;  %v1508_v42 = vpop.f32.mrf.mxu0  ;;  %v1095_v47 = vadd.f32 %v2050_v35, %v1072_v40 }
 0x11f   : > { %v1596_v43 = vpop.f32.mrf.mxu1 }
 0x120   : > { %v1073_v44 = vmul.f32 %v2044_v26, %v1010_v41  ;;  %v1510_v45 = vpop.f32.mrf.mxu0 }
 0x121   : > { %v1598_v46 = vpop.f32.mrf.mxu1 }
 0x122   : > { %v1096_v48 = vadd.f32 %v2050_v35, %v1073_v44  ;;  %v1511_v49 = vpop.f32.mrf.mxu0 }
 0x123   : > { %v1512_v50 = vadd.f32 %v1511_v49, %v1510_v45  ;;  %v1599_v51 = vpop.f32.mrf.mxu1 }
 0x124   : > { %v1429_v52 = vpack.c.bf16 %v1096_v48, %v1095_v47  ;;  %v1600_v53 = vadd.f32 %v1599_v51, %v1598_v46  ;;  %v1513_v54 = vpop.f32.mrf.mxu0 }
 0x125   : > { %v1601_v55 = vpop.f32.mrf.mxu1 }
 0x126   : > { %1453 = vst [vmem:[%s2058_s24 + $0x18] sm:$0xff] %v1429_v52   ;;  %v1017_v56 = vadd.f32 %v1600_v53, %v1512_v50  ;;  %v1514_v57 = vpop.f32.mrf.mxu0 }
 0x127   : > { %v1515_v58 = vadd.f32 %v1514_v57, %v1513_v54  ;;  %v1602_v59 = vpop.f32.mrf.mxu1 }
 0x128   : > { %v1603_v60 = vadd.f32 %v1602_v59, %v1601_v55  ;;  %v1516_v61 = vpop.f32.mrf.mxu0  ;;  %v1074_v63 = vmul.f32 %v2044_v26, %v1017_v56 }
 0x129   : > { %v1604_v62 = vpop.f32.mrf.mxu1 }
 0x12a   : > { %v1020_v0 = vadd.f32 %v1603_v60, %v1515_v58  ;;  %v1517_v1 = vpop.f32.mrf.mxu0  ;;  %v1097_v6 = vadd.f32 %v2050_v35, %v1074_v63 }
 0x12b   : > { %v1605_v2 = vpop.f32.mrf.mxu1 }
 0x12c   : > { %v1075_v3 = vmul.f32 %v2044_v26, %v1020_v0  ;;  %v1519_v4 = vpop.f32.mrf.mxu0 }
 0x12d   : > { %v1607_v5 = vpop.f32.mrf.mxu1 }
 0x12e   : > { %v1098_v7 = vadd.f32 %v2050_v35, %v1075_v3  ;;  %v1520_v8 = vpop.f32.mrf.mxu0 }
 0x12f   : > { %v1521_v9 = vadd.f32 %v1520_v8, %v1519_v4  ;;  %v1608_v10 = vpop.f32.mrf.mxu1 }
 0x130   : > { %v1434_v11 = vpack.c.bf16 %v1098_v7, %v1097_v6  ;;  %v1609_v12 = vadd.f32 %v1608_v10, %v1607_v5  ;;  %v1522_v13 = vpop.f32.mrf.mxu0 }
 0x131   : > { %v1610_v14 = vpop.f32.mrf.mxu1 }
 0x132   : > { %1454 = vst [vmem:[%s2058_s24 + $0x20] sm:$0xff] %v1434_v11   ;;  %v1027_v15 = vadd.f32 %v1609_v12, %v1521_v9  ;;  %v1523_v16 = vpop.f32.mrf.mxu0 }
 0x133   : > { %v1524_v17 = vadd.f32 %v1523_v16, %v1522_v13  ;;  %v1611_v18 = vpop.f32.mrf.mxu1 }
 0x134   : > { %v1612_v19 = vadd.f32 %v1611_v18, %v1610_v14  ;;  %v1525_v20 = vpop.f32.mrf.mxu0  ;;  %v1076_v22 = vmul.f32 %v2044_v26, %v1027_v15 }
 0x135   : > { %v1613_v21 = vpop.f32.mrf.mxu1 }
 0x136   : > { %v1032_v23 = vadd.f32 %v1612_v19, %v1524_v17  ;;  %v1526_v24 = vpop.f32.mrf.mxu0  ;;  %v1099_v30 = vadd.f32 %v2050_v35, %v1076_v22 }
 0x137   : > { %v1614_v25 = vpop.f32.mrf.mxu1 }
 0x138   : > { %v1077_v27 = vmul.f32 %v2044_v26, %v1032_v23  ;;  %v1528_v28 = vpop.f32.mrf.mxu0 }
 0x139   : > { %v1616_v29 = vpop.f32.mrf.mxu1 }
 0x13a   : > { %v1100_v31 = vadd.f32 %v2050_v35, %v1077_v27  ;;  %v1529_v32 = vpop.f32.mrf.mxu0 }
 0x13b   : > { %v1530_v33 = vadd.f32 %v1529_v32, %v1528_v28  ;;  %v1617_v34 = vpop.f32.mrf.mxu1 }
 0x13c   : > { %v1439_v36 = vpack.c.bf16 %v1100_v31, %v1099_v30  ;;  %v1618_v37 = vadd.f32 %v1617_v34, %v1616_v29  ;;  %v1531_v38 = vpop.f32.mrf.mxu0 }
 0x13d   : > { %v1619_v39 = vpop.f32.mrf.mxu1 }
 0x13e   : > { %1455 = vst [vmem:[%s2058_s24 + $0x28] sm:$0xff] %v1439_v36   ;;  %v1039_v40 = vadd.f32 %v1618_v37, %v1530_v33  ;;  %v1532_v41 = vpop.f32.mrf.mxu0 }
 0x13f   : > { %v1533_v42 = vadd.f32 %v1532_v41, %v1531_v38  ;;  %v1620_v43 = vpop.f32.mrf.mxu1 }
 0x140   : > { %v1621_v44 = vadd.f32 %v1620_v43, %v1619_v39  ;;  %v1534_v45 = vpop.f32.mrf.mxu0  ;;  %v1078_v47 = vmul.f32 %v2044_v26, %v1039_v40 }
 0x141   : > { %v1622_v46 = vpop.f32.mrf.mxu1 }
 0x142   : > { %v1042_v48 = vadd.f32 %v1621_v44, %v1533_v42  ;;  %v1535_v49 = vpop.f32.mrf.mxu0  ;;  %v1101_v54 = vadd.f32 %v2050_v35, %v1078_v47 }
 0x143   : > { %v1623_v50 = vpop.f32.mrf.mxu1 }
 0x144   : > { %v1079_v51 = vmul.f32 %v2044_v26, %v1042_v48  ;;  %v1537_v52 = vpop.f32.mrf.mxu0 }
 0x145   : > { %v1625_v53 = vpop.f32.mrf.mxu1 }
 0x146   : > { %v1102_v55 = vadd.f32 %v2050_v35, %v1079_v51  ;;  %v1538_v56 = vpop.f32.mrf.mxu0 }
 0x147   : > { %v1539_v57 = vadd.f32 %v1538_v56, %v1537_v52  ;;  %v1626_v58 = vpop.f32.mrf.mxu1 }
 0x148   : > { %v1444_v59 = vpack.c.bf16 %v1102_v55, %v1101_v54  ;;  %v1627_v60 = vadd.f32 %v1626_v58, %v1625_v53  ;;  %v1540_v61 = vpop.f32.mrf.mxu0 }
 0x149   : > { %v1628_v62 = vpop.f32.mrf.mxu1 }
 0x14a   : > { %1456 = vst [vmem:[%s2058_s24 + $0x30] sm:$0xff] %v1444_v59   ;;  %v1049_v63 = vadd.f32 %v1627_v60, %v1539_v57  ;;  %v1541_v0 = vpop.f32.mrf.mxu0 }
 0x14b   : > { %v1542_v1 = vadd.f32 %v1541_v0, %v1540_v61  ;;  %v1629_v2 = vpop.f32.mrf.mxu1 }
 0x14c   : > { %v1630_v3 = vadd.f32 %v1629_v2, %v1628_v62  ;;  %v1543_v4 = vpop.f32.mrf.mxu0  ;;  %v1080_v6 = vmul.f32 %v2044_v26, %v1049_v63 }
 0x14d   : > { %v1631_v5 = vpop.f32.mrf.mxu1 }
 0x14e   : > { %v1054_v7 = vadd.f32 %v1630_v3, %v1542_v1  ;;  %v1544_v8 = vpop.f32.mrf.mxu0  ;;  %v1103_v11 = vadd.f32 %v2050_v35, %v1080_v6 }
 0x14f   : > { %v1632_v9 = vpop.f32.mrf.mxu1 }
 0x150   : > { %v1081_v10 = vmul.f32 %v2044_v26, %v1054_v7 }
 0x152   : > { %v1104_v12 = vadd.f32 %v2050_v35, %v1081_v10 }
 0x154   : > { %v1449_v13 = vpack.c.bf16 %v1104_v12, %v1103_v11 }
 0x156   : > { %1457 = vst [vmem:[%s2058_s24 + $0x38] sm:$0xff] %v1449_v13  }
 0x157 PF: > { %s14_s19 = sadd.s32 1, %s1818_s19   ;;  %s2116_s15 = smov %s1810_s17 }
 0x158   : > { %p11_p8 = scmp.ge.s32.totalorder %s14_s19, 6   ;;  %s2117_s16 = smov %s1814_s18 }
 0x159   : > { %s2118_s17 = smov %s2121_s20  ;;  %s2119_s18 = smov %s2125_s21 }
 0x15a   :  { %13 = sbr.rel (!%p11_p8) target bundleno = 3 (0x3), region = 66 }

// kernel: _lambda_.7
= control target key start
LH: loop header
LB: loop body
LE: loop exit
PB: predicated region body
PF: predicated region fallthrough
CT: control target
= control target key end

     0   :  { %s4665_s18 = smov 0   ;;  %s4667_s19 = smov 0   ;;  %s5955_s0 = inlined_call_operand.vmem [shape: bf16[2,17,24,512], index: 0, kind: input, shape index: {}, may-alias: {0,1}]   ;;  %s5956_s1 = inlined_call_operand.vmem [shape: bf16[2,17,24,512], index: 1, kind: input, shape index: {}, may-alias: {0,1}]   ;;  %s5957_s2 = inlined_call_operand.vmem [shape: bf16[4,512,128], index: 2, kind: input, shape index: {}]   ;;  %s5958_s3 = inlined_call_operand.vmem [shape: f32[1,128], index: 3, kind: input, shape index: {}]   ;;  %s5959_s4 = inlined_call_operand.vmem [shape: f32[1,128], index: 4, kind: input, shape index: {}]   ;;  %s5960_s5 = inlined_call_operand.vmem [shape: bf16[2,16,16,128], index: 5, kind: output, shape index: {}]  }
   0x1   :  { %s4669_s20 = smov 0   ;;  %s4671_s21 = smov 0  }
   0x2   :  { %s4673_s22 = smov 0  }
   0x3 LB: > { %s24_s23 = sadd.s32 1, %s4625_s20  ;;  %s27_s24 = sadd.s32 1, %s4629_s21  ;;  %s4633_s22 = sphi %s4673_s22, %s15_s22   ;;  %s4629_s21 = sphi %s4671_s21, %s6139_s21   ;;  %s4625_s20 = sphi %s4669_s20, %s6138_s20   ;;  %s4621_s19 = sphi %s4667_s19, %s6137_s19   ;;  %s4617_s18 = sphi %s4665_s18, %s6136_s18  }
   0x4   : > { %p25_p0 = scmp.ge.s32.totalorder %s24_s23, 2  ;;  %p3110_p1 = scmp.ge.s32.totalorder %s4633_s22, 1 }
   0x5   : > { %p245_p2 = scmp.lt.s32.totalorder %s4633_s22, 5 }
   0x6   : > { %s6141_s23 = smov (%p25_p0, %s24_s23), 0  ;;  %s6143_s24 = smov (!%p25_p0, %s27_s24), %s4629_s21 }
   0x7   : > { %p246_p3 = pnand %p3110_p1, %p245_p2  ;;  %p29_p4 = scmp.ge.s32.totalorder %s6143_s24, 2 }
   0x9   : > { %s6145_s24 = smov (%p29_p4, %s6143_s24), 0  ;;  %249 = sbr.rel (%p246_p3) target bundleno = 643 (0x283), region = 40 }
   0xe   : > { %v4371_v0 = vld [vmem:[%s5957_s2 + $0x278] sm:$0xff]   ;;  %v4375_v4 = vld [vmem:[%s5957_s2 + $0x270] sm:$0xff]   ;;  %v4379_v8 = vld [vmem:[%s5957_s2 + $0x268] sm:$0xff]   ;;  %s4727_s25 = sshll.u32 %s4617_s18, 3  ;;  %p307_p5 = scmp.lt.s32.totalorder %s4621_s19, 1 }
   0xf   : > { %v4372_v1 = vld [vmem:[%s5957_s2 + $0x2f8] sm:$0xff]   ;;  %3624 = vmatprep.subr.bf16.mxu0 %v4371_v0  ;;  %v4376_v5 = vld [vmem:[%s5957_s2 + $0x2f0] sm:$0xff]   ;;  %v4380_v9 = vld [vmem:[%s5957_s2 + $0x2e8] sm:$0xff]   ;;  %p309_p6 = scmp.lt.s32.totalorder %s4727_s25, 16  ;;  %s3560_s27 = sadd.s32 8, %s4727_s25 }
  0x10   : > { %v4373_v2 = vld [vmem:[%s5957_s2 + $0x238] sm:$0xff]   ;;  %3712 = vmatprep.subr.bf16.mxu1 %v4372_v1  ;;  %v4377_v6 = vld [vmem:[%s5957_s2 + $0x230] sm:$0xff]   ;;  %v4381_v10 = vld [vmem:[%s5957_s2 + $0x228] sm:$0xff]   ;;  %s6147_s19 = smov (!%p307_p5, %s4621_s19), 1  ;;  %p5024_p7 = scmp.lt.s32.totalorder %s3560_s27, 16 }
  0x11   : > { %v4374_v3 = vld [vmem:[%s5957_s2 + $0x2b8] sm:$0xff]   ;;  %3625 = vmatpush3.bf16.msra.mxu0 %v4373_v2  ;;  %v4378_v7 = vld [vmem:[%s5957_s2 + $0x2b0] sm:$0xff]   ;;  %v4382_v11 = vld [vmem:[%s5957_s2 + $0x2a8] sm:$0xff]   ;;  %s310_s14 = scalar_select %p309_p6, %s4727_s25, 16 }
  0x12   : > { %3713 = vmatpush3.bf16.msra.mxu1 %v4374_v3  ;;  %3626 = vmatprep.subr.bf16.mxu0 %v4375_v4  ;;  %v4383_v12 = vld [vmem:[%s5957_s2 + $0x260] sm:$0xff]   ;;  %v4387_v16 = vld [vmem:[%s5957_s2 + $0x258] sm:$0xff]   ;;  %s4329_s29 = smul.u32 204, %s6147_s19  ;;  %v4391_v20 = vld [vmem:[%s5957_s2 + $0x250] sm:$0xff]   ;;  %s6149_s27 = smov (!%p5024_p7, %s3560_s27), 16 }
  0x13   : > { %3714 = vmatprep.subr.bf16.mxu1 %v4376_v5  ;;  %v4384_v13 = vld [vmem:[%s5957_s2 + $0x2e0] sm:$0xff]   ;;  %v4388_v17 = vld [vmem:[%s5957_s2 + $0x2d8] sm:$0xff]   ;;  %s4328_s18 = smul.u32 12, %s310_s14  ;;  %v4392_v21 = vld [vmem:[%s5957_s2 + $0x2d0] sm:$0xff]   ;;  %p339_p8 = scmp.lt.s32.totalorder %s4727_s25, 15 }
  0x14   : > { %v4385_v14 = vld [vmem:[%s5957_s2 + $0x220] sm:$0xff]   ;;  %v4389_v18 = vld [vmem:[%s5957_s2 + $0x218] sm:$0xff]   ;;  %v4393_v22 = vld [vmem:[%s5957_s2 + $0x210] sm:$0xff]   ;;  %s4330_s28 = smul.u32 12, %s6149_s27 }
  0x15   : > { %3627 = vmatpush3.bf16.msra.mxu0 %v4377_v6  ;;  %v4386_v15 = vld [vmem:[%s5957_s2 + $0x2a0] sm:$0xff]   ;;  %v4390_v19 = vld [vmem:[%s5957_s2 + $0x298] sm:$0xff]   ;;  %v4394_v23 = vld [vmem:[%s5957_s2 + $0x290] sm:$0xff]   ;;  %s313_s14 = sadd.s32 %s4329_s29, %s4328_s18  ;;  %s6151_s25 = smov (!%p339_p8, %s4727_s25), 15 }
  0x16   : > { %3715 = vmatpush3.bf16.msra.mxu1 %v4378_v7  ;;  %3628 = vmatprep.subr.bf16.mxu0 %v4379_v8  ;;  %v4395_v24 = vld [vmem:[%s5957_s2 + $0x248] sm:$0xff]   ;;  %s3112_s6 = sshll.u32 %s313_s14, 2  ;;  %v4399_v28 = vld [vmem:[%s5957_s2 + $0x240] sm:$0xff]   ;;  %v4407_v40 = vld [vmem:[%s5957_s2 + $0x78] sm:$0xff]   ;;  %s331_s8 = sadd.s32 %s4330_s28, %s4329_s29 }
  0x17   : > { %3716 = vmatprep.subr.bf16.mxu1 %v4380_v9  ;;  %v4396_v25 = vld [vmem:[%s5957_s2 + $0x2c8] sm:$0xff]   ;;  %v4400_v29 = vld [vmem:[%s5957_s2 + $0x2c0] sm:$0xff]   ;;  %s4804_s15 = scalar_lea.vmem %s5955_s0, %s3112_s6  ;;  %v4408_v41 = vld [vmem:[%s5957_s2 + $0x38] sm:$0xff]   ;;  %s3114_s13 = sshll.u32 %s331_s8, 2 }
  0x18   : > { %v4397_v26 = vld [vmem:[%s5957_s2 + $0x208] sm:$0xff]   ;;  %v4401_v30 = vld [vmem:[%s5957_s2 + $0x200] sm:$0xff]   ;;  %v4813_v32 = vld [vmem:[%s4804_s15 + $0x30] sm:$0xff]  ;;  %s5187_s28 = scalar_lea.vmem %s5956_s1, %s3114_s13  ;;  %s3116_s12 = sshll.u32 %s6151_s25, 1 }
  0x19   : > { %3629 = vmatpush3.bf16.msra.mxu0 %v4381_v10  ;;  %v4398_v27 = vld [vmem:[%s5957_s2 + $0x288] sm:$0xff]   ;;  %v4402_v31 = vld [vmem:[%s5957_s2 + $0x280] sm:$0xff]   ;;  %v4817_v34 = vld [vmem:[%s4804_s15 + $0x38] sm:$0xff]  ;;  %s3117_s13 = sshll.u32 %s6147_s19, 5 }
  0x1a   : > { %3717 = vmatpush3.bf16.msra.mxu1 %v4382_v11  ;;  %3630 = vmatprep.subr.bf16.mxu0 %v4383_v12  ;;  %v356_v33 = vld [vmem:[%s4804_s15 + $0x40] sm:$0xff]  ;;  %v357_v36 = vld [vmem:[%s4804_s15 + $0x48] sm:$0xff]  ;;  %v4409_v42 = vld [vmem:[%s5957_s2 + $0xf8] sm:$0xff]   ;;  %s343_s17 = sadd.s32 %s3117_s13, %s3116_s12 }
  0x1b   : > { %3718 = vmatprep.subr.bf16.mxu1 %v4384_v13  ;;  %v4820_v35 = vcombine.high %v4813_v32, %v356_v33  ;;  %v4824_v37 = vcombine.low %v4813_v32, %v356_v33  ;;  %v4827_v38 = vcombine.high %v4817_v34, %v357_v36  ;;  %v4830_v39 = vcombine.low %v4817_v34, %v357_v36  ;;  %v4410_v43 = vld [vmem:[%s5957_s2 + $0xb8] sm:$0xff]   ;;  %v358_v44 = vld [vmem:[%s4804_s15 + $0x50] sm:$0xff]  ;;  %v360_v45 = vld [vmem:[%s4804_s15 + $0x60] sm:$0xff]  ;;  %s3118_s19 = sshll.u32 %s343_s17, 2 }
  0x1c   : > { %v4850_v46 = vcombine.high %v358_v44, %v360_v45  ;;  %v359_v47 = vld [vmem:[%s4804_s15 + $0x58] sm:$0xff]  ;;  %v361_v48 = vld [vmem:[%s4804_s15 + $0x68] sm:$0xff]  ;;  %v4854_v49 = vcombine.high %v356_v33, %v358_v44  ;;  %v4415_v51 = vld [vmem:[%s5957_s2 + $0x70] sm:$0xff]   ;;  %v4863_v53 = vcombine.low %v356_v33, %v358_v44  ;;  %v4866_v54 = vcombine.low %v358_v44, %v360_v45 }
  0x1d   : > { %3631 = vmatpush3.bf16.msra.mxu0 %v4385_v14  ;;  %6019 = vst [vmem:[#allocation2_spill] sm:$0xff] %v4820_v35  ;;  %6020 = vst [vmem:[#allocation3_spill] sm:$0xff] %v4824_v37  ;;  %995 = vmatprep.mubr.bf16.mxu0 %v4820_v35  ;;  %v4856_v50 = vcombine.high %v359_v47, %v361_v48  ;;  %v4861_v52 = vcombine.high %v357_v36, %v359_v47  ;;  %v4416_v55 = vld [vmem:[%s5957_s2 + $0x30] sm:$0xff]   ;;  %v364_v60 = vld [vmem:[%s4804_s15 + $0x80] sm:$0xff] }
  0x1e   : > { %3719 = vmatpush3.bf16.msra.mxu1 %v4386_v15  ;;  %3632 = vmatprep.subr.bf16.mxu0 %v4387_v16  ;;  %6021 = vst [vmem:[#allocation4_spill] sm:$0xff] %v4827_v38  ;;  %6022 = vst [vmem:[#allocation5_spill] sm:$0xff] %v4830_v39  ;;  %v4871_v56 = vcombine.low %v357_v36, %v359_v47  ;;  %v4874_v57 = vcombine.low %v359_v47, %v361_v48  ;;  %v4417_v58 = vld [vmem:[%s5957_s2 + $0xf0] sm:$0xff]   ;;  %v363_v61 = vld [vmem:[%s4804_s15 + $0x78] sm:$0xff] }
  0x1f   : > { %3720 = vmatprep.subr.bf16.mxu1 %v4388_v17  ;;  %1116 = vmatprep.mubr.bf16.mxu1 %v4827_v38  ;;  %6023 = vst [vmem:[#allocation6_spill] sm:$0xff] %v4850_v46  ;;  %6024 = vst [vmem:[#allocation7_spill] sm:$0xff] %v4856_v50  ;;  %v362_v59 = vld [vmem:[%s4804_s15 + $0x70] sm:$0xff]  ;;  %v365_v62 = vld [vmem:[%s4804_s15 + $0x88] sm:$0xff]  ;;  %v4898_v7 = vcombine.high %v361_v48, %v363_v61  ;;  %v4900_v8 = vcombine.low %v361_v48, %v363_v61 }
  0x20   : > { %6025 = vst [vmem:[#allocation8_spill] sm:$0xff] %v4866_v54  ;;  %6026 = vst [vmem:[#allocation9_spill] sm:$0xff] %v4874_v57  ;;  %v4883_v63 = vcombine.high %v360_v45, %v362_v59  ;;  %v4885_v0 = vcombine.low %v360_v45, %v362_v59  ;;  %v4887_v1 = vcombine.high %v362_v59, %v364_v60  ;;  %v4420_v3 = vld [vmem:[%s5957_s2 + $0xb0] sm:$0xff]   ;;  %v368_v5 = vld [vmem:[%s4804_s15 + $0xa0] sm:$0xff] }
  0x21   : > { %3633 = vmatpush3.bf16.msra.mxu0 %v4389_v18  ;;  %v4889_v2 = vcombine.high %v363_v61, %v365_v62  ;;  %v366_v4 = vld [vmem:[%s4804_s15 + $0x90] sm:$0xff]  ;;  %v367_v6 = vld [vmem:[%s4804_s15 + $0x98] sm:$0xff]  ;;  %v369_v9 = vld [vmem:[%s4804_s15 + $0xa8] sm:$0xff]  ;;  %v4920_v16 = vcombine.low %v362_v59, %v364_v60  ;;  %v4925_v18 = vcombine.low %v363_v61, %v365_v62 }
  0x22   : > { %3721 = vmatpush3.bf16.msra.mxu1 %v4390_v19  ;;  %3634 = vmatprep.subr.bf16.mxu0 %v4391_v20  ;;  %6027 = vst [vmem:[#allocation10_spill] sm:$0xff] %v4887_v1  ;;  %v4905_v10 = vcombine.high %v364_v60, %v366_v4  ;;  %v4427_v11 = vld [vmem:[%s5957_s2 + $0x68] sm:$0xff]   ;;  %v4911_v12 = vcombine.high %v365_v62, %v367_v6  ;;  %v4966_v33 = vld [vmem:[%s4804_s15 + $0xd0] sm:$0xff]  ;;  %v4440_v44 = vld [vmem:[%s5957_s2 + $0xa0] sm:$0xff]  }
  0x23   : > { %3722 = vmatprep.subr.bf16.mxu1 %v4392_v21  ;;  %6028 = vst [vmem:[#allocation11_spill] sm:$0xff] %v4889_v2  ;;  %v4428_v13 = vld [vmem:[%s5957_s2 + $0x28] sm:$0xff]   ;;  %v4916_v14 = vcombine.low %v364_v60, %v366_v4  ;;  %v4918_v15 = vcombine.low %v365_v62, %v367_v6  ;;  %6029 = vst [vmem:[#allocation12_spill] sm:$0xff] %v4920_v16  ;;  %v4927_v19 = vcombine.high %v366_v4, %v368_v5  ;;  %v4933_v21 = vld [vmem:[%s4804_s15 + $0xb0] sm:$0xff] }
  0x24   : > { %v4429_v17 = vld [vmem:[%s5957_s2 + $0xe8] sm:$0xff]   ;;  %6030 = vst [vmem:[#allocation13_spill] sm:$0xff] %v4925_v18  ;;  %v4986_v45 = vcombine.low %v366_v4, %v368_v5  ;;  %v4992_v48 = vld [vmem:[%s4804_s15 + $0xf0] sm:$0xff]  ;;  %v5003_v59 = vcombine.low %v367_v6, %v369_v9  ;;  %v4447_v4 = vld [vmem:[%s5957_s2 + $0x58] sm:$0xff]  }
  0x25   : > { %3635 = vmatpush3.bf16.msra.mxu0 %v4393_v22  ;;  %6031 = vst [vmem:[#allocation14_spill] sm:$0xff] %v4927_v19  ;;  %v4430_v20 = vld [vmem:[%s5957_s2 + $0xa8] sm:$0xff]   ;;  %v4935_v22 = vcombine.high %v367_v6, %v369_v9  ;;  %v4448_v6 = vld [vmem:[%s5957_s2 + $0x18] sm:$0xff]  }
  0x26   : > { %3723 = vmatpush3.bf16.msra.mxu1 %v4394_v23  ;;  %3636 = vmatprep.subr.bf16.mxu0 %v4395_v24  ;;  %v4938_v23 = vld [vmem:[%s4804_s15 + $0xb8] sm:$0xff]  ;;  %v4941_v24 = vcombine.high %v368_v5, %v4933_v21  ;;  %v373_v36 = vld [vmem:[%s4804_s15 + $0xc8] sm:$0xff]  ;;  %6033 = vst [vmem:[#allocation16_spill] sm:$0xff] %v4986_v45  ;;  %6034 = vst [vmem:[#allocation17_spill] sm:$0xff] %v5003_v59 }
  0x27   : > { %3724 = vmatprep.subr.bf16.mxu1 %v4396_v25  ;;  %6032 = vst [vmem:[#allocation15_spill] sm:$0xff] %v4935_v22  ;;  %v4944_v25 = vcombine.low %v368_v5, %v4933_v21  ;;  %v4989_v47 = vld [vmem:[%s4804_s15 + $0xe8] sm:$0xff] }
  0x29   : > { %3637 = vmatpush3.bf16.msra.mxu0 %v4397_v26  ;;  %v372_v26 = vld [vmem:[%s4804_s15 + $0xc0] sm:$0xff] }
  0x2a   : > { %3725 = vmatpush3.bf16.msra.mxu1 %v4398_v27  ;;  %3638 = vmatprep.subr.bf16.mxu0 %v4399_v28  ;;  %v4435_v27 = vld [vmem:[%s5957_s2 + $0x60] sm:$0xff]   ;;  %v4951_v28 = vcombine.high %v369_v9, %v4938_v23  ;;  %v5006_v60 = vcombine.high %v4933_v21, %v372_v26 }
  0x2b   : > { %3726 = vmatprep.subr.bf16.mxu1 %v4400_v29  ;;  %v4954_v29 = vcombine.low %v369_v9, %v4938_v23 }
  0x2c   : > { %6035 = vst [vmem:[#allocation18_spill] sm:$0xff] %v5006_v60 }
  0x2d   : > { %3639 = vmatpush3.bf16.msra.mxu0 %v4401_v30  ;;  %v4436_v30 = vld [vmem:[%s5957_s2 + $0x20] sm:$0xff]  }
  0x2e   : > { %3727 = vmatpush3.bf16.msra.mxu1 %v4402_v31  ;;  %3800 = vmatprep.subr.bf16.mxu0 %v4407_v40  ;;  %v4437_v31 = vld [vmem:[%s5957_s2 + $0xe0] sm:$0xff]  }
  0x2f   : > { %3888 = vmatprep.subr.bf16.mxu1 %v4409_v42  ;;  %v4971_v40 = vld [vmem:[%s4804_s15 + $0xe0] sm:$0xff]  ;;  %v4977_v42 = vcombine.high %v372_v26, %v4966_v33 }
  0x30   : > { %996 = vmatmul.mubr.bf16.vlgmr.msra.gmra.mxu0 %v4824_v37  ;;  %v5010_v61 = vcombine.high %v4971_v40, %v4992_v48  ;;  %v5030_v5 = vcombine.low %v4971_v40, %v4992_v48 }
  0x31   : > { %1117 = vmatmul.mubr.bf16.vlgmr.msra.gmra.mxu1 %v4830_v39  ;;  %3801 = vmatpush3.bf16.msra.mxu0 %v4408_v41  ;;  %v4974_v41 = vld [vmem:[%s4804_s15 + $0xd8] sm:$0xff] }
  0x32   : > { %3889 = vmatpush3.bf16.msra.mxu1 %v4410_v43  ;;  %1003 = vmatprep.mubr.bf16.mxu0 %v4850_v46  ;;  %v4980_v43 = vcombine.low %v372_v26, %v4966_v33  ;;  %v4489_v46 = vld [vmem:[%s5957_s2 + $0x3f8] sm:$0xff]  }
  0x33   : > { %1124 = vmatprep.mubr.bf16.mxu1 %v4856_v50  ;;  %3802 = vmatprep.subr.bf16.mxu0 %v4415_v51  ;;  %v4995_v51 = vld [vmem:[%s4804_s15 + $0xf8] sm:$0xff] }
  0x34   : > { %3890 = vmatprep.subr.bf16.mxu1 %v4417_v58  ;;  %v5001_v58 = vcombine.low %v373_v36, %v4974_v41  ;;  %v5014_v62 = vcombine.high %v4989_v47, %v4995_v51  ;;  %v5037_v9 = vcombine.low %v4989_v47, %v4995_v51 }
  0x35   : > { %3803 = vmatpush3.bf16.msra.mxu0 %v4416_v55  ;;  %v4998_v55 = vcombine.high %v373_v36, %v4974_v41 }
  0x36   : > { %3891 = vmatpush3.bf16.msra.mxu1 %v4420_v3  ;;  %3804 = vmatprep.subr.bf16.mxu0 %v4427_v11  ;;  %v5017_v3 = vcombine.high %v4938_v23, %v373_v36  ;;  %v4449_v11 = vld [vmem:[%s5957_s2 + $0xd8] sm:$0xff]  }
  0x37   : > { %3892 = vmatprep.subr.bf16.mxu1 %v4429_v17  ;;  %v4450_v17 = vld [vmem:[%s5957_s2 + $0x98] sm:$0xff]  }
  0x38   : > { %1004 = vmatmul.mubr.bf16.gmra.mxu0 %v4866_v54  ;;  %6036 = vst [vmem:[#allocation19_spill] sm:$0xff] %v5017_v3 }
  0x39   : > { %1125 = vmatmul.mubr.bf16.gmra.mxu1 %v4874_v57  ;;  %1010 = vmatprep.mubr.bf16.mxu0 %v4887_v1  ;;  %v4478_v57 = vld [vmem:[%s5957_s2 + $0x80] sm:$0xff]  }
  0x3a   : > { %1131 = vmatprep.mubr.bf16.mxu1 %v4889_v2  ;;  %3805 = vmatpush3.bf16.msra.mxu0 %v4428_v13  ;;  %v5046_v13 = vld [vmem:[%s4804_s15 + $0x100] sm:$0xff]  ;;  %v5171_v2 = vld [vmem:[%s4804_s15 + $0x150] sm:$0xff] }
  0x3b   : > { %3893 = vmatpush3.bf16.msra.mxu1 %v4430_v20  ;;  %3806 = vmatprep.subr.bf16.mxu0 %v4435_v27  ;;  %v5052_v20 = vld [vmem:[%s4804_s15 + $0x110] sm:$0xff]  ;;  %v5056_v27 = vld [vmem:[%s4804_s15 + $0x108] sm:$0xff] }
  0x3c   : > { %3894 = vmatprep.subr.bf16.mxu1 %v4437_v31  ;;  %v5069_v31 = vcombine.high %v5046_v13, %v5052_v20  ;;  %v5216_v54 = vcombine.low %v4995_v51, %v5056_v27 }
  0x3e   : > { %3807 = vmatpush3.bf16.msra.mxu0 %v4436_v30  ;;  %v5059_v30 = vld [vmem:[%s4804_s15 + $0x118] sm:$0xff]  ;;  %6038 = vst [vmem:[#allocation20_spill] sm:$0xff] %v5069_v31  ;;  %6058 = vst [vmem:[#allocation40_spill] sm:$0xff] %v5216_v54 }
  0x3f   : > { %3895 = vmatpush3.bf16.msra.mxu1 %v4440_v44  ;;  %3808 = vmatprep.subr.bf16.mxu0 %v4447_v4  ;;  %v4455_v44 = vld [vmem:[%s5957_s2 + $0x50] sm:$0xff]   ;;  %v5076_v4 = vcombine.high %v5056_v27, %v5059_v30 }
  0x40   : > { %1011 = vmatmul.mubr.bf16.gmra.mxu0 %v4920_v16  ;;  %3896 = vmatprep.subr.bf16.mxu1 %v4449_v11  ;;  %v4456_v11 = vld [vmem:[%s5957_s2 + $0x10] sm:$0xff]   ;;  %v4470_v16 = vld [vmem:[%s5957_s2 + $0x88] sm:$0xff]  }
  0x41   : > { %1132 = vmatmul.mubr.bf16.gmra.mxu1 %v4925_v18  ;;  %1017 = vmatprep.mubr.bf16.mxu0 %v4927_v19  ;;  %6039 = vst [vmem:[#allocation21_spill] sm:$0xff] %v5076_v4  ;;  %v5155_v19 = vcombine.low %v4974_v41, %v4989_v47  ;;  %v5159_v18 = vcombine.high %v4992_v48, %v5046_v13 }
  0x42   : > { %1138 = vmatprep.mubr.bf16.mxu1 %v4935_v22  ;;  %3809 = vmatpush3.bf16.msra.mxu0 %v4448_v6  ;;  %v5080_v6 = vcombine.low %v5046_v13, %v5052_v20  ;;  %v4469_v22 = vld [vmem:[%s5957_s2 + $0xc8] sm:$0xff]  }
  0x43   : > { %3897 = vmatpush3.bf16.msra.mxu1 %v4450_v17  ;;  %3810 = vmatprep.subr.bf16.mxu0 %v4455_v44  ;;  %v5114_v17 = vld [vmem:[%s4804_s15 + $0x130] sm:$0xff]  ;;  %v5118_v44 = vcombine.low %v5056_v27, %v5059_v30  ;;  %6050 = vst [vmem:[#allocation32_spill] sm:$0xff] %v5155_v19  ;;  %6051 = vst [vmem:[#allocation33_spill] sm:$0xff] %v5159_v18 }
  0x44   : > { %6040 = vst [vmem:[#allocation22_spill] sm:$0xff] %v5080_v6 }
  0x45   : > { %6045 = vst [vmem:[#allocation27_spill] sm:$0xff] %v5118_v44 }
  0x46   : > { %3811 = vmatpush3.bf16.msra.mxu0 %v4456_v11 }
  0x48   : > { %1018 = vmatmul.mubr.bf16.gmra.mxu0 %v4986_v45  ;;  %v4457_v45 = vld [vmem:[%s5957_s2 + $0xd0] sm:$0xff]  }
  0x49   : > { %1139 = vmatmul.mubr.bf16.gmra.mxu1 %v5003_v59  ;;  %1025 = vmatprep.mubr.bf16.mxu0 %v5006_v60  ;;  %v5089_v60 = vcombine.low %v4938_v23, %v373_v36  ;;  %v5093_v59 = vcombine.high %v4966_v33, %v4971_v40  ;;  %v4460_v23 = vld [vmem:[%s5957_s2 + $0x90] sm:$0xff]   ;;  %v5111_v36 = vld [vmem:[%s4804_s15 + $0x128] sm:$0xff] }
  0x4a   : > { %1146 = vmatprep.mubr.bf16.mxu1 %v5017_v3  ;;  %v5083_v3 = vcombine.low %v4933_v21, %v372_v26  ;;  %v5100_v21 = vcombine.high %v4974_v41, %v4989_v47  ;;  %3898 = vmatprep.subr.bf16.mxu1 %v4457_v45  ;;  %v5108_v26 = vld [vmem:[%s4804_s15 + $0x120] sm:$0xff]  ;;  %v5123_v45 = vld [vmem:[%s4804_s15 + $0x138] sm:$0xff] }
  0x4b   : > { %6042 = vst [vmem:[#allocation24_spill] sm:$0xff] %v5089_v60  ;;  %6043 = vst [vmem:[#allocation25_spill] sm:$0xff] %v5093_v59  ;;  %v5127_v11 = vcombine.high %v5108_v26, %v5114_v17  ;;  %3899 = vmatpush3.bf16.msra.mxu1 %v4460_v23  ;;  %v5144_v23 = vcombine.low %v5108_v26, %v5114_v17  ;;  %v5174_v41 = vld [vmem:[%s4804_s15 + $0x158] sm:$0xff]  ;;  %v4471_v47 = vld [vmem:[%s5957_s2 + $0x40] sm:$0xff]   ;;  %v5251_v39 = vcombine.low %v5052_v20, %v5108_v26 }
  0x4c   : > { %6041 = vst [vmem:[#allocation23_spill] sm:$0xff] %v5083_v3  ;;  %6044 = vst [vmem:[#allocation26_spill] sm:$0xff] %v5100_v21  ;;  %3900 = vmatprep.subr.bf16.mxu1 %v4469_v22  ;;  %v4472_v22 = vld [vmem:[%s5957_s2] sm:$0xff]  }
  0x4d   : > { %6046 = vst [vmem:[#allocation28_spill] sm:$0xff] %v5127_v11  ;;  %6048 = vst [vmem:[#allocation30_spill] sm:$0xff] %v5144_v23 }
  0x4f   : > { %3901 = vmatpush3.bf16.msra.mxu1 %v4470_v16  ;;  %v4473_v16 = vld [vmem:[%s5957_s2 + $0xc0] sm:$0xff]  }
  0x50   : > { %1026 = vmatmul.mubr.bf16.gmra.mxu0 %v5083_v3  ;;  %v4467_v3 = vld [vmem:[%s5957_s2 + $0x48] sm:$0xff]   ;;  %3902 = vmatprep.subr.bf16.mxu1 %v4473_v16  ;;  %v392_v16 = vld [vmem:[%s4804_s15 + $0x160] sm:$0xff] }
  0x51   : > { %1147 = vmatmul.mubr.bf16.gmra.mxu1 %v5089_v60  ;;  %1032 = vmatprep.mubr.bf16.mxu0 %v5093_v59  ;;  %v5137_v59 = vcombine.high %v5111_v36, %v5123_v45  ;;  %v4468_v60 = vld [vmem:[%s5957_s2 + $0x8] sm:$0xff]  }
  0x52   : > { %1153 = vmatprep.mubr.bf16.mxu1 %v5100_v21  ;;  %v5148_v21 = vcombine.low %v4966_v33, %v4971_v40  ;;  %3812 = vmatprep.subr.bf16.mxu0 %v4467_v3  ;;  %v5166_v33 = vcombine.high %v4995_v51, %v5056_v27  ;;  %v388_v40 = vld [vmem:[%s4804_s15 + $0x140] sm:$0xff]  ;;  %v389_v3 = vld [vmem:[%s4804_s15 + $0x148] sm:$0xff]  ;;  %v4487_v51 = vld [vmem:[%s5957_s2 + $0x378] sm:$0xff]  }
  0x53   : > { %6047 = vst [vmem:[#allocation29_spill] sm:$0xff] %v5137_v59  ;;  %3813 = vmatpush3.bf16.msra.mxu0 %v4468_v60  ;;  %v5181_v60 = vcombine.low %v5111_v36, %v5123_v45  ;;  %v5201_v1 = vcombine.high %v389_v3, %v5174_v41  ;;  %3903 = vmatpush3.bf16.msra.mxu1 %v4478_v57 }
  0x54   : > { %6049 = vst [vmem:[#allocation31_spill] sm:$0xff] %v5148_v21  ;;  %6052 = vst [vmem:[#allocation34_spill] sm:$0xff] %v5166_v33  ;;  %3814 = vmatprep.subr.bf16.mxu0 %v4471_v47  ;;  %v5220_v47 = vcombine.high %v5052_v20, %v5108_v26  ;;  %v5231_v50 = vcombine.low %v389_v3, %v5174_v41  ;;  %4064 = vmatprep.subr.bf16.mxu1 %v4489_v46 }
  0x55   : > { %6053 = vst [vmem:[#allocation35_spill] sm:$0xff] %v5181_v60  ;;  %6055 = vst [vmem:[#allocation37_spill] sm:$0xff] %v5201_v1  ;;  %v5290_v26 = vcombine.high %v5171_v2, %v392_v16 }
  0x56   : > { %6059 = vst [vmem:[#allocation41_spill] sm:$0xff] %v5220_v47  ;;  %6061 = vst [vmem:[#allocation43_spill] sm:$0xff] %v5231_v50 }
  0x57   : > { %3815 = vmatpush3.bf16.msra.mxu0 %v4472_v22  ;;  %v5224_v22 = vcombine.high %v5059_v30, %v5111_v36 }
  0x58   : > { %1033 = vmatmul.mubr.bf16.gmra.mxu0 %v5148_v21  ;;  %v5198_v21 = vcombine.high %v388_v40, %v5171_v2  ;;  %3976 = vmatprep.subr.bf16.mxu0 %v4487_v51  ;;  %v353_v51 = vld [vmem:[%s4804_s15 + $0x28] sm:$0xff] }
  0x59   : > { %1154 = vmatmul.mubr.bf16.gmra.mxu1 %v5155_v19  ;;  %1039 = vmatprep.mubr.bf16.mxu0 %v5159_v18  ;;  %v5205_v19 = vcombine.low %v388_v40, %v5171_v2  ;;  %v5209_v18 = vcombine.low %v4992_v48, %v5046_v13  ;;  %6060 = vst [vmem:[#allocation42_spill] sm:$0xff] %v5224_v22  ;;  %v394_v48 = vld [vmem:[%s4804_s15 + $0x170] sm:$0xff]  ;;  %v395_v13 = vld [vmem:[%s4804_s15 + $0x178] sm:$0xff] }
  0x5a   : > { %6054 = vst [vmem:[#allocation36_spill] sm:$0xff] %v5198_v21  ;;  %1160 = vmatprep.mubr.bf16.mxu1 %v5166_v33  ;;  %v393_v33 = vld [vmem:[%s4804_s15 + $0x168] sm:$0xff]  ;;  %v5239_v27 = vcombine.high %v392_v16, %v394_v48  ;;  %v5266_v38 = vcombine.high %v353_v51, %v4817_v34  ;;  %v5272_v20 = vcombine.low %v353_v51, %v4817_v34 }
  0x5b   : > { %6056 = vst [vmem:[#allocation38_spill] sm:$0xff] %v5205_v19  ;;  %6057 = vst [vmem:[#allocation39_spill] sm:$0xff] %v5209_v18  ;;  %v5241_v57 = vcombine.high %v393_v33, %v395_v13  ;;  %v5277_v46 = vcombine.low %v393_v33, %v395_v13  ;;  %v5287_v34 = vcombine.low %v5123_v45, %v389_v3 }
  0x5c   : > { %6062 = vst [vmem:[#allocation44_spill] sm:$0xff] %v5239_v27 }
  0x5d   : > { %6063 = vst [vmem:[#allocation45_spill] sm:$0xff] %v5241_v57  ;;  %6065 = vst [vmem:[#allocation47_spill] sm:$0xff] %v5277_v46 }
  0x60   : > { %1040 = vmatmul.mubr.bf16.gmra.mxu0 %v5209_v18  ;;  %v5247_v18 = vcombine.low %v392_v16, %v394_v48 }
  0x61   : > { %1161 = vmatmul.mubr.bf16.gmra.mxu1 %v5216_v54  ;;  %1047 = vmatprep.mubr.bf16.mxu0 %v5220_v47  ;;  %v5255_v47 = vcombine.low %v5059_v30, %v5111_v36  ;;  %v5258_v54 = vcombine.high %v5114_v17, %v388_v40  ;;  %v5275_v30 = vcombine.high %v5123_v45, %v389_v3 }
  0x62   : > { %1168 = vmatprep.mubr.bf16.mxu1 %v5224_v22  ;;  %6064 = vst [vmem:[#allocation46_spill] sm:$0xff] %v5247_v18  ;;  %v352_v22 = vld [vmem:[%s4804_s15 + $0x20] sm:$0xff]  ;;  %v5293_v36 = vcombine.high %v5174_v41, %v393_v33  ;;  %v5302_v45 = vcombine.low %v5171_v2, %v392_v16  ;;  %v5305_v3 = vcombine.low %v5174_v41, %v393_v33  ;;  %v5323_v16 = vld [vmem:[%s5187_s28 + $0x1c] ss:$16 sps:$4 sm:$0xff]  }
  0x63   : > { %v5263_v37 = vcombine.high %v352_v22, %v4813_v32  ;;  %v5269_v35 = vcombine.low %v352_v22, %v4813_v32  ;;  %v5284_v32 = vcombine.low %v5114_v17, %v388_v40  ;;  %v396_v17 = vld [vmem:[%s5187_s28] sm:$0xff]  ;;  %v397_v40 = vld [vmem:[%s5187_s28 + $0x8] sm:$0xff]  ;;  %6071 = vst [vmem:[#allocation53_spill] sm:$0xff] %v5323_v16 }
  0x64   : > { %v5307_v22 = vcombine.high %v394_v48, %v396_v17  ;;  %v5309_v51 = vcombine.high %v395_v13, %v397_v40  ;;  %v5315_v2 = vcombine.low %v394_v48, %v396_v17  ;;  %v5317_v33 = vcombine.low %v395_v13, %v397_v40  ;;  %v5320_v41 = vld [vmem:[%s5187_s28 + $0x14] ss:$16 sps:$4 sm:$0xff]   ;;  %v5339_v13 = vld [vmem:[%s4804_s15 + $0xc] ss:$16 sps:$4 sm:$0xff]   ;;  %v5345_v17 = vld [vmem:[%s4804_s15] ss:$16 sps:$4 sm:$0xff]  }
  0x65   : > { %6070 = vst [vmem:[#allocation52_spill] sm:$0xff] %v5320_v41  ;;  %v5336_v48 = vld [vmem:[%s4804_s15 + $0x4] ss:$16 sps:$4 sm:$0xff]   ;;  %6075 = vst [vmem:[#allocation57_spill] sm:$0xff] %v5339_v13  ;;  %v5349_v40 = vld [vmem:[%s4804_s15 + $0x8] ss:$16 sps:$4 sm:$0xff]  }
  0x66   : > { %6066 = vst [vmem:[#allocation48_spill] sm:$0xff] %v5307_v22  ;;  %6067 = vst [vmem:[#allocation49_spill] sm:$0xff] %v5309_v51 }
  0x67   : > { %6068 = vst [vmem:[#allocation50_spill] sm:$0xff] %v5315_v2  ;;  %6069 = vst [vmem:[#allocation51_spill] sm:$0xff] %v5317_v33 }
  0x68   : > { %1048 = vmatmul.mubr.bf16.gmra.mxu0 %v5251_v39  ;;  %6074 = vst [vmem:[#allocation56_spill] sm:$0xff] %v5336_v48  ;;  %6076 = vst [vmem:[#allocation58_spill] sm:$0xff] %v5345_v17 }
  0x69   : > { %1169 = vmatmul.mubr.bf16.gmra.mxu1 %v5255_v47  ;;  %1054 = vmatprep.mubr.bf16.mxu0 %v5258_v54  ;;  %6077 = vst [vmem:[#allocation59_spill] sm:$0xff] %v5349_v40 }
  0x6a   : > { %1175 = vmatprep.mubr.bf16.mxu1 %v5275_v30 }
  0x70   : > { %1055 = vmatmul.mubr.bf16.gmra.mxu0 %v5284_v32 }
  0x71   : > { %1176 = vmatmul.mubr.bf16.gmra.mxu1 %v5287_v34  ;;  %1061 = vmatprep.mubr.bf16.mxu0 %v5290_v26 }
  0x72   : > { %1182 = vmatprep.mubr.bf16.mxu1 %v5293_v36 }
  0x78   : > { %1062 = vmatmul.mubr.bf16.gmra.mxu0 %v5302_v45 }
  0x79   : > { %1183 = vmatmul.mubr.bf16.gmra.mxu1 %v5305_v3  ;;  %1069 = vmatprep.mubr.bf16.mxu0 %v5307_v22  ;;  %v5330_v22 = vld [vmem:[%s5187_s28 + $0x10] ss:$16 sps:$4 sm:$0xff]  }
  0x7a   : > { %1190 = vmatprep.mubr.bf16.mxu1 %v5309_v51  ;;  %6072 = vst [vmem:[#allocation54_spill] sm:$0xff] %v5330_v22  ;;  %v5333_v51 = vld [vmem:[%s5187_s28 + $0x18] ss:$16 sps:$4 sm:$0xff]   ;;  %s5842_s28 = scalar_lea.vmem %s5960_s5, %s3118_s19 }
  0x7b   : > { %6073 = vst [vmem:[#allocation55_spill] sm:$0xff] %v5333_v51 }
  0x80   : > { %1070 = vmatmul.mubr.bf16.gmra.mxu0 %v5315_v2  ;;  %v4509_v2 = vld [vmem:[%s5957_s2 + $0x3e8] sm:$0xff]  }
  0x81   : > { %1191 = vmatmul.mubr.bf16.gmra.mxu1 %v5317_v33  ;;  %1076 = vmatprep.mubr.bf16.mxu0 %v5320_v41  ;;  %v4490_v41 = vld [vmem:[%s5957_s2 + $0x3b8] sm:$0xff]   ;;  %v4507_v33 = vld [vmem:[%s5957_s2 + $0x368] sm:$0xff]  }
  0x82   : > { %1197 = vmatprep.mubr.bf16.mxu1 %v5323_v16  ;;  %v4488_v16 = vld [vmem:[%s5957_s2 + $0x338] sm:$0xff]  }
  0x88   : > { %1077 = vmatmul.mubr.bf16.gmra.mxu0 %v5330_v22  ;;  %v4500_v22 = vld [vmem:[%s5957_s2 + $0x3b0] sm:$0xff]  }
  0x89   : > { %1198 = vmatmul.mubr.bf16.gmra.mxu1 %v5333_v51  ;;  %1543 = vmatprep.mubr.bf16.mxu0 %v5336_v48  ;;  %v4495_v51 = vld [vmem:[%s5957_s2 + $0x370] sm:$0xff]  }
  0x8a   : > { %1664 = vmatprep.mubr.bf16.mxu1 %v5339_v13  ;;  %v4497_v48 = vld [vmem:[%s5957_s2 + $0x3f0] sm:$0xff]  }
  0x8b   : > { %v4496_v13 = vld [vmem:[%s5957_s2 + $0x330] sm:$0xff]  }
  0x90   : > { %1544 = vmatmul.mubr.bf16.vlgmr.msra.gmra.mxu0 %v5345_v17  ;;  %v4508_v17 = vld [vmem:[%s5957_s2 + $0x328] sm:$0xff]  }
  0x91   : > { %1665 = vmatmul.mubr.bf16.vlgmr.msra.gmra.mxu1 %v5349_v40  ;;  %3977 = vmatpush3.bf16.msra.mxu0 %v4488_v16  ;;  %v4510_v16 = vld [vmem:[%s5957_s2 + $0x3a8] sm:$0xff]   ;;  %v4515_v40 = vld [vmem:[%s5957_s2 + $0x360] sm:$0xff]  }
  0x92   : > { %4065 = vmatpush3.bf16.msra.mxu1 %v4490_v41  ;;  %1551 = vmatprep.mubr.bf16.mxu0 %v5263_v37  ;;  %v4516_v41 = vld [vmem:[%s5957_s2 + $0x320] sm:$0xff]  }
  0x93   : > { %1672 = vmatprep.mubr.bf16.mxu1 %v5266_v38  ;;  %3978 = vmatprep.subr.bf16.mxu0 %v4495_v51  ;;  %v4517_v51 = vld [vmem:[%s5957_s2 + $0x3e0] sm:$0xff]  }
  0x94   : > { %4066 = vmatprep.subr.bf16.mxu1 %v4497_v48  ;;  %v4528_v48 = vld [vmem:[%s5957_s2 + $0x318] sm:$0xff]  }
  0x95   : > { %3979 = vmatpush3.bf16.msra.mxu0 %v4496_v13  ;;  %v4530_v13 = vld [vmem:[%s5957_s2 + $0x398] sm:$0xff]  }
  0x96   : > { %4067 = vmatpush3.bf16.msra.mxu1 %v4500_v22  ;;  %3980 = vmatprep.subr.bf16.mxu0 %v4507_v33  ;;  %v4520_v22 = vld [vmem:[%s5957_s2 + $0x3a0] sm:$0xff]   ;;  %v4529_v33 = vld [vmem:[%s5957_s2 + $0x3d8] sm:$0xff]  }
  0x97   : > { %4068 = vmatprep.subr.bf16.mxu1 %v4509_v2  ;;  %v4527_v2 = vld [vmem:[%s5957_s2 + $0x358] sm:$0xff]  }
  0x98   : > { %1552 = vmatmul.mubr.bf16.gmra.mxu0 %v5269_v35 }
  0x99   : > { %1673 = vmatmul.mubr.bf16.gmra.mxu1 %v5272_v20  ;;  %1558 = vmatprep.mubr.bf16.mxu0 %v4854_v49 }
  0x9a   : > { %1679 = vmatprep.mubr.bf16.mxu1 %v4861_v52  ;;  %3981 = vmatpush3.bf16.msra.mxu0 %v4508_v17  ;;  %v4535_v17 = vld [vmem:[%s5957_s2 + $0x350] sm:$0xff]  }
  0x9b   : > { %4069 = vmatpush3.bf16.msra.mxu1 %v4510_v16  ;;  %3982 = vmatprep.subr.bf16.mxu0 %v4515_v40  ;;  %v4537_v40 = vld [vmem:[%s5957_s2 + $0x3d0] sm:$0xff]  }
  0x9c   : > { %4070 = vmatprep.subr.bf16.mxu1 %v4517_v51  ;;  %v4536_v16 = vld [vmem:[%s5957_s2 + $0x310] sm:$0xff]  }
  0x9d   : > { %v4540_v51 = vld [vmem:[%s5957_s2 + $0x390] sm:$0xff]  }
  0x9e   : > { %3983 = vmatpush3.bf16.msra.mxu0 %v4516_v41  ;;  %v4547_v41 = vld [vmem:[%s5957_s2 + $0x348] sm:$0xff]  }
  0x9f   : > { %4071 = vmatpush3.bf16.msra.mxu1 %v4520_v22  ;;  %3984 = vmatprep.subr.bf16.mxu0 %v4527_v2  ;;  %v4549_v22 = vld [vmem:[%s5957_s2 + $0x3c8] sm:$0xff]  }
  0xa0   : > { %1559 = vmatmul.mubr.bf16.gmra.mxu0 %v4863_v53  ;;  %4072 = vmatprep.subr.bf16.mxu1 %v4529_v33  ;;  %v4548_v2 = vld [vmem:[%s5957_s2 + $0x308] sm:$0xff]  }
  0xa1   : > { %1680 = vmatmul.mubr.bf16.gmra.mxu1 %v4871_v56  ;;  %1565 = vmatprep.mubr.bf16.mxu0 %v4883_v63  ;;  %v4550_v33 = vld [vmem:[%s5957_s2 + $0x388] sm:$0xff]  }
  0xa2   : > { %1686 = vmatprep.mubr.bf16.mxu1 %v4898_v7  ;;  %3985 = vmatpush3.bf16.msra.mxu0 %v4528_v48  ;;  %v4555_v48 = vld [vmem:[%s5957_s2 + $0x340] sm:$0xff]  }
  0xa3   : > { %4073 = vmatpush3.bf16.msra.mxu1 %v4530_v13  ;;  %3986 = vmatprep.subr.bf16.mxu0 %v4535_v17  ;;  %v4557_v13 = vld [vmem:[%s5957_s2 + $0x3c0] sm:$0xff]  }
  0xa4   : > { %4074 = vmatprep.subr.bf16.mxu1 %v4537_v40  ;;  %v4556_v17 = vld [vmem:[%s5957_s2 + $0x300] sm:$0xff]  }
  0xa5   : > { %v4560_v40 = vld [vmem:[%s5957_s2 + $0x380] sm:$0xff]  }
  0xa6   : > { %3987 = vmatpush3.bf16.msra.mxu0 %v4536_v16  ;;  %v4563_v16 = vld [vmem:[%s5957_s2 + $0x178] sm:$0xff]  }
  0xa7   : > { %4075 = vmatpush3.bf16.msra.mxu1 %v4540_v51  ;;  %3988 = vmatprep.subr.bf16.mxu0 %v4547_v41  ;;  %v4565_v51 = vld [vmem:[%s5957_s2 + $0x1f8] sm:$0xff]   ;;  %v6078_v41 = vld [vmem:[#allocation2_spill] sm:$0xff] }
  0xa8   : > { %1566 = vmatmul.mubr.bf16.gmra.mxu0 %v4885_v0  ;;  %4076 = vmatprep.subr.bf16.mxu1 %v4549_v22  ;;  %v6079_v22 = vld [vmem:[#allocation4_spill] sm:$0xff] }
  0xa9   : > { %1687 = vmatmul.mubr.bf16.gmra.mxu1 %v4900_v8  ;;  %1573 = vmatprep.mubr.bf16.mxu0 %v4905_v10 }
  0xaa   : > { %1694 = vmatprep.mubr.bf16.mxu1 %v4911_v12  ;;  %3989 = vmatpush3.bf16.msra.mxu0 %v4548_v2  ;;  %v4564_v2 = vld [vmem:[%s5957_s2 + $0x138] sm:$0xff]  }
  0xab   : > { %4077 = vmatpush3.bf16.msra.mxu1 %v4550_v33  ;;  %3990 = vmatprep.subr.bf16.mxu0 %v4555_v48  ;;  %v4566_v33 = vld [vmem:[%s5957_s2 + $0x1b8] sm:$0xff]   ;;  %v4567_v48 = vld [vmem:[%s5957_s2 + $0x170] sm:$0xff]  }
  0xac   : > { %4078 = vmatprep.subr.bf16.mxu1 %v4557_v13 }
  0xae   : > { %3991 = vmatpush3.bf16.msra.mxu0 %v4556_v17  ;;  %v6080_v17 = vld [vmem:[#allocation3_spill] sm:$0xff] }
  0xaf   : > { %4079 = vmatpush3.bf16.msra.mxu1 %v4560_v40  ;;  %4152 = vmatprep.subr.bf16.mxu0 %v4563_v16  ;;  %v4569_v40 = vld [vmem:[%s5957_s2 + $0x1f0] sm:$0xff]  }
  0xb0   : > { %1574 = vmatmul.mubr.bf16.gmra.mxu0 %v4916_v14  ;;  %4240 = vmatprep.subr.bf16.mxu1 %v4565_v51  ;;  %v6081_v51 = vld [vmem:[#allocation5_spill] sm:$0xff] }
  0xb1   : > { %1695 = vmatmul.mubr.bf16.gmra.mxu1 %v4918_v15  ;;  %1580 = vmatprep.mubr.bf16.mxu0 %v4941_v24 }
  0xb2   : > { %1701 = vmatprep.mubr.bf16.mxu1 %v4951_v28 }
  0xb8   : > { %1581 = vmatmul.mubr.bf16.gmra.mxu0 %v4944_v25 }
  0xb9   : > { %1702 = vmatmul.mubr.bf16.gmra.mxu1 %v4954_v29  ;;  %1587 = vmatprep.mubr.bf16.mxu0 %v4977_v42 }
  0xba   : > { %1708 = vmatprep.mubr.bf16.mxu1 %v4998_v55 }
  0xc0   : > { %1588 = vmatmul.mubr.bf16.gmra.mxu0 %v4980_v43 }
  0xc1   : > { %1709 = vmatmul.mubr.bf16.gmra.mxu1 %v5001_v58  ;;  %1595 = vmatprep.mubr.bf16.mxu0 %v5010_v61 }
  0xc2   : > { %1716 = vmatprep.mubr.bf16.mxu1 %v5014_v62 }
  0xc8   : > { %1596 = vmatmul.mubr.bf16.gmra.mxu0 %v5030_v5 }
  0xc9   : > { %1717 = vmatmul.mubr.bf16.gmra.mxu1 %v5037_v9  ;;  %1602 = vmatprep.mubr.bf16.mxu0 %v5069_v31  ;;  %v6105_v31 = vld [vmem:[#allocation40_spill] sm:$0xff] }
  0xca   : > { %1723 = vmatprep.mubr.bf16.mxu1 %v5076_v4  ;;  %v6104_v4 = vld [vmem:[#allocation39_spill] sm:$0xff] }
  0xd0   : > { %1603 = vmatmul.mubr.bf16.gmra.mxu0 %v5080_v6 }
  0xd1   : > { %1724 = vmatmul.mubr.bf16.gmra.mxu1 %v5118_v44  ;;  %1609 = vmatprep.mubr.bf16.mxu0 %v5127_v11  ;;  %v6098_v44 = vld [vmem:[#allocation25_spill] sm:$0xff] }
  0xd2   : > { %1730 = vmatprep.mubr.bf16.mxu1 %v5137_v59 }
  0xd8   : > { %1610 = vmatmul.mubr.bf16.gmra.mxu0 %v5144_v23 }
  0xd9   : > { %1731 = vmatmul.mubr.bf16.gmra.mxu1 %v5181_v60  ;;  %1617 = vmatprep.mubr.bf16.mxu0 %v5198_v21  ;;  %v6091_v60 = vld [vmem:[#allocation15_spill] sm:$0xff] }
  0xda   : > { %1738 = vmatprep.mubr.bf16.mxu1 %v5201_v1 }
  0xe0   : > { %1618 = vmatmul.mubr.bf16.gmra.mxu0 %v5205_v19 }
  0xe1   : > { %1739 = vmatmul.mubr.bf16.gmra.mxu1 %v5231_v50  ;;  %1624 = vmatprep.mubr.bf16.mxu0 %v5239_v27 }
  0xe2   : > { %1745 = vmatprep.mubr.bf16.mxu1 %v5241_v57 }
  0xe8   : > { %1625 = vmatmul.mubr.bf16.gmra.mxu0 %v5247_v18  ;;  %v4571_v18 = vld [vmem:[%s5957_s2 + $0x168] sm:$0xff]  }
  0xe9   : > { %1746 = vmatmul.mubr.bf16.gmra.mxu1 %v5277_v46  ;;  %2107 = vmatprep.mubr.bf16.mxu0 %v6078_v41  ;;  %v4568_v41 = vld [vmem:[%s5957_s2 + $0x130] sm:$0xff]   ;;  %v6082_v46 = vld [vmem:[#allocation6_spill] sm:$0xff] }
  0xea   : > { %2236 = vmatprep.mubr.bf16.mxu1 %v6079_v22 }
  0xf0   : > { %v3640_v13 = vpop.f32.mrf.mxu0  ;;  %2108 = vmatmul.mubr.bf16.vlgmr.msra.gmra.mxu0 %v6080_v17  ;;  %v4570_v17 = vld [vmem:[%s5957_s2 + $0x1b0] sm:$0xff]  }
  0xf1   : > { %v3728_v16 = vpop.f32.mrf.mxu1  ;;  %2237 = vmatmul.mubr.bf16.vlgmr.msra.gmra.mxu1 %v6081_v51  ;;  %4153 = vmatpush3.bf16.msra.mxu0 %v4564_v2  ;;  %v6083_v51 = vld [vmem:[#allocation7_spill] sm:$0xff] }
  0xf2   : > { %v3641_v22 = vpop.f32.mrf.mxu0  ;;  %4241 = vmatpush3.bf16.msra.mxu1 %v4566_v33  ;;  %2115 = vmatprep.mubr.bf16.mxu0 %v6082_v46  ;;  %v4573_v2 = vld [vmem:[%s5957_s2 + $0x1e8] sm:$0xff]  }
  0xf3   : > { %v3642_v57 = vadd.f32 %v3641_v22, %v3640_v13  ;;  %v3729_v27 = vpop.f32.mrf.mxu1  ;;  %2244 = vmatprep.mubr.bf16.mxu1 %v6083_v51  ;;  %4154 = vmatprep.subr.bf16.mxu0 %v4567_v48  ;;  %v4572_v13 = vld [vmem:[%s5957_s2 + $0x128] sm:$0xff]  }
  0xf4   : > { %v3730_v33 = vadd.f32 %v3729_v27, %v3728_v16  ;;  %v3643_v50 = vpop.f32.mrf.mxu0  ;;  %4242 = vmatprep.subr.bf16.mxu1 %v4569_v40  ;;  %v4574_v27 = vld [vmem:[%s5957_s2 + $0x1a8] sm:$0xff]   ;;  %v4575_v40 = vld [vmem:[%s5957_s2 + $0x160] sm:$0xff]  }
  0xf5   : > { %v3731_v46 = vpop.f32.mrf.mxu1  ;;  %4155 = vmatpush3.bf16.msra.mxu0 %v4568_v41  ;;  %v6084_v41 = vld [vmem:[#allocation8_spill] sm:$0xff] }
  0xf6   : > { %v5523_v19 = vadd.f32 %v3730_v33, %v3642_v57  ;;  %v3644_v1 = vpop.f32.mrf.mxu0  ;;  %4243 = vmatpush3.bf16.msra.mxu1 %v4570_v17  ;;  %4156 = vmatprep.subr.bf16.mxu0 %v4571_v18  ;;  %v4577_v18 = vld [vmem:[%s5957_s2 + $0x1e0] sm:$0xff]   ;;  %v6087_v33 = vld [vmem:[#allocation11_spill] sm:$0xff] }
  0xf7   : > { %v3645_v22 = vadd.f32 %v3644_v1, %v3643_v50  ;;  %v3732_v48 = vpop.f32.mrf.mxu1  ;;  %4244 = vmatprep.subr.bf16.mxu1 %v4573_v2  ;;  %v6085_v50 = vld [vmem:[#allocation9_spill] sm:$0xff]  ;;  %v6086_v1 = vld [vmem:[#allocation10_spill] sm:$0xff] }
  0xf8   : > { %v3733_v57 = vadd.f32 %v3732_v48, %v3731_v46  ;;  %v3646_v16 = vpop.f32.mrf.mxu0  ;;  %2116 = vmatmul.mubr.bf16.gmra.mxu0 %v6084_v41  ;;  %v4576_v46 = vld [vmem:[%s5957_s2 + $0x120] sm:$0xff]  }
  0xf9   : > { %v3734_v17 = vpop.f32.mrf.mxu1  ;;  %2245 = vmatmul.mubr.bf16.gmra.mxu1 %v6085_v50  ;;  %2123 = vmatprep.mubr.bf16.mxu0 %v6086_v1  ;;  %v4578_v16 = vld [vmem:[%s5957_s2 + $0x1a0] sm:$0xff]   ;;  %v4582_v1 = vld [vmem:[%s5957_s2 + $0x198] sm:$0xff]  }
  0xfa   : > { %v5540_v51 = vadd.f32 %v3733_v57, %v3645_v22  ;;  %v3647_v2 = vpop.f32.mrf.mxu0  ;;  %2252 = vmatprep.mubr.bf16.mxu1 %v6087_v33  ;;  %4157 = vmatpush3.bf16.msra.mxu0 %v4572_v13  ;;  %v4579_v22 = vld [vmem:[%s5957_s2 + $0x158] sm:$0xff]  }
  0xfb   : > { %v3735_v48 = vpop.f32.mrf.mxu1  ;;  %4245 = vmatpush3.bf16.msra.mxu1 %v4574_v27  ;;  %4158 = vmatprep.subr.bf16.mxu0 %v4575_v40  ;;  %v4581_v13 = vld [vmem:[%s5957_s2 + $0x1d8] sm:$0xff]  }
  0xfc   : > { %v3649_v57 = vpop.f32.mrf.mxu0  ;;  %4246 = vmatprep.subr.bf16.mxu1 %v4577_v18  ;;  %v4580_v27 = vld [vmem:[%s5957_s2 + $0x118] sm:$0xff]   ;;  %v4583_v18 = vld [vmem:[%s5957_s2 + $0x150] sm:$0xff]  }
  0xfd   : > { %v3737_v41 = vpop.f32.mrf.mxu1  ;;  %v6088_v48 = vld [vmem:[#allocation12_spill] sm:$0xff] }
  0xfe   : > { %v3650_v17 = vpop.f32.mrf.mxu0  ;;  %4159 = vmatpush3.bf16.msra.mxu0 %v4576_v46  ;;  %v4585_v46 = vld [vmem:[%s5957_s2 + $0x1d0] sm:$0xff]  }
  0xff   : > { %v3651_v40 = vadd.f32 %v3650_v17, %v3649_v57  ;;  %v3738_v50 = vpop.f32.mrf.mxu1  ;;  %4247 = vmatpush3.bf16.msra.mxu1 %v4578_v16  ;;  %4160 = vmatprep.subr.bf16.mxu0 %v4579_v22  ;;  %v6089_v16 = vld [vmem:[#allocation13_spill] sm:$0xff]  ;;  %v6090_v22 = vld [vmem:[#allocation14_spill] sm:$0xff] }
 0x100   : > { %v3739_v2 = vadd.f32 %v3738_v50, %v3737_v41  ;;  %v3652_v33 = vpop.f32.mrf.mxu0  ;;  %2124 = vmatmul.mubr.bf16.gmra.mxu0 %v6088_v48  ;;  %4248 = vmatprep.subr.bf16.mxu1 %v4581_v13  ;;  %v4584_v41 = vld [vmem:[%s5957_s2 + $0x110] sm:$0xff]  }
 0x101   : > { %v3740_v57 = vpop.f32.mrf.mxu1  ;;  %2253 = vmatmul.mubr.bf16.gmra.mxu1 %v6089_v16  ;;  %2131 = vmatprep.mubr.bf16.mxu0 %v6090_v22  ;;  %v4586_v48 = vld [vmem:[%s5957_s2 + $0x190] sm:$0xff]  }
 0x102   : > { %v5570_v17 = vadd.f32 %v3739_v2, %v3651_v40  ;;  %v3653_v21 = vpop.f32.mrf.mxu0  ;;  %2260 = vmatprep.mubr.bf16.mxu1 %v6091_v60  ;;  %4161 = vmatpush3.bf16.msra.mxu0 %v4580_v27  ;;  %v4587_v40 = vld [vmem:[%s5957_s2 + $0x148] sm:$0xff]  }
 0x103   : > { %v3654_v13 = vadd.f32 %v3653_v21, %v3652_v33  ;;  %v3741_v50 = vpop.f32.mrf.mxu1  ;;  %4249 = vmatpush3.bf16.msra.mxu1 %v4582_v1  ;;  %4162 = vmatprep.subr.bf16.mxu0 %v4583_v18  ;;  %v4589_v60 = vld [vmem:[%s5957_s2 + $0x1c8] sm:$0xff]  }
 0x104   : > { %v3742_v2 = vadd.f32 %v3741_v50, %v3740_v57  ;;  %v3655_v16 = vpop.f32.mrf.mxu0  ;;  %4250 = vmatprep.subr.bf16.mxu1 %v4585_v46  ;;  %v4588_v18 = vld [vmem:[%s5957_s2 + $0x108] sm:$0xff]   ;;  %v4591_v57 = vld [vmem:[%s5957_s2 + $0x140] sm:$0xff]  }
 0x105   : > { %v3743_v27 = vpop.f32.mrf.mxu1  ;;  %v4590_v46 = vld [vmem:[%s5957_s2 + $0x188] sm:$0xff]  }
 0x106   : > { %v5585_v21 = vadd.f32 %v3742_v2, %v3654_v13  ;;  %v3656_v1 = vpop.f32.mrf.mxu0  ;;  %4163 = vmatpush3.bf16.msra.mxu0 %v4584_v41  ;;  %v6092_v13 = vld [vmem:[#allocation16_spill] sm:$0xff]  ;;  %v4593_v41 = vld [vmem:[%s5957_s2 + $0x1c0] sm:$0xff]   ;;  %v6093_v2 = vld [vmem:[#allocation17_spill] sm:$0xff] }
 0x107   : > { %v3744_v33 = vpop.f32.mrf.mxu1  ;;  %4251 = vmatpush3.bf16.msra.mxu1 %v4586_v48  ;;  %4164 = vmatprep.subr.bf16.mxu0 %v4587_v40  ;;  %v6094_v48 = vld [vmem:[#allocation18_spill] sm:$0xff]  ;;  %v6095_v16 = vld [vmem:[#allocation19_spill] sm:$0xff] }
 0x108   : > { %v3658_v22 = vpop.f32.mrf.mxu0  ;;  %2132 = vmatmul.mubr.bf16.gmra.mxu0 %v6092_v13  ;;  %4252 = vmatprep.subr.bf16.mxu1 %v4589_v60  ;;  %v4592_v27 = vld [vmem:[%s5957_s2 + $0x100] sm:$0xff]  }
 0x109   : > { %v3746_v50 = vpop.f32.mrf.mxu1  ;;  %2261 = vmatmul.mubr.bf16.gmra.mxu1 %v6093_v2  ;;  %2139 = vmatprep.mubr.bf16.mxu0 %v6094_v48  ;;  %v4594_v60 = vld [vmem:[%s5957_s2 + $0x180] sm:$0xff]  }
 0x10a   : > { %v3659_v40 = vpop.f32.mrf.mxu0  ;;  %2268 = vmatprep.mubr.bf16.mxu1 %v6095_v16  ;;  %4165 = vmatpush3.bf16.msra.mxu0 %v4588_v18 }
 0x10b   : > { %v3660_v1 = vadd.f32 %v3659_v40, %v3658_v22  ;;  %v3747_v33 = vpop.f32.mrf.mxu1  ;;  %4253 = vmatpush3.bf16.msra.mxu1 %v4590_v46  ;;  %4166 = vmatprep.subr.bf16.mxu0 %v4591_v57  ;;  %v6096_v40 = vld [vmem:[#allocation23_spill] sm:$0xff]  ;;  %v6097_v57 = vld [vmem:[#allocation24_spill] sm:$0xff] }
 0x10c   : > { %v3748_v13 = vadd.f32 %v3747_v33, %v3746_v50  ;;  %v3661_v2 = vpop.f32.mrf.mxu0  ;;  %4254 = vmatprep.subr.bf16.mxu1 %v4593_v41  ;;  %v6099_v33 = vld [vmem:[#allocation26_spill] sm:$0xff] }
 0x10d   : > { %v3749_v48 = vpop.f32.mrf.mxu1 }
 0x10e   : > { %v5609_v23 = vadd.f32 %v3748_v13, %v3660_v1  ;;  %v3662_v16 = vpop.f32.mrf.mxu0  ;;  %4167 = vmatpush3.bf16.msra.mxu0 %v4592_v27 }
 0x10f   : > { %v3663_v18 = vadd.f32 %v3662_v16, %v3661_v2  ;;  %v3750_v59 = vpop.f32.mrf.mxu1  ;;  %4255 = vmatpush3.bf16.msra.mxu1 %v4594_v60 }
 0x110   : > { %v3751_v11 = vadd.f32 %v3750_v59, %v3749_v48  ;;  %v3664_v22 = vpop.f32.mrf.mxu0  ;;  %2140 = vmatmul.mubr.bf16.gmra.mxu0 %v6096_v40 }
 0x111   : > { %v3752_v46 = vpop.f32.mrf.mxu1  ;;  %2269 = vmatmul.mubr.bf16.gmra.mxu1 %v6097_v57  ;;  %2147 = vmatprep.mubr.bf16.mxu0 %v6098_v44  ;;  %v6100_v22 = vld [vmem:[#allocation31_spill] sm:$0xff]  ;;  %v6102_v57 = vld [vmem:[#allocation33_spill] sm:$0xff] }
 0x112   : > { %v5614_v50 = vadd.f32 %v3751_v11, %v3663_v18  ;;  %v3665_v41 = vpop.f32.mrf.mxu0  ;;  %2276 = vmatprep.mubr.bf16.mxu1 %v6099_v33  ;;  %v6101_v46 = vld [vmem:[#allocation32_spill] sm:$0xff]  ;;  %v6103_v18 = vld [vmem:[#allocation34_spill] sm:$0xff] }
 0x113   : > { %v3753_v1 = vpop.f32.mrf.mxu1 }
 0x114   : > { %v3667_v13 = vpop.f32.mrf.mxu0 }
 0x115   : > { %v3755_v27 = vpop.f32.mrf.mxu1 }
 0x116   : > { %v3668_v2 = vpop.f32.mrf.mxu0 }
 0x117   : > { %v3669_v16 = vadd.f32 %v3668_v2, %v3667_v13  ;;  %v3756_v60 = vpop.f32.mrf.mxu1 }
 0x118   : > { %v3757_v59 = vadd.f32 %v3756_v60, %v3755_v27  ;;  %v3670_v48 = vpop.f32.mrf.mxu0  ;;  %2148 = vmatmul.mubr.bf16.gmra.mxu0 %v6100_v22 }
 0x119   : > { %v3758_v40 = vpop.f32.mrf.mxu1  ;;  %2277 = vmatmul.mubr.bf16.gmra.mxu1 %v6101_v46  ;;  %2155 = vmatprep.mubr.bf16.mxu0 %v6102_v57  ;;  %v6107_v57 = vld [vmem:[#allocation42_spill] sm:$0xff] }
 0x11a   : > { %v5620_v44 = vadd.f32 %v3757_v59, %v3669_v16  ;;  %v3671_v11 = vpop.f32.mrf.mxu0  ;;  %2284 = vmatprep.mubr.bf16.mxu1 %v6103_v18  ;;  %v6106_v16 = vld [vmem:[#allocation41_spill] sm:$0xff] }
 0x11b   : > { %v3672_v41 = vadd.f32 %v3671_v11, %v3670_v48  ;;  %v3759_v33 = vpop.f32.mrf.mxu1 }
 0x11c   : > { %v3760_v1 = vadd.f32 %v3759_v33, %v3758_v40  ;;  %v3673_v6 = vpop.f32.mrf.mxu0 }
 0x11d   : > { %v3761_v13 = vpop.f32.mrf.mxu1 }
 0x11e   : > { %v5623_v2 = vadd.f32 %v3760_v1, %v3672_v41  ;;  %v3674_v27 = vpop.f32.mrf.mxu0 }
 0x11f   : > { %v3762_v60 = vpop.f32.mrf.mxu1 }
 0x120   : > { %v3676_v22 = vpop.f32.mrf.mxu0  ;;  %2156 = vmatmul.mubr.bf16.gmra.mxu0 %v6104_v4 }
 0x121   : > { %v3764_v46 = vpop.f32.mrf.mxu1  ;;  %2285 = vmatmul.mubr.bf16.gmra.mxu1 %v6105_v31  ;;  %2163 = vmatprep.mubr.bf16.mxu0 %v6106_v16 }
 0x122   : > { %v3677_v59 = vpop.f32.mrf.mxu0  ;;  %2292 = vmatprep.mubr.bf16.mxu1 %v6107_v57 }
 0x123   : > { %v3678_v48 = vadd.f32 %v3677_v59, %v3676_v22  ;;  %v3765_v11 = vpop.f32.mrf.mxu1 }
 0x124   : > { %v3766_v40 = vadd.f32 %v3765_v11, %v3764_v46  ;;  %v3679_v6 = vpop.f32.mrf.mxu0 }
 0x125   : > { %v3767_v18 = vpop.f32.mrf.mxu1 }
 0x126   : > { %v5629_v41 = vadd.f32 %v3766_v40, %v3678_v48  ;;  %v3680_v33 = vpop.f32.mrf.mxu0 }
 0x127   : > { %v3681_v1 = vadd.f32 %v3680_v33, %v3679_v6  ;;  %v3768_v13 = vpop.f32.mrf.mxu1 }
 0x128   : > { %v3769_v27 = vadd.f32 %v3768_v13, %v3767_v18  ;;  %v3682_v4 = vpop.f32.mrf.mxu0  ;;  %2164 = vmatmul.mubr.bf16.gmra.mxu0 %v5251_v39 }
 0x129   : > { %v3770_v31 = vpop.f32.mrf.mxu1  ;;  %2293 = vmatmul.mubr.bf16.gmra.mxu1 %v5255_v47  ;;  %2171 = vmatprep.mubr.bf16.mxu0 %v5258_v54 }
 0x12a   : > { %v5634_v60 = vadd.f32 %v3769_v27, %v3681_v1  ;;  %v3683_v22 = vpop.f32.mrf.mxu0  ;;  %2300 = vmatprep.mubr.bf16.mxu1 %v5275_v30 }
 0x12b   : > { %v3771_v46 = vpop.f32.mrf.mxu1 }
 0x12c   : > { %v3685_v16 = vpop.f32.mrf.mxu0  ;;  %v6109_v46 = vld [vmem:[#allocation49_spill] sm:$0xff] }
 0x12d   : > { %v3773_v59 = vpop.f32.mrf.mxu1 }
 0x12e   : > { %v3686_v57 = vpop.f32.mrf.mxu0 }
 0x12f   : > { %v3687_v48 = vadd.f32 %v3686_v57, %v3685_v16  ;;  %v3774_v11 = vpop.f32.mrf.mxu1 }
 0x130   : > { %v3775_v40 = vadd.f32 %v3774_v11, %v3773_v59  ;;  %v3688_v6 = vpop.f32.mrf.mxu0  ;;  %2172 = vmatmul.mubr.bf16.gmra.mxu0 %v5284_v32 }
 0x131   : > { %v3776_v39 = vpop.f32.mrf.mxu1  ;;  %2301 = vmatmul.mubr.bf16.gmra.mxu1 %v5287_v34  ;;  %2179 = vmatprep.mubr.bf16.mxu0 %v5290_v26  ;;  %v6108_v26 = vld [vmem:[#allocation48_spill] sm:$0xff] }
 0x132   : > { %v5640_v54 = vadd.f32 %v3775_v40, %v3687_v48  ;;  %v3689_v47 = vpop.f32.mrf.mxu0  ;;  %2308 = vmatprep.mubr.bf16.mxu1 %v5293_v36 }
 0x133   : > { %v3690_v30 = vadd.f32 %v3689_v47, %v3688_v6  ;;  %v3777_v18 = vpop.f32.mrf.mxu1 }
 0x134   : > { %v3778_v33 = vadd.f32 %v3777_v18, %v3776_v39  ;;  %v3691_v1 = vpop.f32.mrf.mxu0  ;;  %v6111_v18 = vld [vmem:[#allocation51_spill] sm:$0xff] }
 0x135   : > { %v3779_v13 = vpop.f32.mrf.mxu1 }
 0x136   : > { %v5643_v27 = vadd.f32 %v3778_v33, %v3690_v30  ;;  %v3692_v4 = vpop.f32.mrf.mxu0  ;;  %v6110_v30 = vld [vmem:[#allocation50_spill] sm:$0xff]  ;;  %v6112_v33 = vld [vmem:[#allocation52_spill] sm:$0xff] }
 0x137   : > { %v3780_v31 = vpop.f32.mrf.mxu1  ;;  %v6113_v4 = vld [vmem:[#allocation53_spill] sm:$0xff] }
 0x138   : > { %v3694_v32 = vpop.f32.mrf.mxu0  ;;  %2180 = vmatmul.mubr.bf16.gmra.mxu0 %v5302_v45 }
 0x139   : > { %v3782_v34 = vpop.f32.mrf.mxu1  ;;  %2309 = vmatmul.mubr.bf16.gmra.mxu1 %v5305_v3  ;;  %2187 = vmatprep.mubr.bf16.mxu0 %v6108_v26 }
 0x13a   : > { %v3695_v22 = vpop.f32.mrf.mxu0  ;;  %2316 = vmatprep.mubr.bf16.mxu1 %v6109_v46 }
 0x13b   : > { %v3696_v36 = vadd.f32 %v3695_v22, %v3694_v32  ;;  %v3783_v16 = vpop.f32.mrf.mxu1 }
 0x13c   : > { %v3784_v59 = vadd.f32 %v3783_v16, %v3782_v34  ;;  %v3697_v57 = vpop.f32.mrf.mxu0 }
 0x13d   : > { %v3785_v48 = vpop.f32.mrf.mxu1 }
 0x13e   : > { %v5649_v11 = vadd.f32 %v3784_v59, %v3696_v36  ;;  %v3698_v40 = vpop.f32.mrf.mxu0  ;;  %v6114_v59 = vld [vmem:[#allocation54_spill] sm:$0xff] }
 0x13f   : > { %v3699_v6 = vadd.f32 %v3698_v40, %v3697_v57  ;;  %v3786_v39 = vpop.f32.mrf.mxu1  ;;  %v6116_v40 = vld [vmem:[#allocation56_spill] sm:$0xff] }
 0x140   : > { %v3787_v47 = vadd.f32 %v3786_v39, %v3785_v48  ;;  %v3700_v45 = vpop.f32.mrf.mxu0  ;;  %2188 = vmatmul.mubr.bf16.gmra.mxu0 %v6110_v30  ;;  %v6115_v48 = vld [vmem:[#allocation55_spill] sm:$0xff] }
 0x141   : > { %v3788_v3 = vpop.f32.mrf.mxu1  ;;  %2317 = vmatmul.mubr.bf16.gmra.mxu1 %v6111_v18  ;;  %2195 = vmatprep.mubr.bf16.mxu0 %v6112_v33 }
 0x142   : > { %v5654_v1 = vadd.f32 %v3787_v47, %v3699_v6  ;;  %v3701_v13 = vpop.f32.mrf.mxu0  ;;  %2324 = vmatprep.mubr.bf16.mxu1 %v6113_v4  ;;  %v6117_v47 = vld [vmem:[#allocation57_spill] sm:$0xff] }
 0x143   : > { %v3789_v31 = vpop.f32.mrf.mxu1 }
 0x144   : > { %v3703_v32 = vpop.f32.mrf.mxu0 }
 0x145   : > { %v3791_v34 = vpop.f32.mrf.mxu1 }
 0x146   : > { %v3704_v26 = vpop.f32.mrf.mxu0 }
 0x147   : > { %v3705_v22 = vadd.f32 %v3704_v26, %v3703_v32  ;;  %v3792_v46 = vpop.f32.mrf.mxu1 }
 0x148   : > { %v3793_v36 = vadd.f32 %v3792_v46, %v3791_v34  ;;  %v3706_v16 = vpop.f32.mrf.mxu0  ;;  %2196 = vmatmul.mubr.bf16.gmra.mxu0 %v6114_v59  ;;  %v6118_v34 = vld [vmem:[#allocation58_spill] sm:$0xff]  ;;  %v6119_v46 = vld [vmem:[#allocation59_spill] sm:$0xff] }
 0x149   : > { %v3794_v57 = vpop.f32.mrf.mxu1  ;;  %2325 = vmatmul.mubr.bf16.gmra.mxu1 %v6115_v48  ;;  %2557 = vmatprep.mubr.bf16.mxu0 %v6116_v40 }
 0x14a   : > { %v5660_v6 = vadd.f32 %v3793_v36, %v3705_v22  ;;  %v3707_v39 = vpop.f32.mrf.mxu0  ;;  %2686 = vmatprep.mubr.bf16.mxu1 %v6117_v47 }
 0x14b   : > { %v3708_v45 = vadd.f32 %v3707_v39, %v3706_v16  ;;  %v3795_v30 = vpop.f32.mrf.mxu1 }
 0x14c   : > { %v3796_v3 = vadd.f32 %v3795_v30, %v3794_v57  ;;  %v3709_v18 = vpop.f32.mrf.mxu0 }
 0x14d   : > { %v3797_v33 = vpop.f32.mrf.mxu1 }
 0x14e   : > { %v5663_v13 = vadd.f32 %v3796_v3, %v3708_v45  ;;  %v3710_v4 = vpop.f32.mrf.mxu0 }
 0x14f   : > { %v3798_v31 = vpop.f32.mrf.mxu1 }
 0x150   : > { %v3816_v32 = vpop.f32.mrf.mxu0  ;;  %2558 = vmatmul.mubr.bf16.vlgmr.msra.gmra.mxu0 %v6118_v34 }
 0x151   : > { %v3904_v26 = vpop.f32.mrf.mxu1  ;;  %2687 = vmatmul.mubr.bf16.vlgmr.msra.gmra.mxu1 %v6119_v46  ;;  %2565 = vmatprep.mubr.bf16.mxu0 %v5263_v37 }
 0x152   : > { %v3817_v22 = vpop.f32.mrf.mxu0  ;;  %2694 = vmatprep.mubr.bf16.mxu1 %v5266_v38 }
 0x153   : > { %v3818_v36 = vadd.f32 %v3817_v22, %v3816_v32  ;;  %v3905_v16 = vpop.f32.mrf.mxu1 }
 0x154   : > { %v3906_v59 = vadd.f32 %v3905_v16, %v3904_v26  ;;  %v3819_v57 = vpop.f32.mrf.mxu0 }
 0x155   : > { %v1546_v48 = vadd.f32 %v3818_v36, %v5523_v19  ;;  %v3907_v40 = vpop.f32.mrf.mxu1 }
 0x156   : > { %v3820_v39 = vpop.f32.mrf.mxu0 }
 0x157   : > { %v5670_v47 = vadd.f32 %v3906_v59, %v1546_v48  ;;  %v3821_v45 = vadd.f32 %v3820_v39, %v3819_v57  ;;  %v3908_v30 = vpop.f32.mrf.mxu1 }
 0x158   : > { %v3909_v3 = vadd.f32 %v3908_v30, %v3907_v40  ;;  %v3822_v18 = vpop.f32.mrf.mxu0  ;;  %2566 = vmatmul.mubr.bf16.gmra.mxu0 %v5269_v35 }
 0x159   : > { %v1549_v37 = vadd.f32 %v3821_v45, %v5540_v51  ;;  %v3910_v33 = vpop.f32.mrf.mxu1  ;;  %2695 = vmatmul.mubr.bf16.gmra.mxu1 %v5272_v20  ;;  %2573 = vmatprep.mubr.bf16.mxu0 %v4854_v49 }
 0x15a   : > { %v3823_v38 = vpop.f32.mrf.mxu0  ;;  %2702 = vmatprep.mubr.bf16.mxu1 %v4861_v52 }
 0x15b   : > { %v5677_v19 = vadd.f32 %v3909_v3, %v1549_v37  ;;  %v3911_v4 = vpop.f32.mrf.mxu1 }
 0x15c   : > { %v3825_v31 = vpop.f32.mrf.mxu0 }
 0x15d   : > { %v3913_v32 = vpop.f32.mrf.mxu1 }
 0x15e   : > { %v3826_v34 = vpop.f32.mrf.mxu0 }
 0x15f   : > { %v3827_v26 = vadd.f32 %v3826_v34, %v3825_v31  ;;  %v3914_v46 = vpop.f32.mrf.mxu1 }
 0x160   : > { %v3915_v22 = vadd.f32 %v3914_v46, %v3913_v32  ;;  %v3828_v35 = vpop.f32.mrf.mxu0  ;;  %2574 = vmatmul.mubr.bf16.gmra.mxu0 %v4863_v53 }
 0x161   : > { %v1556_v51 = vadd.f32 %v3827_v26, %v5570_v17  ;;  %v3916_v20 = vpop.f32.mrf.mxu1  ;;  %2703 = vmatmul.mubr.bf16.gmra.mxu1 %v4871_v56  ;;  %2581 = vmatprep.mubr.bf16.mxu0 %v4883_v63 }
 0x162   : > { %v3829_v49 = vpop.f32.mrf.mxu0  ;;  %2710 = vmatprep.mubr.bf16.mxu1 %v4898_v7 }
 0x163   : > { %v5684_v52 = vadd.f32 %v3915_v22, %v1556_v51  ;;  %v3830_v36 = vadd.f32 %v3829_v49, %v3828_v35  ;;  %v3917_v16 = vpop.f32.mrf.mxu1 }
 0x164   : > { %v3918_v59 = vadd.f32 %v3917_v16, %v3916_v20  ;;  %v3831_v57 = vpop.f32.mrf.mxu0 }
 0x165   : > { %v1561_v48 = vadd.f32 %v3830_v36, %v5585_v21  ;;  %v3919_v40 = vpop.f32.mrf.mxu1 }
 0x166   : > { %v3832_v53 = vpop.f32.mrf.mxu0 }
 0x167   : > { %v5687_v39 = vadd.f32 %v3918_v59, %v1561_v48  ;;  %v3920_v17 = vpop.f32.mrf.mxu1 }
 0x168   : > { %v3834_v45 = vpop.f32.mrf.mxu0  ;;  %2582 = vmatmul.mubr.bf16.gmra.mxu0 %v4885_v0 }
 0x169   : > { %v3922_v56 = vpop.f32.mrf.mxu1  ;;  %2711 = vmatmul.mubr.bf16.gmra.mxu1 %v4900_v8  ;;  %2589 = vmatprep.mubr.bf16.mxu0 %v4905_v10 }
 0x16a   : > { %v3835_v63 = vpop.f32.mrf.mxu0  ;;  %2718 = vmatprep.mubr.bf16.mxu1 %v4911_v12 }
 0x16b   : > { %v3836_v7 = vadd.f32 %v3835_v63, %v3834_v45  ;;  %v3923_v30 = vpop.f32.mrf.mxu1 }
 0x16c   : > { %v3924_v3 = vadd.f32 %v3923_v30, %v3922_v56  ;;  %v3837_v21 = vpop.f32.mrf.mxu0 }
 0x16d   : > { %v1568_v18 = vadd.f32 %v3836_v7, %v5609_v23  ;;  %v3925_v37 = vpop.f32.mrf.mxu1 }
 0x16e   : > { %v3838_v33 = vpop.f32.mrf.mxu0 }
 0x16f   : > { %v5694_v38 = vadd.f32 %v3924_v3, %v1568_v18  ;;  %v3839_v4 = vadd.f32 %v3838_v33, %v3837_v21  ;;  %v3926_v0 = vpop.f32.mrf.mxu1  ;;  %v6121_v33 = vld [vmem:[#allocation21_spill] sm:$0xff] }
 0x170   : > { %v3927_v31 = vadd.f32 %v3926_v0, %v3925_v37  ;;  %v3840_v32 = vpop.f32.mrf.mxu0  ;;  %2590 = vmatmul.mubr.bf16.gmra.mxu0 %v4916_v14 }
 0x171   : > { %v1571_v8 = vadd.f32 %v3839_v4, %v5614_v50  ;;  %v3928_v10 = vpop.f32.mrf.mxu1  ;;  %2719 = vmatmul.mubr.bf16.gmra.mxu1 %v4918_v15  ;;  %2597 = vmatprep.mubr.bf16.mxu0 %v4941_v24 }
 0x172   : > { %v3841_v12 = vpop.f32.mrf.mxu0  ;;  %2726 = vmatprep.mubr.bf16.mxu1 %v4951_v28 }
 0x173   : > { %v5701_v23 = vadd.f32 %v3927_v31, %v1571_v8  ;;  %v3929_v34 = vpop.f32.mrf.mxu1 }
 0x174   : > { %v3843_v26 = vpop.f32.mrf.mxu0  ;;  %v6122_v34 = vld [vmem:[#allocation22_spill] sm:$0xff] }
 0x175   : > { %v3931_v46 = vpop.f32.mrf.mxu1 }
 0x176   : > { %v3844_v22 = vpop.f32.mrf.mxu0 }
 0x177   : > { %v3845_v35 = vadd.f32 %v3844_v22, %v3843_v26  ;;  %v3932_v51 = vpop.f32.mrf.mxu1  ;;  %v6123_v26 = vld [vmem:[#allocation27_spill] sm:$0xff] }
 0x178   : > { %v3933_v20 = vadd.f32 %v3932_v51, %v3931_v46  ;;  %v3846_v14 = vpop.f32.mrf.mxu0  ;;  %2598 = vmatmul.mubr.bf16.gmra.mxu0 %v4944_v25  ;;  %v6124_v46 = vld [vmem:[#allocation28_spill] sm:$0xff] }
 0x179   : > { %v1578_v50 = vadd.f32 %v3845_v35, %v5620_v44  ;;  %v3934_v15 = vpop.f32.mrf.mxu1  ;;  %2727 = vmatmul.mubr.bf16.gmra.mxu1 %v4954_v29  ;;  %2605 = vmatprep.mubr.bf16.mxu0 %v4977_v42  ;;  %v6125_v35 = vld [vmem:[#allocation29_spill] sm:$0xff] }
 0x17a   : > { %v3847_v24 = vpop.f32.mrf.mxu0  ;;  %2734 = vmatprep.mubr.bf16.mxu1 %v4998_v55 }
 0x17b   : > { %v5708_v28 = vadd.f32 %v3933_v20, %v1578_v50  ;;  %v3848_v49 = vadd.f32 %v3847_v24, %v3846_v14  ;;  %v3935_v36 = vpop.f32.mrf.mxu1 }
 0x17c   : > { %v3936_v16 = vadd.f32 %v3935_v36, %v3934_v15  ;;  %v3849_v59 = vpop.f32.mrf.mxu0 }
 0x17d   : > { %v1583_v57 = vadd.f32 %v3848_v49, %v5623_v2  ;;  %v3937_v48 = vpop.f32.mrf.mxu1 }
 0x17e   : > { %v3850_v25 = vpop.f32.mrf.mxu0 }
 0x17f   : > { %v5711_v40 = vadd.f32 %v3936_v16, %v1583_v57  ;;  %v3938_v44 = vpop.f32.mrf.mxu1  ;;  %v6126_v57 = vld [vmem:[#allocation30_spill] sm:$0xff]  ;;  %v6127_v25 = vld [vmem:[#allocation35_spill] sm:$0xff] }
 0x180   : > { %v3852_v53 = vpop.f32.mrf.mxu0  ;;  %2606 = vmatmul.mubr.bf16.gmra.mxu0 %v4980_v43  ;;  %v6128_v44 = vld [vmem:[#allocation36_spill] sm:$0xff] }
 0x181   : > { %v3940_v29 = vpop.f32.mrf.mxu1  ;;  %2735 = vmatmul.mubr.bf16.gmra.mxu1 %v5001_v58  ;;  %2613 = vmatprep.mubr.bf16.mxu0 %v5010_v61 }
 0x182   : > { %v3853_v42 = vpop.f32.mrf.mxu0  ;;  %2742 = vmatprep.mubr.bf16.mxu1 %v5014_v62  ;;  %v6120_v62 = vld [vmem:[#allocation20_spill] sm:$0xff] }
 0x183   : > { %v3854_v55 = vadd.f32 %v3853_v42, %v3852_v53  ;;  %v3941_v17 = vpop.f32.mrf.mxu1 }
 0x184   : > { %v3942_v45 = vadd.f32 %v3941_v17, %v3940_v29  ;;  %v3855_v2 = vpop.f32.mrf.mxu0  ;;  %v6129_v29 = vld [vmem:[#allocation37_spill] sm:$0xff] }
 0x185   : > { %v1590_v56 = vadd.f32 %v3854_v55, %v5629_v41  ;;  %v3943_v63 = vpop.f32.mrf.mxu1 }
 0x186   : > { %v3856_v7 = vpop.f32.mrf.mxu0 }
 0x187   : > { %v5718_v30 = vadd.f32 %v3942_v45, %v1590_v56  ;;  %v3857_v3 = vadd.f32 %v3856_v7, %v3855_v2  ;;  %v3944_v43 = vpop.f32.mrf.mxu1 }
 0x188   : > { %v3945_v21 = vadd.f32 %v3944_v43, %v3943_v63  ;;  %v3858_v18 = vpop.f32.mrf.mxu0  ;;  %2614 = vmatmul.mubr.bf16.gmra.mxu0 %v5030_v5 }
 0x189   : > { %v1593_v58 = vadd.f32 %v3857_v3, %v5634_v60  ;;  %v3946_v61 = vpop.f32.mrf.mxu1  ;;  %2743 = vmatmul.mubr.bf16.gmra.mxu1 %v5037_v9  ;;  %2621 = vmatprep.mubr.bf16.mxu0 %v6120_v62  ;;  %v6130_v18 = vld [vmem:[#allocation38_spill] sm:$0xff]  ;;  %v6131_v62 = vld [vmem:[#allocation43_spill] sm:$0xff] }
 0x18a   : > { %v3859_v37 = vpop.f32.mrf.mxu0  ;;  %2750 = vmatprep.mubr.bf16.mxu1 %v6121_v33 }
 0x18b   : > { %v5725_v41 = vadd.f32 %v3945_v21, %v1593_v58  ;;  %v3947_v4 = vpop.f32.mrf.mxu1  ;;  %v6132_v37 = vld [vmem:[#allocation44_spill] sm:$0xff] }
 0x18c   : > { %v3861_v0 = vpop.f32.mrf.mxu0  ;;  %v6133_v4 = vld [vmem:[#allocation45_spill] sm:$0xff] }
 0x18d   : > { %v3949_v31 = vpop.f32.mrf.mxu1 }
 0x18e   : > { %v3862_v32 = vpop.f32.mrf.mxu0 }
 0x18f   : > { %v3863_v8 = vadd.f32 %v3862_v32, %v3861_v0  ;;  %v3950_v10 = vpop.f32.mrf.mxu1 }
 0x190   : > { %v3951_v12 = vadd.f32 %v3950_v10, %v3949_v31  ;;  %v3864_v5 = vpop.f32.mrf.mxu0  ;;  %2622 = vmatmul.mubr.bf16.gmra.mxu0 %v6122_v34 }
 0x191   : > { %v1600_v60 = vadd.f32 %v3863_v8, %v5640_v54  ;;  %v3952_v9 = vpop.f32.mrf.mxu1  ;;  %2751 = vmatmul.mubr.bf16.gmra.mxu1 %v6123_v26  ;;  %2629 = vmatprep.mubr.bf16.mxu0 %v6124_v46  ;;  %v6135_v26 = vld [vmem:[#allocation47_spill] sm:$0xff] }
 0x192   : > { %v3865_v22 = vpop.f32.mrf.mxu0  ;;  %2758 = vmatprep.mubr.bf16.mxu1 %v6125_v35 }
 0x193   : > { %v5732_v51 = vadd.f32 %v3951_v12, %v1600_v60  ;;  %v3866_v20 = vadd.f32 %v3865_v22, %v3864_v5  ;;  %v3953_v14 = vpop.f32.mrf.mxu1  ;;  %v6134_v60 = vld [vmem:[#allocation46_spill] sm:$0xff] }
 0x194   : > { %v3954_v50 = vadd.f32 %v3953_v14, %v3952_v9  ;;  %v3867_v15 = vpop.f32.mrf.mxu0 }
 0x195   : > { %v1605_v24 = vadd.f32 %v3866_v20, %v5643_v27  ;;  %v3955_v49 = vpop.f32.mrf.mxu1 }
 0x196   : > { %v3868_v36 = vpop.f32.mrf.mxu0 }
 0x197   : > { %v5735_v16 = vadd.f32 %v3954_v50, %v1605_v24  ;;  %v3956_v54 = vpop.f32.mrf.mxu1 }
 0x198   : > { %v3870_v59 = vpop.f32.mrf.mxu0  ;;  %2630 = vmatmul.mubr.bf16.gmra.mxu0 %v6126_v57 }
 0x199   : > { %v3958_v48 = vpop.f32.mrf.mxu1  ;;  %2759 = vmatmul.mubr.bf16.gmra.mxu1 %v6127_v25  ;;  %2637 = vmatprep.mubr.bf16.mxu0 %v6128_v44 }
 0x19a   : > { %v3871_v53 = vpop.f32.mrf.mxu0  ;;  %2766 = vmatprep.mubr.bf16.mxu1 %v6129_v29 }
 0x19b   : > { %v3872_v42 = vadd.f32 %v3871_v53, %v3870_v59  ;;  %v3959_v55 = vpop.f32.mrf.mxu1 }
 0x19c   : > { %v3960_v17 = vadd.f32 %v3959_v55, %v3958_v48  ;;  %v3873_v27 = vpop.f32.mrf.mxu0 }
 0x19d   : > { %v1612_v45 = vadd.f32 %v3872_v42, %v5649_v11  ;;  %v3961_v2 = vpop.f32.mrf.mxu1 }
 0x19e   : > { %v3874_v56 = vpop.f32.mrf.mxu0 }
 0x19f   : > { %v5742_v63 = vadd.f32 %v3960_v17, %v1612_v45  ;;  %v3875_v7 = vadd.f32 %v3874_v56, %v3873_v27  ;;  %v3962_v3 = vpop.f32.mrf.mxu1 }
 0x1a0   : > { %v3963_v43 = vadd.f32 %v3962_v3, %v3961_v2  ;;  %v3876_v21 = vpop.f32.mrf.mxu0  ;;  %2638 = vmatmul.mubr.bf16.gmra.mxu0 %v6130_v18 }
 0x1a1   : > { %v1615_v58 = vadd.f32 %v3875_v7, %v5654_v1  ;;  %v3964_v61 = vpop.f32.mrf.mxu1  ;;  %2767 = vmatmul.mubr.bf16.gmra.mxu1 %v6131_v62  ;;  %2645 = vmatprep.mubr.bf16.mxu0 %v6132_v37 }
 0x1a2   : > { %v3877_v33 = vpop.f32.mrf.mxu0  ;;  %2774 = vmatprep.mubr.bf16.mxu1 %v6133_v4 }
 0x1a3   : > { %v5749_v11 = vadd.f32 %v3963_v43, %v1615_v58  ;;  %v3965_v0 = vpop.f32.mrf.mxu1 }
 0x1a4   : > { %v3879_v31 = vpop.f32.mrf.mxu0 }
 0x1a5   : > { %v3967_v32 = vpop.f32.mrf.mxu1 }
 0x1a6   : > { %v3880_v8 = vpop.f32.mrf.mxu0 }
 0x1a7   : > { %v3881_v10 = vadd.f32 %v3880_v8, %v3879_v31  ;;  %v3968_v12 = vpop.f32.mrf.mxu1 }
 0x1a8   : > { %v3969_v5 = vadd.f32 %v3968_v12, %v3967_v32  ;;  %v3882_v34 = vpop.f32.mrf.mxu0  ;;  %2646 = vmatmul.mubr.bf16.gmra.mxu0 %v6134_v60 }
 0x1a9   : > { %v1622_v1 = vadd.f32 %v3881_v10, %v5660_v6  ;;  %v3970_v9 = vpop.f32.mrf.mxu1  ;;  %2775 = vmatmul.mubr.bf16.gmra.mxu1 %v6135_v26 }
 0x1aa   : > { %v3883_v46 = vpop.f32.mrf.mxu0 }
 0x1ab   : > { %v5754_v22 = vadd.f32 %v3969_v5, %v1622_v1  ;;  %v3884_v35 = vadd.f32 %v3883_v46, %v3882_v34  ;;  %v3971_v20 = vpop.f32.mrf.mxu1 }
 0x1ac   : > { %v3972_v14 = vadd.f32 %v3971_v20, %v3970_v9  ;;  %v3885_v50 = vpop.f32.mrf.mxu0 }
 0x1ad   : > { %v1627_v15 = vadd.f32 %v3884_v35, %v5663_v13  ;;  %v3973_v24 = vpop.f32.mrf.mxu1 }
 0x1ae   : > { %v3886_v49 = vpop.f32.mrf.mxu0 }
 0x1af   : > { %v5757_v36 = vadd.f32 %v3972_v14, %v1627_v15  ;;  %v3974_v54 = vpop.f32.mrf.mxu1 }
 0x1b0   : > { %v3992_v59 = vpop.f32.mrf.mxu0 }
 0x1b1   : > { %v4080_v57 = vpop.f32.mrf.mxu1 }
 0x1b2   : > { %v3993_v6 = vpop.f32.mrf.mxu0 }
 0x1b3   : > { %v3994_v48 = vadd.f32 %v3993_v6, %v3992_v59  ;;  %v4081_v25 = vpop.f32.mrf.mxu1 }
 0x1b4   : > { %v4082_v44 = vadd.f32 %v4081_v25, %v4080_v57  ;;  %v3995_v53 = vpop.f32.mrf.mxu0 }
 0x1b5   : > { %v4083_v29 = vpop.f32.mrf.mxu1 }
 0x1b6   : > { %v5759_v42 = vadd.f32 %v4082_v44, %v3994_v48  ;;  %v3996_v55 = vpop.f32.mrf.mxu0 }
 0x1b7   : > { %v3997_v17 = vadd.f32 %v3996_v55, %v3995_v53  ;;  %v4084_v27 = vpop.f32.mrf.mxu1 }
 0x1b8   : > { %v4085_v45 = vadd.f32 %v4084_v27, %v4083_v29  ;;  %v3998_v13 = vpop.f32.mrf.mxu0 }
 0x1b9   : > { %v4086_v2 = vpop.f32.mrf.mxu1 }
 0x1ba   : > { %v5761_v56 = vadd.f32 %v4085_v45, %v3997_v17  ;;  %v3999_v7 = vpop.f32.mrf.mxu0 }
 0x1bb   : > { %v4000_v3 = vadd.f32 %v3999_v7, %v3998_v13  ;;  %v4087_v43 = vpop.f32.mrf.mxu1 }
 0x1bc   : > { %v4088_v21 = vadd.f32 %v4087_v43, %v4086_v2  ;;  %v4001_v18 = vpop.f32.mrf.mxu0 }
 0x1bd   : > { %v4089_v58 = vpop.f32.mrf.mxu1 }
 0x1be   : > { %v5763_v61 = vadd.f32 %v4088_v21, %v4000_v3  ;;  %v4002_v62 = vpop.f32.mrf.mxu0 }
 0x1bf   : > { %v4003_v37 = vadd.f32 %v4002_v62, %v4001_v18  ;;  %v4090_v33 = vpop.f32.mrf.mxu1 }
 0x1c0   : > { %v4091_v4 = vadd.f32 %v4090_v33, %v4089_v58  ;;  %v4004_v0 = vpop.f32.mrf.mxu0 }
 0x1c1   : > { %v4092_v31 = vpop.f32.mrf.mxu1 }
 0x1c2   : > { %v5765_v32 = vadd.f32 %v4091_v4, %v4003_v37  ;;  %v4005_v8 = vpop.f32.mrf.mxu0 }
 0x1c3   : > { %v4006_v10 = vadd.f32 %v4005_v8, %v4004_v0  ;;  %v4093_v12 = vpop.f32.mrf.mxu1 }
 0x1c4   : > { %v4094_v5 = vadd.f32 %v4093_v12, %v4092_v31  ;;  %v4007_v34 = vpop.f32.mrf.mxu0 }
 0x1c5   : > { %v4095_v60 = vpop.f32.mrf.mxu1 }
 0x1c6   : > { %v5767_v1 = vadd.f32 %v4094_v5, %v4006_v10  ;;  %v4008_v9 = vpop.f32.mrf.mxu0 }
 0x1c7   : > { %v4009_v26 = vadd.f32 %v4008_v9, %v4007_v34  ;;  %v4096_v46 = vpop.f32.mrf.mxu1 }
 0x1c8   : > { %v4097_v35 = vadd.f32 %v4096_v46, %v4095_v60  ;;  %v4010_v20 = vpop.f32.mrf.mxu0 }
 0x1c9   : > { %v4098_v14 = vpop.f32.mrf.mxu1 }
 0x1ca   : > { %v5769_v50 = vadd.f32 %v4097_v35, %v4009_v26  ;;  %v4011_v15 = vpop.f32.mrf.mxu0 }
 0x1cb   : > { %v4012_v24 = vadd.f32 %v4011_v15, %v4010_v20  ;;  %v4099_v49 = vpop.f32.mrf.mxu1 }
 0x1cc   : > { %v4100_v54 = vadd.f32 %v4099_v49, %v4098_v14  ;;  %v4013_v59 = vpop.f32.mrf.mxu0 }
 0x1cd   : > { %v4101_v57 = vpop.f32.mrf.mxu1 }
 0x1ce   : > { %v5771_v6 = vadd.f32 %v4100_v54, %v4012_v24  ;;  %v4014_v48 = vpop.f32.mrf.mxu0 }
 0x1cf   : > { %v4015_v25 = vadd.f32 %v4014_v48, %v4013_v59  ;;  %v4102_v44 = vpop.f32.mrf.mxu1 }
 0x1d0   : > { %v4103_v53 = vadd.f32 %v4102_v44, %v4101_v57  ;;  %v4016_v29 = vpop.f32.mrf.mxu0 }
 0x1d1   : > { %v4104_v55 = vpop.f32.mrf.mxu1 }
 0x1d2   : > { %v5773_v17 = vadd.f32 %v4103_v53, %v4015_v25  ;;  %v4017_v27 = vpop.f32.mrf.mxu0 }
 0x1d3   : > { %v4018_v45 = vadd.f32 %v4017_v27, %v4016_v29  ;;  %v4105_v13 = vpop.f32.mrf.mxu1 }
 0x1d4   : > { %v4106_v2 = vadd.f32 %v4105_v13, %v4104_v55  ;;  %v4019_v7 = vpop.f32.mrf.mxu0 }
 0x1d5   : > { %v4107_v3 = vpop.f32.mrf.mxu1 }
 0x1d6   : > { %v5775_v43 = vadd.f32 %v4106_v2, %v4018_v45  ;;  %v4020_v21 = vpop.f32.mrf.mxu0 }
 0x1d7   : > { %v4021_v18 = vadd.f32 %v4020_v21, %v4019_v7  ;;  %v4108_v58 = vpop.f32.mrf.mxu1 }
 0x1d8   : > { %v4109_v62 = vadd.f32 %v4108_v58, %v4107_v3  ;;  %v4022_v37 = vpop.f32.mrf.mxu0 }
 0x1d9   : > { %v4110_v33 = vpop.f32.mrf.mxu1 }
 0x1da   : > { %v5777_v4 = vadd.f32 %v4109_v62, %v4021_v18  ;;  %v4023_v0 = vpop.f32.mrf.mxu0 }
 0x1db   : > { %v4024_v31 = vadd.f32 %v4023_v0, %v4022_v37  ;;  %v4111_v8 = vpop.f32.mrf.mxu1 }
 0x1dc   : > { %v4112_v10 = vadd.f32 %v4111_v8, %v4110_v33  ;;  %v4025_v12 = vpop.f32.mrf.mxu0 }
 0x1dd   : > { %v4113_v5 = vpop.f32.mrf.mxu1 }
 0x1de   : > { %v5779_v34 = vadd.f32 %v4112_v10, %v4024_v31  ;;  %v4026_v60 = vpop.f32.mrf.mxu0 }
 0x1df   : > { %v4027_v9 = vadd.f32 %v4026_v60, %v4025_v12  ;;  %v4114_v26 = vpop.f32.mrf.mxu1 }
 0x1e0   : > { %v4115_v46 = vadd.f32 %v4114_v26, %v4113_v5  ;;  %v4028_v35 = vpop.f32.mrf.mxu0 }
 0x1e1   : > { %v4116_v20 = vpop.f32.mrf.mxu1 }
 0x1e2   : > { %v5781_v14 = vadd.f32 %v4115_v46, %v4027_v9  ;;  %v4029_v15 = vpop.f32.mrf.mxu0 }
 0x1e3   : > { %v4030_v24 = vadd.f32 %v4029_v15, %v4028_v35  ;;  %v4117_v49 = vpop.f32.mrf.mxu1 }
 0x1e4   : > { %v4118_v54 = vadd.f32 %v4117_v49, %v4116_v20  ;;  %v4031_v59 = vpop.f32.mrf.mxu0 }
 0x1e5   : > { %v4119_v57 = vpop.f32.mrf.mxu1 }
 0x1e6   : > { %v5783_v48 = vadd.f32 %v4118_v54, %v4030_v24  ;;  %v4032_v25 = vpop.f32.mrf.mxu0 }
 0x1e7   : > { %v4033_v44 = vadd.f32 %v4032_v25, %v4031_v59  ;;  %v4120_v53 = vpop.f32.mrf.mxu1 }
 0x1e8   : > { %v4121_v29 = vadd.f32 %v4120_v53, %v4119_v57  ;;  %v4034_v55 = vpop.f32.mrf.mxu0 }
 0x1e9   : > { %v4122_v27 = vpop.f32.mrf.mxu1 }
 0x1ea   : > { %v5785_v45 = vadd.f32 %v4121_v29, %v4033_v44  ;;  %v4035_v13 = vpop.f32.mrf.mxu0 }
 0x1eb   : > { %v4036_v2 = vadd.f32 %v4035_v13, %v4034_v55  ;;  %v4123_v7 = vpop.f32.mrf.mxu1 }
 0x1ec   : > { %v4124_v3 = vadd.f32 %v4123_v7, %v4122_v27  ;;  %v4037_v21 = vpop.f32.mrf.mxu0 }
 0x1ed   : > { %v4125_v18 = vpop.f32.mrf.mxu1 }
 0x1ee   : > { %v5787_v58 = vadd.f32 %v4124_v3, %v4036_v2  ;;  %v4038_v62 = vpop.f32.mrf.mxu0 }
 0x1ef   : > { %v4039_v37 = vadd.f32 %v4038_v62, %v4037_v21  ;;  %v4126_v33 = vpop.f32.mrf.mxu1 }
 0x1f0   : > { %v4127_v0 = vadd.f32 %v4126_v33, %v4125_v18  ;;  %v4040_v31 = vpop.f32.mrf.mxu0 }
 0x1f1   : > { %v4128_v8 = vpop.f32.mrf.mxu1 }
 0x1f2   : > { %v5789_v10 = vadd.f32 %v4127_v0, %v4039_v37  ;;  %v4041_v12 = vpop.f32.mrf.mxu0 }
 0x1f3   : > { %v4042_v5 = vadd.f32 %v4041_v12, %v4040_v31  ;;  %v4129_v60 = vpop.f32.mrf.mxu1 }
 0x1f4   : > { %v4130_v9 = vadd.f32 %v4129_v60, %v4128_v8  ;;  %v4043_v26 = vpop.f32.mrf.mxu0 }
 0x1f5   : > { %v4131_v46 = vpop.f32.mrf.mxu1 }
 0x1f6   : > { %v5791_v35 = vadd.f32 %v4130_v9, %v4042_v5  ;;  %v4044_v20 = vpop.f32.mrf.mxu0 }
 0x1f7   : > { %v4045_v15 = vadd.f32 %v4044_v20, %v4043_v26  ;;  %v4132_v24 = vpop.f32.mrf.mxu1 }
 0x1f8   : > { %v4133_v49 = vadd.f32 %v4132_v24, %v4131_v46  ;;  %v4046_v54 = vpop.f32.mrf.mxu0 }
 0x1f9   : > { %v4134_v59 = vpop.f32.mrf.mxu1 }
 0x1fa   : > { %v5793_v57 = vadd.f32 %v4133_v49, %v4045_v15  ;;  %v4047_v25 = vpop.f32.mrf.mxu0 }
 0x1fb   : > { %v4048_v44 = vadd.f32 %v4047_v25, %v4046_v54  ;;  %v4135_v53 = vpop.f32.mrf.mxu1 }
 0x1fc   : > { %v4136_v29 = vadd.f32 %v4135_v53, %v4134_v59  ;;  %v4049_v55 = vpop.f32.mrf.mxu0 }
 0x1fd   : > { %v4137_v27 = vpop.f32.mrf.mxu1 }
 0x1fe   : > { %v5795_v13 = vadd.f32 %v4136_v29, %v4048_v44  ;;  %v4050_v2 = vpop.f32.mrf.mxu0 }
 0x1ff   : > { %v4051_v7 = vadd.f32 %v4050_v2, %v4049_v55  ;;  %v4138_v3 = vpop.f32.mrf.mxu1 }
 0x200   : > { %v4139_v21 = vadd.f32 %v4138_v3, %v4137_v27  ;;  %v4052_v18 = vpop.f32.mrf.mxu0 }
 0x201   : > { %v4140_v62 = vpop.f32.mrf.mxu1 }
 0x202   : > { %v5797_v37 = vadd.f32 %v4139_v21, %v4051_v7  ;;  %v4053_v33 = vpop.f32.mrf.mxu0 }
 0x203   : > { %v4054_v0 = vadd.f32 %v4053_v33, %v4052_v18  ;;  %v4141_v31 = vpop.f32.mrf.mxu1 }
 0x204   : > { %v4142_v8 = vadd.f32 %v4141_v31, %v4140_v62  ;;  %v4055_v12 = vpop.f32.mrf.mxu0 }
 0x205   : > { %v4143_v5 = vpop.f32.mrf.mxu1 }
 0x206   : > { %v5799_v60 = vadd.f32 %v4142_v8, %v4054_v0  ;;  %v4056_v9 = vpop.f32.mrf.mxu0 }
 0x207   : > { %v4057_v26 = vadd.f32 %v4056_v9, %v4055_v12  ;;  %v4144_v46 = vpop.f32.mrf.mxu1  ;;  %v2807_v12 = vlaneseq }
 0x208   : > { %v4145_v20 = vadd.f32 %v4144_v46, %v4143_v5  ;;  %v4058_v15 = vpop.f32.mrf.mxu0 }
 0x209   : > { %v4146_v24 = vpop.f32.mrf.mxu1 }
 0x20a   : > { %v5801_v49 = vadd.f32 %v4145_v20, %v4057_v26  ;;  %v4059_v54 = vpop.f32.mrf.mxu0 }
 0x20b   : > { %v4060_v59 = vadd.f32 %v4059_v54, %v4058_v15  ;;  %v4147_v25 = vpop.f32.mrf.mxu1 }
 0x20c   : > { %v4148_v44 = vadd.f32 %v4147_v25, %v4146_v24  ;;  %v4061_v53 = vpop.f32.mrf.mxu0  ;;  %v5808_v24 = vshrl.u32 %v2807_v12, 7 }
 0x20d   : > { %v4149_v29 = vpop.f32.mrf.mxu1 }
 0x20e   : > { %v5803_v55 = vadd.f32 %v4148_v44, %v4060_v59  ;;  %v4062_v27 = vpop.f32.mrf.mxu0  ;;  %vm2809_vm0 = vcmp.lt.s32.totalorder %v5808_v24, 7 }
 0x20f   : > { %v4063_v2 = vadd.f32 %v4062_v27, %v4061_v53  ;;  %v4150_v7 = vpop.f32.mrf.mxu1 }
 0x210   : > { %v4151_v3 = vadd.f32 %v4150_v7, %v4149_v29  ;;  %v4168_v21 = vpop.f32.mrf.mxu0 }
 0x211   : > { %v4256_v18 = vpop.f32.mrf.mxu1 }
 0x212   : > { %v5805_v62 = vadd.f32 %v4151_v3, %v4063_v2  ;;  %v4169_v33 = vpop.f32.mrf.mxu0 }
 0x213   : > { %v4170_v0 = vadd.f32 %v4169_v33, %v4168_v21  ;;  %v4257_v31 = vpop.f32.mrf.mxu1 }
 0x214   : > { %v4171_v8 = vpop.f32.mrf.mxu0  ;;  %v4258_v46 = vadd.f32 %v4257_v31, %v4256_v18 }
 0x215   : > { %v2560_v5 = vadd.f32 %v4170_v0, %v5759_v42  ;;  %v4259_v9 = vpop.f32.mrf.mxu1 }
 0x216   : > { %v4172_v26 = vpop.f32.mrf.mxu0 }
 0x217   : > { %v4173_v20 = vadd.f32 %v4172_v26, %v4171_v8  ;;  %v4260_v15 = vpop.f32.mrf.mxu1  ;;  %v2689_v59 = vadd.f32 %v4258_v46, %v2560_v5  ;;  %v5820_v8 = vld [vmem:[%s5958_s3] ss:$0 sm:$0xff] }
 0x218   : > { %v4174_v54 = vpop.f32.mrf.mxu0  ;;  %v4261_v44 = vadd.f32 %v4260_v15, %v4259_v9 }
 0x219   : > { %v2563_v25 = vadd.f32 %v4173_v20, %v5761_v56  ;;  %v4262_v53 = vpop.f32.mrf.mxu1  ;;  %v2783_v3 = vrot.slane %v2689_v59, 1 }
 0x21a   : > { %v4175_v29 = vpop.f32.mrf.mxu0 }
 0x21b   : > { %v2692_v27 = vadd.f32 %v4261_v44, %v2563_v25  ;;  %v4176_v2 = vadd.f32 %v4175_v29, %v4174_v54  ;;  %v4263_v7 = vpop.f32.mrf.mxu1  ;;  %v5829_v25 = vld [vmem:[%s5959_s4] ss:$0 sm:$0xff] }
 0x21c   : > { %v4177_v42 = vpop.f32.mrf.mxu0  ;;  %v4264_v33 = vadd.f32 %v4263_v7, %v4262_v53 }
 0x21d   : > { %v2784_v21 = vrot.slane %v2692_v27, 1  ;;  %v2568_v18 = vadd.f32 %v4176_v2, %v5763_v61  ;;  %v4265_v0 = vpop.f32.mrf.mxu1 }
 0x21e   : > { %v4178_v31 = vpop.f32.mrf.mxu0 }
 0x21f   : > { %v2825_v56 = vsel %vm2809_vm0, %v2783_v3, %v2784_v21  ;;  %v2697_v12 = vadd.f32 %v4264_v33, %v2568_v18  ;;  %v4179_v5 = vadd.f32 %v4178_v31, %v4177_v42  ;;  %v4266_v9 = vpop.f32.mrf.mxu1 }
 0x220   : > { %v2826_v26 = vadd.f32 %v2825_v56, %v5670_v47  ;;  %v4180_v46 = vpop.f32.mrf.mxu0  ;;  %v4267_v53 = vadd.f32 %v4266_v9, %v4265_v0 }
 0x221   : > { %v2785_v61 = vrot.slane %v2697_v12, 1  ;;  %v2571_v20 = vadd.f32 %v4179_v5, %v5765_v32  ;;  %v4268_v15 = vpop.f32.mrf.mxu1 }
 0x222   : > { %v2849_v54 = vmul.f32 %v5820_v8, %v2826_v26  ;;  %v4181_v59 = vpop.f32.mrf.mxu0 }
 0x223   : > { %v2824_v44 = vsel %vm2809_vm0, %v2784_v21, %v2785_v61  ;;  %v4182_v47 = vadd.f32 %v4181_v59, %v4180_v46  ;;  %v4269_v29 = vpop.f32.mrf.mxu1  ;;  %v2700_v2 = vadd.f32 %v4267_v53, %v2571_v20 }
 0x224   : > { %v2827_v27 = vadd.f32 %v2824_v44, %v5677_v19  ;;  %v4183_v32 = vpop.f32.mrf.mxu0  ;;  %v4270_v42 = vadd.f32 %v4269_v29, %v4268_v15  ;;  %v2872_v18 = vadd.f32 %v5829_v25, %v2849_v54 }
 0x225   : > { %v2576_v7 = vadd.f32 %v4182_v47, %v5767_v1  ;;  %v4271_v3 = vpop.f32.mrf.mxu1  ;;  %v2786_v19 = vrot.slane %v2700_v2, 1 }
 0x226   : > { %v2850_v33 = vmul.f32 %v5820_v8, %v2827_v27  ;;  %v4184_v31 = vpop.f32.mrf.mxu0  ;;  %v2888_v61 = vmax.f32 %v2872_v18, 0.0 }
 0x227   : > { %v2705_v56 = vadd.f32 %v4270_v42, %v2576_v7  ;;  %v4185_v12 = vadd.f32 %v4184_v31, %v4183_v32  ;;  %v4272_v21 = vpop.f32.mrf.mxu1 }
 0x228   : > { %v2873_v0 = vadd.f32 %v5829_v25, %v2850_v33  ;;  %v4186_v5 = vpop.f32.mrf.mxu0  ;;  %v4273_v46 = vadd.f32 %v4272_v21, %v4271_v3 }
 0x229   : > { %v2787_v9 = vrot.slane %v2705_v56, 1  ;;  %v2579_v26 = vadd.f32 %v4185_v12, %v5769_v50  ;;  %v4274_v1 = vpop.f32.mrf.mxu1 }
 0x22a   : > { %v2889_v20 = vmax.f32 %v2873_v0, 0.0  ;;  %v4187_v15 = vpop.f32.mrf.mxu0 }
 0x22b   : > { %v2823_v54 = vsel %vm2809_vm0, %v2786_v19, %v2787_v9  ;;  %v2708_v59 = vadd.f32 %v4273_v46, %v2579_v26  ;;  %v4188_v44 = vadd.f32 %v4187_v15, %v4186_v5  ;;  %v4275_v53 = vpop.f32.mrf.mxu1 }
 0x22c   : > { %v3580_v47 = vpack.c.bf16 %v2889_v20, %v2888_v61  ;;  %v2828_v50 = vadd.f32 %v2823_v54, %v5684_v52  ;;  %v4189_v29 = vpop.f32.mrf.mxu0  ;;  %v4276_v18 = vadd.f32 %v4275_v53, %v4274_v1 }
 0x22d   : > { %v2788_v27 = vrot.slane %v2708_v59, 1  ;;  %v2584_v32 = vadd.f32 %v4188_v44, %v5771_v6  ;;  %v4277_v2 = vpop.f32.mrf.mxu1 }
 0x22e   : > { %3581 = vst [vmem:[%s5842_s28] sm:$0xff] %v3580_v47   ;;  %v2851_v7 = vmul.f32 %v5820_v8, %v2828_v50  ;;  %v4190_v42 = vpop.f32.mrf.mxu0 }
 0x22f   : > { %v2822_v3 = vsel %vm2809_vm0, %v2787_v9, %v2788_v27  ;;  %v4191_v33 = vadd.f32 %v4190_v42, %v4189_v29  ;;  %v4278_v31 = vpop.f32.mrf.mxu1  ;;  %v2713_v21 = vadd.f32 %v4276_v18, %v2584_v32 }
 0x230   : > { %v2829_v56 = vadd.f32 %v2822_v3, %v5687_v39  ;;  %v4192_v12 = vpop.f32.mrf.mxu0  ;;  %v4279_v0 = vadd.f32 %v4278_v31, %v4277_v2  ;;  %v2874_v6 = vadd.f32 %v5829_v25, %v2851_v7 }
 0x231   : > { %v2587_v52 = vadd.f32 %v4191_v33, %v5773_v17  ;;  %v4280_v5 = vpop.f32.mrf.mxu1  ;;  %v2789_v15 = vrot.slane %v2713_v21, 1 }
 0x232   : > { %v2852_v19 = vmul.f32 %v5820_v8, %v2829_v56  ;;  %v4193_v26 = vpop.f32.mrf.mxu0  ;;  %v2890_v44 = vmax.f32 %v2874_v6, 0.0 }
 0x233   : > { %v2716_v46 = vadd.f32 %v4279_v0, %v2587_v52  ;;  %v4194_v61 = vadd.f32 %v4193_v26, %v4192_v12  ;;  %v4281_v20 = vpop.f32.mrf.mxu1 }
 0x234   : > { %v2875_v9 = vadd.f32 %v5829_v25, %v2852_v19  ;;  %v4195_v1 = vpop.f32.mrf.mxu0  ;;  %v4282_v59 = vadd.f32 %v4281_v20, %v4280_v5 }
 0x235   : > { %v2790_v54 = vrot.slane %v2716_v46, 1  ;;  %v2592_v39 = vadd.f32 %v4194_v61, %v5775_v43  ;;  %v4283_v17 = vpop.f32.mrf.mxu1 }
 0x236   : > { %v2891_v53 = vmax.f32 %v2875_v9, 0.0  ;;  %v4196_v47 = vpop.f32.mrf.mxu0 }
 0x237   : > { %v2821_v50 = vsel %vm2809_vm0, %v2789_v15, %v2790_v54  ;;  %v2721_v29 = vadd.f32 %v4282_v59, %v2592_v39  ;;  %v4197_v27 = vadd.f32 %v4196_v47, %v4195_v1  ;;  %v4284_v32 = vpop.f32.mrf.mxu1 }
 0x238   : > { %v3585_v2 = vpack.c.bf16 %v2891_v53, %v2890_v44  ;;  %v2830_v7 = vadd.f32 %v2821_v50, %v5694_v38  ;;  %v4198_v42 = vpop.f32.mrf.mxu0  ;;  %v4285_v12 = vadd.f32 %v4284_v32, %v4283_v17 }
 0x239   : > { %v2791_v3 = vrot.slane %v2721_v29, 1  ;;  %v2595_v18 = vadd.f32 %v4197_v27, %v5777_v4  ;;  %v4286_v43 = vpop.f32.mrf.mxu1 }
 0x23a   : > { %3617 = vst [vmem:[%s5842_s28 + $0x8] sm:$0xff] %v3585_v2   ;;  %v2853_v33 = vmul.f32 %v5820_v8, %v2830_v7  ;;  %v4199_v31 = vpop.f32.mrf.mxu0 }
 0x23b   : > { %v2820_v56 = vsel %vm2809_vm0, %v2790_v54, %v2791_v3  ;;  %v4200_v21 = vadd.f32 %v4199_v31, %v4198_v42  ;;  %v4287_v52 = vpop.f32.mrf.mxu1  ;;  %v2724_v6 = vadd.f32 %v4285_v12, %v2595_v18 }
 0x23c   : > { %v2831_v0 = vadd.f32 %v2820_v56, %v5701_v23  ;;  %v4201_v5 = vpop.f32.mrf.mxu0  ;;  %v4288_v19 = vadd.f32 %v4287_v52, %v4286_v43  ;;  %v2876_v4 = vadd.f32 %v5829_v25, %v2853_v33 }
 0x23d   : > { %v2600_v38 = vadd.f32 %v4200_v21, %v5779_v34  ;;  %v4289_v26 = vpop.f32.mrf.mxu1  ;;  %v2792_v39 = vrot.slane %v2724_v6, 1 }
 0x23e   : > { %v2854_v46 = vmul.f32 %v5820_v8, %v2831_v0  ;;  %v4202_v61 = vpop.f32.mrf.mxu0  ;;  %v2892_v44 = vmax.f32 %v2876_v4, 0.0 }
 0x23f   : > { %v2729_v20 = vadd.f32 %v4288_v19, %v2600_v38  ;;  %v4203_v9 = vadd.f32 %v4202_v61, %v4201_v5  ;;  %v4290_v1 = vpop.f32.mrf.mxu1 }
 0x240   : > { %v2877_v15 = vadd.f32 %v5829_v25, %v2854_v46  ;;  %v4204_v54 = vpop.f32.mrf.mxu0  ;;  %v4291_v17 = vadd.f32 %v4290_v1, %v4289_v26 }
 0x241   : > { %v2793_v59 = vrot.slane %v2729_v20, 1  ;;  %v2603_v23 = vadd.f32 %v4203_v9, %v5781_v14  ;;  %v4292_v34 = vpop.f32.mrf.mxu1 }
 0x242   : > { %v2893_v53 = vmax.f32 %v2877_v15, 0.0  ;;  %v4205_v47 = vpop.f32.mrf.mxu0 }
 0x243   : > { %v2819_v50 = vsel %vm2809_vm0, %v2792_v39, %v2793_v59  ;;  %v2732_v29 = vadd.f32 %v4291_v17, %v2603_v23  ;;  %v4206_v27 = vadd.f32 %v4205_v47, %v4204_v54  ;;  %v4293_v32 = vpop.f32.mrf.mxu1 }
 0x244   : > { %v3590_v2 = vpack.c.bf16 %v2893_v53, %v2892_v44  ;;  %v2832_v7 = vadd.f32 %v2819_v50, %v5708_v28  ;;  %v4207_v42 = vpop.f32.mrf.mxu0  ;;  %v4294_v56 = vadd.f32 %v4293_v32, %v4292_v34 }
 0x245   : > { %v2794_v3 = vrot.slane %v2732_v29, 1  ;;  %v2608_v18 = vadd.f32 %v4206_v27, %v5783_v48  ;;  %v4295_v14 = vpop.f32.mrf.mxu1 }
 0x246   : > { %3618 = vst [vmem:[%s5842_s28 + $0x10] sm:$0xff] %v3590_v2   ;;  %v2855_v43 = vmul.f32 %v5820_v8, %v2832_v7  ;;  %v4208_v33 = vpop.f32.mrf.mxu0 }
 0x247   : > { %v2818_v31 = vsel %vm2809_vm0, %v2793_v59, %v2794_v3  ;;  %v4209_v12 = vadd.f32 %v4208_v33, %v4207_v42  ;;  %v4296_v21 = vpop.f32.mrf.mxu1  ;;  %v2737_v5 = vadd.f32 %v4294_v56, %v2608_v18 }
 0x248   : > { %v2833_v52 = vadd.f32 %v2818_v31, %v5711_v40  ;;  %v4210_v0 = vpop.f32.mrf.mxu0  ;;  %v4297_v6 = vadd.f32 %v4296_v21, %v4295_v14  ;;  %v2878_v48 = vadd.f32 %v5829_v25, %v2855_v43 }
 0x249   : > { %v2611_v28 = vadd.f32 %v4209_v12, %v5785_v45  ;;  %v4298_v38 = vpop.f32.mrf.mxu1  ;;  %v2795_v1 = vrot.slane %v2737_v5, 1 }
 0x24a   : > { %v2856_v19 = vmul.f32 %v5820_v8, %v2833_v52  ;;  %v4211_v26 = vpop.f32.mrf.mxu0  ;;  %v2894_v39 = vmax.f32 %v2878_v48, 0.0 }
 0x24b   : > { %v2740_v4 = vadd.f32 %v4297_v6, %v2611_v28  ;;  %v4212_v46 = vadd.f32 %v4211_v26, %v4210_v0  ;;  %v4299_v61 = vpop.f32.mrf.mxu1 }
 0x24c   : > { %v2879_v20 = vadd.f32 %v5829_v25, %v2856_v19  ;;  %v4213_v9 = vpop.f32.mrf.mxu0  ;;  %v4300_v54 = vadd.f32 %v4299_v61, %v4298_v38 }
 0x24d   : > { %v2796_v15 = vrot.slane %v2740_v4, 1  ;;  %v2616_v40 = vadd.f32 %v4212_v46, %v5787_v58  ;;  %v4301_v45 = vpop.f32.mrf.mxu1 }
 0x24e   : > { %v2895_v59 = vmax.f32 %v2879_v20, 0.0  ;;  %v4214_v23 = vpop.f32.mrf.mxu0 }
 0x24f   : > { %v2817_v17 = vsel %vm2809_vm0, %v2795_v1, %v2796_v15  ;;  %v2745_v34 = vadd.f32 %v4300_v54, %v2616_v40  ;;  %v4215_v44 = vadd.f32 %v4214_v23, %v4213_v9  ;;  %v4302_v53 = vpop.f32.mrf.mxu1 }
 0x250   : > { %v3595_v47 = vpack.c.bf16 %v2895_v59, %v2894_v39  ;;  %v2834_v50 = vadd.f32 %v2817_v17, %v5718_v30  ;;  %v4216_v29 = vpop.f32.mrf.mxu0  ;;  %v4303_v3 = vadd.f32 %v4302_v53, %v4301_v45 }
 0x251   : > { %v2797_v27 = vrot.slane %v2745_v34, 1  ;;  %v2619_v32 = vadd.f32 %v4215_v44, %v5789_v10  ;;  %v4304_v58 = vpop.f32.mrf.mxu1 }
 0x252   : > { %3619 = vst [vmem:[%s5842_s28 + $0x18] sm:$0xff] %v3595_v47   ;;  %v2857_v2 = vmul.f32 %v5820_v8, %v2834_v50  ;;  %v4217_v7 = vpop.f32.mrf.mxu0 }
 0x253   : > { %v2816_v42 = vsel %vm2809_vm0, %v2796_v15, %v2797_v27  ;;  %v4218_v18 = vadd.f32 %v4217_v7, %v4216_v29  ;;  %v4305_v14 = vpop.f32.mrf.mxu1  ;;  %v2748_v31 = vadd.f32 %v4303_v3, %v2619_v32 }
 0x254   : > { %v2835_v43 = vadd.f32 %v2816_v42, %v5725_v41  ;;  %v4219_v33 = vpop.f32.mrf.mxu0  ;;  %v4306_v56 = vadd.f32 %v4305_v14, %v4304_v58  ;;  %v2880_v10 = vadd.f32 %v5829_v25, %v2857_v2 }
 0x255   : > { %v2624_v30 = vadd.f32 %v4218_v18, %v5791_v35  ;;  %v4307_v12 = vpop.f32.mrf.mxu1  ;;  %v2798_v48 = vrot.slane %v2748_v31, 1 }
 0x256   : > { %v2858_v21 = vmul.f32 %v5820_v8, %v2835_v43  ;;  %v4220_v52 = vpop.f32.mrf.mxu0  ;;  %v2896_v4 = vmax.f32 %v2880_v10, 0.0 }
 0x257   : > { %v2753_v0 = vadd.f32 %v4306_v56, %v2624_v30  ;;  %v4221_v5 = vadd.f32 %v4220_v52, %v4219_v33  ;;  %v4308_v28 = vpop.f32.mrf.mxu1 }
 0x258   : > { %v2881_v6 = vadd.f32 %v5829_v25, %v2858_v21  ;;  %v4222_v38 = vpop.f32.mrf.mxu0  ;;  %v4309_v26 = vadd.f32 %v4308_v28, %v4307_v12 }
 0x259   : > { %v2799_v19 = vrot.slane %v2753_v0, 1  ;;  %v2627_v41 = vadd.f32 %v4221_v5, %v5793_v57  ;;  %v4310_v35 = vpop.f32.mrf.mxu1 }
 0x25a   : > { %v2897_v46 = vmax.f32 %v2881_v6, 0.0  ;;  %v4223_v61 = vpop.f32.mrf.mxu0 }
 0x25b   : > { %v2815_v20 = vsel %vm2809_vm0, %v2798_v48, %v2799_v19  ;;  %v2756_v9 = vadd.f32 %v4309_v26, %v2627_v41  ;;  %v4224_v1 = vadd.f32 %v4223_v61, %v4222_v38  ;;  %v4311_v15 = vpop.f32.mrf.mxu1 }
 0x25c   : > { %v3600_v40 = vpack.c.bf16 %v2897_v46, %v2896_v4  ;;  %v2836_v54 = vadd.f32 %v2815_v20, %v5732_v51  ;;  %v4225_v45 = vpop.f32.mrf.mxu0  ;;  %v4312_v44 = vadd.f32 %v4311_v15, %v4310_v35 }
 0x25d   : > { %v2800_v39 = vrot.slane %v2756_v9, 1  ;;  %v2632_v59 = vadd.f32 %v4224_v1, %v5795_v13  ;;  %v4313_v57 = vpop.f32.mrf.mxu1 }
 0x25e   : > { %3620 = vst [vmem:[%s5842_s28 + $0x20] sm:$0xff] %v3600_v40   ;;  %v2859_v23 = vmul.f32 %v5820_v8, %v2836_v54  ;;  %v4226_v17 = vpop.f32.mrf.mxu0 }
 0x25f   : > { %v2814_v34 = vsel %vm2809_vm0, %v2799_v19, %v2800_v39  ;;  %v4227_v53 = vadd.f32 %v4226_v17, %v4225_v45  ;;  %v4314_v47 = vpop.f32.mrf.mxu1  ;;  %v2761_v27 = vadd.f32 %v4312_v44, %v2632_v59 }
 0x260   : > { %v2837_v50 = vadd.f32 %v2814_v34, %v5735_v16  ;;  %v4228_v29 = vpop.f32.mrf.mxu0  ;;  %v4315_v32 = vadd.f32 %v4314_v47, %v4313_v57  ;;  %v2882_v13 = vadd.f32 %v5829_v25, %v2859_v23 }
 0x261   : > { %v2635_v51 = vadd.f32 %v4227_v53, %v5797_v37  ;;  %v4316_v58 = vpop.f32.mrf.mxu1  ;;  %v2801_v33 = vrot.slane %v2761_v27, 1 }
 0x262   : > { %v2860_v2 = vmul.f32 %v5820_v8, %v2837_v50  ;;  %v4229_v7 = vpop.f32.mrf.mxu0  ;;  %v2898_v56 = vmax.f32 %v2882_v13, 0.0 }
 0x263   : > { %v2764_v42 = vadd.f32 %v4315_v32, %v2635_v51  ;;  %v4230_v3 = vadd.f32 %v4229_v7, %v4228_v29  ;;  %v4317_v18 = vpop.f32.mrf.mxu1 }
 0x264   : > { %v2883_v14 = vadd.f32 %v5829_v25, %v2860_v2  ;;  %v4231_v43 = vpop.f32.mrf.mxu0  ;;  %v4318_v30 = vadd.f32 %v4317_v18, %v4316_v58 }
 0x265   : > { %v2802_v31 = vrot.slane %v2764_v42, 1  ;;  %v2640_v16 = vadd.f32 %v4230_v3, %v5799_v60  ;;  %v4319_v37 = vpop.f32.mrf.mxu1 }
 0x266   : > { %v2899_v12 = vmax.f32 %v2883_v14, 0.0  ;;  %v4232_v10 = vpop.f32.mrf.mxu0 }
 0x267   : > { %v2813_v21 = vsel %vm2809_vm0, %v2801_v33, %v2802_v31  ;;  %v2769_v52 = vadd.f32 %v4318_v30, %v2640_v16  ;;  %v4233_v0 = vadd.f32 %v4232_v10, %v4231_v43  ;;  %v4320_v5 = vpop.f32.mrf.mxu1 }
 0x268   : > { %v3605_v28 = vpack.c.bf16 %v2899_v12, %v2898_v56  ;;  %v2838_v6 = vadd.f32 %v2813_v21, %v5742_v63  ;;  %v4234_v38 = vpop.f32.mrf.mxu0  ;;  %v4321_v4 = vadd.f32 %v4320_v5, %v4319_v37 }
 0x269   : > { %v2803_v48 = vrot.slane %v2769_v52, 1  ;;  %v2643_v19 = vadd.f32 %v4233_v0, %v5801_v49  ;;  %v4322_v60 = vpop.f32.mrf.mxu1 }
 0x26a   : > { %3621 = vst [vmem:[%s5842_s28 + $0x28] sm:$0xff] %v3605_v28   ;;  %v2861_v41 = vmul.f32 %v5820_v8, %v2838_v6  ;;  %v4235_v26 = vpop.f32.mrf.mxu0 }
 0x26b   : > { %v2812_v35 = vsel %vm2809_vm0, %v2802_v31, %v2803_v48  ;;  %v4236_v46 = vadd.f32 %v4235_v26, %v4234_v38  ;;  %v4323_v61 = vpop.f32.mrf.mxu1  ;;  %v2772_v1 = vadd.f32 %v4321_v4, %v2643_v19 }
 0x26c   : > { %v2839_v20 = vadd.f32 %v2812_v35, %v5749_v11  ;;  %v4237_v9 = vpop.f32.mrf.mxu0  ;;  %v4324_v15 = vadd.f32 %v4323_v61, %v4322_v60  ;;  %v2884_v49 = vadd.f32 %v5829_v25, %v2861_v41 }
 0x26d   : > { %v2648_v63 = vadd.f32 %v4236_v46, %v5803_v55  ;;  %v4325_v40 = vpop.f32.mrf.mxu1  ;;  %v2804_v17 = vrot.slane %v2772_v1, 1 }
 0x26e   : > { %v2862_v54 = vmul.f32 %v5820_v8, %v2839_v20  ;;  %v4238_v45 = vpop.f32.mrf.mxu0  ;;  %v2900_v53 = vmax.f32 %v2884_v49, 0.0 }
 0x26f   : > { %v2777_v39 = vadd.f32 %v4324_v15, %v2648_v63  ;;  %v4239_v59 = vadd.f32 %v4238_v45, %v4237_v9  ;;  %v4326_v57 = vpop.f32.mrf.mxu1 }
 0x270   : > { %v2885_v23 = vadd.f32 %v5829_v25, %v2862_v54  ;;  %v4327_v44 = vadd.f32 %v4326_v57, %v4325_v40 }
 0x271   : > { %v2805_v34 = vrot.slane %v2777_v39, 1  ;;  %v2651_v11 = vadd.f32 %v4239_v59, %v5805_v62 }
 0x272   : > { %v2901_v55 = vmax.f32 %v2885_v23, 0.0 }
 0x273   : > { %v2811_v47 = vsel %vm2809_vm0, %v2804_v17, %v2805_v34  ;;  %v2780_v50 = vadd.f32 %v4327_v44, %v2651_v11 }
 0x274   : > { %v3610_v29 = vpack.c.bf16 %v2901_v55, %v2900_v53  ;;  %v2840_v27 = vadd.f32 %v2811_v47, %v5754_v22 }
 0x275   : > { %v2806_v51 = vrot.slane %v2780_v50, 1 }
 0x276   : > { %3622 = vst [vmem:[%s5842_s28 + $0x30] sm:$0xff] %v3610_v29   ;;  %v2863_v32 = vmul.f32 %v5820_v8, %v2840_v27 }
 0x277   : > { %v2810_v58 = vsel %vm2809_vm0, %v2805_v34, %v2806_v51 }
 0x278   : > { %v2841_v62 = vadd.f32 %v2810_v58, %v5757_v36  ;;  %v2886_v13 = vadd.f32 %v5829_v25, %v2863_v32 }
 0x27a   : > { %v2864_v2 = vmul.f32 %v5820_v8, %v2841_v62  ;;  %v2902_v42 = vmax.f32 %v2886_v13, 0.0 }
 0x27c   : > { %v2887_v7 = vadd.f32 %v5829_v25, %v2864_v2 }
 0x27e   : > { %v2903_v3 = vmax.f32 %v2887_v7, 0.0 }
 0x280   : > { %v3615_v18 = vpack.c.bf16 %v2903_v3, %v2902_v42 }
 0x282   : > { %3623 = vst [vmem:[%s5842_s28 + $0x38] sm:$0xff] %v3615_v18  }
 0x283 PF: > { %s15_s22 = sadd.s32 1, %s4633_s22   ;;  %s6136_s18 = smov %s4625_s20 }
 0x284   : > { %p12_p9 = scmp.ge.s32.totalorder %s15_s22, 6   ;;  %s6137_s19 = smov %s4629_s21 }
 0x285   : > { %s6138_s20 = smov %s6141_s23  ;;  %s6139_s21 = smov %s6145_s24 }
 0x286   :  { %14 = sbr.rel (!%p12_p9) target bundleno = 3 (0x3), region = 76 }

// kernel: _lambda_.9
= control target key start
LH: loop header
LB: loop body
LE: loop exit
PB: predicated region body
PF: predicated region fallthrough
CT: control target
= control target key end

     0   :  { %s3940_s21 = smov 0   ;;  %s3942_s22 = smov 0   ;;  %s5049_s0 = inlined_call_operand.vmem [shape: bf16[2,18,24,128], index: 0, kind: input, shape index: {}, may-alias: {0,1}]   ;;  %s5050_s1 = inlined_call_operand.vmem [shape: bf16[2,18,24,128], index: 1, kind: input, shape index: {}, may-alias: {0,1}]   ;;  %s5051_s2 = inlined_call_operand.vmem [shape: bf16[9,128,128], index: 2, kind: input, shape index: {}]   ;;  %s5052_s3 = inlined_call_operand.vmem [shape: f32[1,128], index: 3, kind: input, shape index: {}]   ;;  %s5053_s4 = inlined_call_operand.vmem [shape: f32[1,128], index: 4, kind: input, shape index: {}]   ;;  %s5054_s5 = inlined_call_operand.vmem [shape: bf16[2,16,16,128], index: 5, kind: input, shape index: {}]   ;;  %s5055_s6 = inlined_call_operand.vmem [shape: bf16[2,16,16,128], index: 6, kind: output, shape index: {}]  }
   0x1   :  { %s3944_s23 = smov 0   ;;  %s3946_s24 = smov 0  }
   0x2   :  { %s3948_s25 = smov 0  }
   0x3 LB: > { %s25_s26 = sadd.s32 1, %s3895_s23  ;;  %s28_s27 = sadd.s32 1, %s3899_s24  ;;  %s3903_s25 = sphi %s3948_s25, %s16_s25   ;;  %s3899_s24 = sphi %s3946_s24, %s5116_s24   ;;  %s3895_s23 = sphi %s3944_s23, %s5115_s23   ;;  %s3891_s22 = sphi %s3942_s22, %s5114_s22   ;;  %s3887_s21 = sphi %s3940_s21, %s5113_s21  }
   0x4   : > { %p26_p0 = scmp.ge.s32.totalorder %s25_s26, 2  ;;  %p2796_p1 = scmp.ge.s32.totalorder %s3903_s25, 1 }
   0x5   : > { %p288_p2 = scmp.lt.s32.totalorder %s3903_s25, 5 }
   0x6   : > { %s5118_s26 = smov (%p26_p0, %s25_s26), 0  ;;  %s5120_s27 = smov (!%p26_p0, %s28_s27), %s3899_s24 }
   0x7   : > { %p289_p3 = pnand %p2796_p1, %p288_p2  ;;  %p30_p4 = scmp.ge.s32.totalorder %s5120_s27, 2 }
   0x9   : > { %s5122_s27 = smov (%p30_p4, %s5120_s27), 0  ;;  %292 = sbr.rel (%p289_p3) target bundleno = 485 (0x1e5), region = 44 }
   0xe   : > { %v3767_v0 = vld [vmem:[%s5051_s2 + $0xf8] sm:$0xff]   ;;  %s3973_s30 = sshll.u32 %s3887_s21, 3  ;;  %p361_p5 = scmp.lt.s32.totalorder %s3891_s22, 1  ;;  %v3769_v2 = vld [vmem:[%s5051_s2 + $0xf0] sm:$0xff]   ;;  %v3771_v4 = vld [vmem:[%s5051_s2 + $0xe8] sm:$0xff]  }
   0xf   : > { %v3768_v1 = vld [vmem:[%s5051_s2 + $0x38] sm:$0xff]   ;;  %3348 = vmatprep.subr.bf16.mxu0 %v3767_v0  ;;  %p363_p6 = scmp.lt.s32.totalorder %s3973_s30, 17  ;;  %v3770_v3 = vld [vmem:[%s5051_s2 + $0x30] sm:$0xff]   ;;  %v3772_v5 = vld [vmem:[%s5051_s2 + $0x28] sm:$0xff]   ;;  %s3153_s14 = sadd.s32 8, %s3973_s30 }
  0x10   : > { %3388 = vmatprep.subr.bf16.mxu1 %v3768_v1  ;;  %3349 = vmatpush3.bf16.msra.mxu0 %v3767_v0  ;;  %s5124_s22 = smov (!%p361_p5, %s3891_s22), 1  ;;  %v3773_v6 = vld [vmem:[%s5051_s2 + $0xe0] sm:$0xff]   ;;  %v3775_v8 = vld [vmem:[%s5051_s2 + $0xd8] sm:$0xff]   ;;  %v3777_v10 = vld [vmem:[%s5051_s2 + $0xd0] sm:$0xff]   ;;  %p4057_p7 = scmp.lt.s32.totalorder %s3153_s14, 17 }
  0x11   : > { %3389 = vmatpush3.bf16.msra.mxu1 %v3768_v1  ;;  %3350 = vmatprep.subr.bf16.mxu0 %v3769_v2  ;;  %s364_s15 = scalar_select %p363_p6, %s3973_s30, 17  ;;  %v3774_v7 = vld [vmem:[%s5051_s2 + $0x20] sm:$0xff]   ;;  %v3776_v9 = vld [vmem:[%s5051_s2 + $0x18] sm:$0xff]   ;;  %v3778_v13 = vld [vmem:[%s5051_s2 + $0x10] sm:$0xff]  }
  0x12   : > { %3390 = vmatprep.subr.bf16.mxu1 %v3770_v3  ;;  %s3725_s18 = smul.u32 54, %s5124_s22  ;;  %v3779_v16 = vld [vmem:[%s5051_s2 + $0xc8] sm:$0xff]   ;;  %v3781_v18 = vld [vmem:[%s5051_s2 + $0xc0] sm:$0xff]   ;;  %v3787_v23 = vld [vmem:[%s5051_s2 + $0x1b8] sm:$0xff]   ;;  %s5126_s14 = smov (!%p4057_p7, %s3153_s14), 17 }
  0x13   : > { %s3724_s19 = smul.u32 3, %s364_s15  ;;  %v3780_v17 = vld [vmem:[%s5051_s2 + $0x8] sm:$0xff]   ;;  %v3782_v19 = vld [vmem:[%s5051_s2] sm:$0xff]   ;;  %v3788_v24 = vld [vmem:[%s5051_s2 + $0x138] sm:$0xff]   ;;  %p394_p8 = scmp.lt.s32.totalorder %s3973_s30, 15 }
  0x14   : > { %3351 = vmatpush3.bf16.msra.mxu0 %v3769_v2  ;;  %v3789_v29 = vld [vmem:[%s5051_s2 + $0x1b0] sm:$0xff]   ;;  %v3796_v35 = vld [vmem:[%s5051_s2 + $0x1a8] sm:$0xff]   ;;  %v3802_v42 = vld [vmem:[%s5051_s2 + $0x1a0] sm:$0xff]   ;;  %s3726_s17 = smul.u32 3, %s5126_s14  ;;  %s2804_s21 = sshll.u32 %s5124_s22, 5 }
  0x15   : > { %3391 = vmatpush3.bf16.msra.mxu1 %v3770_v3  ;;  %3352 = vmatprep.subr.bf16.mxu0 %v3771_v4  ;;  %s367_s28 = sadd.s32 %s3725_s18, %s3724_s19  ;;  %v3790_v30 = vld [vmem:[%s5051_s2 + $0x130] sm:$0xff]   ;;  %v3797_v36 = vld [vmem:[%s5051_s2 + $0x128] sm:$0xff]   ;;  %v3803_v46 = vld [vmem:[%s5051_s2 + $0x120] sm:$0xff]   ;;  %s5128_s30 = smov (!%p394_p8, %s3973_s30), 15 }
  0x16   : > { %3392 = vmatprep.subr.bf16.mxu1 %v3772_v5  ;;  %s2798_s8 = sshll.u32 %s367_s28, 2  ;;  %v3808_v49 = vld [vmem:[%s5051_s2 + $0x198] sm:$0xff]   ;;  %s385_s28 = sadd.s32 %s3726_s17, %s3725_s18  ;;  %v3810_v57 = vld [vmem:[%s5051_s2 + $0x190] sm:$0xff]   ;;  %v3816_v61 = vld [vmem:[%s5051_s2 + $0x188] sm:$0xff]  }
  0x17   : > { %s4012_s15 = scalar_lea.vmem %s5049_s0, %s2798_s8  ;;  %v3809_v50 = vld [vmem:[%s5051_s2 + $0x118] sm:$0xff]   ;;  %v3811_v58 = vld [vmem:[%s5051_s2 + $0x110] sm:$0xff]   ;;  %s2801_s10 = sshll.u32 %s385_s28, 2  ;;  %v3817_v63 = vld [vmem:[%s5051_s2 + $0x108] sm:$0xff]  }
  0x18   : > { %3353 = vmatpush3.bf16.msra.mxu0 %v3771_v4  ;;  %v417_v11 = vld [vmem:[%s4012_s15 + $0xc] sm:$0xf]  ;;  %v418_v12 = vld [vmem:[%s4012_s15 + $0x10] sm:$0xf]  ;;  %v4025_v15 = vld [vmem:[%s4012_s15] sm:$0xff]   ;;  %s4153_s19 = scalar_lea.vmem %s5050_s1, %s2801_s10  ;;  %s2803_s14 = sshll.u32 %s5128_s30, 1 }
  0x19   : > { %3393 = vmatpush3.bf16.msra.mxu1 %v3772_v5  ;;  %3354 = vmatprep.subr.bf16.mxu0 %v3773_v6  ;;  %v4022_v14 = vcombine.low %v417_v11, %v418_v12  ;;  %v419_v20 = vld [vmem:[%s4012_s15 + $0x14] sm:$0xf]  ;;  %v420_v21 = vld [vmem:[%s4012_s15 + $0x18] sm:$0xf]  ;;  %v416_v22 = vld [vmem:[%s4012_s15 + $0x8] sm:$0xf]  ;;  %s4723_s28 = sadd.s32 %s2804_s21, %s2803_s14 }
  0x1a   : > { %3394 = vmatprep.subr.bf16.mxu1 %v3774_v7  ;;  %3404 = vmatprep.mubr.bf16.mxu1 %v4025_v15  ;;  %v4051_v25 = vcombine.low %v419_v20, %v420_v21  ;;  %v421_v26 = vld [vmem:[%s4012_s15 + $0x1c] sm:$0xf]  ;;  %v422_v27 = vld [vmem:[%s4012_s15 + $0x20] sm:$0xf]  ;;  %v4055_v28 = vcombine.low %v416_v22, %v417_v11  ;;  %v4070_v32 = vcombine.low %v418_v12, %v419_v20  ;;  %v423_v33 = vld [vmem:[%s4012_s15 + $0x24] sm:$0xf] }
  0x1b   : > { %3364 = vmatprep.mubr.bf16.mxu0 %v4022_v14  ;;  %v4067_v31 = vcombine.low %v421_v26, %v422_v27  ;;  %v424_v34 = vld [vmem:[%s4012_s15 + $0x28] sm:$0xf]  ;;  %v425_v37 = vld [vmem:[%s4012_s15 + $0x2c] sm:$0xf]  ;;  %v426_v38 = vld [vmem:[%s4012_s15 + $0x30] sm:$0xf]  ;;  %v4091_v40 = vcombine.low %v420_v21, %v421_v26  ;;  %v4098_v43 = vcombine.low %v422_v27, %v423_v33 }
  0x1c   : > { %3355 = vmatpush3.bf16.msra.mxu0 %v3773_v6  ;;  %v4089_v39 = vcombine.low %v423_v33, %v424_v34  ;;  %v4093_v41 = vcombine.low %v425_v37, %v426_v38  ;;  %v427_v44 = vld [vmem:[%s4012_s15 + $0x34] sm:$0xf]  ;;  %v428_v45 = vld [vmem:[%s4012_s15 + $0x38] sm:$0xf]  ;;  %v429_v47 = vld [vmem:[%s4012_s15 + $0x3c] sm:$0xf]  ;;  %v4120_v52 = vcombine.low %v424_v34, %v425_v37 }
  0x1d   : > { %3395 = vmatpush3.bf16.msra.mxu1 %v3774_v7  ;;  %3356 = vmatprep.subr.bf16.mxu0 %v3775_v8  ;;  %v430_v48 = vld [vmem:[%s4012_s15 + $0x40] sm:$0xf]  ;;  %v4118_v51 = vcombine.low %v427_v44, %v428_v45  ;;  %v4126_v54 = vcombine.low %v426_v38, %v427_v44  ;;  %v431_v55 = vld [vmem:[%s4012_s15 + $0x44] sm:$0xf]  ;;  %v432_v56 = vld [vmem:[%s4012_s15 + $0x48] sm:$0xf]  ;;  %v4155_v0 = vcombine.low %v428_v45, %v429_v47 }
  0x1e   : > { %3396 = vmatprep.subr.bf16.mxu1 %v3776_v9  ;;  %v4122_v53 = vcombine.low %v429_v47, %v430_v48  ;;  %v433_v59 = vld [vmem:[%s4012_s15 + $0x4c] sm:$0xf]  ;;  %v434_v60 = vld [vmem:[%s4012_s15 + $0x50] sm:$0xf]  ;;  %v4145_v62 = vcombine.low %v431_v55, %v432_v56  ;;  %v4159_v2 = vcombine.low %v430_v48, %v431_v55  ;;  %v435_v3 = vld [vmem:[%s4012_s15 + $0x54] sm:$0xf] }
  0x1f   : > { %v4157_v1 = vcombine.low %v433_v59, %v434_v60  ;;  %v436_v4 = vld [vmem:[%s4012_s15 + $0x58] sm:$0xf]  ;;  %v3820_v5 = vld [vmem:[%s5051_s2 + $0x180] sm:$0xff]   ;;  %v437_v7 = vld [vmem:[%s4012_s15 + $0x5c] sm:$0xf]  ;;  %v4185_v12 = vcombine.low %v432_v56, %v433_v59  ;;  %s2805_s29 = sshll.u32 %s4723_s28, 2 }
  0x20   : > { %3357 = vmatpush3.bf16.msra.mxu0 %v3775_v8  ;;  %v3821_v6 = vld [vmem:[%s5051_s2 + $0x100] sm:$0xff]   ;;  %v3823_v11 = vld [vmem:[%s5051_s2 + $0x1f8] sm:$0xff]   ;;  %v4206_v20 = vcombine.low %v436_v4, %v437_v7  ;;  %v3824_v21 = vld [vmem:[%s5051_s2 + $0x70] sm:$0xff]   ;;  %s400_s7 = scalar_lea.vmem %s5054_s5, %s2805_s29 }
  0x21   : > { %3397 = vmatpush3.bf16.msra.mxu1 %v3776_v9  ;;  %3358 = vmatprep.subr.bf16.mxu0 %v3777_v10  ;;  %v4175_v8 = vld [vmem:[%s4153_s19] sm:$0xf]  ;;  %v3822_v9 = vld [vmem:[%s5051_s2 + $0x78] sm:$0xff]   ;;  %v3825_v22 = vld [vmem:[%s5051_s2 + $0x1f0] sm:$0xff]  }
  0x22   : > { %3398 = vmatprep.subr.bf16.mxu1 %v3778_v13  ;;  %v3828_v26 = vld [vmem:[%s5051_s2 + $0x60] sm:$0xff]   ;;  %v3832_v33 = vld [vmem:[%s5051_s2 + $0x50] sm:$0xff]   ;;  %v3841_v44 = vld [vmem:[%s5051_s2 + $0x178] sm:$0xff]  }
  0x23   : > { %v3829_v27 = vld [vmem:[%s5051_s2 + $0x1e0] sm:$0xff]   ;;  %v3833_v34 = vld [vmem:[%s5051_s2 + $0x1d0] sm:$0xff]   ;;  %v3845_v55 = vld [vmem:[%s5051_s2 + $0x168] sm:$0xff]  }
  0x24   : > { %3359 = vmatpush3.bf16.msra.mxu0 %v3777_v10  ;;  %v4180_v10 = vcombine.low %v435_v3, %v436_v4  ;;  %v3839_v37 = vld [vmem:[%s5051_s2 + $0x40] sm:$0xff]   ;;  %v4289_v48 = vld [vmem:[%s4153_s19 + $0x10] sm:$0xff]   ;;  %v3846_v56 = vld [vmem:[%s5051_s2 + $0xa8] sm:$0xff]  }
  0x25   : > { %3399 = vmatpush3.bf16.msra.mxu1 %v3778_v13  ;;  %3360 = vmatprep.subr.bf16.mxu0 %v3779_v16  ;;  %v4188_v13 = vcombine.low %v437_v7, %v4175_v8  ;;  %v3840_v38 = vld [vmem:[%s5051_s2 + $0x1c0] sm:$0xff]   ;;  %v3849_v59 = vld [vmem:[%s5051_s2 + $0x158] sm:$0xff]   ;;  %v3854_v4 = vld [vmem:[%s5051_s2 + $0x88] sm:$0xff]  }
  0x26   : > { %3400 = vmatprep.subr.bf16.mxu1 %v3780_v17  ;;  %v3857_v7 = vld [vmem:[%s5051_s2 + $0x238] sm:$0xff]  }
  0x28   : > { %3361 = vmatpush3.bf16.msra.mxu0 %v3779_v16  ;;  %v4190_v16 = vcombine.low %v434_v60, %v435_v3  ;;  %v3850_v60 = vld [vmem:[%s5051_s2 + $0x98] sm:$0xff]   ;;  %v3853_v3 = vld [vmem:[%s5051_s2 + $0x148] sm:$0xff]  }
  0x29   : > { %3401 = vmatpush3.bf16.msra.mxu1 %v3780_v17  ;;  %3362 = vmatprep.subr.bf16.mxu0 %v3781_v18  ;;  %v4194_v17 = vld [vmem:[%s4153_s19 + $0x4] sm:$0xf] }
  0x2a   : > { %3402 = vmatprep.subr.bf16.mxu1 %v3782_v19  ;;  %v4276_v45 = vcombine.low %v4175_v8, %v4194_v17  ;;  %v3858_v8 = vld [vmem:[%s5051_s2 + $0x230] sm:$0xff]  }
  0x2c   : > { %3363 = vmatpush3.bf16.msra.mxu0 %v3781_v18  ;;  %v4199_v18 = vld [vmem:[%s4153_s19 + $0x8] sm:$0xf] }
  0x2d   : > { %3403 = vmatpush3.bf16.msra.mxu1 %v3782_v19  ;;  %3428 = vmatprep.subr.bf16.mxu0 %v3787_v23  ;;  %v4204_v19 = vcombine.low %v4194_v17, %v4199_v18 }
  0x2e   : > { %3468 = vmatprep.subr.bf16.mxu1 %v3788_v24 }
  0x2f   : > { %3365 = vmatmul.mubr.bf16.vlgmr.msra.gmra.mxu0 %v4051_v25 }
  0x30   : > { %3405 = vmatmul.mubr.bf16.vlgmr.msra.gmra.mxu1 %v4055_v28  ;;  %3429 = vmatpush3.bf16.msra.mxu0 %v3787_v23  ;;  %v3826_v23 = vld [vmem:[%s5051_s2 + $0x68] sm:$0xff]  }
  0x31   : > { %3469 = vmatpush3.bf16.msra.mxu1 %v3788_v24  ;;  %3430 = vmatprep.subr.bf16.mxu0 %v3789_v29  ;;  %v3827_v24 = vld [vmem:[%s5051_s2 + $0x1e8] sm:$0xff]  }
  0x32   : > { %3470 = vmatprep.subr.bf16.mxu1 %v3790_v30  ;;  %3368 = vmatprep.mubr.bf16.mxu0 %v4067_v31 }
  0x33   : > { %3408 = vmatprep.mubr.bf16.mxu1 %v4070_v32 }
  0x34   : > { %3431 = vmatpush3.bf16.msra.mxu0 %v3789_v29  ;;  %v3830_v29 = vld [vmem:[%s5051_s2 + $0x58] sm:$0xff]  }
  0x35   : > { %3471 = vmatpush3.bf16.msra.mxu1 %v3790_v30  ;;  %3432 = vmatprep.subr.bf16.mxu0 %v3796_v35  ;;  %v3831_v30 = vld [vmem:[%s5051_s2 + $0x1d8] sm:$0xff]  }
  0x36   : > { %3472 = vmatprep.subr.bf16.mxu1 %v3797_v36 }
  0x37   : > { %3369 = vmatmul.mubr.bf16.gmra.mxu0 %v4089_v39 }
  0x38   : > { %3409 = vmatmul.mubr.bf16.gmra.mxu1 %v4091_v40  ;;  %3433 = vmatpush3.bf16.msra.mxu0 %v3796_v35  ;;  %v3835_v35 = vld [vmem:[%s5051_s2 + $0x48] sm:$0xff]  }
  0x39   : > { %3473 = vmatpush3.bf16.msra.mxu1 %v3797_v36  ;;  %3372 = vmatprep.mubr.bf16.mxu0 %v4093_v41  ;;  %v3836_v36 = vld [vmem:[%s5051_s2 + $0x1c8] sm:$0xff]  }
  0x3a   : > { %3412 = vmatprep.mubr.bf16.mxu1 %v4098_v43  ;;  %3434 = vmatprep.subr.bf16.mxu0 %v3802_v42 }
  0x3b   : > { %3474 = vmatprep.subr.bf16.mxu1 %v3803_v46 }
  0x3c   : > { %3435 = vmatpush3.bf16.msra.mxu0 %v3802_v42  ;;  %v441_v42 = vld [vmem:[%s4153_s19 + $0xc] sm:$0xf]  ;;  %s4926_s19 = scalar_lea.vmem %s5055_s6, %s2805_s29 }
  0x3d   : > { %3475 = vmatpush3.bf16.msra.mxu1 %v3803_v46  ;;  %3436 = vmatprep.subr.bf16.mxu0 %v3808_v49  ;;  %v3842_v46 = vld [vmem:[%s5051_s2 + $0xb8] sm:$0xff]   ;;  %v4282_v47 = vcombine.low %v4199_v18, %v441_v42 }
  0x3e   : > { %3476 = vmatprep.subr.bf16.mxu1 %v3809_v50 }
  0x3f   : > { %3373 = vmatmul.mubr.bf16.gmra.mxu0 %v4118_v51 }
  0x40   : > { %3413 = vmatmul.mubr.bf16.gmra.mxu1 %v4120_v52  ;;  %3376 = vmatprep.mubr.bf16.mxu0 %v4122_v53 }
  0x41   : > { %3416 = vmatprep.mubr.bf16.mxu1 %v4126_v54  ;;  %3437 = vmatpush3.bf16.msra.mxu0 %v3808_v49  ;;  %v3843_v49 = vld [vmem:[%s5051_s2 + $0x170] sm:$0xff]  }
  0x42   : > { %3477 = vmatpush3.bf16.msra.mxu1 %v3809_v50  ;;  %3438 = vmatprep.subr.bf16.mxu0 %v3810_v57  ;;  %v3844_v50 = vld [vmem:[%s5051_s2 + $0xb0] sm:$0xff]  }
  0x43   : > { %3478 = vmatprep.subr.bf16.mxu1 %v3811_v58 }
  0x45   : > { %3439 = vmatpush3.bf16.msra.mxu0 %v3810_v57  ;;  %v3847_v57 = vld [vmem:[%s5051_s2 + $0x160] sm:$0xff]  }
  0x46   : > { %3479 = vmatpush3.bf16.msra.mxu1 %v3811_v58  ;;  %3440 = vmatprep.subr.bf16.mxu0 %v3816_v61  ;;  %v3848_v58 = vld [vmem:[%s5051_s2 + $0xa0] sm:$0xff]  }
  0x47   : > { %3377 = vmatmul.mubr.bf16.gmra.mxu0 %v4145_v62  ;;  %3480 = vmatprep.subr.bf16.mxu1 %v3817_v63 }
  0x48   : > { %3417 = vmatmul.mubr.bf16.gmra.mxu1 %v4155_v0  ;;  %3380 = vmatprep.mubr.bf16.mxu0 %v4157_v1 }
  0x49   : > { %3420 = vmatprep.mubr.bf16.mxu1 %v4159_v2  ;;  %3441 = vmatpush3.bf16.msra.mxu0 %v3816_v61  ;;  %v3851_v61 = vld [vmem:[%s5051_s2 + $0x150] sm:$0xff]  }
  0x4a   : > { %3481 = vmatpush3.bf16.msra.mxu1 %v3817_v63  ;;  %3442 = vmatprep.subr.bf16.mxu0 %v3820_v5  ;;  %v3852_v63 = vld [vmem:[%s5051_s2 + $0x90] sm:$0xff]  }
  0x4b   : > { %3482 = vmatprep.subr.bf16.mxu1 %v3821_v6 }
  0x4d   : > { %3443 = vmatpush3.bf16.msra.mxu0 %v3820_v5  ;;  %v3855_v5 = vld [vmem:[%s5051_s2 + $0x140] sm:$0xff]  }
  0x4e   : > { %3483 = vmatpush3.bf16.msra.mxu1 %v3821_v6  ;;  %3508 = vmatprep.subr.bf16.mxu0 %v3822_v9  ;;  %v3856_v6 = vld [vmem:[%s5051_s2 + $0x80] sm:$0xff]  }
  0x4f   : > { %3381 = vmatmul.mubr.bf16.gmra.mxu0 %v4180_v10  ;;  %3548 = vmatprep.subr.bf16.mxu1 %v3823_v11 }
  0x50   : > { %3421 = vmatmul.mubr.bf16.gmra.mxu1 %v4185_v12  ;;  %3384 = vmatprep.mubr.bf16.mxu0 %v4188_v13 }
  0x51   : > { %3424 = vmatprep.mubr.bf16.mxu1 %v4190_v16 }
  0x57   : > { %3385 = vmatmul.mubr.bf16.gmra.mxu0 %v4204_v19 }
  0x58   : > { %3425 = vmatmul.mubr.bf16.gmra.mxu1 %v4206_v20  ;;  %3444 = vmatprep.mubr.bf16.mxu0 %v4091_v40 }
  0x59   : > { %3484 = vmatprep.mubr.bf16.mxu1 %v4022_v14 }
  0x5f   : > { %3445 = vmatmul.mubr.bf16.vlgmr.msra.gmra.mxu0 %v4098_v43 }
  0x60   : > { %3485 = vmatmul.mubr.bf16.vlgmr.msra.gmra.mxu1 %v4051_v25  ;;  %3509 = vmatpush3.bf16.msra.mxu0 %v3822_v9  ;;  %v3859_v9 = vld [vmem:[%s5051_s2 + $0x228] sm:$0xff]  }
  0x61   : > { %3549 = vmatpush3.bf16.msra.mxu1 %v3823_v11  ;;  %3510 = vmatprep.subr.bf16.mxu0 %v3824_v21 }
  0x62   : > { %3550 = vmatprep.subr.bf16.mxu1 %v3825_v22  ;;  %3448 = vmatprep.mubr.bf16.mxu0 %v4120_v52 }
  0x63   : > { %3488 = vmatprep.mubr.bf16.mxu1 %v4067_v31 }
  0x64   : > { %3511 = vmatpush3.bf16.msra.mxu0 %v3824_v21 }
  0x65   : > { %3551 = vmatpush3.bf16.msra.mxu1 %v3825_v22  ;;  %3512 = vmatprep.subr.bf16.mxu0 %v3826_v23 }
  0x66   : > { %3552 = vmatprep.subr.bf16.mxu1 %v3827_v24 }
  0x67   : > { %3449 = vmatmul.mubr.bf16.gmra.mxu0 %v4126_v54 }
  0x68   : > { %3489 = vmatmul.mubr.bf16.gmra.mxu1 %v4089_v39  ;;  %3513 = vmatpush3.bf16.msra.mxu0 %v3826_v23 }
  0x69   : > { %3553 = vmatpush3.bf16.msra.mxu1 %v3827_v24  ;;  %3452 = vmatprep.mubr.bf16.mxu0 %v4155_v0 }
  0x6a   : > { %3492 = vmatprep.mubr.bf16.mxu1 %v4093_v41  ;;  %3514 = vmatprep.subr.bf16.mxu0 %v3828_v26 }
  0x6b   : > { %3554 = vmatprep.subr.bf16.mxu1 %v3829_v27 }
  0x6c   : > { %3515 = vmatpush3.bf16.msra.mxu0 %v3828_v26 }
  0x6d   : > { %3555 = vmatpush3.bf16.msra.mxu1 %v3829_v27  ;;  %3516 = vmatprep.subr.bf16.mxu0 %v3830_v29 }
  0x6e   : > { %3556 = vmatprep.subr.bf16.mxu1 %v3831_v30 }
  0x6f   : > { %3453 = vmatmul.mubr.bf16.gmra.mxu0 %v4159_v2 }
  0x70   : > { %3493 = vmatmul.mubr.bf16.gmra.mxu1 %v4118_v51  ;;  %3456 = vmatprep.mubr.bf16.mxu0 %v4185_v12 }
  0x71   : > { %3496 = vmatprep.mubr.bf16.mxu1 %v4122_v53  ;;  %3517 = vmatpush3.bf16.msra.mxu0 %v3830_v29 }
  0x72   : > { %3557 = vmatpush3.bf16.msra.mxu1 %v3831_v30  ;;  %3518 = vmatprep.subr.bf16.mxu0 %v3832_v33 }
  0x73   : > { %3558 = vmatprep.subr.bf16.mxu1 %v3833_v34 }
  0x75   : > { %3519 = vmatpush3.bf16.msra.mxu0 %v3832_v33 }
  0x76   : > { %3559 = vmatpush3.bf16.msra.mxu1 %v3833_v34  ;;  %3520 = vmatprep.subr.bf16.mxu0 %v3835_v35 }
  0x77   : > { %3457 = vmatmul.mubr.bf16.gmra.mxu0 %v4190_v16  ;;  %3560 = vmatprep.subr.bf16.mxu1 %v3836_v36 }
  0x78   : > { %3497 = vmatmul.mubr.bf16.gmra.mxu1 %v4145_v62  ;;  %3460 = vmatprep.mubr.bf16.mxu0 %v4206_v20 }
  0x79   : > { %3500 = vmatprep.mubr.bf16.mxu1 %v4157_v1  ;;  %3521 = vmatpush3.bf16.msra.mxu0 %v3835_v35 }
  0x7a   : > { %3561 = vmatpush3.bf16.msra.mxu1 %v3836_v36  ;;  %3522 = vmatprep.subr.bf16.mxu0 %v3839_v37 }
  0x7b   : > { %3562 = vmatprep.subr.bf16.mxu1 %v3840_v38 }
  0x7d   : > { %3523 = vmatpush3.bf16.msra.mxu0 %v3839_v37 }
  0x7e   : > { %3563 = vmatpush3.bf16.msra.mxu1 %v3840_v38  ;;  %3588 = vmatprep.subr.bf16.mxu0 %v3841_v44 }
  0x7f   : > { %3461 = vmatmul.mubr.bf16.gmra.mxu0 %v4276_v45  ;;  %3628 = vmatprep.subr.bf16.mxu1 %v3842_v46 }
  0x80   : > { %3501 = vmatmul.mubr.bf16.gmra.mxu1 %v4180_v10  ;;  %3464 = vmatprep.mubr.bf16.mxu0 %v4282_v47 }
  0x81   : > { %3504 = vmatprep.mubr.bf16.mxu1 %v4188_v13 }
  0x87   : > { %3465 = vmatmul.mubr.bf16.gmra.mxu0 %v4289_v48 }
  0x88   : > { %3505 = vmatmul.mubr.bf16.gmra.mxu1 %v4204_v19  ;;  %3524 = vmatprep.mubr.bf16.mxu0 %v4025_v15 }
  0x89   : > { %3564 = vmatprep.mubr.bf16.mxu1 %v4091_v40 }
  0x8f   : > { %3525 = vmatmul.mubr.bf16.vlgmr.msra.gmra.mxu0 %v4055_v28 }
  0x90   : > { %3565 = vmatmul.mubr.bf16.vlgmr.msra.gmra.mxu1 %v4098_v43  ;;  %3589 = vmatpush3.bf16.msra.mxu0 %v3841_v44 }
  0x91   : > { %3629 = vmatpush3.bf16.msra.mxu1 %v3842_v46  ;;  %3590 = vmatprep.subr.bf16.mxu0 %v3843_v49 }
  0x92   : > { %3630 = vmatprep.subr.bf16.mxu1 %v3844_v50  ;;  %3528 = vmatprep.mubr.bf16.mxu0 %v4070_v32 }
  0x93   : > { %3568 = vmatprep.mubr.bf16.mxu1 %v4120_v52 }
  0x94   : > { %3591 = vmatpush3.bf16.msra.mxu0 %v3843_v49 }
  0x95   : > { %3631 = vmatpush3.bf16.msra.mxu1 %v3844_v50  ;;  %3592 = vmatprep.subr.bf16.mxu0 %v3845_v55 }
  0x96   : > { %3632 = vmatprep.subr.bf16.mxu1 %v3846_v56 }
  0x97   : > { %3529 = vmatmul.mubr.bf16.gmra.mxu0 %v4091_v40 }
  0x98   : > { %3569 = vmatmul.mubr.bf16.gmra.mxu1 %v4126_v54  ;;  %3593 = vmatpush3.bf16.msra.mxu0 %v3845_v55 }
  0x99   : > { %3633 = vmatpush3.bf16.msra.mxu1 %v3846_v56  ;;  %3532 = vmatprep.mubr.bf16.mxu0 %v4098_v43 }
  0x9a   : > { %3572 = vmatprep.mubr.bf16.mxu1 %v4155_v0  ;;  %3594 = vmatprep.subr.bf16.mxu0 %v3847_v57 }
  0x9b   : > { %3634 = vmatprep.subr.bf16.mxu1 %v3848_v58 }
  0x9c   : > { %3595 = vmatpush3.bf16.msra.mxu0 %v3847_v57 }
  0x9d   : > { %3635 = vmatpush3.bf16.msra.mxu1 %v3848_v58  ;;  %3596 = vmatprep.subr.bf16.mxu0 %v3849_v59 }
  0x9e   : > { %3636 = vmatprep.subr.bf16.mxu1 %v3850_v60 }
  0x9f   : > { %3533 = vmatmul.mubr.bf16.gmra.mxu0 %v4120_v52 }
  0xa0   : > { %3573 = vmatmul.mubr.bf16.gmra.mxu1 %v4159_v2  ;;  %3536 = vmatprep.mubr.bf16.mxu0 %v4126_v54 }
  0xa1   : > { %3576 = vmatprep.mubr.bf16.mxu1 %v4185_v12  ;;  %3597 = vmatpush3.bf16.msra.mxu0 %v3849_v59 }
  0xa2   : > { %3637 = vmatpush3.bf16.msra.mxu1 %v3850_v60  ;;  %3598 = vmatprep.subr.bf16.mxu0 %v3851_v61 }
  0xa3   : > { %3638 = vmatprep.subr.bf16.mxu1 %v3852_v63 }
  0xa5   : > { %3599 = vmatpush3.bf16.msra.mxu0 %v3851_v61 }
  0xa6   : > { %3639 = vmatpush3.bf16.msra.mxu1 %v3852_v63  ;;  %3600 = vmatprep.subr.bf16.mxu0 %v3853_v3 }
  0xa7   : > { %3537 = vmatmul.mubr.bf16.gmra.mxu0 %v4155_v0  ;;  %3640 = vmatprep.subr.bf16.mxu1 %v3854_v4 }
  0xa8   : > { %3577 = vmatmul.mubr.bf16.gmra.mxu1 %v4190_v16  ;;  %3540 = vmatprep.mubr.bf16.mxu0 %v4159_v2 }
  0xa9   : > { %3580 = vmatprep.mubr.bf16.mxu1 %v4206_v20  ;;  %3601 = vmatpush3.bf16.msra.mxu0 %v3853_v3 }
  0xaa   : > { %3641 = vmatpush3.bf16.msra.mxu1 %v3854_v4  ;;  %3602 = vmatprep.subr.bf16.mxu0 %v3855_v5 }
  0xab   : > { %3642 = vmatprep.subr.bf16.mxu1 %v3856_v6 }
  0xad   : > { %3603 = vmatpush3.bf16.msra.mxu0 %v3855_v5 }
  0xae   : > { %3643 = vmatpush3.bf16.msra.mxu1 %v3856_v6  ;;  %3668 = vmatprep.subr.bf16.mxu0 %v3857_v7 }
  0xaf   : > { %3541 = vmatmul.mubr.bf16.gmra.mxu0 %v4185_v12  ;;  %3708 = vmatprep.subr.bf16.mxu1 %v3857_v7 }
  0xb0   : > { %3581 = vmatmul.mubr.bf16.gmra.mxu1 %v4276_v45  ;;  %3544 = vmatprep.mubr.bf16.mxu0 %v4190_v16 }
  0xb1   : > { %3584 = vmatprep.mubr.bf16.mxu1 %v4282_v47 }
  0xb7   : > { %3545 = vmatmul.mubr.bf16.gmra.mxu0 %v4206_v20 }
  0xb8   : > { %3585 = vmatmul.mubr.bf16.gmra.mxu1 %v4289_v48  ;;  %3604 = vmatprep.mubr.bf16.mxu0 %v4022_v14  ;;  %v3860_v14 = vld [vmem:[%s5051_s2 + $0x220] sm:$0xff]  }
  0xb9   : > { %3644 = vmatprep.mubr.bf16.mxu1 %v4025_v15  ;;  %v3861_v15 = vld [vmem:[%s5051_s2 + $0x218] sm:$0xff]  }
  0xbf   : > { %3605 = vmatmul.mubr.bf16.vlgmr.msra.gmra.mxu0 %v4051_v25  ;;  %v3862_v25 = vld [vmem:[%s5051_s2 + $0x210] sm:$0xff]  }
  0xc0   : > { %3645 = vmatmul.mubr.bf16.vlgmr.msra.gmra.mxu1 %v4055_v28  ;;  %3669 = vmatpush3.bf16.msra.mxu0 %v3857_v7  ;;  %v3863_v28 = vld [vmem:[%s5051_s2 + $0x208] sm:$0xff]  }
  0xc1   : > { %3716 = vmatpush3.bf16.msra.mxu1 %v3857_v7  ;;  %3670 = vmatprep.subr.bf16.mxu0 %v3858_v8 }
  0xc2   : > { %3709 = vmatprep.subr.bf16.mxu1 %v3858_v8  ;;  %3608 = vmatprep.mubr.bf16.mxu0 %v4067_v31  ;;  %v3864_v31 = vld [vmem:[%s5051_s2 + $0x200] sm:$0xff]  }
  0xc3   : > { %3648 = vmatprep.mubr.bf16.mxu1 %v4070_v32 }
  0xc4   : > { %3671 = vmatpush3.bf16.msra.mxu0 %v3858_v8 }
  0xc5   : > { %3717 = vmatpush3.bf16.msra.mxu1 %v3858_v8  ;;  %3672 = vmatprep.subr.bf16.mxu0 %v3859_v9 }
  0xc6   : > { %3710 = vmatprep.subr.bf16.mxu1 %v3859_v9 }
  0xc7   : > { %3609 = vmatmul.mubr.bf16.gmra.mxu0 %v4089_v39 }
  0xc8   : > { %3649 = vmatmul.mubr.bf16.gmra.mxu1 %v4091_v40  ;;  %3673 = vmatpush3.bf16.msra.mxu0 %v3859_v9 }
  0xc9   : > { %3718 = vmatpush3.bf16.msra.mxu1 %v3859_v9  ;;  %3612 = vmatprep.mubr.bf16.mxu0 %v4093_v41 }
  0xca   : > { %3652 = vmatprep.mubr.bf16.mxu1 %v4098_v43  ;;  %3674 = vmatprep.subr.bf16.mxu0 %v3860_v14 }
  0xcb   : > { %3711 = vmatprep.subr.bf16.mxu1 %v3860_v14 }
  0xcc   : > { %3675 = vmatpush3.bf16.msra.mxu0 %v3860_v14 }
  0xcd   : > { %3719 = vmatpush3.bf16.msra.mxu1 %v3860_v14  ;;  %3676 = vmatprep.subr.bf16.mxu0 %v3861_v15 }
  0xce   : > { %3712 = vmatprep.subr.bf16.mxu1 %v3861_v15 }
  0xcf   : > { %3613 = vmatmul.mubr.bf16.gmra.mxu0 %v4118_v51 }
  0xd0   : > { %3653 = vmatmul.mubr.bf16.gmra.mxu1 %v4120_v52  ;;  %3616 = vmatprep.mubr.bf16.mxu0 %v4122_v53 }
  0xd1   : > { %3656 = vmatprep.mubr.bf16.mxu1 %v4126_v54  ;;  %3677 = vmatpush3.bf16.msra.mxu0 %v3861_v15 }
  0xd2   : > { %3720 = vmatpush3.bf16.msra.mxu1 %v3861_v15  ;;  %3678 = vmatprep.subr.bf16.mxu0 %v3862_v25 }
  0xd3   : > { %3713 = vmatprep.subr.bf16.mxu1 %v3862_v25 }
  0xd5   : > { %3679 = vmatpush3.bf16.msra.mxu0 %v3862_v25 }
  0xd6   : > { %3721 = vmatpush3.bf16.msra.mxu1 %v3862_v25  ;;  %3680 = vmatprep.subr.bf16.mxu0 %v3863_v28 }
  0xd7   : > { %3617 = vmatmul.mubr.bf16.gmra.mxu0 %v4145_v62  ;;  %3714 = vmatprep.subr.bf16.mxu1 %v3863_v28 }
  0xd8   : > { %3657 = vmatmul.mubr.bf16.gmra.mxu1 %v4155_v0  ;;  %3620 = vmatprep.mubr.bf16.mxu0 %v4157_v1 }
  0xd9   : > { %3660 = vmatprep.mubr.bf16.mxu1 %v4159_v2  ;;  %3681 = vmatpush3.bf16.msra.mxu0 %v3863_v28 }
  0xda   : > { %3722 = vmatpush3.bf16.msra.mxu1 %v3863_v28  ;;  %3682 = vmatprep.subr.bf16.mxu0 %v3864_v31 }
  0xdb   : > { %3715 = vmatprep.subr.bf16.mxu1 %v3864_v31 }
  0xdd   : > { %3683 = vmatpush3.bf16.msra.mxu0 %v3864_v31 }
  0xde   : > { %3723 = vmatpush3.bf16.msra.mxu1 %v3864_v31 }
  0xdf   : > { %3621 = vmatmul.mubr.bf16.gmra.mxu0 %v4180_v10 }
  0xe0   : > { %3661 = vmatmul.mubr.bf16.gmra.mxu1 %v4185_v12  ;;  %3624 = vmatprep.mubr.bf16.mxu0 %v4188_v13 }
  0xe1   : > { %3664 = vmatprep.mubr.bf16.mxu1 %v4190_v16 }
  0xe7   : > { %3625 = vmatmul.mubr.bf16.gmra.mxu0 %v4204_v19 }
  0xe8   : > { %3665 = vmatmul.mubr.bf16.gmra.mxu1 %v4206_v20  ;;  %3684 = vmatprep.mubr.bf16.mxu0 %v4091_v40 }
  0xe9   : > { %3696 = vmatprep.mubr.bf16.mxu1 %v4185_v12 }
  0xef   : > { %v3366_v32 = vpop.f32.mrf.mxu0  ;;  %3685 = vmatmul.mubr.bf16.vlgmr.msra.gmra.mxu0 %v4098_v43 }
  0xf0   : > { %v3406_v39 = vpop.f32.mrf.mxu1  ;;  %3697 = vmatmul.mubr.bf16.vlgmr.msra.gmra.mxu1 %v4190_v16  ;;  %3688 = vmatprep.mubr.bf16.mxu0 %v4120_v52 }
  0xf1   : > { %v631_v41 = vpop.f32.mrf.mxu0  ;;  %3700 = vmatprep.mubr.bf16.mxu1 %v4206_v20 }
  0xf2   : > { %v830_v51 = vpop.f32.mrf.mxu1 }
  0xf3   : > { %v4413_v53 = vadd.f32 %v830_v51, %v631_v41  ;;  %v3367_v62 = vpop.f32.mrf.mxu0 }
  0xf4   : > { %v3407_v1 = vpop.f32.mrf.mxu1 }
  0xf5   : > { %v4415_v10 = vadd.f32 %v3407_v1, %v3367_v62  ;;  %v634_v40 = vpop.f32.mrf.mxu0 }
  0xf6   : > { %v833_v11 = vpop.f32.mrf.mxu1 }
  0xf7   : > { %v4417_v12 = vadd.f32 %v833_v11, %v634_v40  ;;  %v3370_v43 = vpop.f32.mrf.mxu0  ;;  %3689 = vmatmul.mubr.bf16.gmra.mxu0 %v4126_v54 }
  0xf8   : > { %v3410_v13 = vpop.f32.mrf.mxu1  ;;  %3701 = vmatmul.mubr.bf16.gmra.mxu1 %v4276_v45  ;;  %3692 = vmatprep.mubr.bf16.mxu0 %v4155_v0 }
  0xf9   : > { %v4422_v52 = vadd.f32 %v3410_v13, %v3370_v43  ;;  %v646_v16 = vpop.f32.mrf.mxu0  ;;  %3704 = vmatprep.mubr.bf16.mxu1 %v4282_v47 }
  0xfa   : > { %v845_v17 = vpop.f32.mrf.mxu1 }
  0xfb   : > { %v4425_v18 = vadd.f32 %v845_v17, %v646_v16  ;;  %v3371_v19 = vpop.f32.mrf.mxu0 }
  0xfc   : > { %v3411_v20 = vpop.f32.mrf.mxu1 }
  0xfd   : > { %v4427_v21 = vadd.f32 %v3411_v20, %v3371_v19  ;;  %v649_v22 = vpop.f32.mrf.mxu0 }
  0xfe   : > { %v848_v23 = vpop.f32.mrf.mxu1 }
  0xff   : > { %v3374_v54 = vpop.f32.mrf.mxu0  ;;  %3693 = vmatmul.mubr.bf16.gmra.mxu0 %v4159_v2 }
 0x100   : > { %v3414_v24 = vpop.f32.mrf.mxu1  ;;  %3705 = vmatmul.mubr.bf16.gmra.mxu1 %v4289_v48 }
 0x101   : > { %v4431_v0 = vadd.f32 %v3414_v24, %v3374_v54  ;;  %v661_v26 = vpop.f32.mrf.mxu0 }
 0x102   : > { %v860_v27 = vpop.f32.mrf.mxu1 }
 0x103   : > { %v3375_v29 = vpop.f32.mrf.mxu0 }
 0x104   : > { %v3415_v30 = vpop.f32.mrf.mxu1 }
 0x105   : > { %v663_v33 = vpop.f32.mrf.mxu0 }
 0x106   : > { %v862_v34 = vpop.f32.mrf.mxu1 }
 0x107   : > { %v4433_v35 = vadd.f32 %v862_v34, %v663_v33  ;;  %v3378_v36 = vpop.f32.mrf.mxu0 }
 0x108   : > { %v3418_v37 = vpop.f32.mrf.mxu1 }
 0x109   : > { %v675_v38 = vpop.f32.mrf.mxu0 }
 0x10a   : > { %v874_v42 = vpop.f32.mrf.mxu1 }
 0x10b   : > { %v4435_v44 = vadd.f32 %v874_v42, %v675_v38  ;;  %v3379_v2 = vpop.f32.mrf.mxu0 }
 0x10c   : > { %v3419_v45 = vpop.f32.mrf.mxu1 }
 0x10d   : > { %v4437_v46 = vadd.f32 %v3419_v45, %v3379_v2  ;;  %v678_v47 = vpop.f32.mrf.mxu0 }
 0x10e   : > { %v877_v48 = vpop.f32.mrf.mxu1 }
 0x10f   : > { %v4439_v49 = vadd.f32 %v877_v48, %v678_v47  ;;  %v3382_v50 = vpop.f32.mrf.mxu0 }
 0x110   : > { %v3422_v55 = vpop.f32.mrf.mxu1 }
 0x111   : > { %v4441_v56 = vadd.f32 %v3422_v55, %v3382_v50  ;;  %v690_v57 = vpop.f32.mrf.mxu0 }
 0x112   : > { %v889_v58 = vpop.f32.mrf.mxu1 }
 0x113   : > { %v4443_v59 = vadd.f32 %v889_v58, %v690_v57  ;;  %v3383_v60 = vpop.f32.mrf.mxu0 }
 0x114   : > { %v3423_v61 = vpop.f32.mrf.mxu1 }
 0x115   : > { %v4445_v63 = vadd.f32 %v3423_v61, %v3383_v60  ;;  %v693_v3 = vpop.f32.mrf.mxu0 }
 0x116   : > { %v892_v4 = vpop.f32.mrf.mxu1 }
 0x117   : > { %v3386_v5 = vpop.f32.mrf.mxu0 }
 0x118   : > { %v3426_v6 = vpop.f32.mrf.mxu1 }
 0x119   : > { %v4447_v7 = vadd.f32 %v3426_v6, %v3386_v5  ;;  %v705_v8 = vpop.f32.mrf.mxu0 }
 0x11a   : > { %v904_v9 = vpop.f32.mrf.mxu1 }
 0x11b   : > { %v3387_v14 = vpop.f32.mrf.mxu0 }
 0x11c   : > { %v3427_v15 = vpop.f32.mrf.mxu1 }
 0x11d   : > { %v707_v25 = vpop.f32.mrf.mxu0 }
 0x11e   : > { %v906_v28 = vpop.f32.mrf.mxu1 }
 0x11f   : > { %v4449_v31 = vadd.f32 %v906_v28, %v707_v25  ;;  %v3446_v32 = vpop.f32.mrf.mxu0 }
 0x120   : > { %v4451_v39 = vpop.f32.mrf.mxu1 }
 0x121   : > { %v1028_v41 = vpop.f32.mrf.mxu0 }
 0x122   : > { %v4454_v51 = vadd.f32 %v1028_v41, %v4413_v53  ;;  %v4456_v62 = vpop.f32.mrf.mxu1 }
 0x123   : > { %v3447_v1 = vpop.f32.mrf.mxu0 }
 0x124   : > { %v4459_v40 = vadd.f32 %v3447_v1, %v4415_v10  ;;  %v4461_v11 = vpop.f32.mrf.mxu1 }
 0x125   : > { %v1031_v43 = vpop.f32.mrf.mxu0 }
 0x126   : > { %v4464_v13 = vadd.f32 %v1031_v43, %v4417_v12  ;;  %v4466_v16 = vpop.f32.mrf.mxu1 }
 0x127   : > { %v3450_v17 = vpop.f32.mrf.mxu0 }
 0x128   : > { %v4469_v19 = vadd.f32 %v3450_v17, %v4422_v52  ;;  %v4471_v53 = vpop.f32.mrf.mxu1 }
 0x129   : > { %v1043_v20 = vpop.f32.mrf.mxu0 }
 0x12a   : > { %v4474_v22 = vadd.f32 %v1043_v20, %v4425_v18  ;;  %v4476_v10 = vpop.f32.mrf.mxu1  ;;  %v1761_v20 = vlaneseq }
 0x12b   : > { %v3451_v23 = vpop.f32.mrf.mxu0 }
 0x12c   : > { %v4479_v54 = vadd.f32 %v3451_v23, %v4427_v21  ;;  %v4481_v12 = vpop.f32.mrf.mxu1 }
 0x12d   : > { %v1046_v24 = vpop.f32.mrf.mxu0 }
 0x12e   : > { %v4483_v26 = vpop.f32.mrf.mxu1 }
 0x12f   : > { %v3454_v27 = vpop.f32.mrf.mxu0 }
 0x130   : > { %v4486_v52 = vadd.f32 %v3454_v27, %v4431_v0  ;;  %v4488_v29 = vpop.f32.mrf.mxu1 }
 0x131   : > { %v1058_v30 = vpop.f32.mrf.mxu0 }
 0x132   : > { %v4490_v18 = vpop.f32.mrf.mxu1 }
 0x133   : > { %v3455_v33 = vpop.f32.mrf.mxu0 }
 0x134   : > { %v4492_v34 = vpop.f32.mrf.mxu1 }
 0x135   : > { %v1060_v36 = vpop.f32.mrf.mxu0 }
 0x136   : > { %v4495_v21 = vadd.f32 %v1060_v36, %v4433_v35  ;;  %v4497_v37 = vpop.f32.mrf.mxu1 }
 0x137   : > { %v3458_v38 = vpop.f32.mrf.mxu0 }
 0x138   : > { %v4499_v42 = vpop.f32.mrf.mxu1 }
 0x139   : > { %v1072_v2 = vpop.f32.mrf.mxu0 }
 0x13a   : > { %v4502_v0 = vadd.f32 %v1072_v2, %v4435_v44  ;;  %v4504_v45 = vpop.f32.mrf.mxu1 }
 0x13b   : > { %v3459_v47 = vpop.f32.mrf.mxu0 }
 0x13c   : > { %v4507_v48 = vadd.f32 %v3459_v47, %v4437_v46  ;;  %v4509_v50 = vpop.f32.mrf.mxu1 }
 0x13d   : > { %v1075_v55 = vpop.f32.mrf.mxu0 }
 0x13e   : > { %v4512_v35 = vadd.f32 %v1075_v55, %v4439_v49  ;;  %v4514_v57 = vpop.f32.mrf.mxu1 }
 0x13f   : > { %v3462_v58 = vpop.f32.mrf.mxu0 }
 0x140   : > { %v4517_v60 = vadd.f32 %v3462_v58, %v4441_v56  ;;  %v4519_v44 = vpop.f32.mrf.mxu1 }
 0x141   : > { %v1087_v61 = vpop.f32.mrf.mxu0 }
 0x142   : > { %v4522_v3 = vadd.f32 %v1087_v61, %v4443_v59  ;;  %v4524_v46 = vpop.f32.mrf.mxu1 }
 0x143   : > { %v3463_v4 = vpop.f32.mrf.mxu0 }
 0x144   : > { %v4527_v5 = vadd.f32 %v3463_v4, %v4445_v63  ;;  %v4529_v49 = vpop.f32.mrf.mxu1 }
 0x145   : > { %v1090_v6 = vpop.f32.mrf.mxu0 }
 0x146   : > { %v4531_v8 = vpop.f32.mrf.mxu1 }
 0x147   : > { %v3466_v9 = vpop.f32.mrf.mxu0 }
 0x148   : > { %v4534_v56 = vadd.f32 %v3466_v9, %v4447_v7  ;;  %v4536_v14 = vpop.f32.mrf.mxu1 }
 0x149   : > { %v1102_v15 = vpop.f32.mrf.mxu0 }
 0x14a   : > { %v4538_v59 = vpop.f32.mrf.mxu1 }
 0x14b   : > { %v3467_v25 = vpop.f32.mrf.mxu0 }
 0x14c   : > { %v4540_v28 = vpop.f32.mrf.mxu1 }
 0x14d   : > { %v1104_v32 = vpop.f32.mrf.mxu0 }
 0x14e   : > { %v4543_v63 = vadd.f32 %v1104_v32, %v4449_v31  ;;  %v4545_v41 = vpop.f32.mrf.mxu1  ;;  %v4550_v31 = vshrl.u32 %v1761_v20, 7 }
 0x14f   : > { %v3526_v1 = vpop.f32.mrf.mxu0 }
 0x150   : > { %v1433_v43 = vadd.f32 %v3526_v1, %v4451_v39  ;;  %v3566_v17 = vpop.f32.mrf.mxu1  ;;  %vm1763_vm0 = vcmp.lt.s32.totalorder %v4550_v31, 7  ;;  %vm2426_vm1 = vcmp.lt.s32.totalorder %v4550_v31, 6 }
 0x151   : > { %v1424_v7 = vpop.f32.mrf.mxu0 }
 0x152   : > { %v1715_v23 = vadd.f32 %v3566_v17, %v1433_v43  ;;  %v1425_v24 = vadd.f32 %v1424_v7, %v4456_v62  ;;  %v1618_v27 = vpop.f32.mrf.mxu1 }
 0x153   : > { %v3527_v30 = vpop.f32.mrf.mxu0 }
 0x154   : > { %v1713_v33 = vadd.f32 %v1618_v27, %v1425_v24  ;;  %v1436_v36 = vadd.f32 %v3527_v30, %v4461_v11  ;;  %v3567_v38 = vpop.f32.mrf.mxu1  ;;  %v1739_v9 = vrot.slane %v1715_v23, 1 }
 0x155   : > { %v1427_v2 = vpop.f32.mrf.mxu0 }
 0x156   : > { %v1716_v47 = vadd.f32 %v3567_v38, %v1436_v36  ;;  %v1428_v55 = vadd.f32 %v1427_v2, %v4466_v16  ;;  %v1621_v58 = vpop.f32.mrf.mxu1  ;;  %v1737_v15 = vrot.slane %v1713_v33, 1 }
 0x157   : > { %v3530_v39 = vpop.f32.mrf.mxu0 }
 0x158   : > { %v1714_v61 = vadd.f32 %v1621_v58, %v1428_v55  ;;  %v1449_v4 = vadd.f32 %v3530_v39, %v4471_v53  ;;  %v3570_v6 = vpop.f32.mrf.mxu1 }
 0x159   : > { %v1440_v62 = vpop.f32.mrf.mxu0 }
 0x15a   : > { %v1738_v25 = vrot.slane %v1714_v61, 1  ;;  %v1719_v11 = vadd.f32 %v3570_v6, %v1449_v4  ;;  %v1441_v32 = vadd.f32 %v1440_v62, %v4476_v10  ;;  %v1634_v1 = vpop.f32.mrf.mxu1  ;;  %v1740_v10 = vrot.slane %v1716_v47, 1 }
 0x15b   : > { %v3531_v43 = vpop.f32.mrf.mxu0 }
 0x15c   : > { %v1778_v16 = vsel %vm1763_vm0, %v1738_v25, %v1739_v9  ;;  %v1779_v17 = vsel %vm1763_vm0, %v1737_v15, %v1738_v25  ;;  %v1717_v7 = vadd.f32 %v1634_v1, %v1441_v32  ;;  %v3571_v53 = vpop.f32.mrf.mxu1  ;;  %v1452_v24 = vadd.f32 %v3531_v43, %v4481_v12 }
 0x15d   : > { %v4561_v20 = vadd.f32 %v1779_v17, %v4454_v51  ;;  %v4564_v23 = vadd.f32 %v1778_v16, %v4464_v13  ;;  %v1443_v27 = vpop.f32.mrf.mxu0  ;;  %v1743_v61 = vrot.slane %v1719_v11, 1 }
 0x15e   : > { %v1741_v30 = vrot.slane %v1717_v7, 1  ;;  %v1444_v33 = vadd.f32 %v1443_v27, %v4483_v26  ;;  %v1637_v36 = vpop.f32.mrf.mxu1  ;;  %v1720_v38 = vadd.f32 %v3571_v53, %v1452_v24 }
 0x15f   : > { %5061 = vst [vmem:[#allocation2_spill] sm:$0xff] %v4564_v23  ;;  %v3534_v2 = vpop.f32.mrf.mxu0 }
 0x160   : > { %v1777_v55 = vsel %vm1763_vm0, %v1740_v10, %v1741_v30  ;;  %v1718_v58 = vadd.f32 %v1637_v36, %v1444_v33  ;;  %v1465_v51 = vadd.f32 %v3534_v2, %v4488_v29  ;;  %v3574_v39 = vpop.f32.mrf.mxu1  ;;  %v1744_v12 = vrot.slane %v1720_v38, 1 }
 0x161   : > { %v4572_v13 = vadd.f32 %v1777_v55, %v4459_v40  ;;  %v1456_v4 = vpop.f32.mrf.mxu0 }
 0x162   : > { %v1742_v47 = vrot.slane %v1718_v58, 1  ;;  %v1723_v6 = vadd.f32 %v3574_v39, %v1465_v51  ;;  %v1457_v26 = vadd.f32 %v1456_v4, %v4490_v18  ;;  %v1650_v9 = vpop.f32.mrf.mxu1  ;;  %v1775_v62 = vsel %vm1763_vm0, %v1743_v61, %v1744_v12 }
 0x163   : > { %5062 = vst [vmem:[#allocation3_spill] sm:$0xff] %v4572_v13  ;;  %v3535_v15 = vpop.f32.mrf.mxu0  ;;  %v4578_v25 = vadd.f32 %v1775_v62, %v4469_v19 }
 0x164   : > { %v1776_v29 = vsel %vm1763_vm0, %v1741_v30, %v1742_v47  ;;  %v1721_v11 = vadd.f32 %v1650_v9, %v1457_v26  ;;  %v3575_v40 = vpop.f32.mrf.mxu1  ;;  %v1468_v1 = vadd.f32 %v3535_v15, %v4492_v34  ;;  %v1747_v30 = vrot.slane %v1723_v6, 1 }
 0x165   : > { %5063 = vst [vmem:[#allocation4_spill] sm:$0xff] %v4578_v25  ;;  %v4583_v32 = vadd.f32 %v1776_v29, %v4474_v22  ;;  %v1459_v43 = vpop.f32.mrf.mxu0  ;;  %v4772_v25 = vld [vmem:[%s400_s7 + $0x38] sm:$0xff]  }
 0x166   : > { %v1745_v18 = vrot.slane %v1721_v11, 1  ;;  %v1460_v16 = vadd.f32 %v1459_v43, %v4497_v37  ;;  %v1653_v17 = vpop.f32.mrf.mxu1  ;;  %v1724_v7 = vadd.f32 %v3575_v40, %v1468_v1 }
 0x167   : > { %5064 = vst [vmem:[#allocation5_spill] sm:$0xff] %v4583_v32  ;;  %v3538_v53 = vpop.f32.mrf.mxu0 }
 0x168   : > { %v1774_v19 = vsel %vm1763_vm0, %v1744_v12, %v1745_v18  ;;  %v1722_v24 = vadd.f32 %v1653_v17, %v1460_v16  ;;  %v1481_v27 = vadd.f32 %v3538_v53, %v4499_v42  ;;  %v3578_v10 = vpop.f32.mrf.mxu1  ;;  %v1748_v33 = vrot.slane %v1724_v7, 1 }
 0x169   : > { %v4591_v22 = vadd.f32 %v1774_v19, %v4479_v54  ;;  %v1472_v34 = vpop.f32.mrf.mxu0 }
 0x16a   : > { %v1746_v36 = vrot.slane %v1722_v24, 1  ;;  %v1727_v38 = vadd.f32 %v3578_v10, %v1481_v27  ;;  %v1473_v37 = vadd.f32 %v1472_v34, %v4504_v45  ;;  %v1666_v2 = vpop.f32.mrf.mxu1  ;;  %v1772_v55 = vsel %vm1763_vm0, %v1747_v30, %v1748_v33 }
 0x16b   : > { %5065 = vst [vmem:[#allocation6_spill] sm:$0xff] %v4591_v22  ;;  %v3539_v58 = vpop.f32.mrf.mxu0  ;;  %v4597_v51 = vadd.f32 %v1772_v55, %v4486_v52 }
 0x16c   : > { %v1773_v42 = vsel %vm1763_vm0, %v1746_v36, %v1747_v30  ;;  %v1725_v39 = vadd.f32 %v1666_v2, %v1473_v37  ;;  %v3579_v54 = vpop.f32.mrf.mxu1  ;;  %v1484_v12 = vadd.f32 %v3539_v58, %v4509_v50  ;;  %v1751_v15 = vrot.slane %v1727_v38, 1 }
 0x16d   : > { %5066 = vst [vmem:[#allocation7_spill] sm:$0xff] %v4597_v51  ;;  %v4602_v61 = vadd.f32 %v1773_v42, %v4495_v21  ;;  %v1475_v4 = vpop.f32.mrf.mxu0  ;;  %v4763_v51 = vld [vmem:[%s400_s7 + $0x30] sm:$0xff]  }
 0x16e   : > { %v1476_v45 = vadd.f32 %v1475_v4, %v4514_v57  ;;  %v1669_v47 = vpop.f32.mrf.mxu1  ;;  %v1728_v6 = vadd.f32 %v3579_v54, %v1484_v12  ;;  %v1749_v11 = vrot.slane %v1725_v39, 1  ;;  %v3107_v13 = vunpack.c.h.bf16 %v4763_v51 }
 0x16f   : > { %5067 = vst [vmem:[#allocation8_spill] sm:$0xff] %v4602_v61  ;;  %v3542_v26 = vpop.f32.mrf.mxu0  ;;  %v4759_v61 = vld [vmem:[%s400_s7 + $0x10] sm:$0xff]  }
 0x170   : > { %v1726_v9 = vadd.f32 %v1669_v47, %v1476_v45  ;;  %v1497_v52 = vadd.f32 %v3542_v26, %v4519_v44  ;;  %v3582_v62 = vpop.f32.mrf.mxu1  ;;  %5077 = vst [vmem:[#allocation18_spill] sm:$0xff] %v4759_v61 }
 0x171   : > { %v1488_v29 = vpop.f32.mrf.mxu0 }
 0x172   : > { %v1750_v40 = vrot.slane %v1726_v9, 1  ;;  %v1731_v1 = vadd.f32 %v3582_v62, %v1497_v52  ;;  %v1489_v21 = vadd.f32 %v1488_v29, %v4524_v46  ;;  %v1682_v43 = vpop.f32.mrf.mxu1  ;;  %v1752_v46 = vrot.slane %v1728_v6, 1 }
 0x173   : > { %v3543_v18 = vpop.f32.mrf.mxu0 }
 0x174   : > { %v1770_v50 = vsel %vm1763_vm0, %v1750_v40, %v1751_v15  ;;  %v1771_v57 = vsel %vm1763_vm0, %v1749_v11, %v1750_v40  ;;  %v1729_v16 = vadd.f32 %v1682_v43, %v1489_v21  ;;  %v3583_v17 = vpop.f32.mrf.mxu1  ;;  %v1500_v53 = vadd.f32 %v3543_v18, %v4529_v49 }
 0x175   : > { %v4613_v44 = vadd.f32 %v1771_v57, %v4502_v0  ;;  %v4616_v7 = vadd.f32 %v1770_v50, %v4512_v35  ;;  %v1491_v19 = vpop.f32.mrf.mxu0  ;;  %v1755_v37 = vrot.slane %v1731_v1, 1 }
 0x176   : > { %v1753_v24 = vrot.slane %v1729_v16, 1  ;;  %v1492_v27 = vadd.f32 %v1491_v19, %v4531_v8  ;;  %v1685_v10 = vpop.f32.mrf.mxu1  ;;  %v1732_v30 = vadd.f32 %v3583_v17, %v1500_v53 }
 0x177   : > { %5068 = vst [vmem:[#allocation9_spill] sm:$0xff] %v4613_v44  ;;  %5069 = vst [vmem:[#allocation10_spill] sm:$0xff] %v4616_v7  ;;  %v3546_v33 = vpop.f32.mrf.mxu0 }
 0x178   : > { %v1769_v34 = vsel %vm1763_vm0, %v1752_v46, %v1753_v24  ;;  %v1730_v36 = vadd.f32 %v1685_v10, %v1492_v27  ;;  %v1513_v0 = vadd.f32 %v3546_v33, %v4536_v14  ;;  %v3586_v38 = vpop.f32.mrf.mxu1  ;;  %v1756_v49 = vrot.slane %v1732_v30, 1 }
 0x179   : > { %v4624_v35 = vadd.f32 %v1769_v34, %v4507_v48  ;;  %v1504_v2 = vpop.f32.mrf.mxu0 }
 0x17a   : > { %v1754_v55 = vrot.slane %v1730_v36, 1  ;;  %v1735_v58 = vadd.f32 %v3586_v38, %v1513_v0  ;;  %v1505_v8 = vadd.f32 %v1504_v2, %v4538_v59  ;;  %v1698_v42 = vpop.f32.mrf.mxu1  ;;  %v1767_v39 = vsel %vm1763_vm0, %v1755_v37, %v1756_v49 }
 0x17b   : > { %5070 = vst [vmem:[#allocation11_spill] sm:$0xff] %v4624_v35  ;;  %v3547_v54 = vpop.f32.mrf.mxu0  ;;  %v4630_v12 = vadd.f32 %v1767_v39, %v4517_v60 }
 0x17c   : > { %v1768_v14 = vsel %vm1763_vm0, %v1753_v24, %v1754_v55  ;;  %v1733_v4 = vadd.f32 %v1698_v42, %v1505_v8  ;;  %v3587_v48 = vpop.f32.mrf.mxu1  ;;  %v1516_v47 = vadd.f32 %v3547_v54, %v4540_v28  ;;  %v1759_v11 = vrot.slane %v1735_v58, 1 }
 0x17d   : > { %5071 = vst [vmem:[#allocation12_spill] sm:$0xff] %v4630_v12  ;;  %v4635_v45 = vadd.f32 %v1768_v14, %v4522_v3  ;;  %v1507_v6 = vpop.f32.mrf.mxu0  ;;  %v4770_v12 = vld [vmem:[%s400_s7 + $0x18] sm:$0xff]  }
 0x17e   : > { %v1757_v59 = vrot.slane %v1733_v4, 1  ;;  %v1508_v26 = vadd.f32 %v1507_v6, %v4545_v41  ;;  %v1701_v9 = vpop.f32.mrf.mxu1  ;;  %v1736_v52 = vadd.f32 %v3587_v48, %v1516_v47 }
 0x17f   : > { %5072 = vst [vmem:[#allocation13_spill] sm:$0xff] %v4635_v45  ;;  %v4639_v62 = vpop.f32.mrf.mxu0 }
 0x180   : > { %v1766_v60 = vsel %vm1763_vm0, %v1756_v49, %v1757_v59  ;;  %v1734_v15 = vadd.f32 %v1701_v9, %v1508_v26  ;;  %v4643_v29 = vpop.f32.mrf.mxu1  ;;  %v1760_v40 = vrot.slane %v1736_v52, 1 }
 0x181   : > { %v4646_v3 = vadd.f32 %v1766_v60, %v4527_v5  ;;  %v4648_v28 = vpop.f32.mrf.mxu0  ;;  %v2098_v45 = vadd.f32 %v4643_v29, %v4639_v62 }
 0x182   : > { %v1758_v1 = vrot.slane %v1734_v15, 1  ;;  %v4650_v21 = vpop.f32.mrf.mxu1  ;;  %v1764_v41 = vsel %vm1763_vm0, %v1759_v11, %v1760_v40  ;;  %v4749_v40 = vld [vmem:[%s400_s7] sm:$0xff]  }
 0x183   : > { %5073 = vst [vmem:[#allocation14_spill] sm:$0xff] %v4646_v3  ;;  %v4654_v43 = vpop.f32.mrf.mxu0  ;;  %v4657_v18 = vadd.f32 %v1764_v41, %v4534_v56  ;;  %5076 = vst [vmem:[#allocation17_spill] sm:$0xff] %v4749_v40  ;;  %v2090_v32 = vadd.f32 %v4650_v21, %v4648_v28 }
 0x184   : > { %v1765_v50 = vsel %vm1763_vm0, %v1758_v1, %v1759_v11  ;;  %v4661_v57 = vpop.f32.mrf.mxu1  ;;  %v4751_v1 = vld [vmem:[%s400_s7 + $0x20] sm:$0xff]  }
 0x185   : > { %5074 = vst [vmem:[#allocation15_spill] sm:$0xff] %v4657_v18  ;;  %v4664_v5 = vadd.f32 %v1765_v50, %v4543_v63  ;;  %v4666_v16 = vpop.f32.mrf.mxu0  ;;  %v4755_v50 = vld [vmem:[%s400_s7 + $0x8] sm:$0xff]   ;;  %v2101_v40 = vadd.f32 %v4661_v57, %v4654_v43 }
 0x186   : > { %v4668_v17 = vpop.f32.mrf.mxu1 }
 0x187   : > { %5075 = vst [vmem:[#allocation16_spill] sm:$0xff] %v4664_v5  ;;  %v4670_v53 = vpop.f32.mrf.mxu0  ;;  %v4757_v5 = vld [vmem:[%s400_s7 + $0x28] sm:$0xff]   ;;  %v2093_v22 = vadd.f32 %v4668_v17, %v4666_v16 }
 0x188   : > { %v4672_v19 = vpop.f32.mrf.mxu1 }
 0x189   : > { %v4674_v46 = vpop.f32.mrf.mxu0 }
 0x18a   : > { %v4676_v56 = vpop.f32.mrf.mxu1 }
 0x18b   : > { %v4678_v24 = vpop.f32.mrf.mxu0  ;;  %v2106_v7 = vadd.f32 %v4676_v56, %v4674_v46 }
 0x18c   : > { %v4680_v27 = vpop.f32.mrf.mxu1 }
 0x18d   : > { %v4682_v63 = vpop.f32.mrf.mxu0 }
 0x18e   : > { %v4684_v10 = vpop.f32.mrf.mxu1 }
 0x18f   : > { %v4686_v30 = vpop.f32.mrf.mxu0  ;;  %v4810_v28 = vadd.f32 %v4684_v10, %v4682_v63 }
 0x190   : > { %v4688_v33 = vpop.f32.mrf.mxu1 }
 0x191   : > { %v4690_v34 = vpop.f32.mrf.mxu0  ;;  %v4814_v21 = vadd.f32 %v4688_v33, %v4686_v30 }
 0x192   : > { %v4692_v36 = vpop.f32.mrf.mxu1 }
 0x193   : > { %v4694_v0 = vpop.f32.mrf.mxu0  ;;  %v4818_v43 = vadd.f32 %v4692_v36, %v4690_v34 }
 0x194   : > { %v4696_v38 = vpop.f32.mrf.mxu1 }
 0x195   : > { %v4698_v37 = vpop.f32.mrf.mxu0  ;;  %v4824_v17 = vadd.f32 %v4696_v38, %v4694_v0 }
 0x196   : > { %v4701_v49 = vpop.f32.mrf.mxu1 }
 0x197   : > { %v4703_v2 = vpop.f32.mrf.mxu0 }
 0x198   : > { %v3658_v55 = vpop.f32.mrf.mxu1 }
 0x199   : > { %v4705_v58 = vpop.f32.mrf.mxu0  ;;  %v2146_v62 = vadd.f32 %v3658_v55, %v4703_v2 }
 0x19a   : > { %v4708_v8 = vpop.f32.mrf.mxu1 }
 0x19b   : > { %v4710_v42 = vpop.f32.mrf.mxu0  ;;  %v2138_v57 = vadd.f32 %v4708_v8, %v4705_v58 }
 0x19c   : > { %v4712_v39 = vpop.f32.mrf.mxu1 }
 0x19d   : > { %v4714_v54 = vpop.f32.mrf.mxu0 }
 0x19e   : > { %v4717_v14 = vpop.f32.mrf.mxu1 }
 0x19f   : > { %v4719_v4 = vpop.f32.mrf.mxu0 }
 0x1a0   : > { %v4721_v48 = vpop.f32.mrf.mxu1 }
 0x1a1   : > { %v4725_v47 = vpop.f32.mrf.mxu0  ;;  %v2162_v33 = vadd.f32 %v4721_v48, %v4719_v4 }
 0x1a2   : > { %v4727_v6 = vpop.f32.mrf.mxu1 }
 0x1a3   : > { %v4729_v59 = vpop.f32.mrf.mxu0  ;;  %v2154_v34 = vadd.f32 %v4727_v6, %v4725_v47 }
 0x1a4   : > { %v4732_v26 = vpop.f32.mrf.mxu1 }
 0x1a5   : > { %v4734_v9 = vpop.f32.mrf.mxu0 }
 0x1a6   : > { %v4736_v52 = vpop.f32.mrf.mxu1 }
 0x1a7   : > { %v4743_v60 = vpop.f32.mrf.mxu0  ;;  %v4844_v0 = vadd.f32 %v4736_v52, %v4734_v9  ;;  %v4862_v52 = vld [vmem:[%s5052_s3] ss:$0 sm:$0xff] }
 0x1a8   : > { %v4745_v15 = vpop.f32.mrf.mxu1 }
 0x1a9   : > { %v4747_v11 = vpop.f32.mrf.mxu0 }
 0x1aa   : > { %v4753_v41 = vpop.f32.mrf.mxu1 }
 0x1ab   : > { %v4761_v18 = vpop.f32.mrf.mxu0 }
 0x1ac   : > { %5078 = vst [vmem:[#allocation19_spill] sm:$0xff] %v4761_v18  ;;  %v4765_v3 = vpop.f32.mrf.mxu1  ;;  %v2114_v18 = vadd.f32 %v4672_v19, %v4670_v53  ;;  %v2149_v53 = vadd.f32 %v4712_v39, %v4710_v42 }
 0x1ad   : > { %5079 = vst [vmem:[#allocation20_spill] sm:$0xff] %v4765_v3  ;;  %v4774_v35 = vpop.f32.mrf.mxu0  ;;  %v4805_v3 = vadd.f32 %v4680_v27, %v4678_v24  ;;  %v4830_v24 = vadd.f32 %v4701_v49, %v4698_v37  ;;  %v2141_v27 = vadd.f32 %v4717_v14, %v4714_v54  ;;  %v4852_v49 = vadd.f32 %v4753_v41, %v4747_v11 }
 0x1ae   : > { %v4780_v44 = vpop.f32.mrf.mxu1 }
 0x1af   : > { %v3686_v23 = vpop.f32.mrf.mxu0 }
 0x1b0   : > { %v3698_v61 = vpop.f32.mrf.mxu1  ;;  %v2380_v19 = vadd.f32 %v3686_v23, %v2098_v45  ;;  %v2165_v45 = vadd.f32 %v4732_v26, %v4729_v59 }
 0x1b1   : > { %v2283_v29 = vpop.f32.mrf.mxu0  ;;  %v2392_v46 = vadd.f32 %v3698_v61, %v2146_v62 }
 0x1b2   : > { %v2331_v16 = vpop.f32.mrf.mxu1  ;;  %v2378_v63 = vadd.f32 %v2283_v29, %v2090_v32  ;;  %v4848_v32 = vadd.f32 %v4745_v15, %v4743_v60  ;;  %v2404_v2 = vrot.slane %v2380_v19, 2  ;;  %v5082_v19 = vld [vmem:[#allocation10_spill] sm:$0xff] }
 0x1b3   : > { %v3687_v56 = vpop.f32.mrf.mxu0  ;;  %v2390_v10 = vadd.f32 %v2331_v16, %v2138_v57  ;;  %v2416_v55 = vrot.slane %v2392_v46, 2  ;;  %v4875_v16 = vld [vmem:[%s5053_s4] ss:$0 sm:$0xff] }
 0x1b4   : > { %v3699_v30 = vpop.f32.mrf.mxu1  ;;  %v2381_v36 = vadd.f32 %v3687_v56, %v2101_v40  ;;  %v2402_v42 = vrot.slane %v2378_v63, 2  ;;  %v5080_v40 = vld [vmem:[#allocation2_spill] sm:$0xff] }
 0x1b5   : > { %v4838_v23 = vadd.f32 %v3699_v30, %v2149_v53  ;;  %v2286_v61 = vpop.f32.mrf.mxu0  ;;  %v2414_v39 = vrot.slane %v2390_v10, 2  ;;  %v5081_v53 = vld [vmem:[#allocation9_spill] sm:$0xff] }
 0x1b6   : > { %v2379_v38 = vadd.f32 %v2286_v61, %v2093_v22  ;;  %v2334_v37 = vpop.f32.mrf.mxu1  ;;  %v2405_v48 = vrot.slane %v2381_v36, 2 }
 0x1b7   : > { %v2391_v58 = vadd.f32 %v2334_v37, %v2141_v27  ;;  %v3690_v8 = vpop.f32.mrf.mxu0  ;;  %v2417_v47 = vrot.slane %v4838_v23, 2 }
 0x1b8   : > { %v2403_v54 = vrot.slane %v2379_v38, 2  ;;  %v2384_v14 = vadd.f32 %v3690_v8, %v2114_v18  ;;  %v3702_v4 = vpop.f32.mrf.mxu1 }
 0x1b9   : > { %v2415_v6 = vrot.slane %v2391_v58, 2  ;;  %v2396_v59 = vadd.f32 %v3702_v4, %v2162_v33  ;;  %v2299_v22 = vpop.f32.mrf.mxu0  ;;  %v5083_v58 = vld [vmem:[#allocation3_spill] sm:$0xff]  ;;  %v5084_v4 = vld [vmem:[#allocation17_spill] sm:$0xff] }
 0x1ba   : > { %v2441_v26 = vsel %vm2426_vm1, %v2403_v54, %v2404_v2  ;;  %v2442_v9 = vsel %vm2426_vm1, %v2402_v42, %v2403_v54  ;;  %v2408_v60 = vrot.slane %v2384_v14, 2  ;;  %v4864_v18 = vadd.f32 %v2299_v22, %v2106_v7  ;;  %v2347_v15 = vpop.f32.mrf.mxu1 }
 0x1bb   : > { %v2443_v11 = vadd.f32 %v2442_v9, %v4561_v20  ;;  %v2444_v41 = vadd.f32 %v2441_v26, %v5080_v40  ;;  %v2433_v62 = vsel %vm2426_vm1, %v2415_v6, %v2416_v55  ;;  %v2434_v29 = vsel %vm2426_vm1, %v2414_v39, %v2415_v6  ;;  %v3691_v57 = vpop.f32.mrf.mxu0 }
 0x1bc   : > { %v2451_v7 = vadd.f32 %v2434_v29, %v5081_v53  ;;  %v2452_v46 = vadd.f32 %v2433_v62, %v5082_v19  ;;  %v2420_v56 = vrot.slane %v2396_v59, 2  ;;  %v2406_v20 = vrot.slane %v4864_v18, 2  ;;  %v3703_v27 = vpop.f32.mrf.mxu1  ;;  %v5089_v29 = vld [vmem:[#allocation11_spill] sm:$0xff] }
 0x1bd   : > { %v2466_v63 = vmul.f32 %v4862_v52, %v2443_v11  ;;  %v2467_v10 = vmul.f32 %v4862_v52, %v2444_v41  ;;  %v4882_v30 = vadd.f32 %v2347_v15, %v2154_v34  ;;  %v4885_v33 = vadd.f32 %v3691_v57, %v4805_v3  ;;  %v2302_v36 = vpop.f32.mrf.mxu0 }
 0x1be   : > { %v2474_v23 = vmul.f32 %v4862_v52, %v2451_v7  ;;  %v2475_v61 = vmul.f32 %v4862_v52, %v2452_v46  ;;  %v2440_v38 = vsel %vm2426_vm1, %v2405_v48, %v2406_v20  ;;  %v4893_v37 = vadd.f32 %v3703_v27, %v2165_v45  ;;  %v2350_v2 = vpop.f32.mrf.mxu1 }
 0x1bf   : > { %v2489_v55 = vadd.f32 %v4875_v16, %v2466_v63  ;;  %v2490_v34 = vadd.f32 %v4875_v16, %v2467_v10  ;;  %v2445_v3 = vadd.f32 %v2440_v38, %v5083_v58  ;;  %v2418_v8 = vrot.slane %v4882_v30, 2  ;;  %v3694_v42 = vpop.f32.mrf.mxu0 }
 0x1c0   : > { %v2497_v39 = vadd.f32 %v4875_v16, %v2474_v23  ;;  %v2498_v54 = vadd.f32 %v4875_v16, %v2475_v61  ;;  %v2409_v14 = vrot.slane %v4885_v33, 2  ;;  %v2421_v45 = vrot.slane %v4893_v37, 2  ;;  %v3706_v15 = vpop.f32.mrf.mxu1 }
 0x1c1   : > { %v5085_v48 = vunpack.c.l.bf16 %v5084_v4  ;;  %v5086_v59 = vunpack.c.h.bf16 %v5084_v4  ;;  %v2468_v26 = vmul.f32 %v4862_v52, %v2445_v3  ;;  %v2432_v9 = vsel %vm2426_vm1, %v2417_v47, %v2418_v8  ;;  %v2315_v7 = vpop.f32.mrf.mxu0  ;;  %v5090_v47 = vld [vmem:[#allocation4_spill] sm:$0xff] }
 0x1c2   : > { %v5087_v11 = vunpack.c.l.bf16 %v4751_v1  ;;  %v5088_v41 = vunpack.c.h.bf16 %v4751_v1  ;;  %v2453_v57 = vadd.f32 %v2432_v9, %v5089_v29  ;;  %v2438_v53 = vsel %vm2426_vm1, %v2408_v60, %v2409_v14  ;;  %v2363_v3 = vpop.f32.mrf.mxu1 }
 0x1c3   : > { %v2537_v6 = vadd.f32 %v5085_v48, %v2489_v55  ;;  %v2538_v22 = vadd.f32 %v5086_v59, %v2490_v34  ;;  %v2491_v27 = vadd.f32 %v4875_v16, %v2468_v26  ;;  %v2447_v63 = vadd.f32 %v2438_v53, %v5090_v47  ;;  %v5092_v34 = vld [vmem:[#allocation12_spill] sm:$0xff] }
 0x1c4   : > { %v2545_v40 = vadd.f32 %v5087_v11, %v2497_v39  ;;  %v2546_v62 = vadd.f32 %v5088_v41, %v2498_v54  ;;  %v2476_v30 = vmul.f32 %v4862_v52, %v2453_v57  ;;  %v2430_v60 = vsel %vm2426_vm1, %v2420_v56, %v2421_v45  ;;  %v5093_v56 = vld [vmem:[#allocation19_spill] sm:$0xff]  ;;  %v5094_v59 = vld [vmem:[#allocation20_spill] sm:$0xff]  ;;  %v3707_v53 = vpop.f32.mrf.mxu1 }
 0x1c5   : > { %v2553_v19 = vmax.f32 %v2537_v6, 0.0  ;;  %v2554_v46 = vmax.f32 %v2538_v22, 0.0  ;;  %v5091_v61 = vunpack.c.l.bf16 %v4755_v50  ;;  %v2470_v55 = vmul.f32 %v4862_v52, %v2447_v63  ;;  %v3695_v6 = vpop.f32.mrf.mxu0  ;;  %v5099_v63 = vld [vmem:[#allocation13_spill] sm:$0xff] }
 0x1c6   : > { %v2561_v1 = vmax.f32 %v2545_v40, 0.0  ;;  %v2562_v10 = vmax.f32 %v2546_v62, 0.0  ;;  %v2455_v58 = vadd.f32 %v2430_v60, %v5092_v34  ;;  %v2499_v54 = vadd.f32 %v4875_v16, %v2476_v30 }
 0x1c7   : > { %v3115_v23 = vpack.c.bf16 %v2554_v46, %v2553_v19  ;;  %v4935_v38 = vadd.f32 %v5091_v61, %v2491_v27  ;;  %v2383_v4 = vadd.f32 %v2302_v36, %v4810_v28  ;;  %v2395_v48 = vadd.f32 %v2350_v2, %v4844_v0  ;;  %v5096_v19 = vld [vmem:[#allocation18_spill] sm:$0xff]  ;;  %v5098_v27 = vld [vmem:[#allocation5_spill] sm:$0xff] }
 0x1c8   : > { %v3135_v39 = vpack.c.bf16 %v2562_v10, %v2561_v1  ;;  %v2181_v22 = vadd.f32 %v5094_v59, %v5093_v56  ;;  %v2493_v26 = vadd.f32 %v4875_v16, %v2470_v55  ;;  %v2478_v9 = vmul.f32 %v4862_v52, %v2455_v58 }
 0x1c9   : > { %3116 = vst [vmem:[%s4926_s19] sm:$0xff] %v3115_v23   ;;  %v2388_v11 = vadd.f32 %v3694_v42, %v4814_v21  ;;  %v5095_v40 = vunpack.c.l.bf16 %v4757_v5  ;;  %v2407_v62 = vrot.slane %v2383_v4, 2  ;;  %v2419_v29 = vrot.slane %v2395_v48, 2 }
 0x1ca   : > { %3164 = vst [vmem:[%s4926_s19 + $0x20] sm:$0xff] %v3135_v39   ;;  %v2400_v28 = vadd.f32 %v3706_v15, %v4848_v32  ;;  %v2173_v0 = vadd.f32 %v4780_v44, %v4774_v35  ;;  %v2555_v36 = vmax.f32 %v4935_v38, 0.0  ;;  %v2501_v2 = vadd.f32 %v4875_v16, %v2478_v9  ;;  %v2318_v35 = vpop.f32.mrf.mxu0  ;;  %v2366_v38 = vpop.f32.mrf.mxu1  ;;  %v5101_v39 = vld [vmem:[#allocation6_spill] sm:$0xff] }
 0x1cb   : > { %v2547_v41 = vadd.f32 %v5095_v40, %v2499_v54  ;;  %v2386_v57 = vadd.f32 %v2315_v7, %v4818_v43  ;;  %v5097_v21 = vunpack.c.l.bf16 %v5096_v19  ;;  %v2439_v46 = vsel %vm2426_vm1, %v2406_v20, %v2407_v62  ;;  %v5104_v9 = vld [vmem:[#allocation14_spill] sm:$0xff] }
 0x1cc   : > { %v2431_v32 = vsel %vm2426_vm1, %v2418_v8, %v2419_v29  ;;  %v2412_v44 = vrot.slane %v2388_v11, 2  ;;  %v2446_v47 = vadd.f32 %v2439_v46, %v5098_v27  ;;  %v2424_v7 = vrot.slane %v2400_v28, 2  ;;  %v5105_v11 = vld [vmem:[#allocation7_spill] sm:$0xff] }
 0x1cd   : > { %v4959_v42 = vadd.f32 %v5097_v21, %v2493_v26  ;;  %v2563_v15 = vmax.f32 %v2547_v41, 0.0  ;;  %v2454_v43 = vadd.f32 %v2431_v32, %v5099_v63  ;;  %v2410_v1 = vrot.slane %v2386_v57, 2 }
 0x1ce   : > { %v2398_v10 = vadd.f32 %v2363_v3, %v4852_v49  ;;  %v2389_v30 = vadd.f32 %v3695_v6, %v4824_v17  ;;  %v2401_v18 = vadd.f32 %v3707_v53, %v2181_v22  ;;  %v5100_v60 = vunpack.c.l.bf16 %v4763_v51  ;;  %v5107_v53 = vld [vmem:[#allocation8_spill] sm:$0xff] }
 0x1cf   : > { %v2469_v23 = vmul.f32 %v4862_v52, %v2446_v47  ;;  %v2477_v8 = vmul.f32 %v4862_v52, %v2454_v43  ;;  %v2387_v61 = vadd.f32 %v2318_v35, %v4830_v24  ;;  %v2437_v55 = vsel %vm2426_vm1, %v2409_v14, %v2410_v1 }
 0x1d0   : > { %v2549_v20 = vadd.f32 %v5100_v60, %v2501_v2  ;;  %v2422_v34 = vrot.slane %v2398_v10, 2  ;;  %v2413_v49 = vrot.slane %v2389_v30, 2  ;;  %v2425_v58 = vrot.slane %v2401_v18, 2  ;;  %v5109_v10 = vld [vmem:[#allocation16_spill] sm:$0xff] }
 0x1d1   : > { %v2492_v17 = vadd.f32 %v4875_v16, %v2469_v23  ;;  %v2500_v3 = vadd.f32 %v4875_v16, %v2477_v8  ;;  %v2448_v54 = vadd.f32 %v2437_v55, %v5101_v39  ;;  %v2411_v4 = vrot.slane %v2387_v61, 2 }
 0x1d2   : > { %v2429_v24 = vsel %vm2426_vm1, %v2421_v45, %v2422_v34  ;;  %v2435_v33 = vsel %vm2426_vm1, %v2412_v44, %v2413_v49  ;;  %v2427_v14 = vsel %vm2426_vm1, %v2424_v7, %v2425_v58  ;;  %v2399_v48 = vadd.f32 %v2366_v38, %v2173_v0  ;;  %v5106_v45 = vld [vmem:[#allocation15_spill] sm:$0xff] }
 0x1d3   : > { %v5102_v6 = vunpack.c.h.bf16 %v4755_v50  ;;  %v5103_v59 = vunpack.c.h.bf16 %v4757_v5  ;;  %v2471_v26 = vmul.f32 %v4862_v52, %v2448_v54  ;;  %v2456_v37 = vadd.f32 %v2429_v24, %v5104_v9 }
 0x1d4   : > { %v2450_v40 = vadd.f32 %v2435_v33, %v5105_v11  ;;  %v2458_v41 = vadd.f32 %v2427_v14, %v5106_v45  ;;  %v2436_v62 = vsel %vm2426_vm1, %v2411_v4, %v2412_v44  ;;  %v2423_v29 = vrot.slane %v2399_v48, 2 }
 0x1d5   : > { %v2540_v56 = vadd.f32 %v5102_v6, %v2492_v17  ;;  %v2548_v22 = vadd.f32 %v5103_v59, %v2500_v3  ;;  %v2494_v50 = vadd.f32 %v4875_v16, %v2471_v26  ;;  %v2479_v5 = vmul.f32 %v4862_v52, %v2456_v37 }
 0x1d6   : > { %v2473_v2 = vmul.f32 %v4862_v52, %v2450_v40  ;;  %v2481_v57 = vmul.f32 %v4862_v52, %v2458_v41  ;;  %v2449_v21 = vadd.f32 %v2436_v62, %v5107_v53  ;;  %v2428_v46 = vsel %vm2426_vm1, %v2423_v29, %v2424_v7 }
 0x1d7   : > { %v2556_v28 = vmax.f32 %v2540_v56, 0.0  ;;  %v2564_v0 = vmax.f32 %v2548_v22, 0.0  ;;  %v5108_v35 = vunpack.c.h.bf16 %v5096_v19  ;;  %v2502_v47 = vadd.f32 %v4875_v16, %v2479_v5 }
 0x1d8   : > { %v2496_v63 = vadd.f32 %v4875_v16, %v2473_v2  ;;  %v2504_v43 = vadd.f32 %v4875_v16, %v2481_v57  ;;  %v2472_v1 = vmul.f32 %v4862_v52, %v2449_v21  ;;  %v2457_v30 = vadd.f32 %v2428_v46, %v5109_v10 }
 0x1d9   : > { %v3120_v32 = vpack.c.bf16 %v2556_v28, %v2555_v36  ;;  %v3140_v44 = vpack.c.bf16 %v2564_v0, %v2563_v15  ;;  %v2542_v27 = vadd.f32 %v5108_v35, %v2494_v50  ;;  %v2557_v18 = vmax.f32 %v4959_v42, 0.0 }
 0x1da   : > { %v2550_v36 = vadd.f32 %v3107_v13, %v2502_v47  ;;  %v5110_v19 = vunpack.c.h.bf16 %v4770_v12  ;;  %v2495_v7 = vadd.f32 %v4875_v16, %v2472_v1  ;;  %v2480_v60 = vmul.f32 %v4862_v52, %v2457_v30 }
 0x1db   : > { %3161 = vst [vmem:[%s4926_s19 + $0x8] sm:$0xff] %v3120_v32   ;;  %3165 = vst [vmem:[%s4926_s19 + $0x28] sm:$0xff] %v3140_v44   ;;  %v2558_v31 = vmax.f32 %v2542_v27, 0.0  ;;  %v3110_v23 = vunpack.c.l.bf16 %v4772_v25  ;;  %v2565_v8 = vmax.f32 %v2549_v20, 0.0  ;;  %v5111_v38 = vunpack.c.h.bf16 %v4772_v25 }
 0x1dc   : > { %v2544_v15 = vadd.f32 %v5110_v19, %v2496_v63  ;;  %v2566_v42 = vmax.f32 %v2550_v36, 0.0  ;;  %v5112_v13 = vunpack.c.l.bf16 %v4770_v12  ;;  %v2503_v34 = vadd.f32 %v4875_v16, %v2480_v60 }
 0x1dd   : > { %v3125_v61 = vpack.c.bf16 %v2558_v31, %v2557_v18  ;;  %v2552_v55 = vadd.f32 %v5111_v38, %v2504_v43 }
 0x1de   : > { %v2543_v51 = vadd.f32 %v5112_v13, %v2495_v7  ;;  %v3145_v49 = vpack.c.bf16 %v2566_v42, %v2565_v8  ;;  %v2560_v58 = vmax.f32 %v2544_v15, 0.0  ;;  %v2551_v52 = vadd.f32 %v3110_v23, %v2503_v34 }
 0x1df   : > { %3162 = vst [vmem:[%s4926_s19 + $0x10] sm:$0xff] %v3125_v61   ;;  %v2568_v3 = vmax.f32 %v2552_v55, 0.0 }
 0x1e0   : > { %v2559_v17 = vmax.f32 %v2543_v51, 0.0  ;;  %3166 = vst [vmem:[%s4926_s19 + $0x30] sm:$0xff] %v3145_v49   ;;  %v2567_v20 = vmax.f32 %v2551_v52, 0.0 }
 0x1e2   : > { %v3130_v39 = vpack.c.bf16 %v2560_v58, %v2559_v17  ;;  %v3150_v54 = vpack.c.bf16 %v2568_v3, %v2567_v20 }
 0x1e4   : > { %3163 = vst [vmem:[%s4926_s19 + $0x18] sm:$0xff] %v3130_v39   ;;  %3167 = vst [vmem:[%s4926_s19 + $0x38] sm:$0xff] %v3150_v54  }
 0x1e5 PF: > { %s16_s25 = sadd.s32 1, %s3903_s25   ;;  %s5113_s21 = smov %s3895_s23 }
 0x1e6   : > { %p13_p9 = scmp.ge.s32.totalorder %s16_s25, 6   ;;  %s5114_s22 = smov %s3899_s24 }
 0x1e7   : > { %s5115_s23 = smov %s5118_s26  ;;  %s5116_s24 = smov %s5122_s27 }
 0x1e8   :  { %15 = sbr.rel (!%p13_p9) target bundleno = 3 (0x3), region = 88 }

</bundles_post_ra>
